<compile_context>
chip_gen: v7x
topology: tpu7x:2x2x1
jax: 0.10.0
libtpu: 0.0.40
codegen_flags: <defaults>
</compile_context>

<pallas_src>
import functools

import jax
import jax.numpy as jnp
import numpy as np
from jax import lax
from jax.experimental import pallas as pl
from jax.experimental.pallas import tpu as pltpu


def _round_up(x, m):
    return ((x + m - 1) // m) * m


def _res_attention_kernel(mask_ref, xpf_ref, w1_ref, b1_ref, w2_ref, b2_ref,
                          o_ref, xb_ref, hb_ref, *,
                          H, W, Wp, C, shift, res_scale, neg_slope):
    """Fused Res_Attention block for ONE image (one grid step).

    mask_ref : (M, 1)       f32   1.0 where (flat row % Wp) < W, else 0.0
    xpf_ref  : (1, Lp, C)   f32   SAME-padded input, flattened row-major
    w*_ref   : (9, C, C)    bf16  per-tap (cin, cout) weights, t = kh*3 + kw
    b*_ref   : (1, C)       f32
    o_ref    : (1, H*W, C)  f32   dense output rows
    xb_ref   : (Lp, C)      bf16  staged conv1 operand (cast once)
    hb_ref   : (Lp2, C)     bf16  zero-halo'd intermediate (conv2 operand)
    """
    M = H * Wp                     # rows computed per conv (W valid cols / row)
    head = shift + Wp + 1          # first interior row of hb; multiple of 16

    def lrelu(v):
        return jnp.where(v >= 0.0, v, neg_slope * v)

    def conv3x3(src_ref, base, w_ref, b_ref):
        # 9 tap-wise (M, C) x (C, C) MXU matmuls accumulated in f32.
        # Every tap is a CONTIGUOUS flat slice (no window compaction).
        acc = None
        for kh in range(3):
            for kw in range(3):
                off = base + kh * Wp + kw
                lhs = src_ref[off:off + M, :]                       # (M, C) bf16
                p = jnp.dot(lhs, w_ref[kh * 3 + kw],
                            preferred_element_type=jnp.float32)     # MXU, f32 acc
                acc = p if acc is None else acc + p
        return acc + b_ref[...].astype(jnp.float32)                 # (M, C) f32

    # ---- stage the conv1 operand once as bf16 (single cast pass) -------------
    xb_ref[...] = xpf_ref[0].astype(jnp.bfloat16)

    # ---- conv1 + LeakyReLU; zero every non-interior column so the halo ring
    #      of the intermediate is exact zeros ----------------------------------
    h = lrelu(conv3x3(xb_ref, 0, w1_ref, b1_ref)) * mask_ref[...]   # (M, C) f32

    # ---- zero-halo'd intermediate in bf16 VMEM (no HBM round trip).
    #      Only two aligned stores: the head ring and one interior+tail slab.
    #      Re-done every grid step (per-core scratch under 'parallel'). --------
    total = hb_ref.shape[0]
    hb_ref[0:head, :] = jnp.zeros((head, C), jnp.bfloat16)
    pad_rows = total - head - M
    slab = h.astype(jnp.bfloat16)
    if pad_rows > 0:
        slab = jnp.concatenate(
            [slab, jnp.zeros((pad_rows, C), jnp.bfloat16)], axis=0)
    hb_ref[head:total, :] = slab

    # ---- conv2 + LeakyReLU + exact-f32 residual (contiguous interior read) ---
    out = lrelu(conv3x3(hb_ref, shift, w2_ref, b2_ref))             # (M, C) f32
    out = out * res_scale + xpf_ref[0, Wp + 1:Wp + 1 + M, :]
    out = out.astype(o_ref.dtype)

    # ---- compact away the Wp - W pad columns per row; store dense rows -------
    # Aligned f32 value slices (Wp is a multiple of 8) + dense row-block stores.
    # TODO(synk): replace with a single reshaped store for very large H.
    for r in range(H):
        o_ref[0, r * W:(r + 1) * W, :] = out[r * Wp:r * Wp + W, :]


def res_attention_fused(x_nhwc, w1, b1, w2, b2, *, res_scale=1.0, neg_slope=0.2):
    """x_nhwc: (N,H,W,C) f32.  w: (3,3,C,C) HWIO.  b: (C,).  Returns (N,H,W,C)."""
    N, H, W, C = x_nhwc.shape
    Wp = _round_up(W + 2, 8)                 # padded width, sublane-aligned
    flat = (H + 2) * Wp
    Lp = _round_up(flat + 2, 8)              # +2: last (kh=2,kw=2) tap over-read
    M = H * Wp
    head = _round_up(Wp + 1, 16)             # aligned start of hb interior
    shift = head - (Wp + 1)
    Lp2 = _round_up(shift + flat + 2, 16)    # bf16 intermediate scratch rows
    assert head % 16 == 0 and Lp2 >= head + M

    # SAME halo pad, done ONCE (no channel padding -> no inflated HBM array).
    x = x_nhwc.astype(jnp.float32)
    xp = jnp.pad(x, ((0, 0), (1, 1), (1, Wp - W - 1), (0, 0)))
    xp = xp.reshape(N, flat, C)
    xp = jnp.pad(xp, ((0, 0), (0, Lp - flat), (0, 0)))

    # f32 {0,1} column-validity mask for the M computed rows.
    col = np.arange(M, dtype=np.int64) % Wp
    mask = jnp.asarray((col < W).astype(np.float32)).reshape(M, 1)

    # Per-tap weights (t = kh*3 + kw) in bf16; biases in f32.
    wq1 = w1.astype(jnp.bfloat16).reshape(9, C, C)
    wq2 = w2.astype(jnp.bfloat16).reshape(9, C, C)
    bq1 = jnp.asarray(b1, jnp.float32).reshape(1, C)
    bq2 = jnp.asarray(b2, jnp.float32).reshape(1, C)

    kernel = functools.partial(
        _res_attention_kernel, H=H, W=W, Wp=Wp, C=C, shift=shift,
        res_scale=float(res_scale), neg_slope=float(neg_slope))

    # VMEM budget derived from the actual (lane-padded) per-step blocks.
    lanes = _round_up(C, 128)
    est_bytes = (
        2 * Lp * lanes * 4            # double-buffered input block (f32)
        + 2 * H * W * lanes * 4       # double-buffered output block (f32)
        + 2 * M * 128 * 4             # column-validity mask
        + 4 * 9 * _round_up(C, 16) * lanes * 2   # both weight blocks, buffered
        + 4 * 8 * lanes * 4           # biases
        + (Lp + Lp2) * lanes * 2      # bf16 scratches
        + 4 * M * lanes * 4           # headroom for spilled (M, C) f32 temps
    )
    vmem_limit = int(min(max(2 * est_bytes, 8 * 2 ** 20), 64 * 2 ** 20))

    out = pl.pallas_call(
        kernel,
        out_shape=jax.ShapeDtypeStruct((N, H * W, C), jnp.float32),
        grid=(N,),
        in_specs=[
            pl.BlockSpec((M, 1), lambda n: (0, 0)),           # column mask
            pl.BlockSpec((1, Lp, C), lambda n: (n, 0, 0)),    # flat padded input
            pl.BlockSpec((9, C, C), lambda n: (0, 0, 0)),     # w1 (per-tap)
            pl.BlockSpec((1, C), lambda n: (0, 0)),           # b1
            pl.BlockSpec((9, C, C), lambda n: (0, 0, 0)),     # w2 (per-tap)
            pl.BlockSpec((1, C), lambda n: (0, 0)),           # b2
        ],
        out_specs=pl.BlockSpec((1, H * W, C), lambda n: (n, 0, 0)),
        scratch_shapes=[
            pltpu.VMEM((Lp, C), jnp.bfloat16),                # staged conv1 input
            pltpu.VMEM((Lp2, C), jnp.bfloat16),               # zero-halo'd interm.
        ],
        compiler_params=pltpu.CompilerParams(
            dimension_semantics=("parallel",),                # one image per core
            vmem_limit_bytes=vmem_limit,
        ),
    )(mask, xp, wq1, bq1, wq2, bq2)

    return out.reshape(N, H, W, C)            # free reshape (contiguous split)


def res_attention_forward(x_nchw, params, res_scale=1.0):
    """Equivalent of Res_Attention.forward (NCHW in/out, like PyTorch)."""
    x = jnp.transpose(x_nchw, (0, 2, 3, 1))               # NCHW -> NHWC (interface)
    y = res_attention_fused(x, params["w1"], params["b1"],
                            params["w2"], params["b2"], res_scale=res_scale)
    return jnp.transpose(y, (0, 3, 1, 2))                  # -> NCHW


def init_params(key, n_feats):
    """Deterministic synthetic weights (HWIO) matching conv3x3 shapes."""
    k1, k2, k3, k4 = jax.random.split(key, 4)
    return {
        "w1": 0.1 * jax.random.normal(k1, (3, 3, n_feats, n_feats), jnp.float32),
        "b1": 0.1 * jax.random.normal(k2, (n_feats,), jnp.float32),
        "w2": 0.1 * jax.random.normal(k3, (3, 3, n_feats, n_feats), jnp.float32),
        "b2": 0.1 * jax.random.normal(k4, (n_feats,), jnp.float32),
    }


# ---------------- pure-JAX references for verification ----------------
def _conv3x3_ref(x_nhwc, w_hwio, b, operand_dtype):
    y = lax.conv_general_dilated(
        x_nhwc.astype(operand_dtype), w_hwio.astype(operand_dtype),
        window_strides=(1, 1), padding="SAME",
        dimension_numbers=("NHWC", "HWIO", "NHWC"),
        preferred_element_type=jnp.float32)
    return y + b.astype(jnp.float32)


def res_attention_ref(x_nchw, params, res_scale=1.0, operand_dtype=jnp.float32):
    x = jnp.transpose(x_nchw, (0, 2, 3, 1)).astype(jnp.float32)
    lrelu = lambda v: jnp.where(v >= 0, v, 0.2 * v)
    h = lrelu(_conv3x3_ref(x, params["w1"], params["b1"], operand_dtype))
    h = lrelu(_conv3x3_ref(h, params["w2"], params["b2"], operand_dtype))
    out = h * res_scale + x
    return jnp.transpose(out, (0, 3, 1, 2))


if __name__ == "__main__":
    key = jax.random.PRNGKey(0)
    k_x, k_p = jax.random.split(key)

    N, C, H, W = 2, 8, 16, 16          # in_channels == out_channels == 8
    x = jax.random.normal(k_x, (N, C, H, W), jnp.float32)   # NCHW like PyTorch
    params = init_params(k_p, C)

    fwd = jax.jit(res_attention_forward)
    out = jax.block_until_ready(fwd(x, params))

    # Strict check vs a reference using the SAME bf16 matmul operands
    # (f32 accumulation) -- catches any structural / indexing bug.
    ref_bf16 = jax.block_until_ready(
        res_attention_ref(x, params, res_scale=1.0, operand_dtype=jnp.bfloat16))
    np.testing.assert_allclose(np.asarray(out), np.asarray(ref_bf16),
                               atol=5e-3, rtol=5e-3)

    # Sanity check vs the full-f32 PyTorch-equivalent reference; tolerance
    # reflects the deliberate bf16 operand cast on the MXU path.
    ref_f32 = jax.block_until_ready(
        res_attention_ref(x, params, res_scale=1.0, operand_dtype=jnp.float32))
    np.testing.assert_allclose(np.asarray(out), np.asarray(ref_f32),
                               atol=2e-2, rtol=2e-2)

    print("KERNEL_OK")
</pallas_src>

<mosaic_0001>
module attributes {stable_mosaic.version = 11 : i64} {
  func.func @_res_attention_kernel(%arg0: i32, %arg1: memref<384x1xf32, #tpu.memory_space<vmem>>, %arg2: memref<1x440x8xf32, #tpu.memory_space<vmem>>, %arg3: memref<9x8x8xbf16, #tpu.memory_space<vmem>>, %arg4: memref<1x8xf32, #tpu.memory_space<vmem>>, %arg5: memref<9x8x8xbf16, #tpu.memory_space<vmem>>, %arg6: memref<1x8xf32, #tpu.memory_space<vmem>>, %arg7: memref<1x256x8xf32, #tpu.memory_space<vmem>>, %arg8: memref<440x8xbf16, #tpu.memory_space<vmem>>, %arg9: memref<448x8xbf16, #tpu.memory_space<vmem>>) attributes {dimension_semantics = [#tpu.dimension_semantics<parallel>], iteration_bounds = array<i64: 2>, scalar_prefetch = 0 : i64, scratch_operands = 2 : i64, tpu.core_type = #tpu.core_type<tc>, window_params = [{pipeline_mode = #tpu.pipeline_mode<synchronous>, transform_indices = @transform_0, window_bounds = array<i64: 384, 1>}, {transform_indices = @transform_1, window_bounds = array<i64: 1, 440, 8>}, {pipeline_mode = #tpu.pipeline_mode<synchronous>, transform_indices = @transform_2, window_bounds = array<i64: 9, 8, 8>}, {pipeline_mode = #tpu.pipeline_mode<synchronous>, transform_indices = @transform_3, window_bounds = array<i64: 1, 8>}, {pipeline_mode = #tpu.pipeline_mode<synchronous>, transform_indices = @transform_4, window_bounds = array<i64: 9, 8, 8>}, {pipeline_mode = #tpu.pipeline_mode<synchronous>, transform_indices = @transform_5, window_bounds = array<i64: 1, 8>}, {transform_indices = @transform_6, window_bounds = array<i64: 1, 256, 8>}]} {
    %c0 = arith.constant 0 : index
    %c0_0 = arith.constant 0 : index
    %c0_1 = arith.constant 0 : index
    %0 = vector.load %arg2[%c0, %c0_0, %c0_1] : memref<1x440x8xf32, #tpu.memory_space<vmem>>, vector<1x440x8xf32>
    %1 = vector.shape_cast %0 : vector<1x440x8xf32> to vector<440x8xf32>
    %2 = arith.truncf %1 : vector<440x8xf32> to vector<440x8xbf16>
    %c0_2 = arith.constant 0 : index
    %c0_3 = arith.constant 0 : index
    %3 = vector.load %arg8[%c0_2, %c0_3] : memref<440x8xbf16, #tpu.memory_space<vmem>>, vector<440x8xbf16>
    tpu.vector_store %arg8[%c0_2, %c0_3], %2 {strides = array<i32>} : memref<440x8xbf16, #tpu.memory_space<vmem>>, vector<440x8xbf16>,
    %c0_4 = arith.constant 0 : index
    %c0_5 = arith.constant 0 : index
    %4 = vector.load %arg8[%c0_4, %c0_5] : memref<440x8xbf16, #tpu.memory_space<vmem>>, vector<384x8xbf16>
    %c0_6 = arith.constant 0 : index
    %c0_7 = arith.constant 0 : index
    %c0_8 = arith.constant 0 : index
    %5 = vector.load %arg3[%c0_6, %c0_7, %c0_8] : memref<9x8x8xbf16, #tpu.memory_space<vmem>>, vector<1x8x8xbf16>
    %6 = vector.shape_cast %5 : vector<1x8x8xbf16> to vector<8x8xbf16>
    %cst = arith.constant dense<0.000000e+00> : vector<384x8xf32>
    %7 = tpu.matmul %4, %6, %cst {dimension_numbers = #tpu.dot_dimension_numbers<[1], [0], [0], [1], [0, 0, 1, 1], [], []>} : vector<384x8xbf16>, vector<8x8xbf16>, vector<384x8xf32> -> vector<384x8xf32>
    %c1 = arith.constant 1 : index
    %c0_9 = arith.constant 0 : index
    %8 = vector.load %arg8[%c1, %c0_9] : memref<440x8xbf16, #tpu.memory_space<vmem>>, vector<384x8xbf16>
    %c1_10 = arith.constant 1 : index
    %c0_11 = arith.constant 0 : index
    %c0_12 = arith.constant 0 : index
    %9 = vector.load %arg3[%c1_10, %c0_11, %c0_12] : memref<9x8x8xbf16, #tpu.memory_space<vmem>>, vector<1x8x8xbf16>
    %10 = vector.shape_cast %9 : vector<1x8x8xbf16> to vector<8x8xbf16>
    %cst_13 = arith.constant dense<0.000000e+00> : vector<384x8xf32>
    %11 = tpu.matmul %8, %10, %cst_13 {dimension_numbers = #tpu.dot_dimension_numbers<[1], [0], [0], [1], [0, 0, 1, 1], [], []>} : vector<384x8xbf16>, vector<8x8xbf16>, vector<384x8xf32> -> vector<384x8xf32>
    %12 = arith.addf %7, %11 : vector<384x8xf32>
    %c2 = arith.constant 2 : index
    %c0_14 = arith.constant 0 : index
    %13 = vector.load %arg8[%c2, %c0_14] : memref<440x8xbf16, #tpu.memory_space<vmem>>, vector<384x8xbf16>
    %c2_15 = arith.constant 2 : index
    %c0_16 = arith.constant 0 : index
    %c0_17 = arith.constant 0 : index
    %14 = vector.load %arg3[%c2_15, %c0_16, %c0_17] : memref<9x8x8xbf16, #tpu.memory_space<vmem>>, vector<1x8x8xbf16>
    %15 = vector.shape_cast %14 : vector<1x8x8xbf16> to vector<8x8xbf16>
    %cst_18 = arith.constant dense<0.000000e+00> : vector<384x8xf32>
    %16 = tpu.matmul %13, %15, %cst_18 {dimension_numbers = #tpu.dot_dimension_numbers<[1], [0], [0], [1], [0, 0, 1, 1], [], []>} : vector<384x8xbf16>, vector<8x8xbf16>, vector<384x8xf32> -> vector<384x8xf32>
    %17 = arith.addf %12, %16 : vector<384x8xf32>
    %c24 = arith.constant 24 : index
    %c0_19 = arith.constant 0 : index
    %18 = vector.load %arg8[%c24, %c0_19] : memref<440x8xbf16, #tpu.memory_space<vmem>>, vector<384x8xbf16>
    %c3 = arith.constant 3 : index
    %c0_20 = arith.constant 0 : index
    %c0_21 = arith.constant 0 : index
    %19 = vector.load %arg3[%c3, %c0_20, %c0_21] : memref<9x8x8xbf16, #tpu.memory_space<vmem>>, vector<1x8x8xbf16>
    %20 = vector.shape_cast %19 : vector<1x8x8xbf16> to vector<8x8xbf16>
    %cst_22 = arith.constant dense<0.000000e+00> : vector<384x8xf32>
    %21 = tpu.matmul %18, %20, %cst_22 {dimension_numbers = #tpu.dot_dimension_numbers<[1], [0], [0], [1], [0, 0, 1, 1], [], []>} : vector<384x8xbf16>, vector<8x8xbf16>, vector<384x8xf32> -> vector<384x8xf32>
    %22 = arith.addf %17, %21 : vector<384x8xf32>
    %c25 = arith.constant 25 : index
    %c0_23 = arith.constant 0 : index
    %23 = vector.load %arg8[%c25, %c0_23] : memref<440x8xbf16, #tpu.memory_space<vmem>>, vector<384x8xbf16>
    %c4 = arith.constant 4 : index
    %c0_24 = arith.constant 0 : index
    %c0_25 = arith.constant 0 : index
    %24 = vector.load %arg3[%c4, %c0_24, %c0_25] : memref<9x8x8xbf16, #tpu.memory_space<vmem>>, vector<1x8x8xbf16>
    %25 = vector.shape_cast %24 : vector<1x8x8xbf16> to vector<8x8xbf16>
    %cst_26 = arith.constant dense<0.000000e+00> : vector<384x8xf32>
    %26 = tpu.matmul %23, %25, %cst_26 {dimension_numbers = #tpu.dot_dimension_numbers<[1], [0], [0], [1], [0, 0, 1, 1], [], []>} : vector<384x8xbf16>, vector<8x8xbf16>, vector<384x8xf32> -> vector<384x8xf32>
    %27 = arith.addf %22, %26 : vector<384x8xf32>
    %c26 = arith.constant 26 : index
    %c0_27 = arith.constant 0 : index
    %28 = vector.load %arg8[%c26, %c0_27] : memref<440x8xbf16, #tpu.memory_space<vmem>>, vector<384x8xbf16>
    %c5 = arith.constant 5 : index
    %c0_28 = arith.constant 0 : index
    %c0_29 = arith.constant 0 : index
    %29 = vector.load %arg3[%c5, %c0_28, %c0_29] : memref<9x8x8xbf16, #tpu.memory_space<vmem>>, vector<1x8x8xbf16>
    %30 = vector.shape_cast %29 : vector<1x8x8xbf16> to vector<8x8xbf16>
    %cst_30 = arith.constant dense<0.000000e+00> : vector<384x8xf32>
    %31 = tpu.matmul %28, %30, %cst_30 {dimension_numbers = #tpu.dot_dimension_numbers<[1], [0], [0], [1], [0, 0, 1, 1], [], []>} : vector<384x8xbf16>, vector<8x8xbf16>, vector<384x8xf32> -> vector<384x8xf32>
    %32 = arith.addf %27, %31 : vector<384x8xf32>
    %c48 = arith.constant 48 : index
    %c0_31 = arith.constant 0 : index
    %33 = vector.load %arg8[%c48, %c0_31] : memref<440x8xbf16, #tpu.memory_space<vmem>>, vector<384x8xbf16>
    %c6 = arith.constant 6 : index
    %c0_32 = arith.constant 0 : index
    %c0_33 = arith.constant 0 : index
    %34 = vector.load %arg3[%c6, %c0_32, %c0_33] : memref<9x8x8xbf16, #tpu.memory_space<vmem>>, vector<1x8x8xbf16>
    %35 = vector.shape_cast %34 : vector<1x8x8xbf16> to vector<8x8xbf16>
    %cst_34 = arith.constant dense<0.000000e+00> : vector<384x8xf32>
    %36 = tpu.matmul %33, %35, %cst_34 {dimension_numbers = #tpu.dot_dimension_numbers<[1], [0], [0], [1], [0, 0, 1, 1], [], []>} : vector<384x8xbf16>, vector<8x8xbf16>, vector<384x8xf32> -> vector<384x8xf32>
    %37 = arith.addf %32, %36 : vector<384x8xf32>
    %c49 = arith.constant 49 : index
    %c0_35 = arith.constant 0 : index
    %38 = vector.load %arg8[%c49, %c0_35] : memref<440x8xbf16, #tpu.memory_space<vmem>>, vector<384x8xbf16>
    %c7 = arith.constant 7 : index
    %c0_36 = arith.constant 0 : index
    %c0_37 = arith.constant 0 : index
    %39 = vector.load %arg3[%c7, %c0_36, %c0_37] : memref<9x8x8xbf16, #tpu.memory_space<vmem>>, vector<1x8x8xbf16>
    %40 = vector.shape_cast %39 : vector<1x8x8xbf16> to vector<8x8xbf16>
    %cst_38 = arith.constant dense<0.000000e+00> : vector<384x8xf32>
    %41 = tpu.matmul %38, %40, %cst_38 {dimension_numbers = #tpu.dot_dimension_numbers<[1], [0], [0], [1], [0, 0, 1, 1], [], []>} : vector<384x8xbf16>, vector<8x8xbf16>, vector<384x8xf32> -> vector<384x8xf32>
    %42 = arith.addf %37, %41 : vector<384x8xf32>
    %c50 = arith.constant 50 : index
    %c0_39 = arith.constant 0 : index
    %43 = vector.load %arg8[%c50, %c0_39] : memref<440x8xbf16, #tpu.memory_space<vmem>>, vector<384x8xbf16>
    %c8 = arith.constant 8 : index
    %c0_40 = arith.constant 0 : index
    %c0_41 = arith.constant 0 : index
    %44 = vector.load %arg3[%c8, %c0_40, %c0_41] : memref<9x8x8xbf16, #tpu.memory_space<vmem>>, vector<1x8x8xbf16>
    %45 = vector.shape_cast %44 : vector<1x8x8xbf16> to vector<8x8xbf16>
    %cst_42 = arith.constant dense<0.000000e+00> : vector<384x8xf32>
    %46 = tpu.matmul %43, %45, %cst_42 {dimension_numbers = #tpu.dot_dimension_numbers<[1], [0], [0], [1], [0, 0, 1, 1], [], []>} : vector<384x8xbf16>, vector<8x8xbf16>, vector<384x8xf32> -> vector<384x8xf32>
    %47 = arith.addf %42, %46 : vector<384x8xf32>
    %c0_43 = arith.constant 0 : index
    %c0_44 = arith.constant 0 : index
    %48 = vector.load %arg4[%c0_43, %c0_44] : memref<1x8xf32, #tpu.memory_space<vmem>>, vector<1x8xf32>
    %49 = vector.broadcast %48 : vector<1x8xf32> to vector<384x8xf32>
    %50 = arith.addf %47, %49 : vector<384x8xf32>
    %cst_45 = arith.constant 0.000000e+00 : f32
    %51 = vector.broadcast %cst_45 : f32 to vector<384x8xf32>
    %52 = arith.cmpf oge, %50, %51 : vector<384x8xf32>
    %cst_46 = arith.constant 2.000000e-01 : f32
    %53 = vector.broadcast %cst_46 : f32 to vector<384x8xf32>
    %54 = arith.mulf %53, %50 : vector<384x8xf32>
    %55 = arith.select %52, %50, %54 : vector<384x8xi1>, vector<384x8xf32>
    %c0_47 = arith.constant 0 : index
    %c0_48 = arith.constant 0 : index
    %56 = vector.load %arg1[%c0_47, %c0_48] : memref<384x1xf32, #tpu.memory_space<vmem>>, vector<384x1xf32>
    %57 = vector.broadcast %56 : vector<384x1xf32> to vector<384x8xf32>
    %58 = arith.mulf %55, %57 : vector<384x8xf32>
    %cst_49 = arith.constant 0.000000e+00 : bf16
    %59 = vector.broadcast %cst_49 : bf16 to vector<32x8xbf16>
    %c0_50 = arith.constant 0 : index
    %c0_51 = arith.constant 0 : index
    %60 = vector.load %arg9[%c0_50, %c0_51] : memref<448x8xbf16, #tpu.memory_space<vmem>>, vector<32x8xbf16>
    tpu.vector_store %arg9[%c0_50, %c0_51], %59 {strides = array<i32>} : memref<448x8xbf16, #tpu.memory_space<vmem>>, vector<32x8xbf16>,
    %61 = arith.truncf %58 : vector<384x8xf32> to vector<384x8xbf16>
    %cst_52 = arith.constant 0.000000e+00 : bf16
    %62 = vector.broadcast %cst_52 : bf16 to vector<32x8xbf16>
    %63 = tpu.concatenate %61, %62 in 0 : vector<384x8xbf16>, vector<32x8xbf16> -> vector<416x8xbf16>
    %c32 = arith.constant 32 : index
    %c0_53 = arith.constant 0 : index
    %64 = vector.load %arg9[%c32, %c0_53] : memref<448x8xbf16, #tpu.memory_space<vmem>>, vector<416x8xbf16>
    tpu.vector_store %arg9[%c32, %c0_53], %63 {strides = array<i32>} : memref<448x8xbf16, #tpu.memory_space<vmem>>, vector<416x8xbf16>,
    %c7_54 = arith.constant 7 : index
    %c0_55 = arith.constant 0 : index
    %65 = vector.load %arg9[%c7_54, %c0_55] : memref<448x8xbf16, #tpu.memory_space<vmem>>, vector<384x8xbf16>
    %c0_56 = arith.constant 0 : index
    %c0_57 = arith.constant 0 : index
    %c0_58 = arith.constant 0 : index
    %66 = vector.load %arg5[%c0_56, %c0_57, %c0_58] : memref<9x8x8xbf16, #tpu.memory_space<vmem>>, vector<1x8x8xbf16>
    %67 = vector.shape_cast %66 : vector<1x8x8xbf16> to vector<8x8xbf16>
    %cst_59 = arith.constant dense<0.000000e+00> : vector<384x8xf32>
    %68 = tpu.matmul %65, %67, %cst_59 {dimension_numbers = #tpu.dot_dimension_numbers<[1], [0], [0], [1], [0, 0, 1, 1], [], []>} : vector<384x8xbf16>, vector<8x8xbf16>, vector<384x8xf32> -> vector<384x8xf32>
    %c8_60 = arith.constant 8 : index
    %c0_61 = arith.constant 0 : index
    %69 = vector.load %arg9[%c8_60, %c0_61] : memref<448x8xbf16, #tpu.memory_space<vmem>>, vector<384x8xbf16>
    %c1_62 = arith.constant 1 : index
    %c0_63 = arith.constant 0 : index
    %c0_64 = arith.constant 0 : index
    %70 = vector.load %arg5[%c1_62, %c0_63, %c0_64] : memref<9x8x8xbf16, #tpu.memory_space<vmem>>, vector<1x8x8xbf16>
    %71 = vector.shape_cast %70 : vector<1x8x8xbf16> to vector<8x8xbf16>
    %cst_65 = arith.constant dense<0.000000e+00> : vector<384x8xf32>
    %72 = tpu.matmul %69, %71, %cst_65 {dimension_numbers = #tpu.dot_dimension_numbers<[1], [0], [0], [1], [0, 0, 1, 1], [], []>} : vector<384x8xbf16>, vector<8x8xbf16>, vector<384x8xf32> -> vector<384x8xf32>
    %73 = arith.addf %68, %72 : vector<384x8xf32>
    %c9 = arith.constant 9 : index
    %c0_66 = arith.constant 0 : index
    %74 = vector.load %arg9[%c9, %c0_66] : memref<448x8xbf16, #tpu.memory_space<vmem>>, vector<384x8xbf16>
    %c2_67 = arith.constant 2 : index
    %c0_68 = arith.constant 0 : index
    %c0_69 = arith.constant 0 : index
    %75 = vector.load %arg5[%c2_67, %c0_68, %c0_69] : memref<9x8x8xbf16, #tpu.memory_space<vmem>>, vector<1x8x8xbf16>
    %76 = vector.shape_cast %75 : vector<1x8x8xbf16> to vector<8x8xbf16>
    %cst_70 = arith.constant dense<0.000000e+00> : vector<384x8xf32>
    %77 = tpu.matmul %74, %76, %cst_70 {dimension_numbers = #tpu.dot_dimension_numbers<[1], [0], [0], [1], [0, 0, 1, 1], [], []>} : vector<384x8xbf16>, vector<8x8xbf16>, vector<384x8xf32> -> vector<384x8xf32>
    %78 = arith.addf %73, %77 : vector<384x8xf32>
    %c31 = arith.constant 31 : index
    %c0_71 = arith.constant 0 : index
    %79 = vector.load %arg9[%c31, %c0_71] : memref<448x8xbf16, #tpu.memory_space<vmem>>, vector<384x8xbf16>
    %c3_72 = arith.constant 3 : index
    %c0_73 = arith.constant 0 : index
    %c0_74 = arith.constant 0 : index
    %80 = vector.load %arg5[%c3_72, %c0_73, %c0_74] : memref<9x8x8xbf16, #tpu.memory_space<vmem>>, vector<1x8x8xbf16>
    %81 = vector.shape_cast %80 : vector<1x8x8xbf16> to vector<8x8xbf16>
    %cst_75 = arith.constant dense<0.000000e+00> : vector<384x8xf32>
    %82 = tpu.matmul %79, %81, %cst_75 {dimension_numbers = #tpu.dot_dimension_numbers<[1], [0], [0], [1], [0, 0, 1, 1], [], []>} : vector<384x8xbf16>, vector<8x8xbf16>, vector<384x8xf32> -> vector<384x8xf32>
    %83 = arith.addf %78, %82 : vector<384x8xf32>
    %c32_76 = arith.constant 32 : index
    %c0_77 = arith.constant 0 : index
    %84 = vector.load %arg9[%c32_76, %c0_77] : memref<448x8xbf16, #tpu.memory_space<vmem>>, vector<384x8xbf16>
    %c4_78 = arith.constant 4 : index
    %c0_79 = arith.constant 0 : index
    %c0_80 = arith.constant 0 : index
    %85 = vector.load %arg5[%c4_78, %c0_79, %c0_80] : memref<9x8x8xbf16, #tpu.memory_space<vmem>>, vector<1x8x8xbf16>
    %86 = vector.shape_cast %85 : vector<1x8x8xbf16> to vector<8x8xbf16>
    %cst_81 = arith.constant dense<0.000000e+00> : vector<384x8xf32>
    %87 = tpu.matmul %84, %86, %cst_81 {dimension_numbers = #tpu.dot_dimension_numbers<[1], [0], [0], [1], [0, 0, 1, 1], [], []>} : vector<384x8xbf16>, vector<8x8xbf16>, vector<384x8xf32> -> vector<384x8xf32>
    %88 = arith.addf %83, %87 : vector<384x8xf32>
    %c33 = arith.constant 33 : index
    %c0_82 = arith.constant 0 : index
    %89 = vector.load %arg9[%c33, %c0_82] : memref<448x8xbf16, #tpu.memory_space<vmem>>, vector<384x8xbf16>
    %c5_83 = arith.constant 5 : index
    %c0_84 = arith.constant 0 : index
    %c0_85 = arith.constant 0 : index
    %90 = vector.load %arg5[%c5_83, %c0_84, %c0_85] : memref<9x8x8xbf16, #tpu.memory_space<vmem>>, vector<1x8x8xbf16>
    %91 = vector.shape_cast %90 : vector<1x8x8xbf16> to vector<8x8xbf16>
    %cst_86 = arith.constant dense<0.000000e+00> : vector<384x8xf32>
    %92 = tpu.matmul %89, %91, %cst_86 {dimension_numbers = #tpu.dot_dimension_numbers<[1], [0], [0], [1], [0, 0, 1, 1], [], []>} : vector<384x8xbf16>, vector<8x8xbf16>, vector<384x8xf32> -> vector<384x8xf32>
    %93 = arith.addf %88, %92 : vector<384x8xf32>
    %c55 = arith.constant 55 : index
    %c0_87 = arith.constant 0 : index
    %94 = vector.load %arg9[%c55, %c0_87] : memref<448x8xbf16, #tpu.memory_space<vmem>>, vector<384x8xbf16>
    %c6_88 = arith.constant 6 : index
    %c0_89 = arith.constant 0 : index
    %c0_90 = arith.constant 0 : index
    %95 = vector.load %arg5[%c6_88, %c0_89, %c0_90] : memref<9x8x8xbf16, #tpu.memory_space<vmem>>, vector<1x8x8xbf16>
    %96 = vector.shape_cast %95 : vector<1x8x8xbf16> to vector<8x8xbf16>
    %cst_91 = arith.constant dense<0.000000e+00> : vector<384x8xf32>
    %97 = tpu.matmul %94, %96, %cst_91 {dimension_numbers = #tpu.dot_dimension_numbers<[1], [0], [0], [1], [0, 0, 1, 1], [], []>} : vector<384x8xbf16>, vector<8x8xbf16>, vector<384x8xf32> -> vector<384x8xf32>
    %98 = arith.addf %93, %97 : vector<384x8xf32>
    %c56 = arith.constant 56 : index
    %c0_92 = arith.constant 0 : index
    %99 = vector.load %arg9[%c56, %c0_92] : memref<448x8xbf16, #tpu.memory_space<vmem>>, vector<384x8xbf16>
    %c7_93 = arith.constant 7 : index
    %c0_94 = arith.constant 0 : index
    %c0_95 = arith.constant 0 : index
    %100 = vector.load %arg5[%c7_93, %c0_94, %c0_95] : memref<9x8x8xbf16, #tpu.memory_space<vmem>>, vector<1x8x8xbf16>
    %101 = vector.shape_cast %100 : vector<1x8x8xbf16> to vector<8x8xbf16>
    %cst_96 = arith.constant dense<0.000000e+00> : vector<384x8xf32>
    %102 = tpu.matmul %99, %101, %cst_96 {dimension_numbers = #tpu.dot_dimension_numbers<[1], [0], [0], [1], [0, 0, 1, 1], [], []>} : vector<384x8xbf16>, vector<8x8xbf16>, vector<384x8xf32> -> vector<384x8xf32>
    %103 = arith.addf %98, %102 : vector<384x8xf32>
    %c57 = arith.constant 57 : index
    %c0_97 = arith.constant 0 : index
    %104 = vector.load %arg9[%c57, %c0_97] : memref<448x8xbf16, #tpu.memory_space<vmem>>, vector<384x8xbf16>
    %c8_98 = arith.constant 8 : index
    %c0_99 = arith.constant 0 : index
    %c0_100 = arith.constant 0 : index
    %105 = vector.load %arg5[%c8_98, %c0_99, %c0_100] : memref<9x8x8xbf16, #tpu.memory_space<vmem>>, vector<1x8x8xbf16>
    %106 = vector.shape_cast %105 : vector<1x8x8xbf16> to vector<8x8xbf16>
    %cst_101 = arith.constant dense<0.000000e+00> : vector<384x8xf32>
    %107 = tpu.matmul %104, %106, %cst_101 {dimension_numbers = #tpu.dot_dimension_numbers<[1], [0], [0], [1], [0, 0, 1, 1], [], []>} : vector<384x8xbf16>, vector<8x8xbf16>, vector<384x8xf32> -> vector<384x8xf32>
    %108 = arith.addf %103, %107 : vector<384x8xf32>
    %c0_102 = arith.constant 0 : index
    %c0_103 = arith.constant 0 : index
    %109 = vector.load %arg6[%c0_102, %c0_103] : memref<1x8xf32, #tpu.memory_space<vmem>>, vector<1x8xf32>
    %110 = vector.broadcast %109 : vector<1x8xf32> to vector<384x8xf32>
    %111 = arith.addf %108, %110 : vector<384x8xf32>
    %cst_104 = arith.constant 0.000000e+00 : f32
    %112 = vector.broadcast %cst_104 : f32 to vector<384x8xf32>
    %113 = arith.cmpf oge, %111, %112 : vector<384x8xf32>
    %cst_105 = arith.constant 2.000000e-01 : f32
    %114 = vector.broadcast %cst_105 : f32 to vector<384x8xf32>
    %115 = arith.mulf %114, %111 : vector<384x8xf32>
    %116 = arith.select %113, %111, %115 : vector<384x8xi1>, vector<384x8xf32>
    %cst_106 = arith.constant 1.000000e+00 : f32
    %117 = vector.broadcast %cst_106 : f32 to vector<384x8xf32>
    %118 = arith.mulf %116, %117 : vector<384x8xf32>
    %c0_107 = arith.constant 0 : index
    %c25_108 = arith.constant 25 : index
    %c0_109 = arith.constant 0 : index
    %119 = vector.load %arg2[%c0_107, %c25_108, %c0_109] : memref<1x440x8xf32, #tpu.memory_space<vmem>>, vector<1x384x8xf32>
    %120 = vector.shape_cast %119 : vector<1x384x8xf32> to vector<384x8xf32>
    %121 = arith.addf %118, %120 : vector<384x8xf32>
    %122 = vector.extract_strided_slice %121 {offsets = [0, 0], sizes = [16, 8], strides = [1, 1]} : vector<384x8xf32> to vector<16x8xf32>
    %c0_110 = arith.constant 0 : index
    %c0_111 = arith.constant 0 : index
    %c0_112 = arith.constant 0 : index
    %123 = vector.load %arg7[%c0_110, %c0_111, %c0_112] : memref<1x256x8xf32, #tpu.memory_space<vmem>>, vector<1x16x8xf32>
    %124 = vector.shape_cast %123 : vector<1x16x8xf32> to vector<16x8xf32>
    %125 = vector.shape_cast %122 : vector<16x8xf32> to vector<1x16x8xf32>
    tpu.vector_store %arg7[%c0_110, %c0_111, %c0_112], %125 {strides = array<i32>} : memref<1x256x8xf32, #tpu.memory_space<vmem>>, vector<1x16x8xf32>,
    %126 = vector.extract_strided_slice %121 {offsets = [24, 0], sizes = [16, 8], strides = [1, 1]} : vector<384x8xf32> to vector<16x8xf32>
    %c0_113 = arith.constant 0 : index
    %c16 = arith.constant 16 : index
    %c0_114 = arith.constant 0 : index
    %127 = vector.load %arg7[%c0_113, %c16, %c0_114] : memref<1x256x8xf32, #tpu.memory_space<vmem>>, vector<1x16x8xf32>
    %128 = vector.shape_cast %127 : vector<1x16x8xf32> to vector<16x8xf32>
    %129 = vector.shape_cast %126 : vector<16x8xf32> to vector<1x16x8xf32>
    tpu.vector_store %arg7[%c0_113, %c16, %c0_114], %129 {strides = array<i32>} : memref<1x256x8xf32, #tpu.memory_space<vmem>>, vector<1x16x8xf32>,
    %130 = vector.extract_strided_slice %121 {offsets = [48, 0], sizes = [16, 8], strides = [1, 1]} : vector<384x8xf32> to vector<16x8xf32>
    %c0_115 = arith.constant 0 : index
    %c32_116 = arith.constant 32 : index
    %c0_117 = arith.constant 0 : index
    %131 = vector.load %arg7[%c0_115, %c32_116, %c0_117] : memref<1x256x8xf32, #tpu.memory_space<vmem>>, vector<1x16x8xf32>
    %132 = vector.shape_cast %131 : vector<1x16x8xf32> to vector<16x8xf32>
    %133 = vector.shape_cast %130 : vector<16x8xf32> to vector<1x16x8xf32>
    tpu.vector_store %arg7[%c0_115, %c32_116, %c0_117], %133 {strides = array<i32>} : memref<1x256x8xf32, #tpu.memory_space<vmem>>, vector<1x16x8xf32>,
    %134 = vector.extract_strided_slice %121 {offsets = [72, 0], sizes = [16, 8], strides = [1, 1]} : vector<384x8xf32> to vector<16x8xf32>
    %c0_118 = arith.constant 0 : index
    %c48_119 = arith.constant 48 : index
    %c0_120 = arith.constant 0 : index
    %135 = vector.load %arg7[%c0_118, %c48_119, %c0_120] : memref<1x256x8xf32, #tpu.memory_space<vmem>>, vector<1x16x8xf32>
    %136 = vector.shape_cast %135 : vector<1x16x8xf32> to vector<16x8xf32>
    %137 = vector.shape_cast %134 : vector<16x8xf32> to vector<1x16x8xf32>
    tpu.vector_store %arg7[%c0_118, %c48_119, %c0_120], %137 {strides = array<i32>} : memref<1x256x8xf32, #tpu.memory_space<vmem>>, vector<1x16x8xf32>,
    %138 = vector.extract_strided_slice %121 {offsets = [96, 0], sizes = [16, 8], strides = [1, 1]} : vector<384x8xf32> to vector<16x8xf32>
    %c0_121 = arith.constant 0 : index
    %c64 = arith.constant 64 : index
    %c0_122 = arith.constant 0 : index
    %139 = vector.load %arg7[%c0_121, %c64, %c0_122] : memref<1x256x8xf32, #tpu.memory_space<vmem>>, vector<1x16x8xf32>
    %140 = vector.shape_cast %139 : vector<1x16x8xf32> to vector<16x8xf32>
    %141 = vector.shape_cast %138 : vector<16x8xf32> to vector<1x16x8xf32>
    tpu.vector_store %arg7[%c0_121, %c64, %c0_122], %141 {strides = array<i32>} : memref<1x256x8xf32, #tpu.memory_space<vmem>>, vector<1x16x8xf32>,
    %142 = vector.extract_strided_slice %121 {offsets = [120, 0], sizes = [16, 8], strides = [1, 1]} : vector<384x8xf32> to vector<16x8xf32>
    %c0_123 = arith.constant 0 : index
    %c80 = arith.constant 80 : index
    %c0_124 = arith.constant 0 : index
    %143 = vector.load %arg7[%c0_123, %c80, %c0_124] : memref<1x256x8xf32, #tpu.memory_space<vmem>>, vector<1x16x8xf32>
    %144 = vector.shape_cast %143 : vector<1x16x8xf32> to vector<16x8xf32>
    %145 = vector.shape_cast %142 : vector<16x8xf32> to vector<1x16x8xf32>
    tpu.vector_store %arg7[%c0_123, %c80, %c0_124], %145 {strides = array<i32>} : memref<1x256x8xf32, #tpu.memory_space<vmem>>, vector<1x16x8xf32>,
    %146 = vector.extract_strided_slice %121 {offsets = [144, 0], sizes = [16, 8], strides = [1, 1]} : vector<384x8xf32> to vector<16x8xf32>
    %c0_125 = arith.constant 0 : index
    %c96 = arith.constant 96 : index
    %c0_126 = arith.constant 0 : index
    %147 = vector.load %arg7[%c0_125, %c96, %c0_126] : memref<1x256x8xf32, #tpu.memory_space<vmem>>, vector<1x16x8xf32>
    %148 = vector.shape_cast %147 : vector<1x16x8xf32> to vector<16x8xf32>
    %149 = vector.shape_cast %146 : vector<16x8xf32> to vector<1x16x8xf32>
    tpu.vector_store %arg7[%c0_125, %c96, %c0_126], %149 {strides = array<i32>} : memref<1x256x8xf32, #tpu.memory_space<vmem>>, vector<1x16x8xf32>,
    %150 = vector.extract_strided_slice %121 {offsets = [168, 0], sizes = [16, 8], strides = [1, 1]} : vector<384x8xf32> to vector<16x8xf32>
    %c0_127 = arith.constant 0 : index
    %c112 = arith.constant 112 : index
    %c0_128 = arith.constant 0 : index
    %151 = vector.load %arg7[%c0_127, %c112, %c0_128] : memref<1x256x8xf32, #tpu.memory_space<vmem>>, vector<1x16x8xf32>
    %152 = vector.shape_cast %151 : vector<1x16x8xf32> to vector<16x8xf32>
    %153 = vector.shape_cast %150 : vector<16x8xf32> to vector<1x16x8xf32>
    tpu.vector_store %arg7[%c0_127, %c112, %c0_128], %153 {strides = array<i32>} : memref<1x256x8xf32, #tpu.memory_space<vmem>>, vector<1x16x8xf32>,
    %154 = vector.extract_strided_slice %121 {offsets = [192, 0], sizes = [16, 8], strides = [1, 1]} : vector<384x8xf32> to vector<16x8xf32>
    %c0_129 = arith.constant 0 : index
    %c128 = arith.constant 128 : index
    %c0_130 = arith.constant 0 : index
    %155 = vector.load %arg7[%c0_129, %c128, %c0_130] : memref<1x256x8xf32, #tpu.memory_space<vmem>>, vector<1x16x8xf32>
    %156 = vector.shape_cast %155 : vector<1x16x8xf32> to vector<16x8xf32>
    %157 = vector.shape_cast %154 : vector<16x8xf32> to vector<1x16x8xf32>
    tpu.vector_store %arg7[%c0_129, %c128, %c0_130], %157 {strides = array<i32>} : memref<1x256x8xf32, #tpu.memory_space<vmem>>, vector<1x16x8xf32>,
    %158 = vector.extract_strided_slice %121 {offsets = [216, 0], sizes = [16, 8], strides = [1, 1]} : vector<384x8xf32> to vector<16x8xf32>
    %c0_131 = arith.constant 0 : index
    %c144 = arith.constant 144 : index
    %c0_132 = arith.constant 0 : index
    %159 = vector.load %arg7[%c0_131, %c144, %c0_132] : memref<1x256x8xf32, #tpu.memory_space<vmem>>, vector<1x16x8xf32>
    %160 = vector.shape_cast %159 : vector<1x16x8xf32> to vector<16x8xf32>
    %161 = vector.shape_cast %158 : vector<16x8xf32> to vector<1x16x8xf32>
    tpu.vector_store %arg7[%c0_131, %c144, %c0_132], %161 {strides = array<i32>} : memref<1x256x8xf32, #tpu.memory_space<vmem>>, vector<1x16x8xf32>,
    %162 = vector.extract_strided_slice %121 {offsets = [240, 0], sizes = [16, 8], strides = [1, 1]} : vector<384x8xf32> to vector<16x8xf32>
    %c0_133 = arith.constant 0 : index
    %c160 = arith.constant 160 : index
    %c0_134 = arith.constant 0 : index
    %163 = vector.load %arg7[%c0_133, %c160, %c0_134] : memref<1x256x8xf32, #tpu.memory_space<vmem>>, vector<1x16x8xf32>
    %164 = vector.shape_cast %163 : vector<1x16x8xf32> to vector<16x8xf32>
    %165 = vector.shape_cast %162 : vector<16x8xf32> to vector<1x16x8xf32>
    tpu.vector_store %arg7[%c0_133, %c160, %c0_134], %165 {strides = array<i32>} : memref<1x256x8xf32, #tpu.memory_space<vmem>>, vector<1x16x8xf32>,
    %166 = vector.extract_strided_slice %121 {offsets = [264, 0], sizes = [16, 8], strides = [1, 1]} : vector<384x8xf32> to vector<16x8xf32>
    %c0_135 = arith.constant 0 : index
    %c176 = arith.constant 176 : index
    %c0_136 = arith.constant 0 : index
    %167 = vector.load %arg7[%c0_135, %c176, %c0_136] : memref<1x256x8xf32, #tpu.memory_space<vmem>>, vector<1x16x8xf32>
    %168 = vector.shape_cast %167 : vector<1x16x8xf32> to vector<16x8xf32>
    %169 = vector.shape_cast %166 : vector<16x8xf32> to vector<1x16x8xf32>
    tpu.vector_store %arg7[%c0_135, %c176, %c0_136], %169 {strides = array<i32>} : memref<1x256x8xf32, #tpu.memory_space<vmem>>, vector<1x16x8xf32>,
    %170 = vector.extract_strided_slice %121 {offsets = [288, 0], sizes = [16, 8], strides = [1, 1]} : vector<384x8xf32> to vector<16x8xf32>
    %c0_137 = arith.constant 0 : index
    %c192 = arith.constant 192 : index
    %c0_138 = arith.constant 0 : index
    %171 = vector.load %arg7[%c0_137, %c192, %c0_138] : memref<1x256x8xf32, #tpu.memory_space<vmem>>, vector<1x16x8xf32>
    %172 = vector.shape_cast %171 : vector<1x16x8xf32> to vector<16x8xf32>
    %173 = vector.shape_cast %170 : vector<16x8xf32> to vector<1x16x8xf32>
    tpu.vector_store %arg7[%c0_137, %c192, %c0_138], %173 {strides = array<i32>} : memref<1x256x8xf32, #tpu.memory_space<vmem>>, vector<1x16x8xf32>,
    %174 = vector.extract_strided_slice %121 {offsets = [312, 0], sizes = [16, 8], strides = [1, 1]} : vector<384x8xf32> to vector<16x8xf32>
    %c0_139 = arith.constant 0 : index
    %c208 = arith.constant 208 : index
    %c0_140 = arith.constant 0 : index
    %175 = vector.load %arg7[%c0_139, %c208, %c0_140] : memref<1x256x8xf32, #tpu.memory_space<vmem>>, vector<1x16x8xf32>
    %176 = vector.shape_cast %175 : vector<1x16x8xf32> to vector<16x8xf32>
    %177 = vector.shape_cast %174 : vector<16x8xf32> to vector<1x16x8xf32>
    tpu.vector_store %arg7[%c0_139, %c208, %c0_140], %177 {strides = array<i32>} : memref<1x256x8xf32, #tpu.memory_space<vmem>>, vector<1x16x8xf32>,
    %178 = vector.extract_strided_slice %121 {offsets = [336, 0], sizes = [16, 8], strides = [1, 1]} : vector<384x8xf32> to vector<16x8xf32>
    %c0_141 = arith.constant 0 : index
    %c224 = arith.constant 224 : index
    %c0_142 = arith.constant 0 : index
    %179 = vector.load %arg7[%c0_141, %c224, %c0_142] : memref<1x256x8xf32, #tpu.memory_space<vmem>>, vector<1x16x8xf32>
    %180 = vector.shape_cast %179 : vector<1x16x8xf32> to vector<16x8xf32>
    %181 = vector.shape_cast %178 : vector<16x8xf32> to vector<1x16x8xf32>
    tpu.vector_store %arg7[%c0_141, %c224, %c0_142], %181 {strides = array<i32>} : memref<1x256x8xf32, #tpu.memory_space<vmem>>, vector<1x16x8xf32>,
    %182 = vector.extract_strided_slice %121 {offsets = [360, 0], sizes = [16, 8], strides = [1, 1]} : vector<384x8xf32> to vector<16x8xf32>
    %c0_143 = arith.constant 0 : index
    %c240 = arith.constant 240 : index
    %c0_144 = arith.constant 0 : index
    %183 = vector.load %arg7[%c0_143, %c240, %c0_144] : memref<1x256x8xf32, #tpu.memory_space<vmem>>, vector<1x16x8xf32>
    %184 = vector.shape_cast %183 : vector<1x16x8xf32> to vector<16x8xf32>
    %185 = vector.shape_cast %182 : vector<16x8xf32> to vector<1x16x8xf32>
    tpu.vector_store %arg7[%c0_143, %c240, %c0_144], %185 {strides = array<i32>} : memref<1x256x8xf32, #tpu.memory_space<vmem>>, vector<1x16x8xf32>,
    return
  }
  func.func @transform_0(%arg0: i32) -> (i32, i32) {
    %c0_i32 = arith.constant 0 : i32
    %c0_i32_0 = arith.constant 0 : i32
    %c0_i32_1 = arith.constant 0 : i32
    return %c0_i32, %c0_i32_0 : i32, i32
  }
  func.func @transform_1(%arg0: i32) -> (i32, i32, i32) {
    %c0_i32 = arith.constant 0 : i32
    %c0_i32_0 = arith.constant 0 : i32
    %c0_i32_1 = arith.constant 0 : i32
    return %arg0, %c0_i32, %c0_i32_0 : i32, i32, i32
  }
  func.func @transform_2(%arg0: i32) -> (i32, i32, i32) {
    %c0_i32 = arith.constant 0 : i32
    %c0_i32_0 = arith.constant 0 : i32
    %c0_i32_1 = arith.constant 0 : i32
    %c0_i32_2 = arith.constant 0 : i32
    return %c0_i32, %c0_i32_0, %c0_i32_1 : i32, i32, i32
  }
  func.func @transform_3(%arg0: i32) -> (i32, i32) {
    %c0_i32 = arith.constant 0 : i32
    %c0_i32_0 = arith.constant 0 : i32
    %c0_i32_1 = arith.constant 0 : i32
    return %c0_i32, %c0_i32_0 : i32, i32
  }
  func.func @transform_4(%arg0: i32) -> (i32, i32, i32) {
    %c0_i32 = arith.constant 0 : i32
    %c0_i32_0 = arith.constant 0 : i32
    %c0_i32_1 = arith.constant 0 : i32
    %c0_i32_2 = arith.constant 0 : i32
    return %c0_i32, %c0_i32_0, %c0_i32_1 : i32, i32, i32
  }
  func.func @transform_5(%arg0: i32) -> (i32, i32) {
    %c0_i32 = arith.constant 0 : i32
    %c0_i32_0 = arith.constant 0 : i32
    %c0_i32_1 = arith.constant 0 : i32
    return %c0_i32, %c0_i32_0 : i32, i32
  }
  func.func @transform_6(%arg0: i32) -> (i32, i32, i32) {
    %c0_i32 = arith.constant 0 : i32
    %c0_i32_0 = arith.constant 0 : i32
    %c0_i32_1 = arith.constant 0 : i32
    return %arg0, %c0_i32, %c0_i32_0 : i32, i32, i32
  }
}

</mosaic_0001>

<bundles_post_ra>
// kernel: res_attention_forward.1
= control target key start
LH: loop header
LB: loop body
LE: loop exit
PB: predicated region body
PF: predicated region fallthrough
CT: control target
= control target key end

     0   :  { %s12830_s21 = smov 0   ;;  %s16819_s0 = inlined_call_operand.vmem [shape: f32[384,1], index: 0, kind: input, shape index: {}]   ;;  %s16820_s1 = inlined_call_operand.vmem [shape: f32[2,440,8], index: 1, kind: input, shape index: {}]   ;;  %s16821_s2 = inlined_call_operand.vmem [shape: bf16[9,8,8], index: 2, kind: input, shape index: {}]   ;;  %s16822_s3 = inlined_call_operand.vmem [shape: f32[1,8], index: 3, kind: input, shape index: {}]   ;;  %s16823_s4 = inlined_call_operand.vmem [shape: bf16[9,8,8], index: 4, kind: input, shape index: {}]   ;;  %s16824_s5 = inlined_call_operand.vmem [shape: f32[1,8], index: 5, kind: input, shape index: {}]   ;;  %s16825_s6 = inlined_call_operand.vmem [shape: f32[2,256,8], index: 6, kind: output, shape index: {}]  }
   0x1 LB: > { %s10177_s22 = sadd.s32 4294967295, %s12792_s21   ;;  %p10181_p0 = scmp.ge.s32.totalorder %s12792_s21, 1  ;;  %s12792_s21 = sphi %s12830_s21, %s16_s21  }
   0x2   : > { %p212_p1 = scmp.lt.s32.totalorder %s12792_s21, 3 }
   0x4   : > { %p213_p2 = pnand %p10181_p0, %p212_p1 }
   0x6   : > { %216 = sbr.rel (%p213_p2) target bundleno = 2133 (0x855), region = 44 }
   0xd   : > { %v10240_v0 = vld [vmem:[%s16821_s2 + $0x4] sm:$0xf]  ;;  %vm1030_vm0 = vcmask 1043456   ;;  %p242_p3 = scmp.lt.s32.totalorder %s10177_s22, 1  ;;  %v12846_v2 = vld [vmem:[%s16821_s2] sm:$0xf] }
   0xe   : > { %12608 = vmatprep.subr.msk.bf16.mxu0 %vm1030_vm0, %v10240_v0  ;;  %v1032_v1 = vsel %vm1030_vm0, %v10240_v0, 0  ;;  %vm529_vm1 = vcmask 60416   ;;  %vm957_vm2 = vcmask 64512   ;;  %vm760_vm3 = vsmask.f32 7424 }
   0xf   : > { %11325 = vmatpush3.bf16.msra.mxu0 %v1032_v1  ;;  %s17385_s22 = smov (!%p242_p3, %s10177_s22), 1  ;;  %vm1541_vm4 = vcmask 1046528  }
  0x10   : > { %12609 = vmatprep.subr.msk.bf16.mxu0 %vm1030_vm0, %v12846_v2  ;;  %s12626_s27 = smul.u32 440, %s17385_s22  ;;  %s10818_s13 = sshll.u32 %s17385_s22, 8 }
  0x11   : > { %s16662_s16 = scalar_lea.vmem %s16825_s6, %s10818_s13 }
  0x12   : > { %s12856_s30 = scalar_lea.vmem %s16820_s1, %s12626_s27 }
  0x13   : > { %v253_v3 = vld [vmem:[%s12856_s30] sm:$0xff]  ;;  %v254_v4 = vld [vmem:[%s12856_s30 + $0x8] sm:$0xff]  ;;  %v255_v5 = vld [vmem:[%s12856_s30 + $0x10] sm:$0xff] }
  0x14   : > { %v256_v6 = vld [vmem:[%s12856_s30 + $0x18] sm:$0xff]  ;;  %v10819_v7 = vpack.c.bf16 %v253_v3, %v253_v3  ;;  %v10820_v8 = vpack.c.bf16 %v254_v4, %v254_v4  ;;  %v10821_v9 = vpack.c.bf16 %v255_v5, %v255_v5  ;;  %v257_v10 = vld [vmem:[%s12856_s30 + $0x20] sm:$0xff]  ;;  %v258_v11 = vld [vmem:[%s12856_s30 + $0x28] sm:$0xff] }
  0x15   : > { %v10822_v12 = vpack.c.bf16 %v256_v6, %v256_v6  ;;  %v10823_v13 = vpack.c.bf16 %v257_v10, %v257_v10  ;;  %v10824_v14 = vpack.c.bf16 %v258_v11, %v258_v11  ;;  %v259_v15 = vld [vmem:[%s12856_s30 + $0x30] sm:$0xff]  ;;  %v260_v16 = vld [vmem:[%s12856_s30 + $0x38] sm:$0xff]  ;;  %v261_v17 = vld [vmem:[%s12856_s30 + $0x40] sm:$0xff] }
  0x16   : > { %530 = vst.msk [vmem:[#allocation2] sm:$0xf] %vm529_vm1, %v10819_v7  ;;  %531 = vst.msk [vmem:[#allocation2 + $0x4] sm:$0xf] %vm529_vm1, %v10820_v8  ;;  %v10825_v18 = vpack.c.bf16 %v259_v15, %v259_v15  ;;  %v10826_v19 = vpack.c.bf16 %v260_v16, %v260_v16  ;;  %v262_v20 = vld [vmem:[%s12856_s30 + $0x48] sm:$0xff]  ;;  %v10827_v21 = vpack.c.bf16 %v261_v17, %v261_v17  ;;  %v263_v22 = vld [vmem:[%s12856_s30 + $0x50] sm:$0xff] }
  0x17   : > { %532 = vst.msk [vmem:[#allocation2 + $0x8] sm:$0xf] %vm529_vm1, %v10821_v9  ;;  %v264_v23 = vld [vmem:[%s12856_s30 + $0x58] sm:$0xff]  ;;  %533 = vst.msk [vmem:[#allocation2 + $0xc] sm:$0xf] %vm529_vm1, %v10822_v12  ;;  %v10828_v24 = vpack.c.bf16 %v262_v20, %v262_v20  ;;  %v10829_v25 = vpack.c.bf16 %v263_v22, %v263_v22  ;;  %v265_v27 = vld [vmem:[%s12856_s30 + $0x60] sm:$0xff] }
  0x18   : > { %534 = vst.msk [vmem:[#allocation2 + $0x10] sm:$0xf] %vm529_vm1, %v10823_v13  ;;  %535 = vst.msk [vmem:[#allocation2 + $0x14] sm:$0xf] %vm529_vm1, %v10824_v14  ;;  %v10830_v26 = vpack.c.bf16 %v264_v23, %v264_v23  ;;  %v266_v28 = vld [vmem:[%s12856_s30 + $0x68] sm:$0xff]  ;;  %v267_v29 = vld [vmem:[%s12856_s30 + $0x70] sm:$0xff]  ;;  %v10831_v30 = vpack.c.bf16 %v265_v27, %v265_v27 }
  0x19   : > { %536 = vst.msk [vmem:[#allocation2 + $0x18] sm:$0xf] %vm529_vm1, %v10825_v18  ;;  %537 = vst.msk [vmem:[#allocation2 + $0x1c] sm:$0xf] %vm529_vm1, %v10826_v19  ;;  %v10832_v31 = vpack.c.bf16 %v266_v28, %v266_v28  ;;  %v268_v32 = vld [vmem:[%s12856_s30 + $0x78] sm:$0xff]  ;;  %v10833_v33 = vpack.c.bf16 %v267_v29, %v267_v29  ;;  %v269_v34 = vld [vmem:[%s12856_s30 + $0x80] sm:$0xff] }
  0x1a   : > { %538 = vst.msk [vmem:[#allocation2 + $0x20] sm:$0xf] %vm529_vm1, %v10827_v21  ;;  %v270_v35 = vld [vmem:[%s12856_s30 + $0x88] sm:$0xff]  ;;  %539 = vst.msk [vmem:[#allocation2 + $0x24] sm:$0xf] %vm529_vm1, %v10828_v24  ;;  %v10834_v36 = vpack.c.bf16 %v268_v32, %v268_v32  ;;  %v10835_v37 = vpack.c.bf16 %v269_v34, %v269_v34  ;;  %v271_v39 = vld [vmem:[%s12856_s30 + $0x90] sm:$0xff] }
  0x1b   : > { %540 = vst.msk [vmem:[#allocation2 + $0x28] sm:$0xf] %vm529_vm1, %v10829_v25  ;;  %541 = vst.msk [vmem:[#allocation2 + $0x2c] sm:$0xf] %vm529_vm1, %v10830_v26  ;;  %v10836_v38 = vpack.c.bf16 %v270_v35, %v270_v35  ;;  %v272_v40 = vld [vmem:[%s12856_s30 + $0x98] sm:$0xff]  ;;  %v273_v41 = vld [vmem:[%s12856_s30 + $0xa0] sm:$0xff]  ;;  %v10837_v42 = vpack.c.bf16 %v271_v39, %v271_v39 }
  0x1c   : > { %542 = vst.msk [vmem:[#allocation2 + $0x30] sm:$0xf] %vm529_vm1, %v10831_v30  ;;  %543 = vst.msk [vmem:[#allocation2 + $0x34] sm:$0xf] %vm529_vm1, %v10832_v31  ;;  %v10838_v43 = vpack.c.bf16 %v272_v40, %v272_v40  ;;  %v274_v44 = vld [vmem:[%s12856_s30 + $0xa8] sm:$0xff]  ;;  %v10839_v45 = vpack.c.bf16 %v273_v41, %v273_v41  ;;  %v275_v46 = vld [vmem:[%s12856_s30 + $0xb0] sm:$0xff] }
  0x1d   : > { %544 = vst.msk [vmem:[#allocation2 + $0x38] sm:$0xf] %vm529_vm1, %v10833_v33  ;;  %v276_v47 = vld [vmem:[%s12856_s30 + $0xb8] sm:$0xff]  ;;  %545 = vst.msk [vmem:[#allocation2 + $0x3c] sm:$0xf] %vm529_vm1, %v10834_v36  ;;  %v10840_v48 = vpack.c.bf16 %v274_v44, %v274_v44  ;;  %v10841_v49 = vpack.c.bf16 %v275_v46, %v275_v46  ;;  %v277_v51 = vld [vmem:[%s12856_s30 + $0xc0] sm:$0xff] }
  0x1e   : > { %546 = vst.msk [vmem:[#allocation2 + $0x40] sm:$0xf] %vm529_vm1, %v10835_v37  ;;  %547 = vst.msk [vmem:[#allocation2 + $0x44] sm:$0xf] %vm529_vm1, %v10836_v38  ;;  %v10842_v50 = vpack.c.bf16 %v276_v47, %v276_v47  ;;  %v278_v52 = vld [vmem:[%s12856_s30 + $0xc8] sm:$0xff]  ;;  %v279_v53 = vld [vmem:[%s12856_s30 + $0xd0] sm:$0xff]  ;;  %v10843_v54 = vpack.c.bf16 %v277_v51, %v277_v51 }
  0x1f   : > { %548 = vst.msk [vmem:[#allocation2 + $0x48] sm:$0xf] %vm529_vm1, %v10837_v42  ;;  %549 = vst.msk [vmem:[#allocation2 + $0x4c] sm:$0xf] %vm529_vm1, %v10838_v43  ;;  %v10844_v55 = vpack.c.bf16 %v278_v52, %v278_v52  ;;  %v280_v56 = vld [vmem:[%s12856_s30 + $0xd8] sm:$0xff]  ;;  %v10845_v57 = vpack.c.bf16 %v279_v53, %v279_v53  ;;  %v281_v58 = vld [vmem:[%s12856_s30 + $0xe0] sm:$0xff] }
  0x20   : > { %550 = vst.msk [vmem:[#allocation2 + $0x50] sm:$0xf] %vm529_vm1, %v10839_v45  ;;  %v282_v59 = vld [vmem:[%s12856_s30 + $0xe8] sm:$0xff]  ;;  %v585_v60 = vld [vmem:[#allocation2] sm:$0xf]  ;;  %v10846_v62 = vpack.c.bf16 %v280_v56, %v280_v56  ;;  %v10847_v63 = vpack.c.bf16 %v281_v58, %v281_v58  ;;  %v12922_v4 = vld [vmem:[#allocation2 + $0x10] sm:$0xff]  }
  0x21   : > { %v12909_v61 = vld [vmem:[#allocation2 + $0x4] sm:$0xf]  ;;  %551 = vst.msk [vmem:[#allocation2 + $0x54] sm:$0xf] %vm529_vm1, %v10840_v48  ;;  %552 = vst.msk [vmem:[#allocation2 + $0x58] sm:$0xf] %vm529_vm1, %v10841_v49  ;;  %v10848_v0 = vpack.c.bf16 %v282_v59, %v282_v59 }
  0x22   : > { %553 = vst.msk [vmem:[#allocation2 + $0x5c] sm:$0xf] %vm529_vm1, %v10842_v50  ;;  %v12915_v1 = vcombine.low %v585_v60, %v12909_v61  ;;  %v12917_v3 = vld [vmem:[#allocation2 + $0x8] sm:$0xff]   ;;  %554 = vst.msk [vmem:[#allocation2 + $0x60] sm:$0xf] %vm529_vm1, %v10843_v54  ;;  %v777_v9 = vshll.u32 %v12922_v4, 16 }
  0x23   : > { %555 = vst.msk [vmem:[#allocation2 + $0x64] sm:$0xf] %vm529_vm1, %v10844_v55  ;;  %556 = vst.msk [vmem:[#allocation2 + $0x68] sm:$0xf] %vm529_vm1, %v10845_v57  ;;  %v769_v7 = vshll.u32 %v12917_v3, 16  ;;  %v773_v8 = vshrl.u32 %v12917_v3, 16 }
  0x24   : > { %557 = vst.msk [vmem:[#allocation2 + $0x6c] sm:$0xf] %vm529_vm1, %v10846_v62  ;;  %558 = vst.msk [vmem:[#allocation2 + $0x70] sm:$0xf] %vm529_vm1, %v10847_v63  ;;  %v762_v5 = vshrl.u32 %v12915_v1, 16  ;;  %v764_v6 = vshll.u32 %v12915_v1, 16 }
  0x25   : > { %559 = vst.msk [vmem:[#allocation2 + $0x74] sm:$0xf] %vm529_vm1, %v10848_v0  ;;  %v12932_v10 = vld [vmem:[#allocation2 + $0x18] sm:$0xff]   ;;  %v781_v11 = vshrl.u32 %v12922_v4, 16  ;;  %v12935_v12 = vld [vmem:[#allocation2 + $0x20] sm:$0xff]   ;;  %v771_v14 = vrot.slane %v769_v7, 1 }
  0x26   : > { %v766_v13 = vrot.slane %v764_v6, 1  ;;  %v779_v15 = vrot.slane %v777_v9, 1  ;;  %v785_v16 = vshll.u32 %v12932_v10, 16  ;;  %v793_v19 = vshll.u32 %v12935_v12, 16  ;;  %v12939_v20 = vld [vmem:[#allocation2 + $0x28] sm:$0xff]   ;;  %v12956_v31 = vld [vmem:[#allocation2 + $0x30] sm:$0xff]  }
  0x27   : > { %v775_v18 = vor.u32 %v773_v8, %v771_v14  ;;  %v1308_v21 = vsel %vm1030_vm0, %v12846_v2, 0  ;;  %v789_v24 = vshrl.u32 %v12932_v10, 16  ;;  %v797_v27 = vshrl.u32 %v12935_v12, 16  ;;  %v12953_v2 = vld [vmem:[%s16821_s2 + $0x8] sm:$0xf]  ;;  %v12959_v35 = vld [vmem:[#allocation2 + $0x38] sm:$0xff]  }
  0x28   : > { %v767_v17 = vor.u32 %v766_v13, %v762_v5  ;;  %v783_v22 = vor.u32 %v781_v11, %v779_v15  ;;  %v787_v23 = vrot.slane %v785_v16, 1  ;;  %v801_v28 = vshll.u32 %v12939_v20, 16  ;;  %v12964_v37 = vld [vmem:[#allocation2 + $0x40] sm:$0xff]   ;;  %v12968_v40 = vld [vmem:[#allocation2 + $0x48] sm:$0xff]   ;;  %v283_v44 = vld [vmem:[%s12856_s30 + $0xf0] sm:$0xff] }
  0x29   : > { %v780_v26 = vsel %vm760_vm3, %v775_v18, %v779_v15  ;;  %v795_v30 = vrot.slane %v793_v19, 1  ;;  %v809_v36 = vshll.u32 %v12956_v31, 16  ;;  %v805_v39 = vshrl.u32 %v12939_v20, 16  ;;  %v284_v47 = vld [vmem:[%s12856_s30 + $0xf8] sm:$0xff]  ;;  %v285_v48 = vld [vmem:[%s12856_s30 + $0x100] sm:$0xff]  ;;  %v286_v49 = vld [vmem:[%s12856_s30 + $0x108] sm:$0xff] }
  0x2a   : > { %v772_v25 = vsel %vm760_vm3, %v767_v17, %v771_v14  ;;  %v788_v29 = vsel %vm760_vm3, %v783_v22, %v787_v23  ;;  %v791_v32 = vor.u32 %v789_v24, %v787_v23  ;;  %v803_v34 = vrot.slane %v801_v28, 1  ;;  %v287_v52 = vld [vmem:[%s12856_s30 + $0x110] sm:$0xff]  ;;  %v288_v53 = vld [vmem:[%s12856_s30 + $0x118] sm:$0xff]  ;;  %v289_v54 = vld [vmem:[%s12856_s30 + $0x120] sm:$0xff] }
  0x2b   : > { %11326 = vmatprep.mubr.msk.bf16.mxu0 %vm957_vm2, %v772_v25  ;;  %v799_v33 = vor.u32 %v797_v27, %v795_v30  ;;  %v813_v42 = vshrl.u32 %v12956_v31, 16  ;;  %v817_v43 = vshll.u32 %v12959_v35, 16  ;;  %v811_v45 = vrot.slane %v809_v36, 1  ;;  %v290_v59 = vld [vmem:[%s12856_s30 + $0x128] sm:$0xff]  ;;  %v291_v60 = vld [vmem:[%s12856_s30 + $0x130] sm:$0xff]  ;;  %v292_v62 = vld [vmem:[%s12856_s30 + $0x138] sm:$0xff] }
  0x2c   : > { %11327 = vmatmul.mubr.msk.bf16.vlgmr.msra.gmra.mrb[0].mxu0 %vm957_vm2, %v780_v26  ;;  %v796_v38 = vsel %vm760_vm3, %v791_v32, %v795_v30  ;;  %v825_v46 = vshll.u32 %v12964_v37, 16  ;;  %v807_v50 = vor.u32 %v805_v39, %v803_v34  ;;  %v833_v51 = vshll.u32 %v12968_v40, 16  ;;  %v293_v5 = vld [vmem:[%s12856_s30 + $0x140] sm:$0xff]  ;;  %v294_v6 = vld [vmem:[%s12856_s30 + $0x148] sm:$0xff]  ;;  %v295_v7 = vld [vmem:[%s12856_s30 + $0x150] sm:$0xff] }
  0x2d   : > { %11375 = vmatpush3.bf16.msra.mxu0 %v1308_v21  ;;  %11330 = vmatprep.mubr.msk.bf16.mxu0 %vm957_vm2, %v788_v29  ;;  %v804_v41 = vsel %vm760_vm3, %v799_v33, %v803_v34  ;;  %v815_v55 = vor.u32 %v813_v42, %v811_v45  ;;  %v819_v56 = vrot.slane %v817_v43, 1  ;;  %v10849_v57 = vpack.c.bf16 %v283_v44, %v283_v44  ;;  %v296_v14 = vld [vmem:[%s12856_s30 + $0x158] sm:$0xff]  ;;  %v297_v15 = vld [vmem:[%s12856_s30 + $0x160] sm:$0xff]  ;;  %v298_v16 = vld [vmem:[%s12856_s30 + $0x168] sm:$0xff] }
  0x2e   : > { %12610 = vmatprep.subr.msk.bf16.mxu0 %vm1030_vm0, %v12953_v2  ;;  %v10850_v58 = vpack.c.bf16 %v284_v47, %v284_v47  ;;  %v821_v63 = vshrl.u32 %v12959_v35, 16  ;;  %v829_v0 = vshrl.u32 %v12964_v37, 16  ;;  %v827_v8 = vrot.slane %v825_v46, 1  ;;  %v12998_v19 = vld [vmem:[#allocation2 + $0x50] sm:$0xff]   ;;  %v300_v24 = vld [vmem:[%s12856_s30 + $0x178] sm:$0xff]  ;;  %v301_v25 = vld [vmem:[%s12856_s30 + $0x180] sm:$0xff] }
  0x2f   : > { %560 = vst.msk [vmem:[#allocation2 + $0x78] sm:$0xf] %vm529_vm1, %v10849_v57  ;;  %v10851_v9 = vpack.c.bf16 %v285_v48, %v285_v48  ;;  %v10852_v11 = vpack.c.bf16 %v286_v49, %v286_v49  ;;  %v10853_v13 = vpack.c.bf16 %v287_v52, %v287_v52  ;;  %v812_v17 = vsel %vm760_vm3, %v807_v50, %v811_v45  ;;  %v299_v23 = vld [vmem:[%s12856_s30 + $0x170] sm:$0xff]  ;;  %v13007_v30 = vld [vmem:[#allocation2 + $0x58] sm:$0xff]   ;;  %v13029_v50 = vld [vmem:[#allocation2 + $0x60] sm:$0xff]  }
  0x30   : > { %561 = vst.msk [vmem:[#allocation2 + $0x7c] sm:$0xf] %vm529_vm1, %v10850_v58  ;;  %v835_v18 = vrot.slane %v833_v51, 1  ;;  %v10854_v21 = vpack.c.bf16 %v288_v53, %v288_v53  ;;  %v10855_v22 = vpack.c.bf16 %v289_v54, %v289_v54  ;;  %v820_v26 = vsel %vm760_vm3, %v815_v55, %v819_v56  ;;  %v13033_v53 = vld [vmem:[#allocation2 + $0x68] sm:$0xff]   ;;  %v13035_v54 = vld [vmem:[#allocation2 + $0x70] sm:$0xff]  }
  0x31   : > { %562 = vst.msk [vmem:[#allocation2 + $0x80] sm:$0xf] %vm529_vm1, %v10851_v9  ;;  %563 = vst.msk [vmem:[#allocation2 + $0x84] sm:$0xf] %vm529_vm1, %v10852_v11  ;;  %v10856_v27 = vpack.c.bf16 %v290_v59, %v290_v59  ;;  %v10857_v28 = vpack.c.bf16 %v291_v60, %v291_v60  ;;  %v10858_v29 = vpack.c.bf16 %v292_v62, %v292_v62  ;;  %v837_v46 = vshrl.u32 %v12968_v40, 16 }
  0x32   : > { %564 = vst.msk [vmem:[#allocation2 + $0x88] sm:$0xf] %vm529_vm1, %v10853_v13  ;;  %565 = vst.msk [vmem:[#allocation2 + $0x8c] sm:$0xf] %vm529_vm1, %v10854_v21  ;;  %v10859_v32 = vpack.c.bf16 %v293_v5, %v293_v5  ;;  %v10860_v33 = vpack.c.bf16 %v294_v6, %v294_v6  ;;  %v10861_v34 = vpack.c.bf16 %v295_v7, %v295_v7  ;;  %v841_v47 = vshll.u32 %v12998_v19, 16 }
  0x33   : > { %566 = vst.msk [vmem:[#allocation2 + $0x90] sm:$0xf] %vm529_vm1, %v10855_v22  ;;  %v10862_v36 = vpack.c.bf16 %v296_v14, %v296_v14  ;;  %567 = vst.msk [vmem:[#allocation2 + $0x94] sm:$0xf] %vm529_vm1, %v10856_v27  ;;  %v10864_v39 = vpack.c.bf16 %v298_v16, %v298_v16  ;;  %v10866_v42 = vpack.c.bf16 %v300_v24, %v300_v24  ;;  %v849_v49 = vshll.u32 %v13007_v30, 16 }
  0x34   : > { %11331 = vmatmul.mubr.msk.bf16.gmra.mrb[4].mxu0 %vm957_vm2, %v796_v38  ;;  %568 = vst.msk [vmem:[#allocation2 + $0x98] sm:$0xf] %vm529_vm1, %v10857_v28  ;;  %569 = vst.msk [vmem:[#allocation2 + $0x9c] sm:$0xf] %vm529_vm1, %v10858_v29  ;;  %v10863_v38 = vpack.c.bf16 %v297_v15, %v297_v15  ;;  %v823_v43 = vor.u32 %v821_v63, %v819_v56  ;;  %v10867_v44 = vpack.c.bf16 %v301_v25, %v301_v25 }
  0x35   : > { %11334 = vmatprep.mubr.msk.bf16.mxu0 %vm957_vm2, %v804_v41  ;;  %v10865_v41 = vpack.c.bf16 %v299_v23, %v299_v23  ;;  %570 = vst.msk [vmem:[#allocation2 + $0xa0] sm:$0xf] %vm529_vm1, %v10859_v32  ;;  %571 = vst.msk [vmem:[#allocation2 + $0xa4] sm:$0xf] %vm529_vm1, %v10860_v33  ;;  %v831_v45 = vor.u32 %v829_v0, %v827_v8  ;;  %v845_v52 = vshrl.u32 %v12998_v19, 16  ;;  %v843_v55 = vrot.slane %v841_v47, 1 }
  0x36   : > { %572 = vst.msk [vmem:[#allocation2 + $0xa8] sm:$0xf] %vm529_vm1, %v10861_v34  ;;  %573 = vst.msk [vmem:[#allocation2 + $0xac] sm:$0xf] %vm529_vm1, %v10862_v36  ;;  %v828_v48 = vsel %vm760_vm3, %v823_v43, %v827_v8  ;;  %v839_v57 = vor.u32 %v837_v46, %v835_v18  ;;  %v851_v58 = vrot.slane %v849_v49, 1  ;;  %v857_v59 = vshll.u32 %v13029_v50, 16 }
  0x37   : > { %574 = vst.msk [vmem:[#allocation2 + $0xb0] sm:$0xf] %vm529_vm1, %v10863_v38  ;;  %575 = vst.msk [vmem:[#allocation2 + $0xb4] sm:$0xf] %vm529_vm1, %v10864_v39  ;;  %v836_v51 = vsel %vm760_vm3, %v831_v45, %v835_v18  ;;  %v13038_v56 = vld [vmem:[#allocation2 + $0x78] sm:$0xff]   ;;  %v847_v62 = vor.u32 %v845_v52, %v843_v55  ;;  %v865_v63 = vshll.u32 %v13033_v53, 16 }
  0x38   : > { %576 = vst.msk [vmem:[#allocation2 + $0xb8] sm:$0xf] %vm529_vm1, %v10865_v41  ;;  %577 = vst.msk [vmem:[#allocation2 + $0xbc] sm:$0xf] %vm529_vm1, %v10866_v42  ;;  %v13042_v60 = vld [vmem:[#allocation2 + $0x80] sm:$0xff]   ;;  %v873_v5 = vshll.u32 %v13035_v54, 16  ;;  %v844_v11 = vsel %vm760_vm3, %v839_v57, %v843_v55 }
  0x39   : > { %578 = vst.msk [vmem:[#allocation2 + $0xc0] sm:$0xf] %vm529_vm1, %v10867_v44  ;;  %v13045_v0 = vld [vmem:[#allocation2 + $0x88] sm:$0xff]   ;;  %v853_v6 = vshrl.u32 %v13007_v30, 16  ;;  %v861_v7 = vshrl.u32 %v13029_v50, 16  ;;  %v869_v8 = vshrl.u32 %v13033_v53, 16  ;;  %v852_v15 = vsel %vm760_vm3, %v847_v62, %v851_v58 }
  0x3a   : > { %v881_v9 = vshll.u32 %v13038_v56, 16  ;;  %v889_v13 = vshll.u32 %v13042_v60, 16  ;;  %v13054_v14 = vld [vmem:[#allocation2 + $0x90] sm:$0xff]   ;;  %v859_v16 = vrot.slane %v857_v59, 1  ;;  %v897_v18 = vshll.u32 %v13045_v0, 16 }
  0x3b   : > { %v875_v21 = vrot.slane %v873_v5, 1  ;;  %v877_v22 = vshrl.u32 %v13035_v54, 16  ;;  %v885_v24 = vshrl.u32 %v13038_v56, 16  ;;  %v893_v25 = vshrl.u32 %v13042_v60, 16  ;;  %v13063_v27 = vld [vmem:[#allocation2 + $0x98] sm:$0xff]  }
  0x3c   : > { %11335 = vmatmul.mubr.msk.bf16.gmra.mrb[8].mxu0 %vm957_vm2, %v812_v17  ;;  %v867_v17 = vrot.slane %v865_v63, 1  ;;  %v883_v23 = vrot.slane %v881_v9, 1  ;;  %v13065_v28 = vld [vmem:[#allocation2 + $0xa0] sm:$0xff]   ;;  %v855_v29 = vor.u32 %v853_v6, %v851_v58  ;;  %v891_v32 = vrot.slane %v889_v13, 1 }
  0x3d   : > { %11338 = vmatprep.mubr.msk.bf16.mxu0 %vm957_vm2, %v820_v26  ;;  %v901_v26 = vshrl.u32 %v13045_v0, 16  ;;  %v905_v33 = vshll.u32 %v13054_v14, 16  ;;  %v863_v34 = vor.u32 %v861_v7, %v859_v16  ;;  %v899_v36 = vrot.slane %v897_v18, 1 }
  0x3e   : > { %v909_v38 = vshrl.u32 %v13054_v14, 16  ;;  %v913_v39 = vshll.u32 %v13063_v27, 16  ;;  %v921_v41 = vshll.u32 %v13065_v28, 16  ;;  %v860_v42 = vsel %vm760_vm3, %v855_v29, %v859_v16 }
  0x3f   : > { %v868_v43 = vsel %vm760_vm3, %v863_v34, %v867_v17  ;;  %v871_v44 = vor.u32 %v869_v8, %v867_v17  ;;  %v879_v45 = vor.u32 %v877_v22, %v875_v21  ;;  %v895_v49 = vor.u32 %v893_v25, %v891_v32  ;;  %v13089_v8 = vld [vmem:[#allocation2 + $0xb0] sm:$0xff]  }
  0x40   : > { %v903_v57 = vor.u32 %v901_v26, %v899_v36  ;;  %v907_v58 = vrot.slane %v905_v33, 1  ;;  %v917_v59 = vshrl.u32 %v13063_v27, 16  ;;  %v915_v62 = vrot.slane %v913_v39, 1 }
  0x41   : > { %v876_v46 = vsel %vm760_vm3, %v871_v44, %v875_v21  ;;  %v884_v47 = vsel %vm760_vm3, %v879_v45, %v883_v23  ;;  %v900_v55 = vsel %vm760_vm3, %v895_v49, %v899_v36  ;;  %v923_v63 = vrot.slane %v921_v41, 1 }
  0x42   : > { %v925_v5 = vshrl.u32 %v13065_v28, 16  ;;  %v911_v7 = vor.u32 %v909_v38, %v907_v58  ;;  %v908_v13 = vsel %vm760_vm3, %v903_v57, %v907_v58  ;;  %v937_v16 = vshll.u32 %v13089_v8, 16 }
  0x43   : > { %v941_v17 = vshrl.u32 %v13089_v8, 16  ;;  %v919_v18 = vor.u32 %v917_v59, %v915_v62  ;;  %v1664_v45 = vsel %vm1030_vm0, %v12953_v2, 0 }
  0x44   : > { %11339 = vmatmul.mubr.msk.bf16.gmra.mrb[12].mxu0 %vm957_vm2, %v828_v48  ;;  %v887_v48 = vor.u32 %v885_v24, %v883_v23  ;;  %v927_v23 = vor.u32 %v925_v5, %v923_v63  ;;  %v13101_v24 = vld [vmem:[#allocation2 + $0xc0] ss:$0 sps:$4 sm:$0x11]   ;;  %v939_v29 = vrot.slane %v937_v16, 1  ;;  %v1555_v5 = vrot.slane %v12959_v35, 1 }
  0x45   : > { %11342 = vmatprep.mubr.msk.bf16.mxu0 %vm957_vm2, %v836_v51  ;;  %v13080_v51 = vld [vmem:[#allocation2 + $0xa8] sm:$0xff]   ;;  %v924_v25 = vsel %vm760_vm3, %v919_v18, %v923_v63  ;;  %v953_v36 = vshll.u32 %v13101_v24, 16  ;;  %v1553_v63 = vrot.slane %v12956_v31, 1  ;;  %v1567_v16 = vrot.slane %v13033_v53, 1 }
  0x46   : > { %v892_v52 = vsel %vm760_vm3, %v887_v48, %v891_v32  ;;  %v929_v6 = vshll.u32 %v13080_v51, 16  ;;  %v933_v9 = vshrl.u32 %v13080_v51, 16  ;;  %v943_v38 = vor.u32 %v941_v17, %v939_v29 }
  0x47   : > { %v1543_v48 = vrot.slane %v12917_v3, 1 }
  0x48   : > { %v931_v21 = vrot.slane %v929_v6, 1 }
  0x4a   : > { %v932_v26 = vsel %vm760_vm3, %v927_v23, %v931_v21  ;;  %v935_v33 = vor.u32 %v933_v9, %v931_v21  ;;  %v302_v21 = vld [vmem:[%s12856_s30 + $0x188] sm:$0xff] }
  0x4c   : > { %11343 = vmatmul.mubr.msk.bf16.gmra.mrb[16].mxu0 %vm957_vm2, %v844_v11  ;;  %v13092_v11 = vld [vmem:[#allocation2 + $0xb8] sm:$0xff]   ;;  %v940_v39 = vsel %vm760_vm3, %v935_v33, %v939_v29  ;;  %v1579_v33 = vrot.slane %v13063_v27, 1 }
  0x4d   : > { %11346 = vmatprep.mubr.msk.bf16.mxu0 %vm957_vm2, %v852_v15  ;;  %v916_v15 = vsel %vm760_vm3, %v911_v7, %v915_v62  ;;  %v945_v22 = vshll.u32 %v13092_v11, 16  ;;  %v949_v32 = vshrl.u32 %v13092_v11, 16  ;;  %v1559_v7 = vrot.slane %v12968_v40, 1 }
  0x4f   : > { %v947_v34 = vrot.slane %v945_v22, 1  ;;  %v303_v22 = vld [vmem:[%s12856_s30 + $0x190] sm:$0xff] }
  0x51   : > { %v948_v41 = vsel %vm760_vm3, %v943_v38, %v947_v34 }
  0x54   : > { %11347 = vmatmul.mubr.msk.bf16.gmra.mrb[20].mxu0 %vm957_vm2, %v860_v42  ;;  %v951_v42 = vor.u32 %v949_v32, %v947_v34  ;;  %v1577_v32 = vrot.slane %v13054_v14, 1 }
  0x55   : > { %11350 = vmatprep.mubr.msk.bf16.mxu0 %vm957_vm2, %v868_v43  ;;  %v955_v43 = vrot.slane %v953_v36, 1 }
  0x56   : > { %v1580_v36 = vsel %vm1541_vm4, %v1577_v32, %v1579_v33 }
  0x57   : > { %v956_v44 = vsel %vm760_vm3, %v951_v42, %v955_v43  ;;  %v12663_v43 = vld [vmem:[#allocation2 + $0xc] sm:$0xff]  }
  0x5c   : > { %11351 = vmatmul.mubr.msk.bf16.gmra.mrb[24].mxu0 %vm957_vm2, %v876_v46  ;;  %v10340_v46 = vld [vmem:[%s16821_s2 + $0xc] sm:$0xf] }
  0x5d   : > { %11354 = vmatprep.mubr.msk.bf16.mxu0 %vm957_vm2, %v884_v47  ;;  %v2182_v57 = vsel %vm1030_vm0, %v10340_v46, 0 }
  0x64   : > { %11355 = vmatmul.mubr.msk.bf16.gmra.mrb[28].mxu0 %vm957_vm2, %v892_v52  ;;  %v1545_v52 = vrot.slane %v12922_v4, 1 }
  0x65   : > { %11358 = vmatprep.mubr.msk.bf16.mxu0 %vm957_vm2, %v900_v55 }
  0x66   : > { %v1546_v55 = vsel %vm1541_vm4, %v1543_v48, %v1545_v52 }
  0x6c   : > { %11359 = vmatmul.mubr.msk.bf16.gmra.mrb[32].mxu0 %vm957_vm2, %v908_v13 }
  0x6d   : > { %11362 = vmatprep.mubr.msk.bf16.mxu0 %vm957_vm2, %v916_v15 }
  0x74   : > { %11363 = vmatmul.mubr.msk.bf16.gmra.mrb[36].mxu0 %vm957_vm2, %v924_v25  ;;  %v10868_v25 = vpack.c.bf16 %v302_v21, %v302_v21 }
  0x75   : > { %11366 = vmatprep.mubr.msk.bf16.mxu0 %vm957_vm2, %v932_v26 }
  0x76   : > { %579 = vst.msk [vmem:[#allocation2 + $0xc4] sm:$0xf] %vm529_vm1, %v10868_v25 }
  0x7c   : > { %11367 = vmatmul.mubr.msk.bf16.gmra.mrb[40].mxu0 %vm957_vm2, %v940_v39 }
  0x7d   : > { %11370 = vmatprep.mubr.msk.bf16.mxu0 %vm957_vm2, %v948_v41 }
  0x84   : > { %11371 = vmatmul.mubr.msk.bf16.gmra.mrb[44].mxu0 %vm957_vm2, %v956_v44  ;;  %v12665_v44 = vld [vmem:[#allocation2 + $0x1c] sm:$0xff]  }
  0x85   : > { %11376 = vmatprep.mubr.msk.bf16.mxu0 %vm957_vm2, %v12915_v1  ;;  %v1535_v1 = vld [vmem:[#allocation2] sm:$0xe] }
  0x86   : > { %v10315_v2 = vcombine.low %v1535_v1, %v12909_v61  ;;  %v1547_v61 = vrot.slane %v12932_v10, 1  ;;  %v12668_v1 = vld [vmem:[#allocation2 + $0x34] sm:$0xff]  }
  0x88   : > { %v1542_v47 = vrot.slane %v10315_v2, 1  ;;  %v1548_v58 = vsel %vm1541_vm4, %v1545_v52, %v1547_v61  ;;  %v12669_v2 = vld [vmem:[#allocation2 + $0x3c] sm:$0xff]  }
  0x89   : > { %v12673_v52 = vld [vmem:[#allocation2 + $0x5c] sm:$0xff]  }
  0x8a   : > { %v1544_v49 = vsel %vm1541_vm4, %v1542_v47, %v1543_v48  ;;  %v12670_v47 = vld [vmem:[#allocation2 + $0x44] sm:$0xff]   ;;  %v12671_v48 = vld [vmem:[#allocation2 + $0x4c] sm:$0xff]  }
  0x8c   : > { %11377 = vmatmul.mubr.msk.bf16.vlgmr.msra.gmra.mrb[0].mxu0 %vm957_vm2, %v12917_v3  ;;  %v13181_v3 = vld [vmem:[%s16821_s2 + $0x10] sm:$0xf] }
  0x8d   : > { %11425 = vmatpush3.bf16.msra.mxu0 %v1664_v45  ;;  %11380 = vmatprep.mubr.msk.bf16.mxu0 %vm957_vm2, %v12922_v4  ;;  %v1549_v4 = vrot.slane %v12935_v12, 1  ;;  %v13260_v45 = vld [vmem:[%s16821_s2 + $0x14] sm:$0xf] }
  0x8e   : > { %12611 = vmatprep.subr.msk.bf16.mxu0 %vm1030_vm0, %v10340_v46  ;;  %v12667_v46 = vld [vmem:[#allocation2 + $0x2c] sm:$0xff]  }
  0x8f   : > { %v1550_v59 = vsel %vm1541_vm4, %v1547_v61, %v1549_v4  ;;  %v12674_v61 = vld [vmem:[#allocation2 + $0x64] sm:$0xff]  }
  0x94   : > { %11381 = vmatmul.mubr.msk.bf16.gmra.mrb[4].mxu0 %vm957_vm2, %v12932_v10  ;;  %v1551_v10 = vrot.slane %v12939_v20, 1 }
  0x95   : > { %11384 = vmatprep.mubr.msk.bf16.mxu0 %vm957_vm2, %v12935_v12  ;;  %v1556_v12 = vsel %vm1541_vm4, %v1553_v63, %v1555_v5 }
  0x96   : > { %v1552_v62 = vsel %vm1541_vm4, %v1549_v4, %v1551_v10  ;;  %v1554_v6 = vsel %vm1541_vm4, %v1551_v10, %v1553_v63  ;;  %v12677_v4 = vld [vmem:[#allocation2 + $0x7c] sm:$0xff]   ;;  %v12678_v10 = vld [vmem:[#allocation2 + $0x84] sm:$0xff]  }
  0x97   : > { %v12681_v63 = vld [vmem:[#allocation2 + $0x9c] sm:$0xff]  }
  0x9c   : > { %11385 = vmatmul.mubr.msk.bf16.gmra.mrb[8].mxu0 %vm957_vm2, %v12939_v20  ;;  %v1557_v20 = vrot.slane %v12964_v37, 1 }
  0x9d   : > { %11388 = vmatprep.mubr.msk.bf16.mxu0 %vm957_vm2, %v12956_v31  ;;  %v1561_v31 = vrot.slane %v12998_v19, 1 }
  0x9e   : > { %v1558_v9 = vsel %vm1541_vm4, %v1555_v5, %v1557_v20  ;;  %v1560_v13 = vsel %vm1541_vm4, %v1557_v20, %v1559_v7  ;;  %v2457_v5 = vld [vmem:[#allocation2 + $0xc] sm:$0xf] }
  0x9f   : > { %v1562_v15 = vsel %vm1541_vm4, %v1559_v7, %v1561_v31  ;;  %v12683_v20 = vld [vmem:[#allocation2 + $0xac] sm:$0xff]  }
  0xa4   : > { %11389 = vmatmul.mubr.msk.bf16.gmra.mrb[12].mxu0 %vm957_vm2, %v12959_v35  ;;  %v1563_v35 = vrot.slane %v13007_v30, 1 }
  0xa5   : > { %11392 = vmatprep.mubr.msk.bf16.mxu0 %vm957_vm2, %v12964_v37 }
  0xa6   : > { %v1564_v37 = vsel %vm1541_vm4, %v1561_v31, %v1563_v35  ;;  %v12684_v31 = vld [vmem:[#allocation2 + $0xb4] sm:$0xff]  }
  0xac   : > { %11393 = vmatmul.mubr.msk.bf16.gmra.mrb[16].mxu0 %vm957_vm2, %v12968_v40  ;;  %v1565_v40 = vrot.slane %v13029_v50, 1 }
  0xad   : > { %11396 = vmatprep.mubr.msk.bf16.mxu0 %vm957_vm2, %v12998_v19  ;;  %v1569_v19 = vrot.slane %v13035_v54, 1 }
  0xae   : > { %v1566_v17 = vsel %vm1541_vm4, %v1563_v35, %v1565_v40  ;;  %v1568_v18 = vsel %vm1541_vm4, %v1565_v40, %v1567_v16  ;;  %v12685_v35 = vld [vmem:[#allocation2 + $0xbc] sm:$0xff]  }
  0xaf   : > { %v1570_v23 = vsel %vm1541_vm4, %v1567_v16, %v1569_v19  ;;  %v13293_v16 = vld [vmem:[#allocation2 + $0x1c] sm:$0xff]  }
  0xb0   : > { %v2647_v21 = vshll.u32 %v13293_v16, 16  ;;  %v2651_v25 = vshrl.u32 %v13293_v16, 16 }
  0xb4   : > { %11397 = vmatmul.mubr.msk.bf16.gmra.mrb[20].mxu0 %vm957_vm2, %v13007_v30  ;;  %v1571_v30 = vrot.slane %v13038_v56, 1 }
  0xb5   : > { %11400 = vmatprep.mubr.msk.bf16.mxu0 %vm957_vm2, %v13029_v50  ;;  %v10869_v50 = vpack.c.bf16 %v303_v22, %v303_v22 }
  0xb7   : > { %580 = vst.msk [vmem:[#allocation2 + $0xc8] sm:$0xf] %vm529_vm1, %v10869_v50 }
  0xbc   : > { %11401 = vmatmul.mubr.msk.bf16.gmra.mrb[24].mxu0 %vm957_vm2, %v13033_v53  ;;  %v1572_v53 = vsel %vm1541_vm4, %v1569_v19, %v1571_v30  ;;  %v13296_v19 = vld [vmem:[#allocation2 + $0x24] sm:$0xff]  }
  0xbd   : > { %11404 = vmatprep.mubr.msk.bf16.mxu0 %vm957_vm2, %v13035_v54  ;;  %v1573_v54 = vrot.slane %v13042_v60, 1  ;;  %v2655_v50 = vshll.u32 %v13296_v19, 16 }
  0xbf   : > { %v1574_v26 = vsel %vm1541_vm4, %v1571_v30, %v1573_v54  ;;  %v12686_v30 = vld [vmem:[#allocation2 + $0xc4] sm:$0xff]  }
  0xc4   : > { %11405 = vmatmul.mubr.msk.bf16.gmra.mrb[28].mxu0 %vm957_vm2, %v13038_v56  ;;  %v1575_v56 = vrot.slane %v13045_v0, 1 }
  0xc5   : > { %11408 = vmatprep.mubr.msk.bf16.mxu0 %vm957_vm2, %v13042_v60  ;;  %v1581_v60 = vrot.slane %v13065_v28, 1 }
  0xc6   : > { %v1576_v29 = vsel %vm1541_vm4, %v1573_v54, %v1575_v56  ;;  %v1578_v34 = vsel %vm1541_vm4, %v1575_v56, %v1577_v32  ;;  %v13304_v54 = vld [vmem:[#allocation2 + $0x2c] sm:$0xff]   ;;  %v13307_v32 = vld [vmem:[#allocation2 + $0x34] sm:$0xff]  }
  0xc7   : > { %v1582_v38 = vsel %vm1541_vm4, %v1579_v33, %v1581_v60  ;;  %v2663_v33 = vshll.u32 %v13304_v54, 16 }
  0xcc   : > { %11409 = vmatmul.mubr.msk.bf16.gmra.mrb[32].mxu0 %vm957_vm2, %v13045_v0  ;;  %v1583_v0 = vrot.slane %v13080_v51, 1 }
  0xcd   : > { %11412 = vmatprep.mubr.msk.bf16.mxu0 %vm957_vm2, %v13054_v14  ;;  %v1585_v14 = vrot.slane %v13089_v8, 1 }
  0xce   : > { %v1584_v39 = vsel %vm1541_vm4, %v1581_v60, %v1583_v0  ;;  %v3303_v60 = vsel %vm1030_vm0, %v13260_v45, 0 }
  0xcf   : > { %v1586_v41 = vsel %vm1541_vm4, %v1583_v0, %v1585_v14 }
  0xd4   : > { %11413 = vmatmul.mubr.msk.bf16.gmra.mrb[36].mxu0 %vm957_vm2, %v13063_v27  ;;  %v1587_v27 = vrot.slane %v13092_v11, 1 }
  0xd5   : > { %11416 = vmatprep.mubr.msk.bf16.mxu0 %vm957_vm2, %v13065_v28  ;;  %v1589_v28 = vrot.slane %v13101_v24, 1  ;;  %v12666_v24 = vld [vmem:[#allocation2 + $0x24] sm:$0xff]  }
  0xd6   : > { %v1588_v42 = vsel %vm1541_vm4, %v1585_v14, %v1587_v27  ;;  %v13320_v14 = vld [vmem:[%s16821_s2 + $0x18] sm:$0xf] }
  0xdc   : > { %11417 = vmatmul.mubr.msk.bf16.gmra.mrb[40].mxu0 %vm957_vm2, %v13080_v51  ;;  %v1590_v51 = vsel %vm1541_vm4, %v1587_v27, %v1589_v28  ;;  %v2665_v27 = vrot.slane %v2663_v33, 1 }
  0xdd   : > { %11420 = vmatprep.mubr.msk.bf16.mxu0 %vm957_vm2, %v13089_v8  ;;  %v12664_v8 = vld [vmem:[#allocation2 + $0x14] sm:$0xff]  }
  0xe4   : > { %11421 = vmatmul.mubr.msk.bf16.gmra.mrb[44].mxu0 %vm957_vm2, %v13092_v11  ;;  %v2900_v11 = vsel %vm1030_vm0, %v13181_v3, 0 }
  0xe5   : > { %11426 = vmatprep.mubr.msk.bf16.mxu0 %vm957_vm2, %v1544_v49  ;;  %v12672_v49 = vld [vmem:[#allocation2 + $0x54] sm:$0xff]  }
  0xec   : > { %11427 = vmatmul.mubr.msk.bf16.vlgmr.msra.gmra.mrb[0].mxu0 %vm957_vm2, %v1546_v55  ;;  %v12675_v55 = vld [vmem:[#allocation2 + $0x6c] sm:$0xff]  }
  0xed   : > { %11475 = vmatpush3.bf16.msra.mxu0 %v2182_v57  ;;  %11430 = vmatprep.mubr.msk.bf16.mxu0 %vm957_vm2, %v1548_v58  ;;  %v304_v57 = vld [vmem:[%s12856_s30 + $0x198] sm:$0xff] }
  0xee   : > { %12612 = vmatprep.subr.msk.bf16.mxu0 %vm1030_vm0, %v13181_v3  ;;  %v10870_v58 = vpack.c.bf16 %v304_v57, %v304_v57  ;;  %v12676_v3 = vld [vmem:[#allocation2 + $0x74] sm:$0xff]  }
  0xf0   : > { %581 = vst.msk [vmem:[#allocation2 + $0xcc] sm:$0xf] %vm529_vm1, %v10870_v58 }
  0xf4   : > { %11431 = vmatmul.mubr.msk.bf16.gmra.mrb[4].mxu0 %vm957_vm2, %v1550_v59  ;;  %v12679_v59 = vld [vmem:[#allocation2 + $0x8c] sm:$0xff]  }
  0xf5   : > { %11434 = vmatprep.mubr.msk.bf16.mxu0 %vm957_vm2, %v1552_v62  ;;  %v12680_v62 = vld [vmem:[#allocation2 + $0x94] sm:$0xff]  }
  0xfc   : > { %11435 = vmatmul.mubr.msk.bf16.gmra.mrb[8].mxu0 %vm957_vm2, %v1554_v6  ;;  %v13284_v6 = vld [vmem:[#allocation2 + $0x10] sm:$0xf] }
  0xfd   : > { %11438 = vmatprep.mubr.msk.bf16.mxu0 %vm957_vm2, %v1556_v12  ;;  %v12682_v12 = vld [vmem:[#allocation2 + $0xa4] sm:$0xff]   ;;  %v10390_v7 = vcombine.low %v2457_v5, %v13284_v6 }
 0x104   : > { %11439 = vmatmul.mubr.msk.bf16.gmra.mrb[12].mxu0 %vm957_vm2, %v1558_v9  ;;  %v13289_v9 = vld [vmem:[#allocation2 + $0x14] sm:$0xff]  }
 0x105   : > { %11442 = vmatprep.mubr.msk.bf16.mxu0 %vm957_vm2, %v1560_v13  ;;  %v2634_v13 = vshll.u32 %v10390_v7, 16  ;;  %v2639_v40 = vshll.u32 %v13289_v9, 16  ;;  %v2643_v22 = vshrl.u32 %v13289_v9, 16 }
 0x10c   : > { %11443 = vmatmul.mubr.msk.bf16.gmra.mrb[16].mxu0 %vm957_vm2, %v1562_v15  ;;  %v2632_v15 = vshrl.u32 %v10390_v7, 16 }
 0x10d   : > { %11446 = vmatprep.mubr.msk.bf16.mxu0 %vm957_vm2, %v1564_v37  ;;  %v2636_v37 = vrot.slane %v2634_v13, 1 }
 0x114   : > { %11447 = vmatmul.mubr.msk.bf16.gmra.mrb[20].mxu0 %vm957_vm2, %v1566_v17  ;;  %v2637_v17 = vor.u32 %v2636_v37, %v2632_v15 }
 0x115   : > { %11450 = vmatprep.mubr.msk.bf16.mxu0 %vm957_vm2, %v1568_v18  ;;  %v2641_v18 = vrot.slane %v2639_v40, 1  ;;  %v13361_v40 = vld [vmem:[#allocation2 + $0x6c] sm:$0xff]  }
 0x117   : > { %v2645_v56 = vor.u32 %v2643_v22, %v2641_v18  ;;  %v2727_v22 = vshll.u32 %v13361_v40, 16 }
 0x11c   : > { %11451 = vmatmul.mubr.msk.bf16.gmra.mrb[24].mxu0 %vm957_vm2, %v1570_v23  ;;  %v2642_v23 = vsel %vm760_vm3, %v2637_v17, %v2641_v18 }
 0x11d   : > { %11454 = vmatprep.mubr.msk.bf16.mxu0 %vm957_vm2, %v1572_v53  ;;  %v2649_v53 = vrot.slane %v2647_v21, 1  ;;  %v13364_v21 = vld [vmem:[#allocation2 + $0x74] sm:$0xff]  }
 0x124   : > { %11455 = vmatmul.mubr.msk.bf16.gmra.mrb[28].mxu0 %vm957_vm2, %v1574_v26  ;;  %v2653_v26 = vor.u32 %v2651_v25, %v2649_v53 }
 0x125   : > { %11458 = vmatprep.mubr.msk.bf16.mxu0 %vm957_vm2, %v1576_v29  ;;  %v2657_v29 = vrot.slane %v2655_v50, 1 }
 0x127   : > { %v2658_v0 = vsel %vm760_vm3, %v2653_v26, %v2657_v29  ;;  %v2729_v26 = vrot.slane %v2727_v22, 1 }
 0x12c   : > { %11459 = vmatmul.mubr.msk.bf16.gmra.mrb[32].mxu0 %vm957_vm2, %v1578_v34  ;;  %v2650_v34 = vsel %vm760_vm3, %v2645_v56, %v2649_v53  ;;  %v2731_v53 = vshrl.u32 %v13361_v40, 16  ;;  %v2735_v56 = vshll.u32 %v13364_v21, 16 }
 0x12d   : > { %11462 = vmatprep.mubr.msk.bf16.mxu0 %vm957_vm2, %v1580_v36  ;;  %v2659_v36 = vshrl.u32 %v13296_v19, 16 }
 0x134   : > { %11463 = vmatmul.mubr.msk.bf16.gmra.mrb[36].mxu0 %vm957_vm2, %v1582_v38  ;;  %v2667_v38 = vshrl.u32 %v13304_v54, 16 }
 0x135   : > { %11466 = vmatprep.mubr.msk.bf16.mxu0 %vm957_vm2, %v1584_v39  ;;  %v2671_v39 = vshll.u32 %v13307_v32, 16 }
 0x136   : > { %v2669_v28 = vor.u32 %v2667_v38, %v2665_v27 }
 0x13c   : > { %11467 = vmatmul.mubr.msk.bf16.gmra.mrb[40].mxu0 %vm957_vm2, %v1586_v41  ;;  %v13323_v41 = vld [vmem:[#allocation2 + $0x3c] sm:$0xff]  }
 0x13d   : > { %11470 = vmatprep.mubr.msk.bf16.mxu0 %vm957_vm2, %v1588_v42  ;;  %v2661_v42 = vor.u32 %v2659_v36, %v2657_v29  ;;  %v13373_v29 = vld [vmem:[#allocation2 + $0x7c] sm:$0xff]   ;;  %v2737_v36 = vrot.slane %v2735_v56, 1 }
 0x144   : > { %11471 = vmatmul.mubr.msk.bf16.gmra.mrb[44].mxu0 %vm957_vm2, %v1590_v51  ;;  %v2673_v51 = vrot.slane %v2671_v39, 1  ;;  %v2739_v39 = vshrl.u32 %v13364_v21, 16 }
 0x145   : > { %11476 = vmatprep.mubr.msk.bf16.mxu0 %vm957_vm2, %v12663_v43  ;;  %v13326_v43 = vld [vmem:[#allocation2 + $0x44] sm:$0xff]  }
 0x146   : > { %v2691_v57 = vshrl.u32 %v13326_v43, 16 }
 0x14c   : > { %11477 = vmatmul.mubr.msk.bf16.vlgmr.msra.gmra.mrb[0].mxu0 %vm957_vm2, %v12664_v8  ;;  %v2679_v8 = vshll.u32 %v13323_v41, 16 }
 0x14d   : > { %11525 = vmatpush3.bf16.msra.mxu0 %v2900_v11  ;;  %11480 = vmatprep.mubr.msk.bf16.mxu0 %vm957_vm2, %v12665_v44  ;;  %v2666_v44 = vsel %vm760_vm3, %v2661_v42, %v2665_v27  ;;  %v2675_v11 = vshrl.u32 %v13307_v32, 16  ;;  %v2747_v42 = vshrl.u32 %v13373_v29, 16 }
 0x14e   : > { %12613 = vmatprep.subr.msk.bf16.mxu0 %vm1030_vm0, %v13260_v45  ;;  %v2674_v45 = vsel %vm760_vm3, %v2669_v28, %v2673_v51 }
 0x154   : > { %11481 = vmatmul.mubr.msk.bf16.gmra.mrb[4].mxu0 %vm957_vm2, %v12666_v24  ;;  %v2683_v24 = vshrl.u32 %v13323_v41, 16 }
 0x155   : > { %11484 = vmatprep.mubr.msk.bf16.mxu0 %vm957_vm2, %v12667_v46  ;;  %v2687_v46 = vshll.u32 %v13326_v43, 16 }
 0x15c   : > { %11485 = vmatmul.mubr.msk.bf16.gmra.mrb[8].mxu0 %vm957_vm2, %v12668_v1  ;;  %v2681_v1 = vrot.slane %v2679_v8, 1  ;;  %v13385_v8 = vld [vmem:[#allocation2 + $0x8c] sm:$0xff]  }
 0x15d   : > { %11488 = vmatprep.mubr.msk.bf16.mxu0 %vm957_vm2, %v12669_v2  ;;  %v13337_v2 = vld [vmem:[#allocation2 + $0x4c] sm:$0xff]  }
 0x164   : > { %11489 = vmatmul.mubr.msk.bf16.gmra.mrb[12].mxu0 %vm957_vm2, %v12670_v47  ;;  %v2677_v47 = vor.u32 %v2675_v11, %v2673_v51 }
 0x165   : > { %11492 = vmatprep.mubr.msk.bf16.mxu0 %vm957_vm2, %v12671_v48  ;;  %v2685_v48 = vor.u32 %v2683_v24, %v2681_v1  ;;  %v13388_v24 = vld [vmem:[#allocation2 + $0x94] sm:$0xff]  }
 0x16c   : > { %11493 = vmatmul.mubr.msk.bf16.gmra.mrb[16].mxu0 %vm957_vm2, %v12672_v49  ;;  %v2689_v49 = vrot.slane %v2687_v46, 1  ;;  %v2759_v46 = vshll.u32 %v13385_v8, 16 }
 0x16d   : > { %11496 = vmatprep.mubr.msk.bf16.mxu0 %vm957_vm2, %v12673_v52  ;;  %v13340_v52 = vld [vmem:[#allocation2 + $0x54] sm:$0xff]  }
 0x16e   : > { %v2690_v58 = vsel %vm760_vm3, %v2685_v48, %v2689_v49  ;;  %v2707_v13 = vshrl.u32 %v13340_v52, 16 }
 0x174   : > { %11497 = vmatmul.mubr.msk.bf16.gmra.mrb[20].mxu0 %vm957_vm2, %v12674_v61  ;;  %v2695_v61 = vshll.u32 %v13337_v2, 16 }
 0x175   : > { %11500 = vmatprep.mubr.msk.bf16.mxu0 %vm957_vm2, %v12675_v55  ;;  %v2682_v55 = vsel %vm760_vm3, %v2677_v47, %v2681_v1 }
 0x17c   : > { %11501 = vmatmul.mubr.msk.bf16.gmra.mrb[24].mxu0 %vm957_vm2, %v12676_v3  ;;  %v2699_v3 = vshrl.u32 %v13337_v2, 16 }
 0x17d   : > { %11504 = vmatprep.mubr.msk.bf16.mxu0 %vm957_vm2, %v12677_v4  ;;  %v2703_v4 = vshll.u32 %v13340_v52, 16 }
 0x17f   : > { %v2705_v5 = vrot.slane %v2703_v4, 1 }
 0x181   : > { %v2709_v17 = vor.u32 %v2707_v13, %v2705_v5 }
 0x184   : > { %11505 = vmatmul.mubr.msk.bf16.gmra.mrb[28].mxu0 %vm957_vm2, %v12678_v10  ;;  %v2697_v10 = vrot.slane %v2695_v61, 1  ;;  %v2767_v61 = vshll.u32 %v13388_v24, 16 }
 0x185   : > { %11508 = vmatprep.mubr.msk.bf16.mxu0 %vm957_vm2, %v12679_v59  ;;  %v13349_v59 = vld [vmem:[#allocation2 + $0x5c] sm:$0xff]  }
 0x186   : > { %v2769_v4 = vrot.slane %v2767_v61, 1 }
 0x18c   : > { %11509 = vmatmul.mubr.msk.bf16.gmra.mrb[32].mxu0 %vm957_vm2, %v12680_v62  ;;  %v2693_v62 = vor.u32 %v2691_v57, %v2689_v49  ;;  %v2763_v49 = vshrl.u32 %v13385_v8, 16  ;;  %v13397_v57 = vld [vmem:[#allocation2 + $0x9c] sm:$0xff]  }
 0x18d   : > { %11512 = vmatprep.mubr.msk.bf16.mxu0 %vm957_vm2, %v12681_v63  ;;  %v2701_v63 = vor.u32 %v2699_v3, %v2697_v10 }
 0x18e   : > { %v2698_v7 = vsel %vm760_vm3, %v2693_v62, %v2697_v10  ;;  %v13400_v10 = vld [vmem:[#allocation2 + $0xa4] sm:$0xff]   ;;  %v2775_v62 = vshll.u32 %v13397_v57, 16 }
 0x18f   : > { %v2783_v13 = vshll.u32 %v13400_v10, 16 }
 0x194   : > { %11513 = vmatmul.mubr.msk.bf16.gmra.mrb[36].mxu0 %vm957_vm2, %v12682_v12  ;;  %v13352_v12 = vld [vmem:[#allocation2 + $0x64] sm:$0xff]  }
 0x195   : > { %11516 = vmatprep.mubr.msk.bf16.mxu0 %vm957_vm2, %v12683_v20  ;;  %v2711_v20 = vshll.u32 %v13349_v59, 16  ;;  %v2719_v15 = vshll.u32 %v13352_v12, 16  ;;  %v2723_v25 = vshrl.u32 %v13352_v12, 16 }
 0x197   : > { %v2713_v37 = vrot.slane %v2711_v20, 1 }
 0x19c   : > { %11517 = vmatmul.mubr.msk.bf16.gmra.mrb[40].mxu0 %vm957_vm2, %v12684_v31  ;;  %v2706_v31 = vsel %vm760_vm3, %v2701_v63, %v2705_v5  ;;  %v2771_v5 = vshrl.u32 %v13388_v24, 16 }
 0x19d   : > { %11520 = vmatprep.mubr.msk.bf16.mxu0 %vm957_vm2, %v12685_v35  ;;  %v2715_v35 = vshrl.u32 %v13349_v59, 16 }
 0x19f   : > { %v2717_v18 = vor.u32 %v2715_v35, %v2713_v37  ;;  %v13409_v35 = vld [vmem:[#allocation2 + $0xac] sm:$0xff]  }
 0x1a4   : > { %11521 = vmatmul.mubr.msk.bf16.gmra.mrb[44].mxu0 %vm957_vm2, %v12686_v30  ;;  %v2721_v30 = vrot.slane %v2719_v15, 1  ;;  %v2773_v15 = vor.u32 %v2771_v5, %v2769_v4 }
 0x1a5   : > { %11526 = vmatprep.mubr.msk.bf16.mxu0 %vm957_vm2, %v2642_v23  ;;  %v2714_v23 = vsel %vm760_vm3, %v2709_v17, %v2713_v37  ;;  %v2785_v17 = vrot.slane %v2783_v13, 1 }
 0x1a6   : > { %v2722_v50 = vsel %vm760_vm3, %v2717_v18, %v2721_v30  ;;  %v2725_v33 = vor.u32 %v2723_v25, %v2721_v30  ;;  %v13412_v18 = vld [vmem:[#allocation2 + $0xb4] sm:$0xff]   ;;  %v2791_v30 = vshll.u32 %v13409_v35, 16 }
 0x1a8   : > { %v2730_v38 = vsel %vm760_vm3, %v2725_v33, %v2729_v26  ;;  %v2793_v56 = vrot.slane %v2791_v30, 1  ;;  %v3194_v30 = vrot.slane %v13326_v43, 1  ;;  %v3202_v43 = vrot.slane %v13352_v12, 1 }
 0x1ac   : > { %11527 = vmatmul.mubr.msk.bf16.vlgmr.msra.gmra.mrb[0].mxu0 %vm957_vm2, %v2650_v34  ;;  %v2733_v34 = vor.u32 %v2731_v53, %v2729_v26  ;;  %v2799_v53 = vshll.u32 %v13412_v18, 16  ;;  %v13421_v26 = vld [vmem:[#allocation2 + $0xbc] sm:$0xff]  }
 0x1ad   : > { %11575 = vmatpush3.bf16.msra.mxu0 %v3303_v60  ;;  %11530 = vmatprep.mubr.msk.bf16.mxu0 %vm957_vm2, %v2658_v0  ;;  %v13376_v60 = vld [vmem:[#allocation2 + $0x84] sm:$0xff]   ;;  %v2743_v0 = vshll.u32 %v13373_v29, 16 }
 0x1ae   : > { %12614 = vmatprep.subr.msk.bf16.mxu0 %vm1030_vm0, %v13320_v14  ;;  %v2738_v27 = vsel %vm760_vm3, %v2733_v34, %v2737_v36  ;;  %v2751_v28 = vshll.u32 %v13376_v60, 16  ;;  %v2755_v47 = vshrl.u32 %v13376_v60, 16  ;;  %v3210_v12 = vrot.slane %v13376_v60, 1 }
 0x1af   : > { %v2745_v51 = vrot.slane %v2743_v0, 1  ;;  %v13424_v0 = vld [vmem:[#allocation2 + $0xc4] sm:$0xff]   ;;  %v3214_v60 = vrot.slane %v13388_v24, 1  ;;  %v3222_v24 = vrot.slane %v13412_v18, 1 }
 0x1b1   : > { %v2749_v11 = vor.u32 %v2747_v42, %v2745_v51 }
 0x1b4   : > { %11531 = vmatmul.mubr.msk.bf16.gmra.mrb[4].mxu0 %vm957_vm2, %v2666_v44  ;;  %v2741_v44 = vor.u32 %v2739_v39, %v2737_v36  ;;  %v2801_v36 = vrot.slane %v2799_v53, 1 }
 0x1b5   : > { %11534 = vmatprep.mubr.msk.bf16.mxu0 %vm957_vm2, %v2674_v45  ;;  %v2753_v45 = vrot.slane %v2751_v28, 1  ;;  %v2811_v28 = vshrl.u32 %v13421_v26, 16 }
 0x1b6   : > { %v2746_v1 = vsel %vm760_vm3, %v2741_v44, %v2745_v51  ;;  %v2815_v51 = vshll.u32 %v13424_v0, 16 }
 0x1b7   : > { %v2754_v48 = vsel %vm760_vm3, %v2749_v11, %v2753_v45 }
 0x1bc   : > { %11535 = vmatmul.mubr.msk.bf16.gmra.mrb[8].mxu0 %vm957_vm2, %v2682_v55  ;;  %v2761_v55 = vrot.slane %v2759_v46, 1 }
 0x1bd   : > { %11538 = vmatprep.mubr.msk.bf16.mxu0 %vm957_vm2, %v2690_v58  ;;  %v2757_v58 = vor.u32 %v2755_v47, %v2753_v45  ;;  %v13434_v45 = vld [vmem:[#allocation2 + $0xcc] ss:$0 sps:$4 sm:$0x11]   ;;  %v3175_v47 = vld [vmem:[#allocation2 + $0xc] sm:$0xe] }
 0x1be   : > { %v2765_v3 = vor.u32 %v2763_v49, %v2761_v55  ;;  %v2819_v49 = vshrl.u32 %v13424_v0, 16  ;;  %v2823_v61 = vshll.u32 %v13434_v45, 16 }
 0x1bf   : > { %v2762_v63 = vsel %vm760_vm3, %v2757_v58, %v2761_v55  ;;  %v10440_v58 = vcombine.low %v3175_v47, %v13284_v6  ;;  %v3186_v6 = vrot.slane %v13296_v19, 1  ;;  %v3190_v19 = vrot.slane %v13307_v32, 1 }
 0x1c0   : > { %v2770_v20 = vsel %vm760_vm3, %v2765_v3, %v2769_v4  ;;  %v2825_v4 = vrot.slane %v2823_v61, 1  ;;  %v3196_v32 = vrot.slane %v13337_v2, 1  ;;  %v12712_v61 = vld [vmem:[#allocation2 + $0x18] sm:$0xff]  }
 0x1c4   : > { %11539 = vmatmul.mubr.msk.bf16.gmra.mrb[12].mxu0 %vm957_vm2, %v2698_v7  ;;  %v2779_v7 = vshrl.u32 %v13397_v57, 16 }
 0x1c5   : > { %11542 = vmatprep.mubr.msk.bf16.mxu0 %vm957_vm2, %v2706_v31  ;;  %v2777_v31 = vrot.slane %v2775_v62, 1  ;;  %v3181_v62 = vrot.slane %v10440_v58, 1  ;;  %v13536_v58 = vld [vmem:[%s16821_s2 + $0x20] sm:$0xf] }
 0x1c7   : > { %v2781_v37 = vor.u32 %v2779_v7, %v2777_v31  ;;  %v2778_v22 = vsel %vm760_vm3, %v2773_v15, %v2777_v31  ;;  %v3184_v7 = vrot.slane %v13293_v16, 1  ;;  %v3821_v31 = vsel %vm1030_vm0, %v13320_v14, 0 }
 0x1c8   : > { %v3188_v16 = vrot.slane %v13304_v54, 1 }
 0x1c9   : > { %v2786_v25 = vsel %vm760_vm3, %v2781_v37, %v2785_v17  ;;  %v3187_v15 = vsel %vm1541_vm4, %v3184_v7, %v3186_v6 }
 0x1ca   : > { %v3189_v14 = vsel %vm1541_vm4, %v3186_v6, %v3188_v16  ;;  %v3191_v37 = vsel %vm1541_vm4, %v3188_v16, %v3190_v19  ;;  %v12723_v6 = vld [vmem:[#allocation2 + $0x70] sm:$0xff]   ;;  %v12726_v16 = vld [vmem:[#allocation2 + $0x88] sm:$0xff]  }
 0x1cc   : > { %11543 = vmatmul.mubr.msk.bf16.gmra.mrb[16].mxu0 %vm957_vm2, %v2714_v23  ;;  %v2787_v23 = vshrl.u32 %v13400_v10, 16 }
 0x1cd   : > { %11546 = vmatprep.mubr.msk.bf16.mxu0 %vm957_vm2, %v2722_v50  ;;  %v2795_v50 = vshrl.u32 %v13409_v35, 16 }
 0x1ce   : > { %v2789_v33 = vor.u32 %v2787_v23, %v2785_v17  ;;  %v3192_v17 = vrot.slane %v13323_v41, 1  ;;  %v3198_v23 = vrot.slane %v13340_v52, 1  ;;  %v3200_v41 = vrot.slane %v13349_v59, 1 }
 0x1cf   : > { %v2797_v34 = vor.u32 %v2795_v50, %v2793_v56  ;;  %v3204_v52 = vrot.slane %v13361_v40, 1  ;;  %v3208_v59 = vrot.slane %v13373_v29, 1  ;;  %v3212_v29 = vrot.slane %v13385_v8, 1 }
 0x1d0   : > { %v2794_v39 = vsel %vm760_vm3, %v2789_v33, %v2793_v56  ;;  %v3195_v54 = vsel %vm1541_vm4, %v3192_v17, %v3194_v30  ;;  %v3199_v50 = vsel %vm1541_vm4, %v3196_v32, %v3198_v23  ;;  %v3201_v53 = vsel %vm1541_vm4, %v3198_v23, %v3200_v41  ;;  %v5419_v23 = vld [vmem:[%s16819_s0 + $0x18] sm:$0xff] }
 0x1d1   : > { %v2802_v42 = vsel %vm760_vm3, %v2797_v34, %v2801_v36  ;;  %v3203_v2 = vsel %vm1541_vm4, %v3200_v41, %v3202_v43  ;;  %v3206_v56 = vrot.slane %v13364_v21, 1  ;;  %v3205_v33 = vsel %vm1541_vm4, %v3202_v43, %v3204_v52  ;;  %v4096_v41 = vld [vmem:[#allocation2 + $0x18] sm:$0xf]  ;;  %v13582_v43 = vld [vmem:[#allocation2 + $0x1c] sm:$0xf] }
 0x1d2   : > { %v3211_v21 = vsel %vm1541_vm4, %v3208_v59, %v3210_v12  ;;  %v3220_v8 = vrot.slane %v13409_v35, 1  ;;  %v3228_v35 = vrot.slane %v13434_v45, 1  ;;  %v12715_v45 = vld [vmem:[#allocation2 + $0x30] sm:$0xff]  }
 0x1d3   : > { %v3207_v34 = vsel %vm1541_vm4, %v3204_v52, %v3206_v56  ;;  %v12732_v52 = vld [vmem:[#allocation2 + $0xb8] sm:$0xff]  }
 0x1d4   : > { %11547 = vmatmul.mubr.msk.bf16.gmra.mrb[20].mxu0 %vm957_vm2, %v2730_v38  ;;  %v2807_v38 = vshll.u32 %v13421_v26, 16  ;;  %v3223_v47 = vsel %vm1541_vm4, %v3220_v8, %v3222_v24 }
 0x1d5   : > { %11550 = vmatprep.mubr.msk.bf16.mxu0 %vm957_vm2, %v2738_v27  ;;  %v2803_v27 = vshrl.u32 %v13412_v18, 16 }
 0x1d6   : > { %v2809_v44 = vrot.slane %v2807_v38, 1  ;;  %v306_v38 = vld [vmem:[%s12856_s30 + $0x1a8] sm:$0xff] }
 0x1d7   : > { %v2805_v11 = vor.u32 %v2803_v27, %v2801_v36  ;;  %v305_v36 = vld [vmem:[%s12856_s30 + $0x1a0] sm:$0xff]  ;;  %v10872_v40 = vpack.c.bf16 %v306_v38, %v306_v38  ;;  %v5426_v38 = vld [vmem:[%s16819_s0 + $0x50] sm:$0xff] }
 0x1d8   : > { %v2813_v46 = vor.u32 %v2811_v28, %v2809_v44  ;;  %v10871_v27 = vpack.c.bf16 %v305_v36, %v305_v36  ;;  %v3215_v28 = vsel %vm1541_vm4, %v3212_v29, %v3214_v60  ;;  %v5425_v36 = vld [vmem:[%s16819_s0 + $0x48] sm:$0xff] }
 0x1d9   : > { %583 = vst.msk [vmem:[#allocation2 + $0xd4] sm:$0xf] %vm529_vm1, %v10872_v40 }
 0x1da   : > { %582 = vst.msk [vmem:[#allocation2 + $0xd0] sm:$0xf] %vm529_vm1, %v10871_v27  ;;  %v12734_v27 = vld [vmem:[#allocation2 + $0xc8] sm:$0xff]  }
 0x1dc   : > { %11551 = vmatmul.mubr.msk.bf16.gmra.mrb[24].mxu0 %vm957_vm2, %v2746_v1  ;;  %v2817_v1 = vrot.slane %v2815_v51, 1  ;;  %v3216_v51 = vrot.slane %v13397_v57, 1  ;;  %v3224_v57 = vrot.slane %v13421_v26, 1  ;;  %v12713_v26 = vld [vmem:[#allocation2 + $0x20] sm:$0xff]  }
 0x1dd   : > { %11554 = vmatprep.mubr.msk.bf16.mxu0 %vm957_vm2, %v2754_v48  ;;  %v2810_v48 = vsel %vm760_vm3, %v2805_v11, %v2809_v44  ;;  %v3218_v44 = vrot.slane %v13400_v10, 1  ;;  %v3226_v10 = vrot.slane %v13424_v0, 1 }
 0x1de   : > { %v2818_v55 = vsel %vm760_vm3, %v2813_v46, %v2817_v1  ;;  %v2821_v3 = vor.u32 %v2819_v49, %v2817_v1  ;;  %v3217_v11 = vsel %vm1541_vm4, %v3214_v60, %v3216_v51  ;;  %v13606_v60 = vld [vmem:[#allocation2 + $0x28] sm:$0xff]  }
 0x1df   : > { %v3219_v46 = vsel %vm1541_vm4, %v3216_v51, %v3218_v44  ;;  %v3221_v1 = vsel %vm1541_vm4, %v3218_v44, %v3220_v8  ;;  %v3227_v49 = vsel %vm1541_vm4, %v3224_v57, %v3226_v10  ;;  %v3229_v18 = vsel %vm1541_vm4, %v3226_v10, %v3228_v35  ;;  %v5430_v8 = vld [vmem:[%s16819_s0 + $0x70] sm:$0xff]  ;;  %v13629_v35 = vld [vmem:[#allocation2 + $0x38] sm:$0xff]  }
 0x1e0   : > { %v2826_v5 = vsel %vm760_vm3, %v2821_v3, %v2825_v4  ;;  %v12716_v3 = vld [vmem:[#allocation2 + $0x38] sm:$0xff]   ;;  %v12717_v4 = vld [vmem:[#allocation2 + $0x40] sm:$0xff]   ;;  %v4290_v10 = vshrl.u32 %v13606_v60, 16 }
 0x1e4   : > { %11555 = vmatmul.mubr.msk.bf16.gmra.mrb[28].mxu0 %vm957_vm2, %v2762_v63  ;;  %v3182_v63 = vrot.slane %v13289_v9, 1  ;;  %v13457_v9 = vld [vmem:[%s16821_s2 + $0x1c] sm:$0xf] }
 0x1e5   : > { %11558 = vmatprep.mubr.msk.bf16.mxu0 %vm957_vm2, %v2770_v20  ;;  %v4539_v0 = vsel %vm1030_vm0, %v13457_v9, 0 }
 0x1e6   : > { %v3183_v20 = vsel %vm1541_vm4, %v3181_v62, %v3182_v63  ;;  %v3185_v13 = vsel %vm1541_vm4, %v3182_v63, %v3184_v7  ;;  %v12718_v62 = vld [vmem:[#allocation2 + $0x48] sm:$0xff]   ;;  %v12719_v63 = vld [vmem:[#allocation2 + $0x50] sm:$0xff]  }
 0x1e7   : > { %v12722_v7 = vld [vmem:[#allocation2 + $0x68] sm:$0xff]  }
 0x1ec   : > { %11559 = vmatmul.mubr.msk.bf16.gmra.mrb[32].mxu0 %vm957_vm2, %v2778_v22  ;;  %v3193_v22 = vsel %vm1541_vm4, %v3190_v19, %v3192_v17  ;;  %v12727_v19 = vld [vmem:[#allocation2 + $0x90] sm:$0xff]   ;;  %v12794_v17 = vmov 0  }
 0x1ed   : > { %11562 = vmatprep.mubr.msk.bf16.mxu0 %vm957_vm2, %v2786_v25  ;;  %v3197_v25 = vsel %vm1541_vm4, %v3194_v30, %v3196_v32  ;;  %12636 = vset.pattern.permute.xlu0 %v12794_v17  ;;  %5752 = vst.msk [vmem:[#allocation3] sm:$0xff] %vm957_vm2, %v12794_v17  ;;  %5753 = vst.msk [vmem:[#allocation3 + $0x8] sm:$0xff] %vm957_vm2, %v12794_v17  ;;  %v5418_v30 = vld [vmem:[%s16819_s0 + $0x10] sm:$0xff]  ;;  %v12730_v32 = vld [vmem:[#allocation2 + $0xa8] sm:$0xff]  }
 0x1ee   : > { %5802 = vst.msk [vmem:[#allocation3 + $0xd0] sm:$0xff] %vm957_vm2, %v12794_v17  ;;  %5803 = vst.msk [vmem:[#allocation3 + $0xd8] sm:$0xff] %vm957_vm2, %v12794_v17  ;;  %12637 = vset.pattern.permute.xlu1 %v12794_v17  ;;  %v5437_v17 = vld [vmem:[%s16819_s0 + $0xa8] sm:$0xff] }
 0x1ef   : > { %5476 = vperm.xlu1 %12637, %v5418_v30   ;;  %v5438_v30 = vld [vmem:[%s16819_s0 + $0xb0] sm:$0xff] }
 0x1f3   : > { %5481 = vperm.xlu1 %12637, %v5419_v23  }
 0x1f4   : > { %11563 = vmatmul.mubr.msk.bf16.gmra.mrb[36].mxu0 %vm957_vm2, %v2794_v39  ;;  %v3209_v39 = vsel %vm1541_vm4, %v3206_v56, %v3208_v59  ;;  %v10515_v56 = vcombine.low %v4096_v41, %v13582_v43  ;;  %v13596_v59 = vld [vmem:[#allocation2 + $0x20] sm:$0xff]  }
 0x1f5   : > { %11566 = vmatprep.mubr.msk.bf16.mxu0 %vm957_vm2, %v2802_v42  ;;  %v3213_v42 = vsel %vm1541_vm4, %v3210_v12, %v3212_v29  ;;  %v4278_v29 = vshll.u32 %v13596_v59, 16 }
 0x1f6   : > { %v4273_v12 = vshll.u32 %v10515_v56, 16  ;;  %v4271_v40 = vshrl.u32 %v10515_v56, 16 }
 0x1f7   : > { %v4280_v44 = vrot.slane %v4278_v29, 1 }
 0x1fc   : > { %11567 = vmatmul.mubr.msk.bf16.gmra.mrb[40].mxu0 %vm957_vm2, %v2810_v48  ;;  %v3225_v48 = vsel %vm1541_vm4, %v3222_v24, %v3224_v57  ;;  %v12735_v24 = vld [vmem:[#allocation2 + $0xd0] sm:$0xff]  }
 0x1fd   : > { %11570 = vmatprep.mubr.msk.bf16.mxu0 %vm957_vm2, %v2818_v55  ;;  %v12714_v55 = vld [vmem:[#allocation2 + $0x28] sm:$0xff]  }
 0x204   : > { %11571 = vmatmul.mubr.msk.bf16.gmra.mrb[44].mxu0 %vm957_vm2, %v2826_v5  ;;  %v12720_v5 = vld [vmem:[#allocation2 + $0x58] sm:$0xff]  }
 0x205   : > { %11576 = vmatprep.mubr.msk.bf16.mxu0 %vm957_vm2, %v3183_v20  ;;  %v12721_v20 = vld [vmem:[#allocation2 + $0x60] sm:$0xff]  }
 0x20c   : > { %11577 = vmatmul.mubr.msk.bf16.vlgmr.msra.gmra.mrb[0].mxu0 %vm957_vm2, %v3185_v13  ;;  %v12724_v13 = vld [vmem:[#allocation2 + $0x78] sm:$0xff]  }
 0x20d   : > { %11625 = vmatpush3.bf16.msra.mxu0 %v3821_v31  ;;  %11580 = vmatprep.mubr.msk.bf16.mxu0 %vm957_vm2, %v3187_v15  ;;  %v307_v31 = vld [vmem:[%s12856_s30 + $0x1b0] sm:$0xff] }
 0x20e   : > { %12615 = vmatprep.subr.msk.bf16.mxu0 %vm1030_vm0, %v13457_v9  ;;  %v10873_v15 = vpack.c.bf16 %v307_v31, %v307_v31  ;;  %v12725_v9 = vld [vmem:[#allocation2 + $0x80] sm:$0xff]  }
 0x210   : > { %584 = vst.msk [vmem:[#allocation2 + $0xd8] sm:$0xf] %vm529_vm1, %v10873_v15  ;;  %v13655_v15 = vld [vmem:[#allocation2 + $0x48] sm:$0xff]  }
 0x214   : > { %11581 = vmatmul.mubr.msk.bf16.gmra.mrb[4].mxu0 %vm957_vm2, %v3189_v14  ;;  %v12728_v14 = vld [vmem:[#allocation2 + $0x98] sm:$0xff]  }
 0x215   : > { %11584 = vmatprep.mubr.msk.bf16.mxu0 %vm957_vm2, %v3191_v37  ;;  %v5416_v37 = vld [vmem:[%s16819_s0] sm:$0xff] }
 0x216   : > { %5466 = vperm.xlu0 %12636, %v5416_v37   ;;  %v13664_v37 = vld [vmem:[#allocation2 + $0x50] sm:$0xff]  }
 0x21c   : > { %11585 = vmatmul.mubr.msk.bf16.gmra.mrb[8].mxu0 %vm957_vm2, %v3193_v22  ;;  %v5417_v22 = vld [vmem:[%s16819_s0 + $0x8] sm:$0xff] }
 0x21d   : > { %11588 = vmatprep.mubr.msk.bf16.mxu0 %vm957_vm2, %v3195_v54  ;;  %v12729_v54 = vld [vmem:[#allocation2 + $0xa0] sm:$0xff]   ;;  %5471 = vperm.xlu0 %12636, %v5417_v22   ;;  %v4318_v22 = vshll.u32 %v13655_v15, 16 }
 0x21f   : > { %v4320_v41 = vrot.slane %v4318_v22, 1  ;;  %v5451_v22 = vld [vmem:[%s16819_s0 + $0x118] sm:$0xff] }
 0x224   : > { %11589 = vmatmul.mubr.msk.bf16.gmra.mrb[12].mxu0 %vm957_vm2, %v3197_v25  ;;  %v5420_v25 = vld [vmem:[%s16819_s0 + $0x20] sm:$0xff] }
 0x225   : > { %11592 = vmatprep.mubr.msk.bf16.mxu0 %vm957_vm2, %v3199_v50  ;;  %5486 = vperm.xlu0 %12636, %v5420_v25   ;;  %v5421_v50 = vld [vmem:[%s16819_s0 + $0x28] sm:$0xff]  ;;  %v4322_v25 = vshrl.u32 %v13655_v15, 16 }
 0x226   : > { %5491 = vperm.xlu1 %12637, %v5421_v50   ;;  %v4326_v50 = vshll.u32 %v13664_v37, 16 }
 0x22c   : > { %11593 = vmatmul.mubr.msk.bf16.gmra.mrb[16].mxu0 %vm957_vm2, %v3201_v53  ;;  %v5422_v53 = vld [vmem:[%s16819_s0 + $0x30] sm:$0xff] }
 0x22d   : > { %11596 = vmatprep.mubr.msk.bf16.mxu0 %vm957_vm2, %v3203_v2  ;;  %v12731_v2 = vld [vmem:[#allocation2 + $0xb0] sm:$0xff]   ;;  %5496 = vperm.xlu0 %12636, %v5422_v53   ;;  %v13679_v53 = vld [vmem:[#allocation2 + $0x58] sm:$0xff]  }
 0x22e   : > { %v4338_v29 = vshrl.u32 %v13679_v53, 16 }
 0x234   : > { %11597 = vmatmul.mubr.msk.bf16.gmra.mrb[20].mxu0 %vm957_vm2, %v3205_v33  ;;  %v5423_v33 = vld [vmem:[%s16819_s0 + $0x38] sm:$0xff] }
 0x235   : > { %11600 = vmatprep.mubr.msk.bf16.mxu0 %vm957_vm2, %v3207_v34  ;;  %v5424_v34 = vld [vmem:[%s16819_s0 + $0x40] sm:$0xff]  ;;  %5501 = vperm.xlu1 %12637, %v5423_v33   ;;  %v4324_v33 = vor.u32 %v4322_v25, %v4320_v41 }
 0x236   : > { %5506 = vperm.xlu0 %12636, %v5424_v34   ;;  %v4328_v34 = vrot.slane %v4326_v50, 1  ;;  %v13760_v50 = vld [vmem:[#allocation2 + $0x90] sm:$0xff]  }
 0x239   : > { %5511 = vperm.xlu1 %12637, %v5425_v36   ;;  %v5441_v36 = vld [vmem:[%s16819_s0 + $0xc8] sm:$0xff] }
 0x23a   : > { %5516 = vperm.xlu0 %12636, %v5426_v38   ;;  %v5442_v38 = vld [vmem:[%s16819_s0 + $0xd0] sm:$0xff] }
 0x23c   : > { %11601 = vmatmul.mubr.msk.bf16.gmra.mrb[24].mxu0 %vm957_vm2, %v3209_v39  ;;  %v12733_v39 = vld [vmem:[#allocation2 + $0xc0] sm:$0xff]  }
 0x23d   : > { %11604 = vmatprep.mubr.msk.bf16.mxu0 %vm957_vm2, %v3211_v21  ;;  %v4275_v21 = vrot.slane %v4273_v12, 1  ;;  %v13688_v12 = vld [vmem:[#allocation2 + $0x60] sm:$0xff]  }
 0x23f   : > { %v4276_v51 = vor.u32 %v4275_v21, %v4271_v40  ;;  %v4330_v40 = vshrl.u32 %v13664_v37, 16  ;;  %v4329_v21 = vsel %vm760_vm3, %v4324_v33, %v4328_v34 }
 0x241   : > { %v4281_v57 = vsel %vm760_vm3, %v4276_v51, %v4280_v44  ;;  %v13703_v51 = vld [vmem:[#allocation2 + $0x68] sm:$0xff]  }
 0x244   : > { %11605 = vmatmul.mubr.msk.bf16.gmra.mrb[28].mxu0 %vm957_vm2, %v3213_v42  ;;  %v5427_v42 = vld [vmem:[%s16819_s0 + $0x58] sm:$0xff] }
 0x245   : > { %11608 = vmatprep.mubr.msk.bf16.mxu0 %vm957_vm2, %v3215_v28  ;;  %v5428_v28 = vld [vmem:[%s16819_s0 + $0x60] sm:$0xff]  ;;  %5521 = vperm.xlu1 %12637, %v5427_v42   ;;  %v4342_v42 = vshll.u32 %v13688_v12, 16 }
 0x246   : > { %5526 = vperm.xlu0 %12636, %v5428_v28  }
 0x24a   : > { %5536 = vperm.xlu0 %12636, %v5430_v8   ;;  %v4332_v8 = vor.u32 %v4330_v40, %v4328_v34  ;;  %v5455_v40 = vld [vmem:[%s16819_s0 + $0x138] sm:$0xff] }
 0x24c   : > { %11609 = vmatmul.mubr.msk.bf16.gmra.mrb[32].mxu0 %vm957_vm2, %v3217_v11  ;;  %v13615_v11 = vld [vmem:[#allocation2 + $0x30] sm:$0xff]  }
 0x24d   : > { %11612 = vmatprep.mubr.msk.bf16.mxu0 %vm957_vm2, %v3219_v46  ;;  %v5429_v46 = vld [vmem:[%s16819_s0 + $0x68] sm:$0xff] }
 0x24e   : > { %5531 = vperm.xlu1 %12637, %v5429_v46   ;;  %v5444_v46 = vld [vmem:[%s16819_s0 + $0xe0] sm:$0xff] }
 0x254   : > { %11613 = vmatmul.mubr.msk.bf16.gmra.mrb[36].mxu0 %vm957_vm2, %v3221_v1  ;;  %v4286_v1 = vshll.u32 %v13606_v60, 16 }
 0x255   : > { %11616 = vmatprep.mubr.msk.bf16.mxu0 %vm957_vm2, %v3223_v47  ;;  %v4282_v47 = vshrl.u32 %v13596_v59, 16 }
 0x25c   : > { %11617 = vmatmul.mubr.msk.bf16.gmra.mrb[40].mxu0 %vm957_vm2, %v3225_v48  ;;  %v4294_v48 = vshll.u32 %v13615_v11, 16 }
 0x25d   : > { %11620 = vmatprep.mubr.msk.bf16.mxu0 %vm957_vm2, %v3227_v49  ;;  %v4288_v49 = vrot.slane %v4286_v1, 1  ;;  %v4344_v1 = vrot.slane %v4342_v42, 1 }
 0x264   : > { %11621 = vmatmul.mubr.msk.bf16.gmra.mrb[44].mxu0 %vm957_vm2, %v3229_v18  ;;  %v5431_v18 = vld [vmem:[%s16819_s0 + $0x78] sm:$0xff] }
 0x265   : > { %11626 = vmatprep.mubr.msk.bf16.mxu0 %vm957_vm2, %v12712_v61  ;;  %v5432_v61 = vld [vmem:[%s16819_s0 + $0x80] sm:$0xff]  ;;  %5541 = vperm.xlu1 %12637, %v5431_v18   ;;  %v4346_v18 = vshrl.u32 %v13688_v12, 16 }
 0x266   : > { %5546 = vperm.xlu0 %12636, %v5432_v61  }
 0x26c   : > { %11627 = vmatmul.mubr.msk.bf16.vlgmr.msra.gmra.mrb[0].mxu0 %vm957_vm2, %v12713_v26  ;;  %v4284_v26 = vor.u32 %v4282_v47, %v4280_v44  ;;  %v5443_v44 = vld [vmem:[%s16819_s0 + $0xd8] sm:$0xff]  ;;  %v13712_v47 = vld [vmem:[#allocation2 + $0x70] sm:$0xff]  }
 0x26d   : > { %11675 = vmatpush3.bf16.msra.mxu0 %v4539_v0  ;;  %11630 = vmatprep.mubr.msk.bf16.mxu0 %vm957_vm2, %v12714_v55  ;;  %v4292_v55 = vor.u32 %v4290_v10, %v4288_v49  ;;  %v4296_v0 = vrot.slane %v4294_v48, 1  ;;  %v5446_v10 = vld [vmem:[%s16819_s0 + $0xf0] sm:$0xff]  ;;  %v4350_v48 = vshll.u32 %v13703_v51, 16 }
 0x26e   : > { %12616 = vmatprep.subr.msk.bf16.mxu0 %vm1030_vm0, %v13536_v58 }
 0x274   : > { %11631 = vmatmul.mubr.msk.bf16.gmra.mrb[4].mxu0 %vm957_vm2, %v12715_v45  ;;  %v13638_v45 = vld [vmem:[#allocation2 + $0x40] sm:$0xff]  }
 0x275   : > { %11634 = vmatprep.mubr.msk.bf16.mxu0 %vm957_vm2, %v12716_v3  ;;  %v5433_v3 = vld [vmem:[%s16819_s0 + $0x88] sm:$0xff] }
 0x276   : > { %5551 = vperm.xlu1 %12637, %v5433_v3   ;;  %v13727_v3 = vld [vmem:[#allocation2 + $0x78] sm:$0xff]  }
 0x27c   : > { %11635 = vmatmul.mubr.msk.bf16.gmra.mrb[8].mxu0 %vm957_vm2, %v12717_v4  ;;  %v5434_v4 = vld [vmem:[%s16819_s0 + $0x90] sm:$0xff] }
 0x27d   : > { %11638 = vmatprep.mubr.msk.bf16.mxu0 %vm957_vm2, %v12718_v62  ;;  %v4302_v62 = vshll.u32 %v13629_v35, 16  ;;  %5556 = vperm.xlu0 %12636, %v5434_v4   ;;  %v5447_v4 = vld [vmem:[%s16819_s0 + $0xf8] sm:$0xff] }
 0x27f   : > { %v4304_v31 = vrot.slane %v4302_v62, 1  ;;  %v5448_v62 = vld [vmem:[%s16819_s0 + $0x100] sm:$0xff] }
 0x284   : > { %11639 = vmatmul.mubr.msk.bf16.gmra.mrb[12].mxu0 %vm957_vm2, %v12719_v63  ;;  %v4289_v63 = vsel %vm760_vm3, %v4284_v26, %v4288_v49  ;;  %v4354_v26 = vshrl.u32 %v13703_v51, 16 }
 0x285   : > { %11642 = vmatprep.mubr.msk.bf16.mxu0 %vm957_vm2, %v12720_v5  ;;  %v4298_v5 = vshrl.u32 %v13615_v11, 16 }
 0x28c   : > { %11643 = vmatmul.mubr.msk.bf16.gmra.mrb[16].mxu0 %vm957_vm2, %v12721_v20  ;;  %v4942_v20 = vsel %vm1030_vm0, %v13536_v58, 0  ;;  %v5436_v58 = vld [vmem:[%s16819_s0 + $0xa0] sm:$0xff] }
 0x28d   : > { %11646 = vmatprep.mubr.msk.bf16.mxu0 %vm957_vm2, %v12722_v7  ;;  %v4297_v7 = vsel %vm760_vm3, %v4292_v55, %v4296_v0  ;;  %5566 = vperm.xlu0 %12636, %v5436_v58   ;;  %v4358_v55 = vshll.u32 %v13712_v47, 16  ;;  %v4362_v58 = vshrl.u32 %v13712_v47, 16 }
 0x291   : > { %5576 = vperm.xlu0 %12636, %v5438_v30   ;;  %v13751_v30 = vld [vmem:[#allocation2 + $0x88] sm:$0xff]  }
 0x294   : > { %11647 = vmatmul.mubr.msk.bf16.gmra.mrb[20].mxu0 %vm957_vm2, %v12723_v6  ;;  %v4306_v6 = vshrl.u32 %v13629_v35, 16 }
 0x295   : > { %11650 = vmatprep.mubr.msk.bf16.mxu0 %vm957_vm2, %v12724_v13  ;;  %v4310_v13 = vshll.u32 %v13638_v45, 16 }
 0x29c   : > { %11651 = vmatmul.mubr.msk.bf16.gmra.mrb[24].mxu0 %vm957_vm2, %v12725_v9  ;;  %v5435_v9 = vld [vmem:[%s16819_s0 + $0x98] sm:$0xff] }
 0x29d   : > { %11654 = vmatprep.mubr.msk.bf16.mxu0 %vm957_vm2, %v12726_v16  ;;  %v4300_v16 = vor.u32 %v4298_v5, %v4296_v0  ;;  %5561 = vperm.xlu1 %12637, %v5435_v9   ;;  %v4352_v0 = vrot.slane %v4350_v48, 1 }
 0x29f   : > { %v4356_v5 = vor.u32 %v4354_v26, %v4352_v0  ;;  %v5459_v26 = vld [vmem:[%s16819_s0 + $0x158] sm:$0xff] }
 0x2a1   : > { %5571 = vperm.xlu1 %12637, %v5437_v17  }
 0x2a4   : > { %11655 = vmatmul.mubr.msk.bf16.gmra.mrb[28].mxu0 %vm957_vm2, %v12727_v19  ;;  %v4308_v19 = vor.u32 %v4306_v6, %v4304_v31  ;;  %v5449_v6 = vld [vmem:[%s16819_s0 + $0x108] sm:$0xff] }
 0x2a5   : > { %11658 = vmatprep.mubr.msk.bf16.mxu0 %vm957_vm2, %v12728_v14  ;;  %v4312_v14 = vrot.slane %v4310_v13, 1  ;;  %v5450_v13 = vld [vmem:[%s16819_s0 + $0x110] sm:$0xff] }
 0x2a7   : > { %v4313_v23 = vsel %vm760_vm3, %v4308_v19, %v4312_v14  ;;  %v4370_v19 = vshrl.u32 %v13727_v3, 16 }
 0x2ac   : > { %11659 = vmatmul.mubr.msk.bf16.gmra.mrb[32].mxu0 %vm957_vm2, %v12729_v54  ;;  %v4305_v54 = vsel %vm760_vm3, %v4300_v16, %v4304_v31  ;;  %v4366_v31 = vshll.u32 %v13727_v3, 16 }
 0x2ad   : > { %11662 = vmatprep.mubr.msk.bf16.mxu0 %vm957_vm2, %v12730_v32  ;;  %v4314_v32 = vshrl.u32 %v13638_v45, 16 }
 0x2ae   : > { %v4368_v17 = vrot.slane %v4366_v31, 1 }
 0x2af   : > { %v4316_v56 = vor.u32 %v4314_v32, %v4312_v14 }
 0x2b4   : > { %11663 = vmatmul.mubr.msk.bf16.gmra.mrb[36].mxu0 %vm957_vm2, %v12731_v2  ;;  %v5439_v2 = vld [vmem:[%s16819_s0 + $0xb8] sm:$0xff] }
 0x2b5   : > { %11666 = vmatprep.mubr.msk.bf16.mxu0 %vm957_vm2, %v12732_v52  ;;  %v5440_v52 = vld [vmem:[%s16819_s0 + $0xc0] sm:$0xff]  ;;  %5581 = vperm.xlu1 %12637, %v5439_v2   ;;  %v5454_v2 = vld [vmem:[%s16819_s0 + $0x130] sm:$0xff] }
 0x2b6   : > { %5586 = vperm.xlu0 %12636, %v5440_v52   ;;  %v4382_v52 = vshll.u32 %v13751_v30, 16 }
 0x2b9   : > { %5591 = vperm.xlu1 %12637, %v5441_v36   ;;  %v4386_v36 = vshrl.u32 %v13751_v30, 16 }
 0x2ba   : > { %5596 = vperm.xlu0 %12636, %v5442_v38   ;;  %v4390_v38 = vshll.u32 %v13760_v50, 16 }
 0x2bc   : > { %11667 = vmatmul.mubr.msk.bf16.gmra.mrb[40].mxu0 %vm957_vm2, %v12733_v39  ;;  %v4334_v39 = vshll.u32 %v13679_v53, 16 }
 0x2bd   : > { %11670 = vmatprep.mubr.msk.bf16.mxu0 %vm957_vm2, %v12734_v27  ;;  %v4321_v27 = vsel %vm760_vm3, %v4316_v56, %v4320_v41  ;;  %5601 = vperm.xlu1 %12637, %v5443_v44   ;;  %v5453_v41 = vld [vmem:[%s16819_s0 + $0x128] sm:$0xff]  ;;  %v13784_v44 = vld [vmem:[#allocation2 + $0xa0] sm:$0xff]  }
 0x2be   : > { %v4336_v28 = vrot.slane %v4334_v39, 1  ;;  %5606 = vperm.xlu0 %12636, %v5444_v46   ;;  %v4384_v39 = vrot.slane %v4382_v52, 1  ;;  %v5457_v46 = vld [vmem:[%s16819_s0 + $0x148] sm:$0xff]  ;;  %v4410_v31 = vshrl.u32 %v13784_v44, 16 }
 0x2c0   : > { %v4337_v49 = vsel %vm760_vm3, %v4332_v8, %v4336_v28  ;;  %v4388_v42 = vor.u32 %v4386_v36, %v4384_v39  ;;  %v5458_v8 = vld [vmem:[%s16819_s0 + $0x150] sm:$0xff]  ;;  %v13838_v36 = vld [vmem:[#allocation2 + $0xc8] sm:$0xff]  }
 0x2c2   : > { %5616 = vperm.xlu0 %12636, %v5446_v10  }
 0x2c4   : > { %11671 = vmatmul.mubr.msk.bf16.gmra.mrb[44].mxu0 %vm957_vm2, %v12735_v24  ;;  %v4340_v24 = vor.u32 %v4338_v29, %v4336_v28  ;;  %v4392_v28 = vrot.slane %v4390_v38, 1 }
 0x2c5   : > { %11676 = vmatprep.mubr.msk.bf16.mxu0 %vm957_vm2, %v4281_v57  ;;  %v5445_v57 = vld [vmem:[%s16819_s0 + $0xe8] sm:$0xff] }
 0x2c6   : > { %v4345_v61 = vsel %vm760_vm3, %v4340_v24, %v4344_v1  ;;  %5611 = vperm.xlu1 %12637, %v5445_v57   ;;  %5626 = vperm.xlu0 %12636, %v5448_v62   ;;  %v4394_v57 = vshrl.u32 %v13760_v50, 16  ;;  %v4393_v10 = vsel %vm760_vm3, %v4388_v42, %v4392_v28 }
 0x2ca   : > { %5621 = vperm.xlu1 %12637, %v5447_v4   ;;  %5636 = vperm.xlu0 %12636, %v5450_v13  }
 0x2cc   : > { %11677 = vmatmul.mubr.msk.bf16.vlgmr.msra.gmra.mrb[0].mxu0 %vm957_vm2, %v4289_v63  ;;  %v4348_v63 = vor.u32 %v4346_v18, %v4344_v1 }
 0x2cd   : > { %11725 = vmatpush3.bf16.msra.mxu0 %v4942_v20  ;;  %11680 = vmatprep.mubr.msk.bf16.mxu0 %vm957_vm2, %v4297_v7  ;;  %v4360_v20 = vrot.slane %v4358_v55, 1  ;;  %v13736_v7 = vld [vmem:[#allocation2 + $0x80] sm:$0xff]  }
 0x2ce   : > { %v4353_v9 = vsel %vm760_vm3, %v4348_v63, %v4352_v0  ;;  %v4374_v14 = vshll.u32 %v13736_v7, 16  ;;  %5631 = vperm.xlu1 %12637, %v5449_v6   ;;  %v4378_v33 = vshrl.u32 %v13736_v7, 16  ;;  %v5460_v55 = vld [vmem:[%s16819_s0 + $0x160] sm:$0xff]  ;;  %v4396_v0 = vor.u32 %v4394_v57, %v4392_v28  ;;  %v13808_v63 = vld [vmem:[#allocation2 + $0xb0] sm:$0xff]  }
 0x2cf   : > { %v4361_v16 = vsel %vm760_vm3, %v4356_v5, %v4360_v20  ;;  %v4364_v32 = vor.u32 %v4362_v58, %v4360_v20  ;;  %v5461_v5 = vld [vmem:[%s16819_s0 + $0x168] sm:$0xff]  ;;  %v5462_v20 = vld [vmem:[%s16819_s0 + $0x170] sm:$0xff] }
 0x2d0   : > { %v4376_v25 = vrot.slane %v4374_v14, 1  ;;  %v13823_v14 = vld [vmem:[#allocation2 + $0xb8] sm:$0xff]  }
 0x2d1   : > { %v4369_v56 = vsel %vm760_vm3, %v4364_v32, %v4368_v17 }
 0x2d2   : > { %5641 = vperm.xlu1 %12637, %v5451_v22   ;;  %v4380_v29 = vor.u32 %v4378_v33, %v4376_v25 }
 0x2d4   : > { %11681 = vmatmul.mubr.msk.bf16.gmra.mrb[4].mxu0 %vm957_vm2, %v4305_v54  ;;  %v5452_v54 = vld [vmem:[%s16819_s0 + $0x120] sm:$0xff]  ;;  %v4385_v1 = vsel %vm760_vm3, %v4380_v29, %v4384_v39  ;;  %v4446_v29 = vshll.u32 %v13838_v36, 16 }
 0x2d5   : > { %11684 = vmatprep.mubr.msk.bf16.mxu0 %vm957_vm2, %v4313_v23  ;;  %v4372_v23 = vor.u32 %v4370_v19, %v4368_v17  ;;  %5646 = vperm.xlu0 %12636, %v5452_v54   ;;  %v5463_v17 = vld [vmem:[%s16819_s0 + $0x178] sm:$0xff] }
 0x2d6   : > { %5651 = vperm.xlu1 %12637, %v5453_v41  }
 0x2d7   : > { %v4377_v34 = vsel %vm760_vm3, %v4372_v23, %v4376_v25  ;;  %v13829_v23 = vld [vmem:[#allocation2 + $0xc0] sm:$0xff]   ;;  %v4430_v25 = vshll.u32 %v13823_v14, 16 }
 0x2d8   : > { %v4438_v33 = vshll.u32 %v13829_v23, 16  ;;  %v4442_v28 = vshrl.u32 %v13829_v23, 16 }
 0x2d9   : > { %5656 = vperm.xlu0 %12636, %v5454_v2   ;;  %v4426_v2 = vshrl.u32 %v13808_v63, 16 }
 0x2da   : > { %5661 = vperm.xlu1 %12637, %v5455_v40   ;;  %v4440_v40 = vrot.slane %v4438_v33, 1 }
 0x2dc   : > { %11685 = vmatmul.mubr.msk.bf16.gmra.mrb[8].mxu0 %vm957_vm2, %v4321_v27  ;;  %v13775_v27 = vld [vmem:[#allocation2 + $0x98] sm:$0xff]   ;;  %v4444_v57 = vor.u32 %v4442_v28, %v4440_v40 }
 0x2dd   : > { %11688 = vmatprep.mubr.msk.bf16.mxu0 %vm957_vm2, %v4329_v21  ;;  %v5456_v21 = vld [vmem:[%s16819_s0 + $0x140] sm:$0xff]  ;;  %v4398_v24 = vshll.u32 %v13775_v27, 16  ;;  %v4402_v48 = vshrl.u32 %v13775_v27, 16 }
 0x2de   : > { %5666 = vperm.xlu0 %12636, %v5456_v21   ;;  %5671 = vperm.xlu1 %12637, %v5457_v46   ;;  %v13841_v21 = vld [vmem:[#allocation2 + $0xd0] sm:$0xff]  }
 0x2df   : > { %v4400_v18 = vrot.slane %v4398_v24, 1  ;;  %v4454_v24 = vshll.u32 %v13841_v21, 16 }
 0x2e1   : > { %v4404_v4 = vor.u32 %v4402_v48, %v4400_v18  ;;  %v4401_v13 = vsel %vm760_vm3, %v4396_v0, %v4400_v18  ;;  %v4814_v18 = vld [vmem:[#allocation2 + $0x18] sm:$0xe] }
 0x2e2   : > { %5676 = vperm.xlu0 %12636, %v5458_v8   ;;  %5681 = vperm.xlu1 %12637, %v5459_v26   ;;  %v4450_v8 = vshrl.u32 %v13838_v36, 16 }
 0x2e4   : > { %11689 = vmatmul.mubr.msk.bf16.gmra.mrb[12].mxu0 %vm957_vm2, %v4337_v49  ;;  %v4406_v49 = vshll.u32 %v13784_v44, 16 }
 0x2e5   : > { %11692 = vmatprep.mubr.msk.bf16.mxu0 %vm957_vm2, %v4345_v61  ;;  %v13799_v61 = vld [vmem:[#allocation2 + $0xa8] sm:$0xff]  }
 0x2e6   : > { %v4408_v62 = vrot.slane %v4406_v49, 1  ;;  %5686 = vperm.xlu0 %12636, %v5460_v55   ;;  %v4414_v6 = vshll.u32 %v13799_v61, 16  ;;  %v4418_v58 = vshrl.u32 %v13799_v61, 16  ;;  %5691 = vperm.xlu1 %12637, %v5461_v5   ;;  %v4456_v49 = vrot.slane %v4454_v24, 1 }
 0x2e7   : > { %v4458_v55 = vshrl.u32 %v13841_v21, 16 }
 0x2e8   : > { %v4416_v19 = vrot.slane %v4414_v6, 1  ;;  %v4412_v22 = vor.u32 %v4410_v31, %v4408_v62 }
 0x2e9   : > { %v4460_v5 = vor.u32 %v4458_v55, %v4456_v49 }
 0x2ea   : > { %5696 = vperm.xlu0 %12636, %v5462_v20   ;;  %v4420_v54 = vor.u32 %v4418_v58, %v4416_v19  ;;  %5701 = vperm.xlu1 %12637, %v5463_v17   ;;  %v4417_v41 = vsel %vm760_vm3, %v4412_v22, %v4416_v19  ;;  %v4823_v58 = vrot.slane %v13606_v60, 1  ;;  %v4829_v17 = vrot.slane %v13638_v45, 1 }
 0x2eb   : > { %v4831_v60 = vrot.slane %v13655_v15, 1  ;;  %v4837_v45 = vrot.slane %v13688_v12, 1  ;;  %v4839_v15 = vrot.slane %v13703_v51, 1  ;;  %v4845_v12 = vrot.slane %v13736_v7, 1 }
 0x2ec   : > { %11693 = vmatmul.mubr.msk.bf16.gmra.mrb[16].mxu0 %vm957_vm2, %v4353_v9  ;;  %v4409_v9 = vsel %vm760_vm3, %v4404_v4, %v4408_v62  ;;  %v10565_v62 = vcombine.low %v4814_v18, %v13582_v43  ;;  %v4825_v43 = vrot.slane %v13615_v11, 1  ;;  %v4833_v11 = vrot.slane %v13664_v37, 1 }
 0x2ed   : > { %11696 = vmatprep.mubr.msk.bf16.mxu0 %vm957_vm2, %v4361_v16  ;;  %v4422_v16 = vshll.u32 %v13808_v63, 16  ;;  %v4841_v37 = vrot.slane %v13712_v47, 1  ;;  %v4847_v51 = vrot.slane %v13751_v30, 1  ;;  %v4849_v47 = vrot.slane %v13760_v50, 1 }
 0x2ee   : > { %v4820_v6 = vrot.slane %v10565_v62, 1  ;;  %v4826_v19 = vsel %vm1541_vm4, %v4823_v58, %v4825_v43  ;;  %v4853_v7 = vrot.slane %v13784_v44, 1  ;;  %v4855_v30 = vrot.slane %v13799_v61, 1 }
 0x2ef   : > { %v4424_v32 = vrot.slane %v4422_v16, 1  ;;  %v4857_v50 = vrot.slane %v13808_v63, 1  ;;  %v4861_v44 = vrot.slane %v13829_v23, 1  ;;  %v4863_v61 = vrot.slane %v13838_v36, 1  ;;  %v10591_v36 = vld [vmem:[%s16823_s4 + $0x4] sm:$0xf] }
 0x2f0   : > { %v4865_v63 = vrot.slane %v13841_v21, 1  ;;  %v13939_v21 = vld [vmem:[#allocation3] sm:$0xf0]  ;;  %12617 = vmatprep.subr.msk.bf16.mxu1 %vm1030_vm0, %v10591_v36 }
 0x2f1   : > { %v4425_v52 = vsel %vm760_vm3, %v4420_v54, %v4424_v32  ;;  %v4428_v38 = vor.u32 %v4426_v2, %v4424_v32  ;;  %v4832_v32 = vsel %vm1541_vm4, %v4829_v17, %v4831_v60  ;;  %v4858_v28 = vsel %vm1541_vm4, %v4855_v30, %v4857_v50 }
 0x2f2   : > { %v4864_v24 = vsel %vm1541_vm4, %v4861_v44, %v4863_v61 }
 0x2f4   : > { %11697 = vmatmul.mubr.msk.bf16.gmra.mrb[20].mxu0 %vm957_vm2, %v4369_v56  ;;  %v4434_v56 = vshrl.u32 %v13823_v14, 16 }
 0x2f5   : > { %11700 = vmatprep.mubr.msk.bf16.mxu0 %vm957_vm2, %v4377_v34  ;;  %v4432_v34 = vrot.slane %v4430_v25, 1  ;;  %v4834_v25 = vsel %vm1541_vm4, %v4831_v60, %v4833_v11 }
 0x2f7   : > { %v4436_v39 = vor.u32 %v4434_v56, %v4432_v34  ;;  %v4433_v42 = vsel %vm760_vm3, %v4428_v38, %v4432_v34  ;;  %v4842_v56 = vsel %vm1541_vm4, %v4839_v15, %v4841_v37  ;;  %v4848_v38 = vsel %vm1541_vm4, %v4845_v12, %v4847_v51 }
 0x2f9   : > { %v4441_v46 = vsel %vm760_vm3, %v4436_v39, %v4440_v40  ;;  %v4850_v39 = vsel %vm1541_vm4, %v4847_v51, %v4849_v47 }
 0x2fc   : > { %11701 = vmatmul.mubr.msk.bf16.gmra.mrb[24].mxu0 %vm957_vm2, %v4385_v1  ;;  %v4448_v1 = vrot.slane %v4446_v29, 1 }
 0x2fd   : > { %11704 = vmatprep.mubr.msk.bf16.mxu0 %vm957_vm2, %v4393_v10  ;;  %v13851_v10 = vld [vmem:[#allocation2 + $0xd8] ss:$0 sps:$4 sm:$0x11]  }
 0x2fe   : > { %v4452_v48 = vor.u32 %v4450_v8, %v4448_v1  ;;  %v4449_v26 = vsel %vm760_vm3, %v4444_v57, %v4448_v1  ;;  %v4462_v0 = vshll.u32 %v13851_v10, 16  ;;  %v4866_v1 = vsel %vm1541_vm4, %v4863_v61, %v4865_v63  ;;  %v13937_v57 = vld [vmem:[#allocation3 + $0x8] sm:$0xff] }
 0x2ff   : > { %v6202_v55 = vshrl.u32 %v13937_v57, 16 }
 0x300   : > { %v4457_v4 = vsel %vm760_vm3, %v4452_v48, %v4456_v49  ;;  %v4464_v20 = vrot.slane %v4462_v0, 1  ;;  %v5981_v48 = vsel %vm1030_vm0, %v10591_v36, 0  ;;  %v5859_v49 = vrot.slane %v13939_v21, 4 }
 0x301   : > { %11775 = vmatpush3.bf16.msra.mxu1 %v5981_v48  ;;  %v6205_v0 = vshll.u32 %v13937_v57, 16 }
 0x302   : > { %v4465_v31 = vsel %vm760_vm3, %v4460_v5, %v4464_v20  ;;  %v5467_v20 = vpop.permute.xlu0 %5466 }
 0x303   : > { %v6714_v62 = vrot.slane %v6205_v0, 5 }
 0x304   : > { %11705 = vmatmul.mubr.msk.bf16.gmra.mrb[28].mxu0 %vm957_vm2, %v4401_v13  ;;  %v4821_v13 = vrot.slane %v13596_v59, 1  ;;  %v4827_v59 = vrot.slane %v13629_v35, 1  ;;  %v4835_v35 = vrot.slane %v13679_v53, 1  ;;  %v4843_v53 = vrot.slane %v13727_v3, 1 }
 0x305   : > { %11708 = vmatprep.mubr.msk.bf16.mxu0 %vm957_vm2, %v4409_v9  ;;  %v4851_v3 = vrot.slane %v13775_v27, 1  ;;  %v4859_v27 = vrot.slane %v13823_v14, 1  ;;  %v4867_v14 = vrot.slane %v13851_v10, 1  ;;  %v5860_v10 = vrot.slane %v13937_v57, 4 }
 0x306   : > { %v4822_v9 = vsel %vm1541_vm4, %v4820_v6, %v4821_v13  ;;  %v4824_v16 = vsel %vm1541_vm4, %v4821_v13, %v4823_v58  ;;  %v4828_v22 = vsel %vm1541_vm4, %v4825_v43, %v4827_v59  ;;  %v4830_v54 = vsel %vm1541_vm4, %v4827_v59, %v4829_v17  ;;  %v5477_v6 = vpop.permute.xlu1 %5476  ;;  %v5472_v13 = vpop.permute.xlu0 %5471 }
 0x307   : > { %v4838_v2 = vsel %vm1541_vm4, %v4835_v35, %v4837_v45  ;;  %v4844_v33 = vsel %vm1541_vm4, %v4841_v37, %v4843_v53  ;;  %v4846_v34 = vsel %vm1541_vm4, %v4843_v53, %v4845_v12  ;;  %v4852_v40 = vsel %vm1541_vm4, %v4849_v47, %v4851_v3 }
 0x308   : > { %v4854_v29 = vsel %vm1541_vm4, %v4851_v3, %v4853_v7  ;;  %v4862_v8 = vsel %vm1541_vm4, %v4859_v27, %v4861_v44  ;;  %v4868_v23 = vsel %vm1541_vm4, %v4865_v63, %v4867_v14  ;;  %v5861_v18 = vsel %vm1030_vm0, %v5859_v49, %v5860_v10  ;;  %v5804_v63 = vld [vmem:[#allocation3] sm:$0xf8] }
 0x309   : > { %11776 = vmatprep.mubr.msk.bf16.mxu1 %vm957_vm2, %v5861_v18 }
 0x30c   : > { %11709 = vmatmul.mubr.msk.bf16.gmra.mrb[32].mxu0 %vm957_vm2, %v4417_v41  ;;  %v4836_v41 = vsel %vm1541_vm4, %v4833_v11, %v4835_v35 }
 0x30d   : > { %11712 = vmatprep.mubr.msk.bf16.mxu0 %vm957_vm2, %v4425_v52  ;;  %v4840_v52 = vsel %vm1541_vm4, %v4837_v45, %v4839_v15 }
 0x314   : > { %11713 = vmatmul.mubr.msk.bf16.gmra.mrb[36].mxu0 %vm957_vm2, %v4433_v42  ;;  %v4856_v42 = vsel %vm1541_vm4, %v4853_v7, %v4855_v30 }
 0x315   : > { %11716 = vmatprep.mubr.msk.bf16.mxu0 %vm957_vm2, %v4441_v46  ;;  %v4860_v46 = vsel %vm1541_vm4, %v4857_v50, %v4859_v27 }
 0x31c   : > { %11717 = vmatmul.mubr.msk.bf16.gmra.mrb[40].mxu0 %vm957_vm2, %v4449_v26  ;;  %v13952_v26 = vld [vmem:[%s16823_s4] sm:$0xf] }
 0x31d   : > { %11720 = vmatprep.mubr.msk.bf16.mxu0 %vm957_vm2, %v4457_v4  ;;  %12618 = vmatprep.subr.msk.bf16.mxu1 %vm1030_vm0, %v13952_v26  ;;  %v6713_v4 = vrot.slane %v6202_v55, 4 }
 0x31f   : > { %v13960_v5 = vor.u32 %v6714_v62, %v6713_v4  ;;  %v6207_v4 = vrot.slane %v6205_v0, 4 }
 0x324   : > { %11721 = vmatmul.mubr.msk.bf16.gmra.mrb[44].mxu0 %vm957_vm2, %v4465_v31  ;;  %v5482_v31 = vpop.permute.xlu1 %5481 }
 0x325   : > { %11726 = vmatprep.mubr.msk.bf16.mxu0 %vm957_vm2, %v4822_v9  ;;  %v13962_v9 = vpop.permute.xlu0 %5486 }
 0x328   : > { %v13964_v58 = vpop.permute.xlu1 %5491 }
 0x329   : > { %v13966_v43 = vpop.permute.xlu0 %5496 }
 0x32c   : > { %11727 = vmatmul.mubr.msk.bf16.vlgmr.msra.gmra.mrb[0].mxu0 %vm957_vm2, %v4824_v16  ;;  %v13968_v16 = vpop.permute.xlu1 %5501 }
 0x32d   : > { %11730 = vmatprep.mubr.msk.bf16.mxu0 %vm957_vm2, %v4826_v19  ;;  %v13970_v19 = vpop.permute.xlu0 %5506 }
 0x330   : > { %v13972_v59 = vpop.permute.xlu1 %5511 }
 0x331   : > { %v13974_v17 = vpop.permute.xlu0 %5516 }
 0x334   : > { %11731 = vmatmul.mubr.msk.bf16.gmra.mrb[4].mxu0 %vm957_vm2, %v4828_v22  ;;  %v13976_v22 = vpop.permute.xlu1 %5521 }
 0x335   : > { %11734 = vmatprep.mubr.msk.bf16.mxu0 %vm957_vm2, %v4830_v54  ;;  %v13978_v54 = vpop.permute.xlu0 %5526 }
 0x338   : > { %v13980_v60 = vpop.permute.xlu1 %5531 }
 0x339   : > { %v13982_v11 = vpop.permute.xlu0 %5536 }
 0x33c   : > { %11735 = vmatmul.mubr.msk.bf16.gmra.mrb[8].mxu0 %vm957_vm2, %v4832_v32  ;;  %v13987_v32 = vld [vmem:[%s16822_s3] ss:$0 sm:$0xff] }
 0x33d   : > { %11738 = vmatprep.mubr.msk.bf16.mxu0 %vm957_vm2, %v4834_v25  ;;  %v13989_v25 = vpop.permute.xlu1 %5541  ;;  %v13993_v37 = vpop.permute.xlu0 %5546 }
 0x341   : > { %v13999_v50 = vpop.permute.xlu0 %5556 }
 0x344   : > { %11739 = vmatmul.mubr.msk.bf16.gmra.mrb[12].mxu0 %vm957_vm2, %v4836_v41 }
 0x345   : > { %11742 = vmatprep.mubr.msk.bf16.mxu0 %vm957_vm2, %v4838_v2 }
 0x34c   : > { %11743 = vmatmul.mubr.msk.bf16.gmra.mrb[16].mxu0 %vm957_vm2, %v4840_v52 }
 0x34d   : > { %11746 = vmatprep.mubr.msk.bf16.mxu0 %vm957_vm2, %v4842_v56 }
 0x354   : > { %11747 = vmatmul.mubr.msk.bf16.gmra.mrb[20].mxu0 %vm957_vm2, %v4844_v33 }
 0x355   : > { %11750 = vmatprep.mubr.msk.bf16.mxu0 %vm957_vm2, %v4846_v34  ;;  %v13997_v34 = vpop.permute.xlu1 %5551 }
 0x35c   : > { %11751 = vmatmul.mubr.msk.bf16.gmra.mrb[24].mxu0 %vm957_vm2, %v4848_v38 }
 0x35d   : > { %11754 = vmatprep.mubr.msk.bf16.mxu0 %vm957_vm2, %v4850_v39 }
 0x364   : > { %11755 = vmatmul.mubr.msk.bf16.gmra.mrb[28].mxu0 %vm957_vm2, %v4852_v40 }
 0x365   : > { %11758 = vmatprep.mubr.msk.bf16.mxu0 %vm957_vm2, %v4854_v29 }
 0x36c   : > { %11759 = vmatmul.mubr.msk.bf16.gmra.mrb[32].mxu0 %vm957_vm2, %v4856_v42 }
 0x36d   : > { %11762 = vmatprep.mubr.msk.bf16.mxu0 %vm957_vm2, %v4858_v28 }
 0x374   : > { %11763 = vmatmul.mubr.msk.bf16.gmra.mrb[36].mxu0 %vm957_vm2, %v4860_v46 }
 0x375   : > { %11766 = vmatprep.mubr.msk.bf16.mxu0 %vm957_vm2, %v4862_v8 }
 0x37c   : > { %11767 = vmatmul.mubr.msk.bf16.gmra.mrb[40].mxu0 %vm957_vm2, %v4864_v24  ;;  %v6204_v24 = vrot.slane %v6202_v55, 3 }
 0x37d   : > { %11770 = vmatprep.mubr.msk.bf16.mxu0 %vm957_vm2, %v4866_v1  ;;  %v14003_v1 = vpop.permute.xlu1 %5561 }
 0x37e   : > { %v14015_v0 = vor.u32 %v6207_v4, %v6204_v24 }
 0x384   : > { %11771 = vmatmul.mubr.msk.bf16.gmra.mrb[44].mxu0 %vm957_vm2, %v4868_v23 }
 0x3ff   : > { %v11728_v35 = vpop.f32.mrb[0].mxu0 }
 0x400   : > { %v5226_v45 = vadd.f32 %v11728_v35, %v13987_v32  ;;  %v4978_v41 = vpop.f32.mrb[1].mxu0  ;;  %v14011_v35 = vpop.permute.xlu0 %5566 }
 0x401   : > { %v5224_v2 = vadd.f32 %v13987_v32, %v4978_v41  ;;  %v11729_v15 = vpop.f32.mrb[2].mxu0 }
 0x402   : > { %vm5274_vm5 = vcmp.ge.f32.partialorder %v5226_v45, 0.0  ;;  %v5322_v52 = vmul.f32 0.2, %v5226_v45  ;;  %v5227_v56 = vadd.f32 %v11729_v15, %v13987_v32  ;;  %v4981_v53 = vpop.f32.mrb[3].mxu0 }
 0x403   : > { %vm5272_vm6 = vcmp.ge.f32.partialorder %v5224_v2, 0.0  ;;  %v5320_v12 = vmul.f32 0.2, %v5224_v2  ;;  %v5225_v33 = vadd.f32 %v13987_v32, %v4981_v53 }
 0x404   : > { %v5370_v51 = vsel %vm5274_vm5, %v5226_v45, %v5322_v52  ;;  %vm5275_vm7 = vcmp.ge.f32.partialorder %v5227_v56, 0.0  ;;  %v5323_v47 = vmul.f32 0.2, %v5227_v56 }
 0x405   : > { %v5368_v38 = vsel %vm5272_vm6, %v5224_v2, %v5320_v12  ;;  %vm5273_vm8 = vcmp.ge.f32.partialorder %v5225_v33, 0.0  ;;  %v5321_v39 = vmul.f32 0.2, %v5225_v33  ;;  %v5706_v7 = vmul.f32 %v5477_v6, %v5370_v51 }
 0x406   : > { %v5371_v3 = vsel %vm5275_vm7, %v5227_v56, %v5323_v47  ;;  %v5704_v42 = vmul.f32 %v5467_v20, %v5368_v38  ;;  %v6194_v20 = vshrl.u32 %v5804_v63, 16  ;;  %v14017_v56 = vpop.permute.xlu1 %5571  ;;  %v6490_v47 = vsel %vm1030_vm0, %v13952_v26, 0 }
 0x407   : > { %v5707_v40 = vmul.f32 %v5482_v31, %v5371_v3  ;;  %v5369_v29 = vsel %vm5273_vm8, %v5225_v33, %v5321_v39  ;;  %v11732_v30 = vpop.f32.mrb[4].mxu0  ;;  %v6197_v31 = vshll.u32 %v5804_v63, 16  ;;  %vm6192_vm8 = vsmask.f32 4352 }
 0x408   : > { %v5705_v28 = vmul.f32 %v5472_v13, %v5369_v29  ;;  %v5230_v27 = vadd.f32 %v11732_v30, %v13987_v32  ;;  %v4994_v44 = vpop.f32.mrb[5].mxu0  ;;  %v14025_v39 = vrot.slane %v6194_v20, 3 }
 0x409   : > { %v5755_v46 = vpack.c.bf16 %v5707_v40, %v5706_v7  ;;  %v5228_v8 = vadd.f32 %v13987_v32, %v4994_v44  ;;  %v11733_v61 = vpop.f32.mrb[6].mxu0  ;;  %v14027_v3 = vrot.slane %v6197_v31, 4 }
 0x40a   : > { %v5754_v14 = vpack.c.bf16 %v5705_v28, %v5704_v42  ;;  %vm5278_vm9 = vcmp.ge.f32.partialorder %v5230_v27, 0.0  ;;  %v5326_v23 = vmul.f32 0.2, %v5230_v27  ;;  %v5231_v36 = vadd.f32 %v11733_v61, %v13987_v32  ;;  %v4997_v48 = vpop.f32.mrb[7].mxu0 }
 0x40b   : > { %5779 = vst.msk [vmem:[#allocation3 + $0x18] sm:$0xff] %vm957_vm2, %v5755_v46  ;;  %vm5276_vm10 = vcmp.ge.f32.partialorder %v5228_v8, 0.0  ;;  %v5324_v49 = vmul.f32 0.2, %v5228_v8  ;;  %v5229_v18 = vadd.f32 %v13987_v32, %v4997_v48  ;;  %v6200_v24 = vor.u32 %v14027_v3, %v14025_v39 }
 0x40c   : > { %5778 = vst.msk [vmem:[#allocation3 + $0x10] sm:$0xff] %vm957_vm2, %v5754_v14  ;;  %v5374_v55 = vsel %vm5278_vm9, %v5230_v27, %v5326_v23  ;;  %vm5279_vm11 = vcmp.ge.f32.partialorder %v5231_v36, 0.0  ;;  %v5327_v62 = vmul.f32 0.2, %v5231_v36  ;;  %v14037_v27 = vpop.permute.xlu0 %5576  ;;  %v14043_v14 = vpop.permute.xlu1 %5581 }
 0x40d   : > { %v5372_v6 = vsel %vm5276_vm10, %v5228_v8, %v5324_v49  ;;  %vm5277_vm12 = vcmp.ge.f32.partialorder %v5229_v18, 0.0  ;;  %v5325_v13 = vmul.f32 0.2, %v5229_v18  ;;  %v5710_v41 = vmul.f32 %v13966_v43, %v5374_v55 }
 0x40e   : > { %v5375_v45 = vsel %vm5279_vm11, %v5231_v36, %v5327_v62  ;;  %v5708_v53 = vmul.f32 %v13962_v9, %v5372_v6 }
 0x40f   : > { %v5711_v2 = vmul.f32 %v13968_v16, %v5375_v45  ;;  %v5373_v15 = vsel %vm5277_vm12, %v5229_v18, %v5325_v13  ;;  %v11736_v52 = vpop.f32.mrb[8].mxu0  ;;  %v14053_v18 = vld [vmem:[%s16823_s4 + $0x8] sm:$0xf] }
 0x410   : > { %v5709_v12 = vmul.f32 %v13964_v58, %v5373_v15  ;;  %v5234_v33 = vadd.f32 %v11736_v52, %v13987_v32  ;;  %v5010_v51 = vpop.f32.mrb[9].mxu0 }
 0x411   : > { %v5757_v38 = vpack.c.bf16 %v5711_v2, %v5710_v41  ;;  %v5232_v43 = vadd.f32 %v13987_v32, %v5010_v51  ;;  %v11737_v16 = vpop.f32.mrb[10].mxu0 }
 0x412   : > { %v5756_v7 = vpack.c.bf16 %v5709_v12, %v5708_v53  ;;  %vm5282_vm13 = vcmp.ge.f32.partialorder %v5234_v33, 0.0  ;;  %v5330_v40 = vmul.f32 0.2, %v5234_v33  ;;  %v5235_v9 = vadd.f32 %v11737_v16, %v13987_v32  ;;  %v5013_v58 = vpop.f32.mrb[11].mxu0  ;;  %v14030_v29 = vld [vmem:[#allocation3 + $0x18] sm:$0xff]  ;;  %v14081_v16 = vpop.permute.xlu1 %5591 }
 0x413   : > { %16932 = vst [vmem:[#allocation4_spill] sm:$0xff] %v14030_v29  ;;  %5781 = vst.msk [vmem:[#allocation3 + $0x28] sm:$0xff] %vm957_vm2, %v5757_v38  ;;  %vm5280_vm14 = vcmp.ge.f32.partialorder %v5232_v43, 0.0  ;;  %v5328_v26 = vmul.f32 0.2, %v5232_v43  ;;  %v5233_v30 = vadd.f32 %v13987_v32, %v5013_v58  ;;  %v14034_v42 = vld [vmem:[#allocation3 + $0x10] sm:$0xff] }
 0x414   : > { %v5864_v28 = vrot.slane %v14030_v29, 4  ;;  %5780 = vst.msk [vmem:[#allocation3 + $0x20] sm:$0xff] %vm957_vm2, %v5756_v7  ;;  %v5378_v44 = vsel %vm5282_vm13, %v5234_v33, %v5330_v40  ;;  %vm5283_vm15 = vcmp.ge.f32.partialorder %v5235_v9, 0.0  ;;  %v5331_v46 = vmul.f32 0.2, %v5235_v9 }
 0x415   : > { %v5862_v8 = vrot.slane %v14034_v42, 4  ;;  %v5376_v61 = vsel %vm5280_vm14, %v5232_v43, %v5328_v26  ;;  %vm5281_vm1 = vcmp.ge.f32.partialorder %v5233_v30, 0.0  ;;  %v5329_v63 = vmul.f32 0.2, %v5233_v30 }
 0x416   : > { %v5714_v23 = vmul.f32 %v13974_v17, %v5378_v44  ;;  %v5379_v36 = vsel %vm5283_vm15, %v5235_v9, %v5331_v46  ;;  %v6211_v49 = vshrl.u32 %v14034_v42, 16  ;;  %v6214_v17 = vshll.u32 %v14034_v42, 16 }
 0x417   : > { %v5863_v48 = vsel %vm1030_vm0, %v5860_v10, %v5862_v8  ;;  %v5715_v4 = vmul.f32 %v13976_v22, %v5379_v36  ;;  %v5377_v55 = vsel %vm5281_vm1, %v5233_v30, %v5329_v63  ;;  %v11740_v62 = vpop.f32.mrb[12].mxu0  ;;  %v5865_v20 = vsel %vm1030_vm0, %v5862_v8, %v5864_v28 }
 0x418   : > { %11777 = vmatmul.mubr.msk.bf16.vlgmr.msra.gmra.mrb[0].mxu1 %vm957_vm2, %v5863_v48  ;;  %v5712_v57 = vmul.f32 %v13970_v19, %v5376_v61  ;;  %v5713_v10 = vmul.f32 %v13972_v59, %v5377_v55  ;;  %v5238_v13 = vadd.f32 %v11740_v62, %v13987_v32  ;;  %v5026_v31 = vpop.f32.mrb[13].mxu0  ;;  %v6213_v45 = vrot.slane %v6211_v49, 3  ;;  %v14071_v59 = vpop.permute.xlu0 %5586 }
 0x419   : > { %11825 = vmatpush3.bf16.msra.mxu1 %v6490_v47  ;;  %11780 = vmatprep.mubr.msk.bf16.mxu1 %vm957_vm2, %v5865_v20  ;;  %v5759_v22 = vpack.c.bf16 %v5715_v4, %v5714_v23  ;;  %v6216_v41 = vrot.slane %v6214_v17, 4  ;;  %v5236_v2 = vadd.f32 %v13987_v32, %v5026_v31  ;;  %v11741_v19 = vpop.f32.mrb[14].mxu0  ;;  %v16830_v42 = vshll.u32 %v14030_v29, 16 }
 0x41a   : > { %12619 = vmatprep.subr.msk.bf16.mxu1 %vm1030_vm0, %v14053_v18  ;;  %v5758_v15 = vpack.c.bf16 %v5713_v10, %v5712_v57  ;;  %vm5286_vm4 = vcmp.ge.f32.partialorder %v5238_v13, 0.0  ;;  %v5334_v52 = vmul.f32 0.2, %v5238_v13  ;;  %v5239_v53 = vadd.f32 %v11741_v19, %v13987_v32  ;;  %v5029_v12 = vpop.f32.mrb[15].mxu0  ;;  %v14074_v33 = vld [vmem:[#allocation3 + $0x28] sm:$0xff] }
 0x41b   : > { %16933 = vst [vmem:[#allocation5_spill] sm:$0xff] %v14074_v33  ;;  %5783 = vst.msk [vmem:[#allocation3 + $0x38] sm:$0xff] %vm957_vm2, %v5759_v22  ;;  %vm5284_vm5 = vcmp.ge.f32.partialorder %v5236_v2, 0.0  ;;  %v5332_v51 = vmul.f32 0.2, %v5236_v2  ;;  %v5237_v47 = vadd.f32 %v13987_v32, %v5029_v12  ;;  %v14078_v38 = vld [vmem:[#allocation3 + $0x20] sm:$0xff]  ;;  %v14091_v48 = vor.u32 %v6216_v41, %v6213_v45 }
 0x41c   : > { %16934 = vst [vmem:[#allocation6_spill] sm:$0xff] %v14078_v38  ;;  %v5868_v43 = vrot.slane %v14074_v33, 4  ;;  %5782 = vst.msk [vmem:[#allocation3 + $0x30] sm:$0xff] %vm957_vm2, %v5758_v15  ;;  %v5382_v7 = vsel %vm5286_vm4, %v5238_v13, %v5334_v52  ;;  %vm5287_vm6 = vcmp.ge.f32.partialorder %v5239_v53, 0.0  ;;  %v5335_v40 = vmul.f32 0.2, %v5239_v53  ;;  %v14093_v4 = vpop.permute.xlu0 %5596  ;;  %v14116_v13 = vpop.permute.xlu1 %5601 }
 0x41d   : > { %v5866_v9 = vrot.slane %v14078_v38, 4  ;;  %v5380_v26 = vsel %vm5284_vm5, %v5236_v2, %v5332_v51  ;;  %vm5285_vm7 = vcmp.ge.f32.partialorder %v5237_v47, 0.0  ;;  %v5333_v30 = vmul.f32 0.2, %v5237_v47 }
 0x41e   : > { %v5383_v44 = vsel %vm5287_vm6, %v5239_v53, %v5335_v40  ;;  %v5718_v61 = vmul.f32 %v13982_v11, %v5382_v7  ;;  %v5716_v55 = vmul.f32 %v13978_v54, %v5380_v26  ;;  %v14104_v11 = vsel %vm6192_vm8, %v6200_v24, %v14015_v0 }
 0x41f   : > { %v5867_v46 = vsel %vm1030_vm0, %v5864_v28, %v5866_v9  ;;  %v5869_v8 = vsel %vm1030_vm0, %v5866_v9, %v5868_v43  ;;  %v5719_v63 = vmul.f32 %v13989_v25, %v5383_v44  ;;  %v5381_v23 = vsel %vm5285_vm7, %v5237_v47, %v5333_v30  ;;  %v11744_v36 = vpop.f32.mrb[16].mxu0 }
 0x420   : > { %11781 = vmatmul.mubr.msk.bf16.gmra.mrb[4].mxu1 %vm957_vm2, %v5867_v46  ;;  %v5717_v62 = vmul.f32 %v13980_v60, %v5381_v23  ;;  %v5242_v28 = vadd.f32 %v11744_v36, %v13987_v32  ;;  %v5042_v20 = vpop.f32.mrb[17].mxu0  ;;  %v14110_v54 = vsel %vm6192_vm8, %v14015_v0, %v14091_v48  ;;  %v14114_v60 = vsel %vm1030_vm0, %v14053_v18, 0  ;;  %v14129_v51 = vpop.permute.xlu0 %5606 }
 0x421   : > { %11784 = vmatprep.mubr.msk.bf16.mxu1 %vm957_vm2, %v5869_v8  ;;  %v5761_v25 = vpack.c.bf16 %v5719_v63, %v5718_v61  ;;  %v5240_v57 = vadd.f32 %v13987_v32, %v5042_v20  ;;  %v11745_v10 = vpop.f32.mrb[18].mxu0  ;;  %v16831_v12 = vshrl.u32 %v14030_v29, 16  ;;  %v14133_v47 = vrot.slane %v6211_v49, 4  ;;  %v14144_v61 = vpop.permute.xlu1 %5611 }
 0x422   : > { %v5760_v31 = vpack.c.bf16 %v5717_v62, %v5716_v55  ;;  %vm5290_vm9 = vcmp.ge.f32.partialorder %v5242_v28, 0.0  ;;  %v5338_v39 = vmul.f32 0.2, %v5242_v28  ;;  %v5243_v3 = vadd.f32 %v11745_v10, %v13987_v32  ;;  %v5045_v24 = vpop.f32.mrb[19].mxu0  ;;  %v14119_v22 = vld [vmem:[#allocation3 + $0x38] sm:$0xff] }
 0x423   : > { %5785 = vst.msk [vmem:[#allocation3 + $0x48] sm:$0xff] %vm957_vm2, %v5761_v25  ;;  %vm5288_vm10 = vcmp.ge.f32.partialorder %v5240_v57, 0.0  ;;  %v5336_v45 = vmul.f32 0.2, %v5240_v57  ;;  %v5241_v0 = vadd.f32 %v13987_v32, %v5045_v24  ;;  %v14123_v41 = vld [vmem:[#allocation3 + $0x30] sm:$0xff]  ;;  %v5872_v18 = vrot.slane %v14119_v22, 4 }
 0x424   : > { %5784 = vst.msk [vmem:[#allocation3 + $0x40] sm:$0xff] %vm957_vm2, %v5760_v31  ;;  %v5386_v2 = vsel %vm5290_vm9, %v5242_v28, %v5338_v39  ;;  %vm5291_vm11 = vcmp.ge.f32.partialorder %v5243_v3, 0.0  ;;  %v5339_v19 = vmul.f32 0.2, %v5243_v3  ;;  %v5870_v15 = vrot.slane %v14123_v41, 4  ;;  %v14163_v39 = vpop.permute.xlu0 %5616 }
 0x425   : > { %v5384_v52 = vsel %vm5288_vm10, %v5240_v57, %v5336_v45  ;;  %vm5289_vm12 = vcmp.ge.f32.partialorder %v5241_v0, 0.0  ;;  %v5337_v53 = vmul.f32 0.2, %v5241_v0  ;;  %v14139_v26 = vrot.slane %v6214_v17, 5 }
 0x426   : > { %v5387_v7 = vsel %vm5291_vm11, %v5243_v3, %v5339_v19  ;;  %v5871_v40 = vsel %vm1030_vm0, %v5868_v43, %v5870_v15  ;;  %v5873_v9 = vsel %vm1030_vm0, %v5870_v15, %v5872_v18  ;;  %v5722_v30 = vmul.f32 %v13999_v50, %v5386_v2  ;;  %v14169_v15 = vpop.permute.xlu1 %5621 }
 0x427   : > { %v5723_v44 = vmul.f32 %v14003_v1, %v5387_v7  ;;  %v5385_v46 = vsel %vm5289_vm12, %v5241_v0, %v5337_v53  ;;  %v11748_v8 = vpop.f32.mrb[20].mxu0  ;;  %v5720_v49 = vmul.f32 %v13993_v37, %v5384_v52  ;;  %v6222_v36 = vrot.slane %v16831_v12, 3 }
 0x428   : > { %11785 = vmatmul.mubr.msk.bf16.gmra.mrb[8].mxu1 %vm957_vm2, %v5871_v40  ;;  %v5721_v43 = vmul.f32 %v13997_v34, %v5385_v46  ;;  %v5246_v63 = vadd.f32 %v11748_v8, %v13987_v32  ;;  %v5058_v23 = vpop.f32.mrb[21].mxu0  ;;  %v16829_v55 = vshrl.u32 %v14078_v38, 16  ;;  %v6225_v19 = vrot.slane %v16830_v42, 4 }
 0x429   : > { %11788 = vmatprep.mubr.msk.bf16.mxu1 %vm957_vm2, %v5873_v9  ;;  %v5763_v50 = vpack.c.bf16 %v5723_v44, %v5722_v30  ;;  %v5244_v1 = vadd.f32 %v13987_v32, %v5058_v23  ;;  %v11749_v17 = vpop.f32.mrb[22].mxu0  ;;  %v16828_v8 = vshll.u32 %v14078_v38, 16  ;;  %v16827_v23 = vshrl.u32 %v14074_v33, 16 }
 0x42a   : > { %v5762_v62 = vpack.c.bf16 %v5721_v43, %v5720_v49  ;;  %vm5294_vm13 = vcmp.ge.f32.partialorder %v5246_v63, 0.0  ;;  %v5342_v37 = vmul.f32 0.2, %v5246_v63  ;;  %v5247_v34 = vadd.f32 %v11749_v17, %v13987_v32  ;;  %v5061_v28 = vpop.f32.mrb[23].mxu0  ;;  %v14156_v20 = vld [vmem:[#allocation3 + $0x48] sm:$0xff] }
 0x42b   : > { %5787 = vst.msk [vmem:[#allocation3 + $0x58] sm:$0xff] %vm957_vm2, %v5763_v50  ;;  %vm5292_vm14 = vcmp.ge.f32.partialorder %v5244_v1, 0.0  ;;  %v5340_v25 = vmul.f32 0.2, %v5244_v1  ;;  %v5245_v57 = vadd.f32 %v13987_v32, %v5061_v28  ;;  %v14160_v10 = vld [vmem:[#allocation3 + $0x40] sm:$0xff]  ;;  %v5876_v31 = vrot.slane %v14156_v20, 4 }
 0x42c   : > { %5786 = vst.msk [vmem:[#allocation3 + $0x50] sm:$0xff] %vm957_vm2, %v5762_v62  ;;  %v5390_v3 = vsel %vm5294_vm13, %v5246_v63, %v5342_v37  ;;  %vm5295_vm15 = vcmp.ge.f32.partialorder %v5247_v34, 0.0  ;;  %v5343_v24 = vmul.f32 0.2, %v5247_v34  ;;  %v5874_v45 = vrot.slane %v14160_v10, 4  ;;  %v14190_v62 = vpop.permute.xlu0 %5626 }
 0x42d   : > { %v5388_v0 = vsel %vm5292_vm14, %v5244_v1, %v5340_v25  ;;  %vm5293_vm1 = vcmp.ge.f32.partialorder %v5245_v57, 0.0  ;;  %v5341_v2 = vmul.f32 0.2, %v5245_v57  ;;  %v14175_v40 = vrot.slane %v16829_v55, 3 }
 0x42e   : > { %v5391_v52 = vsel %vm5295_vm15, %v5247_v34, %v5343_v24  ;;  %v5875_v53 = vsel %vm1030_vm0, %v5872_v18, %v5874_v45  ;;  %v5877_v7 = vsel %vm1030_vm0, %v5874_v45, %v5876_v31  ;;  %v5726_v9 = vmul.f32 %v14037_v27, %v5390_v3  ;;  %v14200_v24 = vpop.permute.xlu1 %5631 }
 0x42f   : > { %v5727_v30 = vmul.f32 %v14043_v14, %v5391_v52  ;;  %v5389_v44 = vsel %vm5293_vm1, %v5245_v57, %v5341_v2  ;;  %v11752_v46 = vpop.f32.mrb[24].mxu0  ;;  %v5724_v49 = vmul.f32 %v14011_v35, %v5388_v0  ;;  %v14187_v1 = vor.u32 %v6225_v19, %v6222_v36 }
 0x430   : > { %11789 = vmatmul.mubr.msk.bf16.gmra.mrb[12].mxu1 %vm957_vm2, %v5875_v53  ;;  %v5725_v18 = vmul.f32 %v14017_v56, %v5389_v44  ;;  %v5250_v43 = vadd.f32 %v11752_v46, %v13987_v32  ;;  %v5074_v63 = vpop.f32.mrb[25].mxu0  ;;  %v16826_v17 = vshll.u32 %v14074_v33, 16  ;;  %v14206_v53 = vrot.slane %v16828_v8, 4 }
 0x431   : > { %11792 = vmatprep.mubr.msk.bf16.mxu1 %vm957_vm2, %v5877_v7  ;;  %v5765_v27 = vpack.c.bf16 %v5727_v30, %v5726_v9  ;;  %v5248_v14 = vadd.f32 %v13987_v32, %v5074_v63  ;;  %v11753_v50 = vpop.f32.mrb[26].mxu0  ;;  %v14212_v44 = vrot.slane %v16827_v23, 3  ;;  %v16938_v38 = vshrl.u32 %v13939_v21, 16 }
 0x432   : > { %v5764_v35 = vpack.c.bf16 %v5725_v18, %v5724_v49  ;;  %vm5298_vm4 = vcmp.ge.f32.partialorder %v5250_v43, 0.0  ;;  %v5346_v56 = vmul.f32 0.2, %v5250_v43  ;;  %v5251_v37 = vadd.f32 %v11753_v50, %v13987_v32  ;;  %v5077_v34 = vpop.f32.mrb[27].mxu0  ;;  %v14193_v28 = vld [vmem:[#allocation3 + $0x58] sm:$0xff] }
 0x433   : > { %5789 = vst.msk [vmem:[#allocation3 + $0x68] sm:$0xff] %vm957_vm2, %v5765_v27  ;;  %vm5296_vm5 = vcmp.ge.f32.partialorder %v5248_v14, 0.0  ;;  %v5344_v25 = vmul.f32 0.2, %v5248_v14  ;;  %v5249_v57 = vadd.f32 %v13987_v32, %v5077_v34  ;;  %v14197_v36 = vld [vmem:[#allocation3 + $0x50] sm:$0xff]  ;;  %v5880_v3 = vrot.slane %v14193_v28, 4  ;;  %v14221_v27 = vpop.permute.xlu0 %5636 }
 0x434   : > { %5788 = vst.msk [vmem:[#allocation3 + $0x60] sm:$0xff] %vm957_vm2, %v5764_v35  ;;  %v5394_v45 = vsel %vm5298_vm4, %v5250_v43, %v5346_v56  ;;  %vm5299_vm6 = vcmp.ge.f32.partialorder %v5251_v37, 0.0  ;;  %v5347_v0 = vmul.f32 0.2, %v5251_v37  ;;  %v5878_v2 = vrot.slane %v14197_v36, 4 }
 0x435   : > { %v5392_v19 = vsel %vm5296_vm5, %v5248_v14, %v5344_v25  ;;  %vm5297_vm7 = vcmp.ge.f32.partialorder %v5249_v57, 0.0  ;;  %v5345_v52 = vmul.f32 0.2, %v5249_v57  ;;  %v5730_v46 = vmul.f32 %v14093_v4, %v5394_v45 }
 0x436   : > { %v5395_v7 = vsel %vm5299_vm6, %v5251_v37, %v5347_v0  ;;  %v5879_v9 = vsel %vm1030_vm0, %v5876_v31, %v5878_v2  ;;  %v5881_v30 = vsel %vm1030_vm0, %v5878_v2, %v5880_v3  ;;  %v14219_v63 = vrot.slane %v16826_v17, 4 }
 0x437   : > { %v5731_v49 = vmul.f32 %v14116_v13, %v5395_v7  ;;  %v5393_v18 = vsel %vm5297_vm7, %v5249_v57, %v5345_v52  ;;  %v11756_v43 = vpop.f32.mrb[28].mxu0  ;;  %v5728_v31 = vmul.f32 %v14071_v59, %v5392_v19  ;;  %v16837_v4 = vshrl.u32 %v14123_v41, 16  ;;  %v14231_v57 = vpop.permute.xlu1 %5641 }
 0x438   : > { %11793 = vmatmul.mubr.msk.bf16.gmra.mrb[16].mxu1 %vm957_vm2, %v5879_v9  ;;  %v5729_v14 = vmul.f32 %v14081_v16, %v5393_v18  ;;  %v5254_v50 = vadd.f32 %v11756_v43, %v13987_v32  ;;  %v5090_v35 = vpop.f32.mrb[29].mxu0  ;;  %v16833_v34 = vshll.u32 %v14123_v41, 16  ;;  %v16832_v25 = vshrl.u32 %v14119_v22, 16 }
 0x439   : > { %11796 = vmatprep.mubr.msk.bf16.mxu1 %vm957_vm2, %v5881_v30  ;;  %v5767_v13 = vpack.c.bf16 %v5731_v49, %v5730_v46  ;;  %v5252_v56 = vadd.f32 %v13987_v32, %v5090_v35  ;;  %v11757_v37 = vpop.f32.mrb[30].mxu0  ;;  %v16939_v29 = vshll.u32 %v13939_v21, 16  ;;  %v6227_v21 = vsel %vm6192_vm8, %v14091_v48, %v14187_v1 }
 0x43a   : > { %v5766_v59 = vpack.c.bf16 %v5729_v14, %v5728_v31  ;;  %vm5302_vm9 = vcmp.ge.f32.partialorder %v5254_v50, 0.0  ;;  %v5350_v16 = vmul.f32 0.2, %v5254_v50  ;;  %v5255_v45 = vadd.f32 %v11757_v37, %v13987_v32  ;;  %v5093_v0 = vpop.f32.mrb[31].mxu0  ;;  %v14234_v2 = vld [vmem:[#allocation3 + $0x68] sm:$0xff]  ;;  %v14245_v14 = vpop.permute.xlu0 %5646 }
 0x43b   : > { %5791 = vst.msk [vmem:[#allocation3 + $0x78] sm:$0xff] %vm957_vm2, %v5767_v13  ;;  %vm5300_vm10 = vcmp.ge.f32.partialorder %v5252_v56, 0.0  ;;  %v5348_v19 = vmul.f32 0.2, %v5252_v56  ;;  %v5253_v52 = vadd.f32 %v13987_v32, %v5093_v0  ;;  %v14238_v7 = vld [vmem:[#allocation3 + $0x60] sm:$0xff]  ;;  %v5884_v9 = vrot.slane %v14234_v2, 4  ;;  %v14255_v17 = vpop.permute.xlu1 %5651 }
 0x43c   : > { %5790 = vst.msk [vmem:[#allocation3 + $0x70] sm:$0xff] %vm957_vm2, %v5766_v59  ;;  %v5398_v30 = vsel %vm5302_vm9, %v5254_v50, %v5350_v16  ;;  %vm5303_vm11 = vcmp.ge.f32.partialorder %v5255_v45, 0.0  ;;  %v5351_v46 = vmul.f32 0.2, %v5255_v45  ;;  %v5882_v49 = vrot.slane %v14238_v7, 4 }
 0x43d   : > { %v5396_v18 = vsel %vm5300_vm10, %v5252_v56, %v5348_v19  ;;  %vm5301_vm12 = vcmp.ge.f32.partialorder %v5253_v52, 0.0  ;;  %v5349_v43 = vmul.f32 0.2, %v5253_v52  ;;  %v6249_v31 = vrot.slane %v16837_v4, 3 }
 0x43e   : > { %v5734_v35 = vmul.f32 %v14163_v39, %v5398_v30  ;;  %v5399_v13 = vsel %vm5303_vm11, %v5255_v45, %v5351_v46  ;;  %v5883_v37 = vsel %vm1030_vm0, %v5880_v3, %v5882_v49  ;;  %v5885_v59 = vsel %vm1030_vm0, %v5882_v49, %v5884_v9 }
 0x43f   : > { %v5732_v50 = vmul.f32 %v14129_v51, %v5396_v18  ;;  %v5735_v16 = vmul.f32 %v14169_v15, %v5399_v13  ;;  %v5397_v0 = vsel %vm5301_vm12, %v5253_v52, %v5349_v43  ;;  %v11760_v56 = vpop.f32.mrb[32].mxu0  ;;  %v6252_v19 = vrot.slane %v16833_v34, 4  ;;  %v5662_v55 = vpop.permute.xlu1 %5661 }
 0x440   : > { %11797 = vmatmul.mubr.msk.bf16.gmra.mrb[20].mxu1 %vm957_vm2, %v5883_v37  ;;  %v5733_v39 = vmul.f32 %v14144_v61, %v5397_v0  ;;  %v5258_v45 = vadd.f32 %v11760_v56, %v13987_v32  ;;  %v5106_v3 = vpop.f32.mrb[33].mxu0  ;;  %v6258_v51 = vrot.slane %v16832_v25, 3  ;;  %v16836_v15 = vshll.u32 %v14119_v22, 16 }
 0x441   : > { %11800 = vmatprep.mubr.msk.bf16.mxu1 %vm957_vm2, %v5885_v59  ;;  %v5769_v52 = vpack.c.bf16 %v5735_v16, %v5734_v35  ;;  %v5256_v30 = vadd.f32 %v13987_v32, %v5106_v3  ;;  %v11761_v46 = vpop.f32.mrb[34].mxu0  ;;  %v16835_v49 = vshrl.u32 %v14160_v10, 16  ;;  %v16834_v18 = vshll.u32 %v14160_v10, 16  ;;  %v5657_v3 = vpop.permute.xlu0 %5656 }
 0x442   : > { %v5768_v43 = vpack.c.bf16 %v5733_v39, %v5732_v50  ;;  %vm5306_vm13 = vcmp.ge.f32.partialorder %v5258_v45, 0.0  ;;  %v5354_v61 = vmul.f32 0.2, %v5258_v45  ;;  %v5259_v13 = vadd.f32 %v11761_v46, %v13987_v32  ;;  %v5109_v37 = vpop.f32.mrb[35].mxu0  ;;  %v14267_v59 = vld [vmem:[#allocation3 + $0x78] sm:$0xff] }
 0x443   : > { %5793 = vst.msk [vmem:[#allocation3 + $0x88] sm:$0xff] %vm957_vm2, %v5769_v52  ;;  %vm5304_vm14 = vcmp.ge.f32.partialorder %v5256_v30, 0.0  ;;  %v5352_v0 = vmul.f32 0.2, %v5256_v30  ;;  %v5257_v35 = vadd.f32 %v13987_v32, %v5109_v37  ;;  %v14271_v16 = vld [vmem:[#allocation3 + $0x70] sm:$0xff]  ;;  %v5888_v56 = vrot.slane %v14267_v59, 4 }
 0x444   : > { %5792 = vst.msk [vmem:[#allocation3 + $0x80] sm:$0xff] %vm957_vm2, %v5768_v43  ;;  %v5402_v50 = vsel %vm5306_vm13, %v5258_v45, %v5354_v61  ;;  %vm5307_vm15 = vcmp.ge.f32.partialorder %v5259_v13, 0.0  ;;  %v5355_v39 = vmul.f32 0.2, %v5259_v13  ;;  %v5886_v46 = vrot.slane %v14271_v16, 4 }
 0x445   : > { %v5400_v23 = vsel %vm5304_vm14, %v5256_v30, %v5352_v0  ;;  %vm5305_vm1 = vcmp.ge.f32.partialorder %v5257_v35, 0.0  ;;  %v5353_v8 = vmul.f32 0.2, %v5257_v35  ;;  %v14276_v52 = vor.u32 %v6252_v19, %v6249_v31 }
 0x446   : > { %v5738_v37 = vmul.f32 %v14221_v27, %v5402_v50  ;;  %v5403_v42 = vsel %vm5307_vm15, %v5259_v13, %v5355_v39  ;;  %v5887_v12 = vsel %vm1030_vm0, %v5884_v9, %v5886_v46  ;;  %v5889_v25 = vsel %vm1030_vm0, %v5886_v46, %v5888_v56  ;;  %v14295_v13 = vpop.permute.xlu0 %5666 }
 0x447   : > { %v5736_v43 = vmul.f32 %v14190_v62, %v5400_v23  ;;  %v5739_v45 = vmul.f32 %v14231_v57, %v5403_v42  ;;  %v5401_v61 = vsel %vm5305_vm1, %v5257_v35, %v5353_v8  ;;  %v11764_v34 = vpop.f32.mrb[36].mxu0  ;;  %v6261_v31 = vrot.slane %v16836_v15, 4 }
 0x448   : > { %11801 = vmatmul.mubr.msk.bf16.gmra.mrb[24].mxu1 %vm957_vm2, %v5887_v12  ;;  %v5737_v19 = vmul.f32 %v14200_v24, %v5401_v61  ;;  %v5262_v27 = vadd.f32 %v11764_v34, %v13987_v32  ;;  %v5122_v30 = vpop.f32.mrb[37].mxu0  ;;  %v6267_v9 = vrot.slane %v16835_v49, 3  ;;  %v6270_v42 = vrot.slane %v16834_v18, 4 }
 0x449   : > { %11804 = vmatprep.mubr.msk.bf16.mxu1 %vm957_vm2, %v5889_v25  ;;  %v5771_v8 = vpack.c.bf16 %v5739_v45, %v5738_v37  ;;  %v5260_v23 = vadd.f32 %v13987_v32, %v5122_v30  ;;  %v11765_v12 = vpop.f32.mrb[38].mxu0  ;;  %v6262_v62 = vor.u32 %v6261_v31, %v6258_v51  ;;  %v16838_v57 = vshrl.u32 %v14156_v20, 16  ;;  %v14305_v37 = vpop.permute.xlu1 %5671 }
 0x44a   : > { %v5770_v24 = vpack.c.bf16 %v5737_v19, %v5736_v43  ;;  %vm5310_vm4 = vcmp.ge.f32.partialorder %v5262_v27, 0.0  ;;  %v5358_v34 = vmul.f32 0.2, %v5262_v27  ;;  %v5263_v25 = vadd.f32 %v11765_v12, %v13987_v32  ;;  %v5125_v0 = vpop.f32.mrb[39].mxu0  ;;  %v14298_v35 = vld [vmem:[#allocation3 + $0x88] sm:$0xff] }
 0x44b   : > { %5795 = vst.msk [vmem:[#allocation3 + $0x98] sm:$0xff] %vm957_vm2, %v5771_v8  ;;  %vm5308_vm5 = vcmp.ge.f32.partialorder %v5260_v23, 0.0  ;;  %v5356_v50 = vmul.f32 0.2, %v5260_v23  ;;  %v5261_v39 = vadd.f32 %v13987_v32, %v5125_v0  ;;  %v14302_v46 = vld [vmem:[#allocation3 + $0x80] sm:$0xff]  ;;  %v5892_v51 = vrot.slane %v14298_v35, 4 }
 0x44c   : > { %5794 = vst.msk [vmem:[#allocation3 + $0x90] sm:$0xff] %vm957_vm2, %v5770_v24  ;;  %v5406_v43 = vsel %vm5310_vm4, %v5262_v27, %v5358_v34  ;;  %vm5311_vm6 = vcmp.ge.f32.partialorder %v5263_v25, 0.0  ;;  %v5359_v45 = vmul.f32 0.2, %v5263_v25  ;;  %v5890_v61 = vrot.slane %v14302_v46, 4 }
 0x44d   : > { %v5742_v31 = vmul.f32 %v5657_v3, %v5406_v43  ;;  %v5404_v19 = vsel %vm5308_vm5, %v5260_v23, %v5356_v50  ;;  %vm5309_vm7 = vcmp.ge.f32.partialorder %v5261_v39, 0.0  ;;  %v5357_v30 = vmul.f32 0.2, %v5261_v39  ;;  %v5677_v23 = vpop.permute.xlu0 %5676 }
 0x44e   : > { %v5740_v8 = vmul.f32 %v14245_v14, %v5404_v19  ;;  %v5407_v12 = vsel %vm5311_vm6, %v5263_v25, %v5359_v45  ;;  %v5891_v0 = vsel %vm1030_vm0, %v5888_v56, %v5890_v61  ;;  %v5893_v18 = vsel %vm1030_vm0, %v5890_v61, %v5892_v51 }
 0x44f   : > { %v5743_v49 = vmul.f32 %v5662_v55, %v5407_v12  ;;  %v5405_v15 = vsel %vm5309_vm7, %v5261_v39, %v5357_v30  ;;  %v11768_v4 = vpop.f32.mrb[40].mxu0  ;;  %v14315_v27 = vsel %vm6192_vm8, %v14276_v52, %v6262_v62  ;;  %v14317_v3 = vor.u32 %v6270_v42, %v6267_v9 }
 0x450   : > { %11805 = vmatmul.mubr.msk.bf16.gmra.mrb[28].mxu1 %vm957_vm2, %v5891_v0  ;;  %v5741_v24 = vmul.f32 %v14255_v17, %v5405_v15  ;;  %v5266_v14 = vadd.f32 %v11768_v4, %v13987_v32  ;;  %v5138_v34 = vpop.f32.mrb[41].mxu0  ;;  %v6276_v55 = vrot.slane %v16838_v57, 3  ;;  %v16840_v56 = vshll.u32 %v14156_v20, 16  ;;  %v5682_v15 = vpop.permute.xlu1 %5681 }
 0x451   : > { %11808 = vmatprep.mubr.msk.bf16.mxu1 %vm957_vm2, %v5893_v18  ;;  %v5773_v25 = vpack.c.bf16 %v5743_v49, %v5742_v31  ;;  %v5264_v50 = vadd.f32 %v13987_v32, %v5138_v34  ;;  %v11769_v39 = vpop.f32.mrb[42].mxu0  ;;  %v14328_v9 = vsel %vm6192_vm8, %v6262_v62, %v14317_v3  ;;  %v16839_v17 = vshrl.u32 %v14197_v36, 16  ;;  %v5687_v34 = vpop.permute.xlu0 %5686 }
 0x452   : > { %v5772_v4 = vpack.c.bf16 %v5741_v24, %v5740_v8  ;;  %vm5314_vm9 = vcmp.ge.f32.partialorder %v5266_v14, 0.0  ;;  %v5362_v42 = vmul.f32 0.2, %v5266_v14  ;;  %v5267_v18 = vadd.f32 %v11769_v39, %v13987_v32  ;;  %v5141_v43 = vpop.f32.mrb[43].mxu0  ;;  %v14332_v45 = vld [vmem:[#allocation3 + $0x98] sm:$0xff] }
 0x453   : > { %5797 = vst.msk [vmem:[#allocation3 + $0xa8] sm:$0xff] %vm957_vm2, %v5773_v25  ;;  %vm5312_vm10 = vcmp.ge.f32.partialorder %v5264_v50, 0.0  ;;  %v5360_v49 = vmul.f32 0.2, %v5264_v50  ;;  %v5265_v61 = vadd.f32 %v13987_v32, %v5141_v43  ;;  %v14336_v31 = vld [vmem:[#allocation3 + $0x90] sm:$0xff]  ;;  %v5896_v62 = vrot.slane %v14332_v45, 4 }
 0x454   : > { %5796 = vst.msk [vmem:[#allocation3 + $0xa0] sm:$0xff] %vm957_vm2, %v5772_v4  ;;  %v5410_v19 = vsel %vm5314_vm9, %v5266_v14, %v5362_v42  ;;  %vm5315_vm11 = vcmp.ge.f32.partialorder %v5267_v18, 0.0  ;;  %v5363_v30 = vmul.f32 0.2, %v5267_v18  ;;  %v5894_v8 = vrot.slane %v14336_v31, 4 }
 0x455   : > { %v5746_v12 = vmul.f32 %v5677_v23, %v5410_v19  ;;  %v5408_v0 = vsel %vm5312_vm10, %v5264_v50, %v5360_v49  ;;  %vm5313_vm12 = vcmp.ge.f32.partialorder %v5265_v61, 0.0  ;;  %v5361_v24 = vmul.f32 0.2, %v5265_v61  ;;  %v5692_v50 = vpop.permute.xlu1 %5691 }
 0x456   : > { %v5744_v25 = vmul.f32 %v14295_v13, %v5408_v0  ;;  %v5411_v39 = vsel %vm5315_vm11, %v5267_v18, %v5363_v30  ;;  %v5895_v43 = vsel %vm1030_vm0, %v5892_v51, %v5894_v8  ;;  %v5897_v57 = vsel %vm1030_vm0, %v5894_v8, %v5896_v62 }
 0x457   : > { %v5747_v58 = vmul.f32 %v5682_v15, %v5411_v39  ;;  %v5409_v6 = vsel %vm5313_vm12, %v5265_v61, %v5361_v24  ;;  %v11772_v4 = vpop.f32.mrb[44].mxu0  ;;  %v6279_v14 = vrot.slane %v16840_v56, 4  ;;  %v6285_v23 = vrot.slane %v16839_v17, 3 }
 0x458   : > { %11809 = vmatmul.mubr.msk.bf16.gmra.mrb[32].mxu1 %vm957_vm2, %v5895_v43  ;;  %v5745_v42 = vmul.f32 %v14305_v37, %v5409_v6  ;;  %v5270_v13 = vadd.f32 %v11772_v4, %v13987_v32  ;;  %v5154_v18 = vpop.f32.mrb[45].mxu0  ;;  %v16853_v51 = vshll.u32 %v14197_v36, 16  ;;  %v5697_v43 = vpop.permute.xlu0 %5696  ;;  %vm6704_vm4 = vsmask.f32 3328 }
 0x459   : > { %11812 = vmatprep.mubr.msk.bf16.mxu1 %vm957_vm2, %v5897_v57  ;;  %v5775_v49 = vpack.c.bf16 %v5747_v58, %v5746_v12  ;;  %v5268_v61 = vadd.f32 %v13987_v32, %v5154_v18  ;;  %v11773_v19 = vpop.f32.mrb[46].mxu0  ;;  %v6280_v30 = vor.u32 %v6279_v14, %v6276_v55  ;;  %v6235_v48 = vor.u32 %v14206_v53, %v14175_v40 }
 0x45a   : > { %v5774_v0 = vpack.c.bf16 %v5745_v42, %v5744_v25  ;;  %vm5318_vm13 = vcmp.ge.f32.partialorder %v5270_v13, 0.0  ;;  %v5366_v24 = vmul.f32 0.2, %v5270_v13  ;;  %v5271_v6 = vadd.f32 %v11773_v19, %v13987_v32  ;;  %v5157_v37 = vpop.f32.mrb[47].mxu0  ;;  %v14357_v39 = vld [vmem:[#allocation3 + $0xa8] sm:$0xff]  ;;  %v5702_v19 = vpop.permute.xlu1 %5701 }
 0x45b   : > { %5799 = vst.msk [vmem:[#allocation3 + $0xb8] sm:$0xff] %vm957_vm2, %v5775_v49  ;;  %vm5316_vm14 = vcmp.ge.f32.partialorder %v5268_v61, 0.0  ;;  %v5364_v57 = vmul.f32 0.2, %v5268_v61  ;;  %v5269_v58 = vadd.f32 %v13987_v32, %v5157_v37  ;;  %v14361_v12 = vld [vmem:[#allocation3 + $0xa0] sm:$0xff]  ;;  %v5900_v55 = vrot.slane %v14357_v39, 4 }
 0x45c   : > { %5798 = vst.msk [vmem:[#allocation3 + $0xb0] sm:$0xff] %vm957_vm2, %v5774_v0  ;;  %v5414_v25 = vsel %vm5318_vm13, %v5270_v13, %v5366_v24  ;;  %vm5319_vm15 = vcmp.ge.f32.partialorder %v5271_v6, 0.0  ;;  %v5367_v4 = vmul.f32 0.2, %v5271_v6  ;;  %v5898_v14 = vrot.slane %v14361_v12, 4 }
 0x45d   : > { %v5750_v42 = vmul.f32 %v5697_v43, %v5414_v25  ;;  %v5412_v18 = vsel %vm5316_vm14, %v5268_v61, %v5364_v57  ;;  %vm5317_vm1 = vcmp.ge.f32.partialorder %v5269_v58, 0.0  ;;  %v5365_v49 = vmul.f32 0.2, %v5269_v58 }
 0x45e   : > { %v5748_v17 = vmul.f32 %v5687_v34, %v5412_v18  ;;  %v5415_v56 = vsel %vm5319_vm15, %v5271_v6, %v5367_v4  ;;  %v5899_v32 = vsel %vm1030_vm0, %v5896_v62, %v5898_v14  ;;  %v5901_v37 = vsel %vm1030_vm0, %v5898_v14, %v5900_v55 }
 0x45f   : > { %v5751_v8 = vmul.f32 %v5702_v19, %v5415_v56  ;;  %v5413_v15 = vsel %vm5317_vm1, %v5269_v58, %v5365_v49  ;;  %v14371_v13 = vsel %vm6192_vm8, %v14317_v3, %v6280_v30  ;;  %v6288_v61 = vrot.slane %v16853_v51, 4 }
 0x460   : > { %11813 = vmatmul.mubr.msk.bf16.gmra.mrb[36].mxu1 %vm957_vm2, %v5899_v32  ;;  %v5749_v0 = vmul.f32 %v5692_v50, %v5413_v15  ;;  %v16935_v34 = vshrl.u32 %v14193_v28, 16  ;;  %v16936_v62 = vshll.u32 %v14193_v28, 16  ;;  %v16851_v56 = vshrl.u32 %v14238_v7, 16 }
 0x461   : > { %11816 = vmatprep.mubr.msk.bf16.mxu1 %vm957_vm2, %v5901_v37  ;;  %v5777_v57 = vpack.c.bf16 %v5751_v8, %v5750_v42  ;;  %v6289_v58 = vor.u32 %v6288_v61, %v6285_v23  ;;  %v16850_v43 = vshll.u32 %v14238_v7, 16  ;;  %v16846_v3 = vshrl.u32 %v14234_v2, 16 }
 0x462   : > { %v6294_v24 = vrot.slane %v16935_v34, 3  ;;  %v6297_v6 = vrot.slane %v16936_v62, 4  ;;  %v5776_v25 = vpack.c.bf16 %v5749_v0, %v5748_v17  ;;  %v14383_v4 = vld [vmem:[#allocation3 + $0xb8] sm:$0xff]  ;;  %v6303_v15 = vrot.slane %v16851_v56, 3 }
 0x463   : > { %v16845_v14 = vshll.u32 %v14234_v2, 16  ;;  %5801 = vst.msk [vmem:[#allocation3 + $0xc8] sm:$0xff] %vm957_vm2, %v5777_v57  ;;  %v14389_v18 = vld [vmem:[#allocation3 + $0xb0] sm:$0xff]  ;;  %v5904_v8 = vrot.slane %v14383_v4, 4  ;;  %v14393_v23 = vsel %vm6192_vm8, %v6280_v30, %v6289_v58  ;;  %v6306_v17 = vrot.slane %v16850_v43, 4 }
 0x464   : > { %v6298_v50 = vor.u32 %v6297_v6, %v6294_v24  ;;  %v6312_v42 = vrot.slane %v16846_v3, 3  ;;  %5800 = vst.msk [vmem:[#allocation3 + $0xc0] sm:$0xff] %vm957_vm2, %v5776_v25  ;;  %v5902_v49 = vrot.slane %v14389_v18, 4  ;;  %v16844_v37 = vshrl.u32 %v14271_v16, 16 }
 0x465   : > { %v6315_v32 = vrot.slane %v16845_v14, 4  ;;  %v6307_v30 = vor.u32 %v6306_v17, %v6303_v15  ;;  %v16841_v61 = vshll.u32 %v14271_v16, 16  ;;  %v16842_v0 = vshrl.u32 %v14267_v59, 16 }
 0x466   : > { %v14402_v19 = vsel %vm6192_vm8, %v6289_v58, %v6298_v50  ;;  %v16843_v34 = vshll.u32 %v14267_v59, 16  ;;  %v5903_v24 = vsel %vm1030_vm0, %v5900_v55, %v5902_v49  ;;  %v5905_v62 = vsel %vm1030_vm0, %v5902_v49, %v5904_v8 }
 0x467   : > { %v6316_v6 = vor.u32 %v6315_v32, %v6312_v42  ;;  %v6321_v57 = vrot.slane %v16844_v37, 3  ;;  %v14416_v58 = vsel %vm6192_vm8, %v6298_v50, %v6307_v30  ;;  %v6324_v25 = vrot.slane %v16841_v61, 4 }
 0x468   : > { %11817 = vmatmul.mubr.msk.bf16.gmra.mrb[40].mxu1 %vm957_vm2, %v5903_v24  ;;  %v6330_v15 = vrot.slane %v16842_v0, 3  ;;  %v6333_v55 = vrot.slane %v16843_v34, 4  ;;  %v16849_v42 = vshrl.u32 %v14302_v46, 16  ;;  %v16847_v49 = vshll.u32 %v14302_v46, 16 }
 0x469   : > { %11820 = vmatprep.mubr.msk.bf16.mxu1 %vm957_vm2, %v5905_v62  ;;  %v14426_v17 = vsel %vm6192_vm8, %v6307_v30, %v6316_v6  ;;  %v16848_v50 = vshrl.u32 %v14298_v35, 16  ;;  %v6325_v32 = vor.u32 %v6324_v25, %v6321_v57  ;;  %v16852_v61 = vshll.u32 %v14298_v35, 16 }
 0x46a   : > { %v6334_v24 = vor.u32 %v6333_v55, %v6330_v15  ;;  %v16854_v0 = vshrl.u32 %v14336_v31, 16  ;;  %v6339_v34 = vrot.slane %v16849_v42, 3  ;;  %v6342_v62 = vrot.slane %v16847_v49, 4 }
 0x46b   : > { %v6348_v30 = vrot.slane %v16848_v50, 3  ;;  %v16859_v37 = vshll.u32 %v14336_v31, 16  ;;  %v5828_v14 = vld [vmem:[#allocation3 + $0xc0] sm:$0xf]  ;;  %v14441_v3 = vsel %vm6192_vm8, %v6316_v6, %v6325_v32  ;;  %v6351_v25 = vrot.slane %v16852_v61, 4 }
 0x46c   : > { %v14444_v57 = vsel %vm6192_vm8, %v6325_v32, %v6334_v24  ;;  %v6357_v15 = vrot.slane %v16854_v0, 3  ;;  %v5906_v55 = vrot.slane %v5828_v14, 4  ;;  %v6343_v49 = vor.u32 %v6342_v62, %v6339_v34 }
 0x46d   : > { %v6360_v50 = vrot.slane %v16859_v37, 4  ;;  %v16858_v42 = vshrl.u32 %v14332_v45, 16  ;;  %v6352_v43 = vor.u32 %v6351_v25, %v6348_v30  ;;  %v16855_v6 = vshll.u32 %v14332_v45, 16 }
 0x46e   : > { %v16856_v32 = vshrl.u32 %v14361_v12, 16  ;;  %v16857_v56 = vshll.u32 %v14361_v12, 16  ;;  %v5907_v61 = vsel %vm1030_vm0, %v5904_v8, %v5906_v55  ;;  %v14458_v51 = vsel %vm6192_vm8, %v6334_v24, %v6343_v49 }
 0x46f   : > { %v6361_v0 = vor.u32 %v6360_v50, %v6357_v15  ;;  %v6366_v34 = vrot.slane %v16858_v42, 3  ;;  %v14464_v62 = vsel %vm6192_vm8, %v6343_v49, %v6352_v43  ;;  %v6369_v30 = vrot.slane %v16855_v6, 4 }
 0x470   : > { %11821 = vmatmul.mubr.msk.bf16.gmra.mrb[44].mxu1 %vm957_vm2, %v5907_v61  ;;  %v6375_v25 = vrot.slane %v16856_v32, 3  ;;  %v6378_v8 = vrot.slane %v16857_v56, 4  ;;  %v16861_v61 = vshrl.u32 %v14357_v39, 16  ;;  %v16860_v49 = vshll.u32 %v14357_v39, 16 }
 0x471   : > { %11826 = vmatprep.mubr.msk.bf16.mxu1 %vm957_vm2, %v14104_v11  ;;  %v14475_v50 = vsel %vm6192_vm8, %v6352_v43, %v6361_v0  ;;  %v16862_v24 = vshrl.u32 %v14389_v18, 16  ;;  %v6370_v15 = vor.u32 %v6369_v30, %v6366_v34  ;;  %v16869_v6 = vshll.u32 %v14389_v18, 16 }
 0x472   : > { %v6379_v55 = vor.u32 %v6378_v8, %v6375_v25  ;;  %v16870_v32 = vshrl.u32 %v14383_v4, 16  ;;  %v6384_v56 = vrot.slane %v16861_v61, 3  ;;  %v6387_v11 = vrot.slane %v16860_v49, 4 }
 0x473   : > { %v6393_v43 = vrot.slane %v16862_v24, 3  ;;  %v6403_v42 = vshll.u32 %v14383_v4, 16  ;;  %v14490_v37 = vsel %vm6192_vm8, %v6361_v0, %v6370_v15  ;;  %v6396_v30 = vrot.slane %v16869_v6, 4 }
 0x474   : > { %v14493_v34 = vsel %vm6192_vm8, %v6370_v15, %v6379_v55  ;;  %v6402_v25 = vrot.slane %v16870_v32, 3  ;;  %v6388_v8 = vor.u32 %v6387_v11, %v6384_v56  ;;  %v6409_v61 = vshrl.u32 %v5828_v14, 16 }
 0x475   : > { %16937 = vst [vmem:[#allocation7_spill] sm:$0xff] %v14493_v34  ;;  %v6405_v49 = vrot.slane %v6403_v42, 4  ;;  %v6412_v24 = vshll.u32 %v5828_v14, 16  ;;  %v6397_v33 = vor.u32 %v6396_v30, %v6393_v43  ;;  %v6708_v0 = vrot.slane %v16938_v38, 4  ;;  %v14515_v14 = vld [vmem:[%s16823_s4 + $0xc] sm:$0xf] }
 0x476   : > { %v6711_v15 = vrot.slane %v16939_v29, 5  ;;  %v14507_v34 = vor.u32 %v14139_v26, %v14133_v47  ;;  %v14510_v6 = vsel %vm6192_vm8, %v6379_v55, %v6388_v8  ;;  %v6411_v11 = vrot.slane %v6409_v61, 3 }
 0x477   : > { %v6406_v56 = vor.u32 %v6405_v49, %v6402_v25  ;;  %v6414_v32 = vrot.slane %v6412_v24, 4  ;;  %v14523_v29 = vsel %vm6192_vm8, %v6388_v8, %v6397_v33  ;;  %v6244_v49 = vor.u32 %v14219_v63, %v14212_v44 }
 0x478   : > { %11827 = vmatmul.mubr.msk.bf16.vlgmr.msra.gmra.mrb[48].mxu1 %vm957_vm2, %v14110_v54  ;;  %v6712_v38 = vor.u32 %v6711_v15, %v6708_v0  ;;  %v14528_v47 = vsel %vm6704_vm4, %v13960_v5, %v14507_v34  ;;  %v16942_v40 = vshrl.u32 %v14119_v22, 16  ;;  %v16944_v30 = vshrl.u32 %v14160_v10, 16 }
 0x479   : > { %11875 = vmatpush3.bf16.msra.mxu1 %v14114_v60  ;;  %11830 = vmatprep.mubr.msk.bf16.mxu1 %vm957_vm2, %v6227_v21  ;;  %v14533_v26 = vsel %vm6192_vm8, %v6397_v33, %v6406_v56  ;;  %v6415_v54 = vor.u32 %v6414_v32, %v6411_v11  ;;  %v16940_v33 = vshrl.u32 %v14123_v41, 16  ;;  %v16941_v32 = vshll.u32 %v14123_v41, 16 }
 0x47a   : > { %v14539_v61 = vsel %vm6704_vm4, %v6712_v38, %v13960_v5  ;;  %12620 = vmatprep.subr.msk.bf16.mxu1 %vm1030_vm0, %v14515_v14  ;;  %v6737_v53 = vrot.slane %v16942_v40, 4  ;;  %v16943_v5 = vshll.u32 %v14119_v22, 16  ;;  %v6741_v25 = vrot.slane %v16944_v30, 4 }
 0x47b   : > { %v14546_v60 = vsel %vm6192_vm8, %v6406_v56, %v6415_v54  ;;  %v6733_v24 = vrot.slane %v16940_v33, 4  ;;  %v6734_v55 = vrot.slane %v16941_v32, 5  ;;  %v16945_v44 = vshll.u32 %v14160_v10, 16 }
 0x47c   : > { %v6738_v43 = vrot.slane %v16943_v5, 5  ;;  %v6236_v8 = vsel %vm6192_vm8, %v14187_v1, %v6235_v48  ;;  %v16946_v41 = vshrl.u32 %v14156_v20, 16  ;;  %v6245_v11 = vsel %vm6192_vm8, %v6235_v48, %v6244_v49 }
 0x47d   : > { %v6742_v63 = vrot.slane %v16945_v44, 5  ;;  %v14562_v0 = vor.u32 %v6734_v55, %v6733_v24  ;;  %v16947_v22 = vshll.u32 %v14156_v20, 16  ;;  %v16948_v54 = vshrl.u32 %v14197_v36, 16 }
 0x47e   : > { %v6739_v15 = vor.u32 %v6738_v43, %v6737_v53  ;;  %v6745_v56 = vrot.slane %v16946_v41, 4  ;;  %v6254_v10 = vsel %vm6192_vm8, %v6244_v49, %v14276_v52  ;;  %v16949_v24 = vshll.u32 %v14197_v36, 16 }
 0x47f   : > { %v6743_v21 = vor.u32 %v6742_v63, %v6741_v25  ;;  %v6746_v38 = vrot.slane %v16947_v22, 5  ;;  %v6749_v33 = vrot.slane %v16948_v54, 4  ;;  %v16950_v48 = vshrl.u32 %v14193_v28, 16 }
 0x480   : > { %11831 = vmatmul.mubr.msk.bf16.gmra.mrb[52].mxu1 %vm957_vm2, %v6236_v8  ;;  %v14576_v1 = vsel %vm6704_vm4, %v14562_v0, %v6739_v15  ;;  %v6750_v32 = vrot.slane %v16949_v24, 5  ;;  %v16951_v53 = vshll.u32 %v14193_v28, 16  ;;  %v16952_v52 = vshrl.u32 %v14238_v7, 16 }
 0x481   : > { %v6753_v55 = vrot.slane %v16950_v48, 4  ;;  %11834 = vmatprep.mubr.msk.bf16.mxu1 %vm957_vm2, %v6245_v11  ;;  %v14584_v20 = vsel %vm6704_vm4, %v6739_v15, %v6743_v21  ;;  %v6747_v40 = vor.u32 %v6746_v38, %v6745_v56  ;;  %v16953_v30 = vshll.u32 %v14238_v7, 16 }
 0x482   : > { %v6754_v5 = vrot.slane %v16951_v53, 5  ;;  %v6757_v49 = vrot.slane %v16952_v52, 4  ;;  %v6751_v43 = vor.u32 %v6750_v32, %v6749_v33  ;;  %v16954_v25 = vshrl.u32 %v14234_v2, 16 }
 0x483   : > { %v6758_v36 = vrot.slane %v16953_v30, 5  ;;  %v16955_v63 = vshll.u32 %v14234_v2, 16  ;;  %v14597_v15 = vsel %vm6704_vm4, %v6743_v21, %v6747_v40  ;;  %v16956_v28 = vshrl.u32 %v14271_v16, 16 }
 0x484   : > { %v6761_v44 = vrot.slane %v16954_v25, 4  ;;  %v6755_v41 = vor.u32 %v6754_v5, %v6753_v55  ;;  %v16957_v11 = vshll.u32 %v14271_v16, 16  ;;  %v14604_v38 = vsel %vm6704_vm4, %v6747_v40, %v6751_v43 }
 0x485   : > { %v6762_v8 = vrot.slane %v16955_v63, 5  ;;  %v6765_v56 = vrot.slane %v16956_v28, 4  ;;  %v6759_v7 = vor.u32 %v6758_v36, %v6757_v49  ;;  %v16958_v33 = vshrl.u32 %v14267_v59, 16 }
 0x486   : > { %v6766_v22 = vrot.slane %v16957_v11, 5  ;;  %v14609_v2 = vsel %vm6704_vm4, %v6751_v43, %v6755_v41  ;;  %v16959_v32 = vshll.u32 %v14267_v59, 16  ;;  %v16960_v55 = vshrl.u32 %v14302_v46, 16 }
 0x487   : > { %v6763_v54 = vor.u32 %v6762_v8, %v6761_v44  ;;  %v6769_v24 = vrot.slane %v16958_v33, 4  ;;  %v14616_v16 = vsel %vm6704_vm4, %v6755_v41, %v6759_v7  ;;  %v16961_v5 = vshll.u32 %v14302_v46, 16 }
 0x488   : > { %v6767_v21 = vor.u32 %v6766_v22, %v6765_v56  ;;  %v6770_v48 = vrot.slane %v16959_v32, 5  ;;  %v6773_v53 = vrot.slane %v16960_v55, 4  ;;  %v16962_v49 = vshrl.u32 %v14298_v35, 16  ;;  %11835 = vmatmul.mubr.msk.bf16.gmra.mrb[56].mxu1 %vm957_vm2, %v6254_v10 }
 0x489   : > { %v14619_v40 = vsel %vm6704_vm4, %v6759_v7, %v6763_v54  ;;  %v6774_v52 = vrot.slane %v16961_v5, 5  ;;  %v16963_v36 = vshll.u32 %v14298_v35, 16  ;;  %v16964_v44 = vshrl.u32 %v14336_v31, 16  ;;  %11838 = vmatprep.mubr.msk.bf16.mxu1 %vm957_vm2, %v14315_v27 }
 0x48a   : > { %v6777_v43 = vrot.slane %v16962_v49, 4  ;;  %v14626_v30 = vsel %vm6704_vm4, %v6763_v54, %v6767_v21  ;;  %v6771_v59 = vor.u32 %v6770_v48, %v6769_v24  ;;  %v16965_v41 = vshll.u32 %v14336_v31, 16 }
 0x48b   : > { %v6778_v25 = vrot.slane %v16963_v36, 5  ;;  %v6781_v63 = vrot.slane %v16964_v44, 4  ;;  %v6775_v8 = vor.u32 %v6774_v52, %v6773_v53  ;;  %v16966_v28 = vshrl.u32 %v14332_v45, 16 }
 0x48c   : > { %v6782_v46 = vrot.slane %v16965_v41, 5  ;;  %v16967_v11 = vshll.u32 %v14332_v45, 16  ;;  %v14642_v35 = vsel %vm6704_vm4, %v6767_v21, %v6771_v59  ;;  %v16968_v54 = vshrl.u32 %v14361_v12, 16 }
 0x48d   : > { %v6785_v56 = vrot.slane %v16966_v28, 4  ;;  %v6779_v7 = vor.u32 %v6778_v25, %v6777_v43  ;;  %v16969_v33 = vshll.u32 %v14361_v12, 16  ;;  %v14649_v24 = vsel %vm6704_vm4, %v6771_v59, %v6775_v8 }
 0x48e   : > { %v6786_v22 = vrot.slane %v16967_v11, 5  ;;  %v6789_v10 = vrot.slane %v16968_v54, 4  ;;  %v6783_v32 = vor.u32 %v6782_v46, %v6781_v63  ;;  %v16970_v45 = vshrl.u32 %v14357_v39, 16  ;;  %v14707_v11 = vld [vmem:[#allocation3 + $0x30] sm:$0xff]  ;;  %v14715_v54 = vld [vmem:[#allocation3 + $0x40] sm:$0xff] }
 0x48f   : > { %v6790_v31 = vrot.slane %v16969_v33, 5  ;;  %v14654_v27 = vsel %vm6704_vm4, %v6775_v8, %v6779_v7  ;;  %v16971_v53 = vshll.u32 %v14357_v39, 16  ;;  %v16972_v52 = vshrl.u32 %v14389_v18, 16  ;;  %16981 = vst [vmem:[#allocation14_spill] sm:$0xff] %v14715_v54 }
 0x490   : > { %v6787_v48 = vor.u32 %v6786_v22, %v6785_v56  ;;  %v6793_v55 = vrot.slane %v16970_v45, 4  ;;  %v14661_v12 = vsel %vm6704_vm4, %v6779_v7, %v6783_v32  ;;  %v16974_v59 = vshll.u32 %v14389_v18, 16  ;;  %11839 = vmatmul.mubr.msk.bf16.gmra.mrb[60].mxu1 %vm957_vm2, %v14328_v9  ;;  %v14697_v9 = vld [vmem:[#allocation3 + $0x10] sm:$0xff]  ;;  %v14725_v45 = vld [vmem:[#allocation3 + $0x58] sm:$0xff] }
 0x491   : > { %v6791_v21 = vor.u32 %v6790_v31, %v6789_v10  ;;  %v6794_v5 = vrot.slane %v16971_v53, 5  ;;  %v6797_v49 = vrot.slane %v16972_v52, 4  ;;  %v16975_v25 = vshrl.u32 %v14383_v4, 16  ;;  %11842 = vmatprep.mubr.msk.bf16.mxu1 %vm957_vm2, %v14371_v13  ;;  %v14699_v4 = vld [vmem:[#allocation3 + $0x18] sm:$0xff]  ;;  %v14703_v13 = vld [vmem:[#allocation3 + $0x20] sm:$0xff]  ;;  %v14717_v10 = vld [vmem:[#allocation3 + $0x48] sm:$0xff] }
 0x492   : > { %v14664_v43 = vsel %vm6704_vm4, %v6783_v32, %v6787_v48  ;;  %v6798_v36 = vrot.slane %v16974_v59, 5  ;;  %v6802_v8 = vrot.slane %v6403_v42, 5  ;;  %v14705_v42 = vld [vmem:[#allocation3 + $0x28] sm:$0xff]  ;;  %v16872_v22 = vshll.u32 %v14697_v9, 16  ;;  %16982 = vst [vmem:[#allocation15_spill] sm:$0xff] %v14717_v10  ;;  %v14731_v52 = vld [vmem:[#allocation3 + $0x60] sm:$0xff] }
 0x493   : > { %16973 = vst [vmem:[#allocation8_spill] sm:$0xff] %v14664_v43  ;;  %v6801_v44 = vrot.slane %v16975_v25, 4  ;;  %v14671_v63 = vsel %vm6704_vm4, %v6787_v48, %v6791_v21  ;;  %v6795_v39 = vor.u32 %v6794_v5, %v6793_v55  ;;  %v16873_v7 = vshll.u32 %v14699_v4, 16  ;;  %v14723_v48 = vld [vmem:[#allocation3 + $0x50] sm:$0xff]  ;;  %v14747_v31 = vld [vmem:[#allocation3 + $0x80] sm:$0xff]  ;;  %v14749_v59 = vld [vmem:[#allocation3 + $0x88] sm:$0xff] }
 0x494   : > { %16976 = vst [vmem:[#allocation9_spill] sm:$0xff] %v14671_v63  ;;  %v6799_v41 = vor.u32 %v6798_v36, %v6797_v49  ;;  %16983 = vst [vmem:[#allocation16_spill] sm:$0xff] %v14723_v48  ;;  %v14733_v49 = vld [vmem:[#allocation3 + $0x68] sm:$0xff]  ;;  %v14757_v53 = vld [vmem:[#allocation3 + $0x90] sm:$0xff]  ;;  %vm7157_vm5 = vsmask.f32 256 }
 0x495   : > { %v14676_v46 = vsel %vm6704_vm4, %v6791_v21, %v6795_v39  ;;  %v14678_v28 = vor.u32 %v6802_v8, %v6801_v44  ;;  %16984 = vst [vmem:[#allocation17_spill] sm:$0xff] %v14733_v49  ;;  %v14741_v8 = vld [vmem:[#allocation3 + $0x78] sm:$0xff]  ;;  %16987 = vst [vmem:[#allocation20_spill] sm:$0xff] %v14747_v31  ;;  %v14767_v44 = vld [vmem:[#allocation3 + $0xa0] sm:$0xff]  ;;  %v8001_v25 = vrot.slane %v16873_v7, 1  ;;  %v16996_v21 = vshll.u32 %v14703_v13, 16 }
 0x496   : > { %16977 = vst [vmem:[#allocation10_spill] sm:$0xff] %v14676_v46  ;;  %v14683_v18 = vsel %vm6704_vm4, %v6795_v39, %v6799_v41  ;;  %v14739_v39 = vld [vmem:[#allocation3 + $0x70] sm:$0xff]  ;;  %16986 = vst [vmem:[#allocation19_spill] sm:$0xff] %v14741_v8  ;;  %v14759_v55 = vld [vmem:[#allocation3 + $0x98] sm:$0xff]  ;;  %v17000_v7 = vshrl.u32 %v14703_v13, 16 }
 0x497   : > { %16978 = vst [vmem:[#allocation11_spill] sm:$0xff] %v14678_v28  ;;  %16979 = vst [vmem:[#allocation12_spill] sm:$0xff] %v14683_v18  ;;  %v14689_v56 = vsel %vm6704_vm4, %v6799_v41, %v14678_v28  ;;  %v14769_v36 = vld [vmem:[#allocation3 + $0xa8] sm:$0xff]  ;;  %v14775_v32 = vld [vmem:[#allocation3 + $0xb0] sm:$0xff]  ;;  %v8009_v28 = vrot.slane %v16996_v21, 1  ;;  %v16999_v18 = vshrl.u32 %v14699_v4, 16 }
 0x498   : > { %16980 = vst [vmem:[#allocation13_spill] sm:$0xff] %v14689_v56  ;;  %11843 = vmatmul.mubr.msk.bf16.gmra.mrb[64].mxu1 %vm957_vm2, %v14393_v23  ;;  %v14709_v23 = vld [vmem:[#allocation3 + $0x38] sm:$0xff]  ;;  %16985 = vst [vmem:[#allocation18_spill] sm:$0xff] %v14739_v39  ;;  %v17001_v21 = vshll.u32 %v14707_v11, 16  ;;  %v17010_v41 = vshll.u32 %v14715_v54, 16 }
 0x499   : > { %11846 = vmatprep.mubr.msk.bf16.mxu1 %vm957_vm2, %v14402_v19  ;;  %16988 = vst [vmem:[#allocation21_spill] sm:$0xff] %v14749_v59  ;;  %16989 = vst [vmem:[#allocation22_spill] sm:$0xff] %v14757_v53  ;;  %v14781_v19 = vld [vmem:[#allocation3 + $0xb8] sm:$0xff]  ;;  %v8005_v46 = vor.u32 %v8001_v25, %v16999_v18  ;;  %v8013_v63 = vor.u32 %v8009_v28, %v17000_v7  ;;  %v17004_v5 = vshll.u32 %v14709_v23, 16  ;;  %v17011_v7 = vshll.u32 %v14717_v10, 16 }
 0x49a   : > { %16990 = vst [vmem:[#allocation23_spill] sm:$0xff] %v14759_v55  ;;  %16991 = vst [vmem:[#allocation24_spill] sm:$0xff] %v14767_v44  ;;  %v8025_v43 = vrot.slane %v17001_v21, 1 }
 0x49b   : > { %16992 = vst [vmem:[#allocation25_spill] sm:$0xff] %v14769_v36  ;;  %16993 = vst [vmem:[#allocation26_spill] sm:$0xff] %v14775_v32  ;;  %v8033_v18 = vrot.slane %v17004_v5, 1  ;;  %v14823_v21 = vsel %vm760_vm3, %v8005_v46, %v8009_v28 }
 0x49c   : > { %16994 = vst [vmem:[#allocation27_spill] sm:$0xff] %v14781_v19  ;;  %17005 = vst [vmem:[#allocation30_spill] sm:$0xff] %v14823_v21  ;;  %v17022_v21 = vshrl.u32 %v14725_v45, 16 }
 0x4a0   : > { %11847 = vmatmul.mubr.msk.bf16.gmra.mrb[68].mxu1 %vm957_vm2, %v14416_v58  ;;  %v16997_v58 = vshrl.u32 %v14697_v9, 16 }
 0x4a1   : > { %11850 = vmatprep.mubr.msk.bf16.mxu1 %vm957_vm2, %v14426_v17 }
 0x4a8   : > { %11851 = vmatmul.mubr.msk.bf16.gmra.mrb[72].mxu1 %vm957_vm2, %v14441_v3  ;;  %v14790_v3 = vld [vmem:[#allocation3 + $0xc0] sm:$0xff] }
 0x4a9   : > { %11854 = vmatprep.mubr.msk.bf16.mxu1 %vm957_vm2, %v14444_v57  ;;  %v7996_v57 = vrot.slane %v16872_v22, 1  ;;  %16995 = vst [vmem:[#allocation28_spill] sm:$0xff] %v14790_v3  ;;  %v16998_v22 = vshll.u32 %v14705_v42, 16 }
 0x4ab   : > { %v7997_v56 = vor.u32 %v7996_v57, %v16997_v58  ;;  %v8017_v33 = vrot.slane %v16998_v22, 1  ;;  %v17003_v22 = vshrl.u32 %v14705_v42, 16 }
 0x4ad   : > { %v14813_v58 = vsel %vm760_vm3, %v7997_v56, %v8001_v25  ;;  %v8021_v57 = vor.u32 %v8017_v33, %v17003_v22  ;;  %v17007_v56 = vshrl.u32 %v14707_v11, 16  ;;  %v17009_v22 = vshrl.u32 %v14709_v23, 16 }
 0x4ae   : > { %17002 = vst [vmem:[#allocation29_spill] sm:$0xff] %v14813_v58  ;;  %v8049_v58 = vrot.slane %v17011_v7, 1  ;;  %v17018_v7 = vshrl.u32 %v14717_v10, 16 }
 0x4af   : > { %v8029_v25 = vor.u32 %v8025_v43, %v17007_v56  ;;  %v14831_v17 = vsel %vm760_vm3, %v8021_v57, %v8025_v43  ;;  %v8037_v5 = vor.u32 %v8033_v18, %v17009_v22  ;;  %v17015_v43 = vshll.u32 %v14731_v52, 16 }
 0x4b0   : > { %11855 = vmatmul.mubr.msk.bf16.gmra.mrb[76].mxu1 %vm957_vm2, %v14458_v51  ;;  %v14826_v51 = vsel %vm760_vm3, %v8013_v63, %v8017_v33  ;;  %17008 = vst [vmem:[#allocation32_spill] sm:$0xff] %v14831_v17  ;;  %v17013_v63 = vshll.u32 %v14723_v48, 16  ;;  %v17014_v33 = vshll.u32 %v14725_v45, 16 }
 0x4b1   : > { %11858 = vmatprep.mubr.msk.bf16.mxu1 %vm957_vm2, %v14464_v62  ;;  %17006 = vst [vmem:[#allocation31_spill] sm:$0xff] %v14826_v51  ;;  %v8041_v62 = vrot.slane %v17010_v41, 1  ;;  %v14840_v46 = vsel %vm760_vm3, %v8029_v25, %v8033_v18  ;;  %v8073_v57 = vrot.slane %v17015_v43, 1  ;;  %v17017_v41 = vshrl.u32 %v14715_v54, 16 }
 0x4b2   : > { %17012 = vst [vmem:[#allocation33_spill] sm:$0xff] %v14840_v46  ;;  %v8057_v28 = vrot.slane %v17013_v63, 1  ;;  %v8065_v56 = vrot.slane %v17014_v33, 1  ;;  %v8053_v51 = vor.u32 %v8049_v58, %v17018_v7  ;;  %v17019_v18 = vshll.u32 %v14733_v49, 16  ;;  %v14857_v46 = vld [vmem:[#allocation3 + $0xc8] sm:$0xff] }
 0x4b3   : > { %v14849_v22 = vsel %vm760_vm3, %v8037_v5, %v8041_v62  ;;  %v8045_v17 = vor.u32 %v8041_v62, %v17017_v41  ;;  %17020 = vst [vmem:[#allocation35_spill] sm:$0xff] %v14857_v46  ;;  %v17021_v63 = vshrl.u32 %v14723_v48, 16  ;;  %v17023_v5 = vshrl.u32 %v14731_v52, 16 }
 0x4b4   : > { %17016 = vst [vmem:[#allocation34_spill] sm:$0xff] %v14849_v22  ;;  %v8081_v25 = vrot.slane %v17019_v18, 1  ;;  %v8069_v43 = vor.u32 %v8065_v56, %v17022_v21  ;;  %v17024_v54 = vshll.u32 %v14739_v39, 16  ;;  %v14871_v7 = vsel %vm760_vm3, %v8053_v51, %v8057_v28 }
 0x4b5   : > { %v8061_v33 = vor.u32 %v8057_v28, %v17021_v63  ;;  %v8077_v22 = vor.u32 %v8073_v57, %v17023_v5  ;;  %v14868_v41 = vsel %vm760_vm3, %v8045_v17, %v8049_v58  ;;  %17026 = vst [vmem:[#allocation37_spill] sm:$0xff] %v14871_v7  ;;  %v17027_v18 = vshrl.u32 %v14733_v49, 16  ;;  %v15083_v7 = vld [vmem:[#allocation3 + $0xb0] sm:$0xff] }
 0x4b6   : > { %v8089_v62 = vrot.slane %v17024_v54, 1  ;;  %17025 = vst [vmem:[#allocation36_spill] sm:$0xff] %v14868_v41  ;;  %v17028_v63 = vshll.u32 %v14741_v8, 16  ;;  %v14881_v5 = vsel %vm760_vm3, %v8069_v43, %v8073_v57  ;;  %v17032_v17 = vshrl.u32 %v14739_v39, 16  ;;  %17082 = vst [vmem:[#allocation56_spill] sm:$0xff] %v15083_v7  ;;  %v15092_v41 = vld [vmem:[#allocation3 + $0xc0] sm:$0xff] }
 0x4b7   : > { %v8085_v10 = vor.u32 %v8081_v25, %v17027_v18  ;;  %v14878_v21 = vsel %vm760_vm3, %v8061_v33, %v8065_v56  ;;  %17030 = vst [vmem:[#allocation39_spill] sm:$0xff] %v14881_v5  ;;  %v14884_v54 = vsel %vm760_vm3, %v8077_v22, %v8081_v25  ;;  %v17034_v56 = vshrl.u32 %v14741_v8, 16  ;;  %17084 = vst [vmem:[#allocation58_spill] sm:$0xff] %v15092_v41 }
 0x4b8   : > { %v8097_v48 = vrot.slane %v17028_v63, 1  ;;  %17029 = vst [vmem:[#allocation38_spill] sm:$0xff] %v14878_v21  ;;  %17031 = vst [vmem:[#allocation40_spill] sm:$0xff] %v14884_v54  ;;  %v8093_v58 = vor.u32 %v8089_v62, %v17032_v17  ;;  %11859 = vmatmul.mubr.msk.bf16.gmra.mrb[80].mxu1 %vm957_vm2, %v14475_v50  ;;  %v17035_v57 = vshll.u32 %v14747_v31, 16  ;;  %v17037_v25 = vshll.u32 %v14749_v59, 16 }
 0x4b9   : > { %v14892_v28 = vsel %vm760_vm3, %v8085_v10, %v8089_v62  ;;  %11862 = vmatprep.mubr.msk.bf16.mxu1 %vm957_vm2, %v14490_v37  ;;  %v17038_v18 = vshll.u32 %v14757_v53, 16  ;;  %v17039_v10 = vshll.u32 %v14759_v55, 16  ;;  %v17042_v37 = vshll.u32 %v14767_v44, 16 }
 0x4ba   : > { %17033 = vst [vmem:[#allocation41_spill] sm:$0xff] %v14892_v28  ;;  %v8101_v33 = vor.u32 %v8097_v48, %v17034_v56  ;;  %v8105_v43 = vrot.slane %v17035_v57, 1  ;;  %v14901_v22 = vsel %vm760_vm3, %v8093_v58, %v8097_v48  ;;  %v8113_v50 = vrot.slane %v17037_v25, 1 }
 0x4bb   : > { %17036 = vst [vmem:[#allocation42_spill] sm:$0xff] %v14901_v22  ;;  %v8121_v63 = vrot.slane %v17038_v18, 1  ;;  %v8129_v62 = vrot.slane %v17039_v10, 1  ;;  %v17041_v56 = vshrl.u32 %v14747_v31, 16  ;;  %v8137_v51 = vrot.slane %v17042_v37, 1 }
 0x4bc   : > { %v14910_v17 = vsel %vm760_vm3, %v8101_v33, %v8105_v43  ;;  %v17043_v48 = vshll.u32 %v14769_v36, 16  ;;  %v17044_v25 = vshrl.u32 %v14749_v59, 16  ;;  %v17045_v18 = vshrl.u32 %v14757_v53, 16 }
 0x4bd   : > { %17040 = vst [vmem:[#allocation43_spill] sm:$0xff] %v14910_v17  ;;  %v8109_v57 = vor.u32 %v8105_v43, %v17041_v56  ;;  %v17046_v10 = vshrl.u32 %v14759_v55, 16  ;;  %v17047_v33 = vshll.u32 %v14775_v32, 16  ;;  %v17049_v56 = vshrl.u32 %v14767_v44, 16 }
 0x4be   : > { %v8145_v58 = vrot.slane %v17043_v48, 1  ;;  %v8117_v22 = vor.u32 %v8113_v50, %v17044_v25  ;;  %v8125_v28 = vor.u32 %v8121_v63, %v17045_v18  ;;  %v17050_v48 = vshrl.u32 %v14769_v36, 16 }
 0x4bf   : > { %v8133_v54 = vor.u32 %v8129_v62, %v17046_v10  ;;  %v8153_v17 = vrot.slane %v17047_v33, 1  ;;  %v14927_v43 = vsel %vm760_vm3, %v8109_v57, %v8113_v50  ;;  %v8141_v37 = vor.u32 %v8137_v51, %v17049_v56 }
 0x4c0   : > { %17048 = vst [vmem:[#allocation44_spill] sm:$0xff] %v14927_v43  ;;  %v8149_v5 = vor.u32 %v8145_v58, %v17050_v48  ;;  %v17051_v25 = vshll.u32 %v14781_v19, 16  ;;  %v14936_v18 = vsel %vm760_vm3, %v8117_v22, %v8121_v63  ;;  %v14939_v10 = vsel %vm760_vm3, %v8125_v28, %v8129_v62 }
 0x4c1   : > { %17052 = vst [vmem:[#allocation45_spill] sm:$0xff] %v14936_v18  ;;  %17053 = vst [vmem:[#allocation46_spill] sm:$0xff] %v14939_v10  ;;  %v14942_v33 = vsel %vm760_vm3, %v8133_v54, %v8137_v51  ;;  %v17055_v50 = vshrl.u32 %v14775_v32, 16  ;;  %v14947_v56 = vsel %vm760_vm3, %v8141_v37, %v8145_v58  ;;  %v17059_v22 = vshll.u32 %v14790_v3, 16  ;;  %v15074_v18 = vld [vmem:[#allocation3 + $0xa0] sm:$0xff]  ;;  %v15103_v10 = vld [vmem:[#allocation3 + $0xd0] sm:$0xff] }
 0x4c2   : > { %v8161_v21 = vrot.slane %v17051_v25, 1  ;;  %17054 = vst [vmem:[#allocation47_spill] sm:$0xff] %v14942_v33  ;;  %17056 = vst [vmem:[#allocation48_spill] sm:$0xff] %v14947_v56  ;;  %v14950_v48 = vsel %vm760_vm3, %v8149_v5, %v8153_v17  ;;  %v17058_v25 = vshrl.u32 %v14781_v19, 16  ;;  %v16880_v28 = vshrl.u32 %v14857_v46, 16  ;;  %v15066_v33 = vld [vmem:[#allocation3 + $0x90] sm:$0xff] }
 0x4c3   : > { %v8157_v57 = vor.u32 %v8153_v17, %v17055_v50  ;;  %17057 = vst [vmem:[#allocation49_spill] sm:$0xff] %v14950_v48  ;;  %v8169_v63 = vrot.slane %v17059_v22, 1  ;;  %v17061_v51 = vshll.u32 %v14857_v46, 16  ;;  %v17062_v50 = vld [vmem:[#allocation7_spill] sm:$0xff]  ;;  %v17064_v17 = vshrl.u32 %v14790_v3, 16  ;;  %v15058_v48 = vld [vmem:[#allocation3 + $0x80] sm:$0xff] }
 0x4c4   : > { %v8165_v43 = vor.u32 %v8161_v21, %v17058_v25  ;;  %11863 = vmatmul.mubr.msk.bf16.gmra.mrb[84].mxu1 %vm957_vm2, %v17062_v50  ;;  %17080 = vst [vmem:[#allocation54_spill] sm:$0xff] %v15074_v18  ;;  %v15098_v3 = vld [vmem:[#allocation3 + $0xc8] sm:$0xff]  ;;  %17086 = vst [vmem:[#allocation60_spill] sm:$0xff] %v15103_v10  ;;  %v16903_v31 = vrot.slane %v15103_v10, 4 }
 0x4c5   : > { %v14958_v54 = vsel %vm760_vm3, %v8157_v57, %v8161_v21  ;;  %v8177_v62 = vrot.slane %v17061_v51, 1  ;;  %v8173_v58 = vor.u32 %v8169_v63, %v17064_v17  ;;  %11866 = vmatprep.mubr.msk.bf16.mxu1 %vm957_vm2, %v14510_v6  ;;  %v17073_v17 = vld [vmem:[#allocation5_spill] sm:$0xff]  ;;  %17085 = vst [vmem:[#allocation59_spill] sm:$0xff] %v15098_v3 }
 0x4c6   : > { %17060 = vst [vmem:[#allocation50_spill] sm:$0xff] %v14958_v54  ;;  %v14965_v5 = vsel %vm760_vm3, %v8165_v43, %v8169_v63  ;;  %v17067_v43 = vld [vmem:[#allocation4_spill] sm:$0xff]  ;;  %v17070_v63 = vld [vmem:[#allocation6_spill] sm:$0xff]  ;;  %v15085_v54 = vld [vmem:[#allocation3 + $0xb8] sm:$0xff] }
 0x4c7   : > { %17063 = vst [vmem:[#allocation7_spill] sm:$0xff] %v14965_v5  ;;  %v14973_v37 = vor.u32 %v8177_v62, %v16880_v28  ;;  %v14976_v21 = vsel %vm760_vm3, %v8173_v58, %v8177_v62  ;;  %v17068_v57 = vshrl.u32 %v17067_v43, 16  ;;  %v17069_v6 = vshll.u32 %v17067_v43, 16  ;;  %v15050_v5 = vld [vmem:[#allocation3 + $0x70] sm:$0xff]  ;;  %17083 = vst [vmem:[#allocation57_spill] sm:$0xff] %v15085_v54 }
 0x4c8   : > { %17066 = vst [vmem:[#allocation52_spill] sm:$0xff] %v14976_v21  ;;  %v17071_v51 = vshrl.u32 %v17070_v63, 16  ;;  %v7427_v43 = vsel %vm1030_vm0, %v14515_v14, 0 }
 0x4c9   : > { %17065 = vst [vmem:[#allocation51_spill] sm:$0xff] %v14973_v37  ;;  %v6721_v25 = vrot.slane %v17068_v57, 4  ;;  %v6722_v22 = vrot.slane %v17069_v6, 5  ;;  %v15005_v6 = vld [vmem:[#allocation3 + $0x20] sm:$0xff] }
 0x4ca   : > { %v6725_v62 = vrot.slane %v17071_v51, 4  ;;  %17076 = vst [vmem:[#allocation4_spill] sm:$0xff] %v15005_v6 }
 0x4cb   : > { %v6723_v37 = vor.u32 %v6722_v22, %v6721_v25  ;;  %v15013_v22 = vld [vmem:[#allocation3 + $0x30] sm:$0xff] }
 0x4cc   : > { %11867 = vmatmul.mubr.msk.bf16.gmra.mrb[88].mxu1 %vm957_vm2, %v14523_v29  ;;  %v17072_v29 = vshll.u32 %v17070_v63, 16  ;;  %v15007_v63 = vld [vmem:[#allocation3 + $0x28] sm:$0xff]  ;;  %17078 = vst [vmem:[#allocation5_spill] sm:$0xff] %v15013_v22  ;;  %v9103_v46 = vrot.slane %v15013_v22, 4 }
 0x4cd   : > { %11870 = vmatprep.mubr.msk.bf16.mxu1 %vm957_vm2, %v14533_v26  ;;  %v17074_v26 = vshrl.u32 %v17073_v17, 16  ;;  %17077 = vst [vmem:[#allocation6_spill] sm:$0xff] %v15007_v63  ;;  %v6724_v25 = vsel %vm6704_vm4, %v14507_v34, %v6723_v37  ;;  %v17087_v34 = vrot.slane %v15005_v6, 4 }
 0x4ce   : > { %v6726_v50 = vrot.slane %v17072_v29, 5  ;;  %v15024_v29 = vld [vmem:[#allocation3 + $0x40] sm:$0xff] }
 0x4cf   : > { %v6729_v58 = vrot.slane %v17074_v26, 4  ;;  %v15034_v26 = vld [vmem:[#allocation3 + $0x50] sm:$0xff] }
 0x4d0   : > { %v6727_v57 = vor.u32 %v6726_v50, %v6725_v62  ;;  %v15076_v50 = vld [vmem:[#allocation3 + $0xa8] sm:$0xff]  ;;  %v9111_v32 = vrot.slane %v15034_v26, 4 }
 0x4d1   : > { %17081 = vst [vmem:[#allocation55_spill] sm:$0xff] %v15076_v50 }
 0x4d2   : > { %v6728_v14 = vsel %vm6704_vm4, %v6723_v37, %v6727_v57  ;;  %v9101_v37 = vrot.slane %v15007_v63, 4 }
 0x4d4   : > { %11871 = vmatmul.mubr.msk.bf16.gmra.mrb[92].mxu1 %vm957_vm2, %v14546_v60  ;;  %v17075_v60 = vshll.u32 %v17073_v17, 16  ;;  %v15060_v17 = vld [vmem:[#allocation3 + $0x88] sm:$0xff]  ;;  %v15122_v36 = vsel %vm1030_vm0, %v9101_v37, %v9103_v46 }
 0x4d5   : > { %11876 = vmatprep.mubr.msk.bf16.mxu1 %vm957_vm2, %v14539_v61  ;;  %v15003_v61 = vld [vmem:[%s16823_s4 + $0x10] sm:$0xf]  ;;  %17089 = vst [vmem:[#allocation62_spill] sm:$0xff] %v15122_v36 }
 0x4d6   : > { %v6730_v28 = vrot.slane %v17075_v60, 5  ;;  %v15068_v60 = vld [vmem:[#allocation3 + $0x98] sm:$0xff] }
 0x4d8   : > { %v6731_v21 = vor.u32 %v6730_v28, %v6729_v58  ;;  %v15015_v28 = vld [vmem:[#allocation3 + $0x38] sm:$0xff] }
 0x4d9   : > { %17079 = vst [vmem:[#allocation53_spill] sm:$0xff] %v15015_v28  ;;  %v15036_v58 = vld [vmem:[#allocation3 + $0x58] sm:$0xff] }
 0x4da   : > { %v6732_v51 = vsel %vm6704_vm4, %v6727_v57, %v6731_v21  ;;  %v15022_v62 = vsel %vm6704_vm4, %v6731_v21, %v14562_v0  ;;  %v15052_v0 = vld [vmem:[#allocation3 + $0x78] sm:$0xff]  ;;  %v9105_v57 = vrot.slane %v15015_v28, 4  ;;  %v15119_v21 = vsel %vm1030_vm0, %v17087_v34, %v9101_v37 }
 0x4db   : > { %17088 = vst [vmem:[#allocation61_spill] sm:$0xff] %v15119_v21  ;;  %v9113_v34 = vrot.slane %v15036_v58, 4 }
 0x4dc   : > { %11877 = vmatmul.mubr.msk.bf16.vlgmr.msra.gmra.mrb[96].mxu1 %vm957_vm2, %v14528_v47  ;;  %v15026_v47 = vld [vmem:[#allocation3 + $0x48] sm:$0xff]  ;;  %v15125_v19 = vsel %vm1030_vm0, %v9103_v46, %v9105_v57 }
 0x4dd   : > { %11925 = vmatpush3.bf16.msra.mxu1 %v7427_v43  ;;  %11880 = vmatprep.mubr.msk.bf16.mxu1 %vm957_vm2, %v6724_v25  ;;  %v15042_v43 = vld [vmem:[#allocation3 + $0x60] sm:$0xff]  ;;  %v15044_v25 = vld [vmem:[#allocation3 + $0x68] sm:$0xff]  ;;  %17090 = vst [vmem:[#allocation63_spill] sm:$0xff] %v15125_v19  ;;  %v9109_v44 = vrot.slane %v15026_v47, 4  ;;  %v15149_v56 = vsel %vm1030_vm0, %v9111_v32, %v9113_v34 }
 0x4de   : > { %12621 = vmatprep.subr.msk.bf16.mxu1 %vm1030_vm0, %v15003_v61  ;;  %v9115_v37 = vrot.slane %v15042_v43, 4  ;;  %v9117_v36 = vrot.slane %v15044_v25, 4  ;;  %17094 = vst [vmem:[#allocation67_spill] sm:$0xff] %v15149_v56 }
 0x4e0   : > { %v15152_v19 = vsel %vm1030_vm0, %v9113_v34, %v9115_v37  ;;  %v15155_v21 = vsel %vm1030_vm0, %v9115_v37, %v9117_v36  ;;  %v9129_v37 = vrot.slane %v15068_v60, 4 }
 0x4e1   : > { %17095 = vst [vmem:[#allocation68_spill] sm:$0xff] %v15152_v19  ;;  %17096 = vst [vmem:[#allocation69_spill] sm:$0xff] %v15155_v21  ;;  %v9131_v21 = vrot.slane %v15074_v18, 4  ;;  %v9135_v19 = vrot.slane %v15083_v7, 4 }
 0x4e3   : > { %v15190_v53 = vsel %vm1030_vm0, %v9129_v37, %v9131_v21 }
 0x4e4   : > { %11881 = vmatmul.mubr.msk.bf16.gmra.mrb[100].mxu1 %vm957_vm2, %v6728_v14  ;;  %v9107_v14 = vrot.slane %v15024_v29, 4  ;;  %17103 = vst [vmem:[#allocation76_spill] sm:$0xff] %v15190_v53 }
 0x4e5   : > { %11884 = vmatprep.mubr.msk.bf16.mxu1 %vm957_vm2, %v6732_v51 }
 0x4e6   : > { %v15128_v51 = vsel %vm1030_vm0, %v9105_v57, %v9107_v14  ;;  %v15141_v46 = vsel %vm1030_vm0, %v9107_v14, %v9109_v44  ;;  %v15144_v57 = vsel %vm1030_vm0, %v9109_v44, %v9111_v32  ;;  %v9127_v32 = vrot.slane %v15066_v33, 4 }
 0x4e7   : > { %17091 = vst [vmem:[#allocation64_spill] sm:$0xff] %v15128_v51  ;;  %17092 = vst [vmem:[#allocation65_spill] sm:$0xff] %v15141_v46  ;;  %v9119_v51 = vrot.slane %v15050_v5, 4 }
 0x4e8   : > { %17093 = vst [vmem:[#allocation66_spill] sm:$0xff] %v15144_v57  ;;  %v9125_v57 = vrot.slane %v15060_v17, 4  ;;  %v15187_v55 = vsel %vm1030_vm0, %v9127_v32, %v9129_v37 }
 0x4e9   : > { %v15159_v46 = vsel %vm1030_vm0, %v9117_v36, %v9119_v51  ;;  %17102 = vst [vmem:[#allocation75_spill] sm:$0xff] %v15187_v55 }
 0x4ea   : > { %17097 = vst [vmem:[#allocation70_spill] sm:$0xff] %v15159_v46  ;;  %v9070_v46 = vld [vmem:[#allocation3 + $0x18] sm:$0xf0] }
 0x4eb   : > { %v11778_v14 = vpop.f32.mrb[0].mxu1  ;;  %v9470_v37 = vshll.u32 %v9070_v46, 16 }
 0x4ec   : > { %11885 = vmatmul.mubr.msk.bf16.gmra.mrb[104].mxu1 %vm957_vm2, %v15022_v62  ;;  %v9121_v62 = vrot.slane %v15052_v0, 4  ;;  %v15166_v56 = vpop.f32.mrb[1].mxu1  ;;  %v9133_v14 = vrot.slane %v15076_v50, 4 }
 0x4ed   : > { %11888 = vmatprep.mubr.msk.bf16.mxu1 %vm957_vm2, %v14576_v1  ;;  %v9123_v1 = vrot.slane %v15058_v48, 4  ;;  %v15174_v36 = vpop.f32.mrb[2].mxu1 }
 0x4ee   : > { %v15162_v44 = vsel %vm1030_vm0, %v9119_v51, %v9121_v62  ;;  %v15193_v59 = vsel %vm1030_vm0, %v9131_v21, %v9133_v14  ;;  %v9467_v21 = vshrl.u32 %v9070_v46, 16 }
 0x4ef   : > { %17098 = vst [vmem:[#allocation71_spill] sm:$0xff] %v15162_v44  ;;  %v15169_v34 = vsel %vm1030_vm0, %v9121_v62, %v9123_v1  ;;  %v15177_v51 = vsel %vm1030_vm0, %v9123_v1, %v9125_v57  ;;  %v15180_v44 = vsel %vm1030_vm0, %v9125_v57, %v9127_v32  ;;  %v9137_v62 = vrot.slane %v15085_v54, 4  ;;  %17104 = vst [vmem:[#allocation77_spill] sm:$0xff] %v15193_v59 }
 0x4f0   : > { %17099 = vst [vmem:[#allocation72_spill] sm:$0xff] %v15169_v34  ;;  %17100 = vst [vmem:[#allocation73_spill] sm:$0xff] %v15177_v51  ;;  %v15184_v34 = vpop.f32.mrb[3].mxu1  ;;  %v9139_v1 = vrot.slane %v15092_v41, 4  ;;  %v15197_v57 = vsel %vm1030_vm0, %v9133_v14, %v9135_v19  ;;  %v9141_v51 = vrot.slane %v15098_v3, 4  ;;  %v17108_v59 = vshrl.u32 %v15005_v6, 16 }
 0x4f1   : > { %17101 = vst [vmem:[#allocation74_spill] sm:$0xff] %v15180_v44  ;;  %17105 = vst [vmem:[#allocation78_spill] sm:$0xff] %v15197_v57  ;;  %v15200_v44 = vsel %vm1030_vm0, %v9135_v19, %v9137_v62  ;;  %v9472_v57 = vrot.slane %v9470_v37, 5 }
 0x4f2   : > { %17106 = vst [vmem:[#allocation79_spill] sm:$0xff] %v15200_v44  ;;  %v15207_v32 = vsel %vm1030_vm0, %v9137_v62, %v9139_v1  ;;  %v9474_v53 = vrot.slane %v17108_v59, 4  ;;  %v15214_v19 = vsel %vm1030_vm0, %v9139_v1, %v9141_v51  ;;  %v15219_v14 = vsel %vm1030_vm0, %v9141_v51, %v16903_v31 }
 0x4f3   : > { %17107 = vst [vmem:[#allocation80_spill] sm:$0xff] %v15207_v32  ;;  %17109 = vst [vmem:[#allocation81_spill] sm:$0xff] %v15214_v19  ;;  %v17112_v32 = vshrl.u32 %v15007_v63, 16  ;;  %v9469_v44 = vrot.slane %v9467_v21, 4  ;;  %v17113_v59 = vshll.u32 %v15007_v63, 16  ;;  %v15229_v19 = vpop.f32.mrb[4].mxu1 }
 0x4f4   : > { %11889 = vmatmul.mubr.msk.bf16.gmra.mrb[108].mxu1 %vm957_vm2, %v14584_v20  ;;  %17110 = vst [vmem:[#allocation82_spill] sm:$0xff] %v15219_v14  ;;  %v17111_v20 = vshll.u32 %v15005_v6, 16  ;;  %17115 = vst [vmem:[#allocation83_spill] sm:$0xff] %v15229_v19  ;;  %v17116_v51 = vshll.u32 %v15013_v22, 16  ;;  %v17117_v14 = vshrl.u32 %v15015_v28, 16  ;;  %v17118_v6 = vshll.u32 %v15015_v28, 16 }
 0x4f5   : > { %11892 = vmatprep.mubr.msk.bf16.mxu1 %vm957_vm2, %v14597_v15  ;;  %v9478_v46 = vrot.slane %v17112_v32, 4  ;;  %v9479_v55 = vrot.slane %v17113_v59, 5  ;;  %v17114_v15 = vshrl.u32 %v15013_v22, 16  ;;  %v15237_v21 = vpop.f32.mrb[5].mxu1  ;;  %v9473_v37 = vor.u32 %v9472_v57, %v9469_v44 }
 0x4f6   : > { %v9475_v62 = vrot.slane %v17111_v20, 5  ;;  %v9483_v31 = vrot.slane %v17116_v51, 5  ;;  %v9486_v20 = vrot.slane %v17117_v14, 4  ;;  %v9487_v32 = vrot.slane %v17118_v6, 5 }
 0x4f7   : > { %v9482_v1 = vrot.slane %v17114_v15, 4  ;;  %v9480_v63 = vor.u32 %v9479_v55, %v9478_v46  ;;  %v17119_v59 = vshrl.u32 %v15024_v29, 16  ;;  %v17120_v15 = vshll.u32 %v15024_v29, 16 }
 0x4f8   : > { %v9476_v8 = vor.u32 %v9475_v62, %v9474_v53  ;;  %v15243_v53 = vpop.f32.mrb[6].mxu1  ;;  %v9488_v51 = vor.u32 %v9487_v32, %v9486_v20  ;;  %v17121_v22 = vshrl.u32 %v15026_v47, 16  ;;  %v17122_v28 = vshll.u32 %v15026_v47, 16 }
 0x4f9   : > { %v9490_v39 = vrot.slane %v17119_v59, 4  ;;  %v9491_v49 = vrot.slane %v17120_v15, 5  ;;  %v9484_v62 = vor.u32 %v9483_v31, %v9482_v1  ;;  %v6035_v19 = vpop.f32.mrb[7].mxu1  ;;  %v17125_v46 = vshrl.u32 %v15034_v26, 16 }
 0x4fa   : > { %v9494_v14 = vrot.slane %v17121_v22, 4  ;;  %v9495_v6 = vrot.slane %v17122_v28, 5  ;;  %v15250_v44 = vsel %vm6704_vm4, %v9473_v37, %v9476_v8  ;;  %v15253_v55 = vsel %vm6704_vm4, %v9476_v8, %v9480_v63 }
 0x4fb   : > { %17123 = vst [vmem:[#allocation84_spill] sm:$0xff] %v15250_v44  ;;  %17124 = vst [vmem:[#allocation85_spill] sm:$0xff] %v15253_v55  ;;  %v9492_v57 = vor.u32 %v9491_v49, %v9490_v39  ;;  %v9498_v59 = vrot.slane %v17125_v46, 4  ;;  %v15258_v31 = vsel %vm6704_vm4, %v9480_v63, %v9484_v62  ;;  %v15261_v1 = vsel %vm6704_vm4, %v9484_v62, %v9488_v51 }
 0x4fc   : > { %17126 = vst [vmem:[#allocation86_spill] sm:$0xff] %v15258_v31  ;;  %17127 = vst [vmem:[#allocation87_spill] sm:$0xff] %v15261_v1  ;;  %v9496_v22 = vor.u32 %v9495_v6, %v9494_v14  ;;  %v17128_v28 = vshll.u32 %v15034_v26, 16  ;;  %11893 = vmatmul.mubr.msk.bf16.gmra.mrb[112].mxu1 %vm957_vm2, %v14604_v38  ;;  %v17130_v49 = vshrl.u32 %v15036_v58, 16  ;;  %v17131_v20 = vshll.u32 %v15036_v58, 16  ;;  %v15291_v1 = vpop.f32.mrb[8].mxu1 }
 0x4fd   : > { %v15268_v8 = vsel %vm6704_vm4, %v9488_v51, %v9492_v57  ;;  %v17132_v32 = vshrl.u32 %v15042_v43, 16  ;;  %11896 = vmatprep.mubr.msk.bf16.mxu1 %vm957_vm2, %v14609_v2  ;;  %v17134_v38 = vshll.u32 %v15042_v43, 16  ;;  %v17135_v14 = vshrl.u32 %v15044_v25, 16 }
 0x4fe   : > { %v9499_v19 = vrot.slane %v17128_v28, 5  ;;  %17129 = vst [vmem:[#allocation88_spill] sm:$0xff] %v15268_v8  ;;  %v9502_v39 = vrot.slane %v17130_v49, 4  ;;  %v9503_v63 = vrot.slane %v17131_v20, 5  ;;  %v15279_v15 = vsel %vm6704_vm4, %v9492_v57, %v9496_v22 }
 0x4ff   : > { %v9506_v37 = vrot.slane %v17132_v32, 4  ;;  %17133 = vst [vmem:[#allocation89_spill] sm:$0xff] %v15279_v15  ;;  %v9507_v51 = vrot.slane %v17134_v38, 5  ;;  %v9510_v6 = vrot.slane %v17135_v14, 4  ;;  %v17136_v28 = vshll.u32 %v15044_v25, 16  ;;  %v6047_v14 = vpop.f32.mrb[9].mxu1 }
 0x500   : > { %v9500_v62 = vor.u32 %v9499_v19, %v9498_v59  ;;  %v9504_v46 = vor.u32 %v9503_v63, %v9502_v39  ;;  %v17137_v20 = vshrl.u32 %v15050_v5, 16  ;;  %v17138_v8 = vshll.u32 %v15050_v5, 16  ;;  %v11787_v55 = vpop.f32.mrb[10].mxu1 }
 0x501   : > { %v9511_v49 = vrot.slane %v17136_v28, 5  ;;  %v9508_v59 = vor.u32 %v9507_v51, %v9506_v37  ;;  %v17140_v19 = vshrl.u32 %v15052_v0, 16  ;;  %v17141_v39 = vshll.u32 %v15052_v0, 16  ;;  %v15312_v14 = vpop.f32.mrb[11].mxu1 }
 0x502   : > { %v9514_v32 = vrot.slane %v17137_v20, 4  ;;  %v9515_v2 = vrot.slane %v17138_v8, 5  ;;  %v15294_v57 = vsel %vm6704_vm4, %v9496_v22, %v9500_v62  ;;  %v15301_v28 = vsel %vm6704_vm4, %v9500_v62, %v9504_v46 }
 0x503   : > { %17139 = vst [vmem:[#allocation90_spill] sm:$0xff] %v15294_v57  ;;  %v9518_v38 = vrot.slane %v17140_v19, 4  ;;  %v9519_v63 = vrot.slane %v17141_v39, 5  ;;  %17142 = vst [vmem:[#allocation91_spill] sm:$0xff] %v15301_v28  ;;  %v9512_v20 = vor.u32 %v9511_v49, %v9510_v6  ;;  %v17143_v8 = vshrl.u32 %v15058_v48, 16 }
 0x504   : > { %v9516_v15 = vor.u32 %v9515_v2, %v9514_v32  ;;  %v15306_v22 = vsel %vm6704_vm4, %v9504_v46, %v9508_v59  ;;  %v17145_v51 = vshll.u32 %v15058_v48, 16  ;;  %v17146_v57 = vshrl.u32 %v15060_v17, 16  ;;  %11897 = vmatmul.mubr.msk.bf16.gmra.mrb[116].mxu1 %vm957_vm2, %v14616_v16 }
 0x505   : > { %v9522_v31 = vrot.slane %v17143_v8, 4  ;;  %17144 = vst [vmem:[#allocation92_spill] sm:$0xff] %v15306_v22  ;;  %v9520_v37 = vor.u32 %v9519_v63, %v9518_v38  ;;  %v15315_v62 = vsel %vm6704_vm4, %v9508_v59, %v9512_v20  ;;  %v17149_v55 = vshll.u32 %v15060_v17, 16  ;;  %11900 = vmatprep.mubr.msk.bf16.mxu1 %vm957_vm2, %v14619_v40  ;;  %v11790_v22 = vpop.f32.mrb[12].mxu1 }
 0x506   : > { %v9523_v19 = vrot.slane %v17145_v51, 5  ;;  %v9526_v39 = vrot.slane %v17146_v57, 4  ;;  %17147 = vst [vmem:[#allocation93_spill] sm:$0xff] %v15315_v62  ;;  %v15318_v6 = vsel %vm6704_vm4, %v9512_v20, %v9516_v15  ;;  %v17150_v46 = vshrl.u32 %v15066_v33, 16 }
 0x507   : > { %17148 = vst [vmem:[#allocation94_spill] sm:$0xff] %v15318_v6  ;;  %v9527_v49 = vrot.slane %v17149_v55, 5  ;;  %v15325_v2 = vsel %vm6704_vm4, %v9516_v15, %v9520_v37  ;;  %v17152_v57 = vshll.u32 %v15066_v33, 16  ;;  %v17153_v8 = vshrl.u32 %v15068_v60, 16 }
 0x508   : > { %v9530_v32 = vrot.slane %v17150_v46, 4  ;;  %17151 = vst [vmem:[#allocation95_spill] sm:$0xff] %v15325_v2  ;;  %v9524_v38 = vor.u32 %v9523_v19, %v9522_v31  ;;  %v17154_v51 = vshll.u32 %v15068_v60, 16  ;;  %v17155_v6 = vshrl.u32 %v15074_v18, 16 }
 0x509   : > { %v9531_v63 = vrot.slane %v17152_v57, 5  ;;  %v9534_v59 = vrot.slane %v17153_v8, 4  ;;  %v9528_v20 = vor.u32 %v9527_v49, %v9526_v39  ;;  %v17156_v15 = vshll.u32 %v15074_v18, 16 }
 0x50a   : > { %v9535_v55 = vrot.slane %v17154_v51, 5  ;;  %v9538_v46 = vrot.slane %v17155_v6, 4  ;;  %v15342_v31 = vsel %vm6704_vm4, %v9520_v37, %v9524_v38  ;;  %v17158_v57 = vshrl.u32 %v15076_v50, 16 }
 0x50b   : > { %v9539_v2 = vrot.slane %v17156_v15, 5  ;;  %17157 = vst [vmem:[#allocation96_spill] sm:$0xff] %v15342_v31  ;;  %v9532_v19 = vor.u32 %v9531_v63, %v9530_v32  ;;  %v17159_v39 = vshll.u32 %v15076_v50, 16  ;;  %v15349_v8 = vsel %vm6704_vm4, %v9524_v38, %v9528_v20 }
 0x50c   : > { %v9542_v16 = vrot.slane %v17158_v57, 4  ;;  %17160 = vst [vmem:[#allocation97_spill] sm:$0xff] %v15349_v8  ;;  %v9536_v6 = vor.u32 %v9535_v55, %v9534_v59  ;;  %v17161_v15 = vshrl.u32 %v15083_v7, 16  ;;  %v17163_v32 = vshll.u32 %v15083_v7, 16  ;;  %11901 = vmatmul.mubr.msk.bf16.gmra.mrb[120].mxu1 %vm957_vm2, %v14626_v30 }
 0x50d   : > { %v9543_v49 = vrot.slane %v17159_v39, 5  ;;  %v9540_v51 = vor.u32 %v9539_v2, %v9538_v46  ;;  %v15354_v40 = vsel %vm6704_vm4, %v9528_v20, %v9532_v19  ;;  %v17164_v57 = vshrl.u32 %v15085_v54, 16  ;;  %v15360_v39 = vpop.f32.mrb[13].mxu1  ;;  %11904 = vmatprep.mubr.msk.bf16.mxu1 %vm957_vm2, %v14642_v35 }
 0x50e   : > { %v9546_v62 = vrot.slane %v17161_v15, 4  ;;  %17162 = vst [vmem:[#allocation98_spill] sm:$0xff] %v15354_v40  ;;  %v9547_v63 = vrot.slane %v17163_v32, 5  ;;  %v15363_v38 = vsel %vm6704_vm4, %v9532_v19, %v9536_v6  ;;  %v17167_v22 = vshll.u32 %v15085_v54, 16  ;;  %v15372_v46 = vpop.f32.mrb[14].mxu1 }
 0x50f   : > { %v9544_v37 = vor.u32 %v9543_v49, %v9542_v16  ;;  %v9550_v31 = vrot.slane %v17164_v57, 4  ;;  %17165 = vst [vmem:[#allocation99_spill] sm:$0xff] %v15363_v38  ;;  %v15366_v2 = vsel %vm6704_vm4, %v9536_v6, %v9540_v51  ;;  %v17168_v20 = vshrl.u32 %v15092_v41, 16  ;;  %v15381_v6 = vpop.f32.mrb[15].mxu1 }
 0x510   : > { %17166 = vst [vmem:[#allocation100_spill] sm:$0xff] %v15366_v2  ;;  %v9551_v59 = vrot.slane %v17167_v22, 5  ;;  %v9548_v49 = vor.u32 %v9547_v63, %v9546_v62  ;;  %v17170_v15 = vshll.u32 %v15092_v41, 16  ;;  %v17171_v19 = vshrl.u32 %v15098_v3, 16  ;;  %v15411_v30 = vpop.f32.mrb[16].mxu1  ;;  %v17198_v41 = vld [vmem:[#allocation14_spill] sm:$0xff] }
 0x511   : > { %v9554_v55 = vrot.slane %v17168_v20, 4  ;;  %v15375_v16 = vsel %vm6704_vm4, %v9540_v51, %v9544_v37  ;;  %v17172_v22 = vshll.u32 %v15098_v3, 16  ;;  %v17173_v20 = vshrl.u32 %v15103_v10, 16 }
 0x512   : > { %17169 = vst [vmem:[#allocation101_spill] sm:$0xff] %v15375_v16  ;;  %v9555_v32 = vrot.slane %v17170_v15, 5  ;;  %v9558_v57 = vrot.slane %v17171_v19, 4  ;;  %v9552_v2 = vor.u32 %v9551_v59, %v9550_v31  ;;  %v17174_v8 = vshll.u32 %v15103_v10, 16 }
 0x513   : > { %v9559_v38 = vrot.slane %v17172_v22, 5  ;;  %v9562_v40 = vrot.slane %v17173_v20, 4  ;;  %v15390_v62 = vsel %vm6704_vm4, %v9544_v37, %v9548_v49  ;;  %v17187_v10 = vshll.u32 %v14697_v9, 16 }
 0x514   : > { %v9563_v51 = vrot.slane %v17174_v8, 5  ;;  %17175 = vst [vmem:[#allocation102_spill] sm:$0xff] %v15390_v62  ;;  %v9556_v63 = vor.u32 %v9555_v32, %v9554_v55  ;;  %v15395_v15 = vsel %vm6704_vm4, %v9548_v49, %v9552_v2  ;;  %v15413_v55 = vpop.f32.mrb[17].mxu1  ;;  %11905 = vmatmul.mubr.msk.bf16.gmra.mrb[124].mxu1 %vm957_vm2, %v14649_v24 }
 0x515   : > { %17176 = vst [vmem:[#allocation103_spill] sm:$0xff] %v15395_v15  ;;  %v9560_v31 = vor.u32 %v9559_v38, %v9558_v57  ;;  %v15415_v38 = vpop.f32.mrb[18].mxu1  ;;  %11908 = vmatprep.mubr.msk.bf16.mxu1 %vm957_vm2, %v14654_v27  ;;  %v17181_v57 = vld [vmem:[#allocation8_spill] sm:$0xff]  ;;  %v17182_v27 = vld [vmem:[#allocation9_spill] sm:$0xff]  ;;  %v17185_v15 = vshrl.u32 %v14697_v9, 16 }
 0x516   : > { %v15397_v59 = vor.u32 %v9563_v51, %v9562_v40  ;;  %v15402_v19 = vsel %vm6704_vm4, %v9552_v2, %v9556_v63  ;;  %v6079_v40 = vpop.f32.mrb[19].mxu1 }
 0x517   : > { %17178 = vst [vmem:[#allocation105_spill] sm:$0xff] %v15402_v19  ;;  %v15405_v8 = vsel %vm6704_vm4, %v9556_v63, %v9560_v31  ;;  %v15421_v35 = vpop.f32.mrb[20].mxu1  ;;  %v6701_v63 = vld [vmem:[#allocation3 + $0xc0] sm:$0x1f]  ;;  %v7165_v62 = vrot.slane %v17185_v15, 7  ;;  %v17189_v15 = vshrl.u32 %v14699_v4, 16 }
 0x518   : > { %17177 = vst [vmem:[#allocation104_spill] sm:$0xff] %v15397_v59  ;;  %17179 = vst [vmem:[#allocation106_spill] sm:$0xff] %v15405_v8  ;;  %v15409_v37 = vsel %vm6704_vm4, %v9560_v31, %v15397_v59  ;;  %v6091_v2 = vpop.f32.mrb[21].mxu1  ;;  %v17183_v31 = vld [vmem:[#allocation10_spill] sm:$0xff]  ;;  %v17184_v19 = vld [vmem:[#allocation12_spill] sm:$0xff] }
 0x519   : > { %17180 = vst [vmem:[#allocation107_spill] sm:$0xff] %v15409_v37  ;;  %v11799_v49 = vpop.f32.mrb[22].mxu1  ;;  %v6809_v2 = vshll.u32 %v6701_v63, 16  ;;  %v7173_v3 = vrot.slane %v17189_v15, 7 }
 0x51a   : > { %v15423_v32 = vpop.f32.mrb[23].mxu1 }
 0x51b   : > { %v11802_v22 = vpop.f32.mrb[24].mxu1  ;;  %v6811_v8 = vrot.slane %v6809_v2, 5 }
 0x51c   : > { %11909 = vmatmul.mubr.msk.bf16.gmra.mrb[128].mxu1 %vm957_vm2, %v14661_v12  ;;  %v15429_v20 = vpop.f32.mrb[25].mxu1  ;;  %v6806_v12 = vshrl.u32 %v6701_v63, 16  ;;  %v7130_v22 = vld [vmem:[#allocation3 + $0x8] sm:$0x80] }
 0x51d   : > { %11912 = vmatprep.mubr.msk.bf16.mxu1 %vm957_vm2, %v17181_v57  ;;  %v15431_v51 = vpop.f32.mrb[26].mxu1 }
 0x51e   : > { %v15433_v24 = vpop.f32.mrb[27].mxu1  ;;  %v6808_v37 = vrot.slane %v6806_v12, 4 }
 0x520   : > { %v6812_v63 = vor.u32 %v6811_v8, %v6808_v37 }
 0x523   : > { %v15439_v40 = vpop.f32.mrb[28].mxu1 }
 0x524   : > { %11913 = vmatmul.mubr.msk.bf16.gmra.mrb[132].mxu1 %vm957_vm2, %v17182_v27  ;;  %v15441_v49 = vpop.f32.mrb[29].mxu1  ;;  %v7159_v27 = vshrl.u32 %v7130_v22, 16 }
 0x525   : > { %11916 = vmatprep.mubr.msk.bf16.mxu1 %vm957_vm2, %v17183_v31  ;;  %v15443_v57 = vpop.f32.mrb[30].mxu1  ;;  %v17186_v31 = vld [vmem:[#allocation13_spill] sm:$0xff] }
 0x526   : > { %v6123_v59 = vpop.f32.mrb[31].mxu1  ;;  %v7161_v44 = vrot.slane %v7159_v27, 7 }
 0x527   : > { %v7168_v59 = vor.u32 %v17187_v10, %v7165_v62  ;;  %v17191_v10 = vshll.u32 %v14699_v4, 16  ;;  %v15484_v4 = vld [vmem:[%s16823_s4 + $0x14] sm:$0xf] }
 0x529   : > { %v7176_v37 = vor.u32 %v17191_v10, %v7173_v3 }
 0x52b   : > { %v15451_v16 = vpop.f32.mrb[32].mxu1 }
 0x52c   : > { %11917 = vmatmul.mubr.msk.bf16.gmra.mrb[136].mxu1 %vm957_vm2, %v17184_v19  ;;  %v6135_v28 = vpop.f32.mrb[33].mxu1  ;;  %v17188_v19 = vld [vmem:[#allocation11_spill] sm:$0xff] }
 0x52d   : > { %11920 = vmatprep.mubr.msk.bf16.mxu1 %vm957_vm2, %v17186_v31  ;;  %v11811_v12 = vpop.f32.mrb[34].mxu1  ;;  %v6813_v22 = vsel %vm6704_vm4, %v17188_v19, %v6812_v63  ;;  %v7169_v31 = vsel %vm7157_vm5, %v7161_v44, %v7168_v59  ;;  %v17190_v28 = vshrl.u32 %v14703_v13, 16  ;;  %v17192_v63 = vshll.u32 %v14703_v13, 16 }
 0x52e   : > { %v15455_v2 = vpop.f32.mrb[35].mxu1  ;;  %v7721_v44 = vsel %vm1030_vm0, %v15003_v61, 0  ;;  %v7177_v59 = vsel %vm7157_vm5, %v7165_v62, %v7176_v37  ;;  %v17195_v62 = vshll.u32 %v14705_v42, 16 }
 0x52f   : > { %v7181_v8 = vrot.slane %v17190_v28, 7  ;;  %v17194_v28 = vshrl.u32 %v14707_v11, 16 }
 0x531   : > { %v7184_v12 = vor.u32 %v17192_v63, %v7181_v8  ;;  %v17196_v63 = vshll.u32 %v14707_v11, 16  ;;  %v17200_v11 = vshll.u32 %v14709_v23, 16 }
 0x533   : > { %v11814_v9 = vpop.f32.mrb[36].mxu1  ;;  %v7185_v13 = vsel %vm7157_vm5, %v7173_v3, %v7184_v12 }
 0x534   : > { %11921 = vmatmul.mubr.msk.bf16.gmra.mrb[140].mxu1 %vm957_vm2, %v6813_v22  ;;  %v15468_v27 = vpop.f32.mrb[37].mxu1  ;;  %v17193_v22 = vshrl.u32 %v14705_v42, 16  ;;  %v7197_v9 = vrot.slane %v17194_v28, 7  ;;  %v17199_v42 = vshrl.u32 %v17198_v41, 16 }
 0x535   : > { %11926 = vmatprep.mubr.msk.bf16.mxu1 %vm957_vm2, %v7169_v31  ;;  %v15472_v19 = vpop.f32.mrb[38].mxu1 }
 0x536   : > { %v15474_v15 = vpop.f32.mrb[39].mxu1  ;;  %v7189_v31 = vrot.slane %v17193_v22, 7  ;;  %v17197_v22 = vshrl.u32 %v14709_v23, 16 }
 0x538   : > { %v7192_v10 = vor.u32 %v17195_v62, %v7189_v31  ;;  %v7213_v62 = vrot.slane %v17199_v42, 7  ;;  %v17204_v42 = vld [vmem:[#allocation16_spill] sm:$0xff] }
 0x539   : > { %v17205_v18 = vshrl.u32 %v17204_v42, 16 }
 0x53b   : > { %v15493_v61 = vpop.f32.mrb[40].mxu1  ;;  %v7229_v23 = vrot.slane %v17205_v18, 7 }
 0x53c   : > { %11927 = vmatmul.mubr.msk.bf16.vlgmr.msra.gmra.mrb[144].mxu1 %vm957_vm2, %v7177_v59  ;;  %v15497_v37 = vpop.f32.mrb[41].mxu1  ;;  %v7200_v59 = vor.u32 %v17196_v63, %v7197_v9 }
 0x53d   : > { %11975 = vmatpush3.bf16.msra.mxu1 %v7721_v44  ;;  %11930 = vmatprep.mubr.msk.bf16.mxu1 %vm957_vm2, %v7185_v13  ;;  %v15501_v3 = vpop.f32.mrb[42].mxu1  ;;  %v7193_v44 = vsel %vm7157_vm5, %v7181_v8, %v7192_v10  ;;  %v7205_v13 = vrot.slane %v17197_v22, 7  ;;  %v17201_v8 = vshll.u32 %v17198_v41, 16 }
 0x53e   : > { %12622 = vmatprep.subr.msk.bf16.mxu1 %vm1030_vm0, %v15484_v4  ;;  %v6167_v12 = vpop.f32.mrb[43].mxu1  ;;  %v7201_v28 = vsel %vm7157_vm5, %v7189_v31, %v7200_v59  ;;  %v17202_v31 = vld [vmem:[#allocation15_spill] sm:$0xff] }
 0x53f   : > { %v7208_v63 = vor.u32 %v17200_v11, %v7205_v13  ;;  %v7216_v10 = vor.u32 %v17201_v8, %v7213_v62  ;;  %v17203_v59 = vshrl.u32 %v17202_v31, 16  ;;  %v17206_v41 = vshll.u32 %v17202_v31, 16 }
 0x540   : > { %v17207_v8 = vshll.u32 %v17204_v42, 16  ;;  %v17208_v31 = vshrl.u32 %v14725_v45, 16 }
 0x541   : > { %v7221_v50 = vrot.slane %v17203_v59, 7 }
 0x543   : > { %v15511_v54 = vpop.f32.mrb[44].mxu1 }
 0x544   : > { %11931 = vmatmul.mubr.msk.bf16.gmra.mrb[148].mxu1 %vm957_vm2, %v7193_v44  ;;  %v6179_v12 = vpop.f32.mrb[45].mxu1  ;;  %v7209_v44 = vsel %vm7157_vm5, %v7197_v9, %v7208_v63  ;;  %v7232_v9 = vor.u32 %v17207_v8, %v7229_v23 }
 0x545   : > { %11934 = vmatprep.mubr.msk.bf16.mxu1 %vm957_vm2, %v7201_v28  ;;  %v11823_v7 = vpop.f32.mrb[46].mxu1  ;;  %v7217_v28 = vsel %vm7157_vm5, %v7205_v13, %v7216_v10 }
 0x546   : > { %v15517_v22 = vpop.f32.mrb[47].mxu1  ;;  %v7224_v7 = vor.u32 %v17206_v41, %v7221_v50  ;;  %v7233_v42 = vsel %vm7157_vm5, %v7221_v50, %v7232_v9  ;;  %v17210_v41 = vshll.u32 %v14725_v45, 16 }
 0x548   : > { %v7225_v10 = vsel %vm7157_vm5, %v7213_v62, %v7224_v7  ;;  %v17212_v7 = vshll.u32 %v14731_v52, 16 }
 0x54b   : > { %v11828_v11 = vpop.f32.mrb[48].mxu1 }
 0x54c   : > { %11935 = vmatmul.mubr.msk.bf16.gmra.mrb[152].mxu1 %vm957_vm2, %v7209_v44  ;;  %v6526_v12 = vpop.f32.mrb[49].mxu1 }
 0x54d   : > { %11938 = vmatprep.mubr.msk.bf16.mxu1 %vm957_vm2, %v7217_v28  ;;  %v15532_v63 = vadd.f32 %v6526_v12, %v15166_v56  ;;  %v11829_v59 = vpop.f32.mrb[50].mxu1  ;;  %v7237_v28 = vrot.slane %v17208_v31, 7  ;;  %v17209_v56 = vshrl.u32 %v14731_v52, 16 }
 0x54e   : > { %v15535_v44 = vadd.f32 %v11829_v59, %v15174_v36  ;;  %v6529_v13 = vpop.f32.mrb[51].mxu1 }
 0x54f   : > { %v15538_v18 = vadd.f32 %v6529_v13, %v15184_v34  ;;  %v7245_v11 = vrot.slane %v17209_v56, 7  ;;  %v7240_v12 = vor.u32 %v17210_v41, %v7237_v28  ;;  %v17211_v34 = vld [vmem:[#allocation83_spill] sm:$0xff]  ;;  %v17215_v41 = vld [vmem:[#allocation18_spill] sm:$0xff] }
 0x550   : > { %v17216_v52 = vshrl.u32 %v17215_v41, 16 }
 0x551   : > { %v7248_v59 = vor.u32 %v17212_v7, %v7245_v11  ;;  %v7241_v31 = vsel %vm7157_vm5, %v7229_v23, %v7240_v12  ;;  %v17218_v12 = vshll.u32 %v17215_v41, 16 }
 0x553   : > { %v11832_v36 = vpop.f32.mrb[52].mxu1 }
 0x554   : > { %11939 = vmatmul.mubr.msk.bf16.gmra.mrb[156].mxu1 %vm957_vm2, %v7225_v10  ;;  %v15551_v8 = vadd.f32 %v11832_v36, %v17211_v34  ;;  %v6541_v62 = vpop.f32.mrb[53].mxu1  ;;  %v7249_v36 = vsel %vm7157_vm5, %v7237_v28, %v7248_v59  ;;  %v7261_v34 = vrot.slane %v17216_v52, 7 }
 0x555   : > { %11942 = vmatprep.mubr.msk.bf16.mxu1 %vm957_vm2, %v7233_v42  ;;  %v15556_v13 = vadd.f32 %v6541_v62, %v15237_v21  ;;  %v11833_v50 = vpop.f32.mrb[54].mxu1  ;;  %v17213_v42 = vld [vmem:[#allocation17_spill] sm:$0xff] }
 0x556   : > { %v15559_v9 = vadd.f32 %v11833_v50, %v15243_v53  ;;  %v6544_v10 = vpop.f32.mrb[55].mxu1  ;;  %v17214_v45 = vshrl.u32 %v17213_v42, 16  ;;  %v17217_v62 = vshll.u32 %v17213_v42, 16  ;;  %v7264_v50 = vor.u32 %v17218_v12, %v7261_v34 }
 0x558   : > { %v7253_v56 = vrot.slane %v17214_v45, 7  ;;  %v17219_v45 = vld [vmem:[#allocation19_spill] sm:$0xff] }
 0x55a   : > { %v7256_v53 = vor.u32 %v17217_v62, %v7253_v56  ;;  %v7265_v42 = vsel %vm7157_vm5, %v7253_v56, %v7264_v50 }
 0x55b   : > { %v11836_v21 = vpop.f32.mrb[56].mxu1 }
 0x55c   : > { %11943 = vmatmul.mubr.msk.bf16.gmra.mrb[160].mxu1 %vm957_vm2, %v7241_v31  ;;  %v15572_v7 = vadd.f32 %v11836_v21, %v15291_v1  ;;  %v6556_v23 = vpop.f32.mrb[57].mxu1  ;;  %v7257_v59 = vsel %vm7157_vm5, %v7245_v11, %v7256_v53  ;;  %v17221_v1 = vld [vmem:[#allocation20_spill] sm:$0xff] }
 0x55d   : > { %11946 = vmatprep.mubr.msk.bf16.mxu1 %vm957_vm2, %v7249_v36  ;;  %v11837_v10 = vpop.f32.mrb[58].mxu1  ;;  %v17220_v36 = vshrl.u32 %v17219_v45, 16  ;;  %v17222_v21 = vshrl.u32 %v17221_v1, 16  ;;  %v17223_v23 = vshll.u32 %v17219_v45, 16 }
 0x55e   : > { %v6558_v31 = vpop.f32.mrb[59].mxu1  ;;  %v17224_v10 = vshll.u32 %v17221_v1, 16 }
 0x55f   : > { %v15577_v28 = vadd.f32 %v6558_v31, %v15312_v14  ;;  %v7269_v52 = vrot.slane %v17220_v36, 7  ;;  %v7277_v62 = vrot.slane %v17222_v21, 7 }
 0x561   : > { %v7272_v12 = vor.u32 %v17223_v23, %v7269_v52  ;;  %v7280_v11 = vor.u32 %v17224_v10, %v7277_v62 }
 0x563   : > { %v11840_v41 = vpop.f32.mrb[60].mxu1  ;;  %v7273_v36 = vsel %vm7157_vm5, %v7261_v34, %v7272_v12  ;;  %v7281_v1 = vsel %vm7157_vm5, %v7269_v52, %v7280_v11 }
 0x564   : > { %11947 = vmatmul.mubr.msk.bf16.gmra.mrb[164].mxu1 %vm957_vm2, %v7257_v59  ;;  %v6570_v14 = vpop.f32.mrb[61].mxu1  ;;  %v17227_v41 = vld [vmem:[#allocation22_spill] sm:$0xff] }
 0x565   : > { %11950 = vmatprep.mubr.msk.bf16.mxu1 %vm957_vm2, %v7265_v42  ;;  %v15592_v53 = vadd.f32 %v6570_v14, %v15360_v39  ;;  %v11841_v31 = vpop.f32.mrb[62].mxu1  ;;  %v17225_v42 = vld [vmem:[#allocation21_spill] sm:$0xff]  ;;  %v17228_v39 = vshrl.u32 %v17227_v41, 16  ;;  %v17230_v12 = vshll.u32 %v17227_v41, 16 }
 0x566   : > { %v15595_v59 = vadd.f32 %v11841_v31, %v15372_v46  ;;  %v6573_v56 = vpop.f32.mrb[63].mxu1  ;;  %v17226_v45 = vshrl.u32 %v17225_v42, 16  ;;  %v17229_v14 = vshll.u32 %v17225_v42, 16 }
 0x567   : > { %v15598_v50 = vadd.f32 %v6573_v56, %v15381_v6  ;;  %v7293_v23 = vrot.slane %v17228_v39, 7 }
 0x568   : > { %v7285_v21 = vrot.slane %v17226_v45, 7 }
 0x569   : > { %v7296_v31 = vor.u32 %v17230_v12, %v7293_v23 }
 0x56a   : > { %v7288_v10 = vor.u32 %v17229_v14, %v7285_v21 }
 0x56b   : > { %v11844_v46 = vpop.f32.mrb[64].mxu1 }
 0x56c   : > { %11951 = vmatmul.mubr.msk.bf16.gmra.mrb[168].mxu1 %vm957_vm2, %v7273_v36  ;;  %v15611_v6 = vadd.f32 %v11844_v46, %v15411_v30  ;;  %v6585_v34 = vpop.f32.mrb[65].mxu1  ;;  %v7289_v45 = vsel %vm7157_vm5, %v7277_v62, %v7288_v10  ;;  %v7297_v30 = vsel %vm7157_vm5, %v7285_v21, %v7296_v31  ;;  %v17233_v46 = vld [vmem:[#allocation24_spill] sm:$0xff] }
 0x56d   : > { %11954 = vmatprep.mubr.msk.bf16.mxu1 %vm957_vm2, %v7281_v1  ;;  %v15616_v56 = vadd.f32 %v6585_v34, %v15413_v55  ;;  %v11845_v52 = vpop.f32.mrb[66].mxu1  ;;  %v17231_v1 = vld [vmem:[#allocation23_spill] sm:$0xff]  ;;  %v17234_v41 = vshrl.u32 %v17233_v46, 16  ;;  %v17236_v10 = vshll.u32 %v17233_v46, 16 }
 0x56e   : > { %v15619_v11 = vadd.f32 %v11845_v52, %v15415_v38  ;;  %v6588_v36 = vpop.f32.mrb[67].mxu1  ;;  %v17232_v42 = vshrl.u32 %v17231_v1, 16  ;;  %v17235_v34 = vshll.u32 %v17231_v1, 16 }
 0x56f   : > { %v7309_v14 = vrot.slane %v17234_v41, 7 }
 0x570   : > { %v7301_v39 = vrot.slane %v17232_v42, 7  ;;  %v17237_v42 = vld [vmem:[#allocation25_spill] sm:$0xff] }
 0x571   : > { %v7312_v52 = vor.u32 %v17236_v10, %v7309_v14 }
 0x572   : > { %v7304_v38 = vor.u32 %v17235_v34, %v7301_v39 }
 0x573   : > { %v11848_v55 = vpop.f32.mrb[68].mxu1  ;;  %v7313_v1 = vsel %vm7157_vm5, %v7301_v39, %v7312_v52 }
 0x574   : > { %11955 = vmatmul.mubr.msk.bf16.gmra.mrb[172].mxu1 %vm957_vm2, %v7289_v45  ;;  %v15632_v12 = vadd.f32 %v11848_v55, %v15421_v35  ;;  %v6600_v62 = vpop.f32.mrb[69].mxu1  ;;  %v7305_v31 = vsel %vm7157_vm5, %v7293_v23, %v7304_v38  ;;  %v17239_v35 = vld [vmem:[#allocation26_spill] sm:$0xff] }
 0x575   : > { %11958 = vmatprep.mubr.msk.bf16.mxu1 %vm957_vm2, %v7297_v30  ;;  %v11849_v36 = vpop.f32.mrb[70].mxu1  ;;  %v17238_v30 = vshrl.u32 %v17237_v42, 16  ;;  %v17240_v55 = vshrl.u32 %v17239_v35, 16  ;;  %v17241_v62 = vshll.u32 %v17237_v42, 16 }
 0x576   : > { %v6602_v45 = vpop.f32.mrb[71].mxu1  ;;  %v17242_v36 = vshll.u32 %v17239_v35, 16 }
 0x577   : > { %v15637_v21 = vadd.f32 %v6602_v45, %v15423_v32  ;;  %v7317_v41 = vrot.slane %v17238_v30, 7  ;;  %v7325_v34 = vrot.slane %v17240_v55, 7 }
 0x579   : > { %v7320_v10 = vor.u32 %v17241_v62, %v7317_v41  ;;  %v7328_v23 = vor.u32 %v17242_v36, %v7325_v34 }
 0x57b   : > { %v11852_v46 = vpop.f32.mrb[72].mxu1  ;;  %v7321_v30 = vsel %vm7157_vm5, %v7309_v14, %v7320_v10  ;;  %v7329_v35 = vsel %vm7157_vm5, %v7317_v41, %v7328_v23 }
 0x57c   : > { %11959 = vmatmul.mubr.msk.bf16.gmra.mrb[176].mxu1 %vm957_vm2, %v7305_v31  ;;  %v6614_v32 = vpop.f32.mrb[73].mxu1  ;;  %v17245_v46 = vld [vmem:[#allocation28_spill] sm:$0xff] }
 0x57d   : > { %11962 = vmatprep.mubr.msk.bf16.mxu1 %vm957_vm2, %v7313_v1  ;;  %v15652_v38 = vadd.f32 %v6614_v32, %v15429_v20  ;;  %v11853_v45 = vpop.f32.mrb[74].mxu1  ;;  %v17243_v1 = vld [vmem:[#allocation27_spill] sm:$0xff]  ;;  %v17246_v20 = vshrl.u32 %v17245_v46, 16  ;;  %v17248_v10 = vshll.u32 %v17245_v46, 16 }
 0x57e   : > { %v15655_v31 = vadd.f32 %v11853_v45, %v15431_v51  ;;  %v6617_v39 = vpop.f32.mrb[75].mxu1  ;;  %v17244_v42 = vshrl.u32 %v17243_v1, 16  ;;  %v17247_v32 = vshll.u32 %v17243_v1, 16 }
 0x57f   : > { %v15658_v52 = vadd.f32 %v6617_v39, %v15433_v24  ;;  %v7341_v62 = vrot.slane %v17246_v20, 7 }
 0x580   : > { %v7333_v55 = vrot.slane %v17244_v42, 7 }
 0x581   : > { %v7344_v45 = vor.u32 %v17248_v10, %v7341_v62 }
 0x582   : > { %v7336_v36 = vor.u32 %v17247_v32, %v7333_v55 }
 0x583   : > { %v11856_v51 = vpop.f32.mrb[76].mxu1 }
 0x584   : > { %11963 = vmatmul.mubr.msk.bf16.gmra.mrb[180].mxu1 %vm957_vm2, %v7321_v30  ;;  %v15671_v24 = vadd.f32 %v11856_v51, %v15439_v40  ;;  %v6629_v14 = vpop.f32.mrb[77].mxu1  ;;  %v7337_v42 = vsel %vm7157_vm5, %v7325_v34, %v7336_v36  ;;  %v7345_v40 = vsel %vm7157_vm5, %v7333_v55, %v7344_v45  ;;  %v12761_v55 = vld [vmem:[#allocation3 + $0x10] sm:$0xff] }
 0x585   : > { %11966 = vmatprep.mubr.msk.bf16.mxu1 %vm957_vm2, %v7329_v35  ;;  %v15676_v39 = vadd.f32 %v6629_v14, %v15441_v49  ;;  %v11857_v41 = vpop.f32.mrb[78].mxu1  ;;  %v17249_v35 = vld [vmem:[#allocation35_spill] sm:$0xff] }
 0x586   : > { %v15679_v23 = vadd.f32 %v11857_v41, %v15443_v57  ;;  %v6632_v30 = vpop.f32.mrb[79].mxu1  ;;  %v17250_v1 = vshrl.u32 %v17249_v35, 16  ;;  %v17251_v49 = vshll.u32 %v17249_v35, 16 }
 0x588   : > { %v7349_v20 = vrot.slane %v17250_v1, 7  ;;  %v15712_v1 = vld [vmem:[%s16823_s4 + $0x18] sm:$0xf] }
 0x58a   : > { %v7352_v51 = vor.u32 %v17251_v49, %v7349_v20  ;;  %v12762_v20 = vld [vmem:[#allocation3 + $0x18] sm:$0xff] }
 0x58b   : > { %v11860_v46 = vpop.f32.mrb[80].mxu1 }
 0x58c   : > { %11967 = vmatmul.mubr.msk.bf16.gmra.mrb[184].mxu1 %vm957_vm2, %v7337_v42  ;;  %v15690_v32 = vadd.f32 %v11860_v46, %v15451_v16  ;;  %v6644_v57 = vpop.f32.mrb[81].mxu1  ;;  %v7353_v36 = vsel %vm7157_vm5, %v7341_v62, %v7352_v51 }
 0x58d   : > { %11970 = vmatprep.mubr.msk.bf16.mxu1 %vm957_vm2, %v7345_v40  ;;  %v11861_v14 = vpop.f32.mrb[82].mxu1  ;;  %v12764_v57 = vld [vmem:[#allocation3 + $0x28] sm:$0xff] }
 0x58e   : > { %v6646_v10 = vpop.f32.mrb[83].mxu1  ;;  %v12765_v14 = vld [vmem:[#allocation3 + $0x30] sm:$0xff] }
 0x58f   : > { %v15693_v34 = vadd.f32 %v6646_v10, %v15455_v2  ;;  %v8260_v2 = vsel %vm1030_vm0, %v15484_v4, 0 }
 0x594   : > { %11971 = vmatmul.mubr.msk.bf16.gmra.mrb[188].mxu1 %vm957_vm2, %v7353_v36 }
 0x595   : > { %11976 = vmatprep.mubr.msk.bf16.mxu1 %vm957_vm2, %v12761_v55 }
 0x597   : > { %v11864_v45 = vpop.f32.mrb[84].mxu1 }
 0x598   : > { %v6658_v41 = vpop.f32.mrb[85].mxu1 }
 0x599   : > { %v15699_v30 = vadd.f32 %v6658_v41, %v15468_v27  ;;  %v11865_v16 = vpop.f32.mrb[86].mxu1  ;;  %v12763_v27 = vld [vmem:[#allocation3 + $0x20] sm:$0xff]  ;;  %v12766_v41 = vld [vmem:[#allocation3 + $0x38] sm:$0xff] }
 0x59a   : > { %v15702_v42 = vadd.f32 %v11865_v16, %v15472_v19  ;;  %v6661_v35 = vpop.f32.mrb[87].mxu1 }
 0x59b   : > { %v15707_v62 = vadd.f32 %v6661_v35, %v15474_v15 }
 0x59c   : > { %11977 = vmatmul.mubr.msk.bf16.vlgmr.msra.gmra.mrb[192].mxu1 %vm957_vm2, %v12762_v20 }
 0x59d   : > { %12025 = vmatpush3.bf16.msra.mxu1 %v8260_v2  ;;  %11980 = vmatprep.mubr.msk.bf16.mxu1 %vm957_vm2, %v12763_v27 }
 0x59e   : > { %12623 = vmatprep.subr.msk.bf16.mxu1 %vm1030_vm0, %v15712_v1 }
 0x59f   : > { %v11868_v19 = vpop.f32.mrb[88].mxu1 }
 0x5a0   : > { %v15719_v4 = vadd.f32 %v11868_v19, %v15493_v61  ;;  %v6673_v15 = vpop.f32.mrb[89].mxu1 }
 0x5a1   : > { %v15722_v40 = vadd.f32 %v6673_v15, %v15497_v37  ;;  %v11869_v46 = vpop.f32.mrb[90].mxu1  ;;  %v12769_v15 = vld [vmem:[#allocation3 + $0x50] sm:$0xff] }
 0x5a2   : > { %v15725_v49 = vadd.f32 %v11869_v46, %v15501_v3  ;;  %v6676_v51 = vpop.f32.mrb[91].mxu1  ;;  %v12767_v3 = vld [vmem:[#allocation3 + $0x40] sm:$0xff] }
 0x5a4   : > { %11981 = vmatmul.mubr.msk.bf16.gmra.mrb[196].mxu1 %vm957_vm2, %v12764_v57 }
 0x5a5   : > { %11984 = vmatprep.mubr.msk.bf16.mxu1 %vm957_vm2, %v12765_v14 }
 0x5a7   : > { %v11872_v10 = vpop.f32.mrb[92].mxu1 }
 0x5a8   : > { %v15730_v36 = vadd.f32 %v11872_v10, %v15511_v54  ;;  %v6688_v61 = vpop.f32.mrb[93].mxu1  ;;  %v12770_v10 = vld [vmem:[#allocation3 + $0x58] sm:$0xff] }
 0x5a9   : > { %v11873_v55 = vpop.f32.mrb[94].mxu1  ;;  %v12771_v61 = vld [vmem:[#allocation3 + $0x60] sm:$0xff] }
 0x5aa   : > { %v6690_v45 = vpop.f32.mrb[95].mxu1 }
 0x5ab   : > { %v15733_v37 = vadd.f32 %v6690_v45, %v15517_v22  ;;  %v12768_v22 = vld [vmem:[#allocation3 + $0x48] sm:$0xff] }
 0x5ac   : > { %11985 = vmatmul.mubr.msk.bf16.gmra.mrb[200].mxu1 %vm957_vm2, %v12766_v41 }
 0x5ad   : > { %11988 = vmatprep.mubr.msk.bf16.mxu1 %vm957_vm2, %v12767_v3 }
 0x5af   : > { %v11878_v16 = vpop.f32.mrb[96].mxu1 }
 0x5b0   : > { %v6923_v35 = vpop.f32.mrb[97].mxu1  ;;  %v12772_v16 = vld [vmem:[#allocation3 + $0x68] sm:$0xff] }
 0x5b1   : > { %v15738_v2 = vadd.f32 %v6923_v35, %v15532_v63  ;;  %v11879_v20 = vpop.f32.mrb[98].mxu1 }
 0x5b2   : > { %v15741_v54 = vadd.f32 %v11879_v20, %v15535_v44  ;;  %v6926_v27 = vpop.f32.mrb[99].mxu1 }
 0x5b3   : > { %v15744_v19 = vadd.f32 %v6926_v27, %v15538_v18 }
 0x5b4   : > { %11989 = vmatmul.mubr.msk.bf16.gmra.mrb[204].mxu1 %vm957_vm2, %v12768_v22 }
 0x5b5   : > { %11992 = vmatprep.mubr.msk.bf16.mxu1 %vm957_vm2, %v12769_v15 }
 0x5b7   : > { %v11882_v46 = vpop.f32.mrb[100].mxu1 }
 0x5b8   : > { %v15749_v51 = vadd.f32 %v11882_v46, %v15551_v8  ;;  %v6938_v63 = vpop.f32.mrb[101].mxu1 }
 0x5b9   : > { %v15752_v57 = vadd.f32 %v6938_v63, %v15556_v13  ;;  %v11883_v44 = vpop.f32.mrb[102].mxu1  ;;  %v12775_v63 = vld [vmem:[#allocation3 + $0x80] sm:$0xff] }
 0x5ba   : > { %v15755_v14 = vadd.f32 %v11883_v44, %v15559_v9  ;;  %v6941_v18 = vpop.f32.mrb[103].mxu1  ;;  %v12773_v9 = vld [vmem:[#allocation3 + $0x70] sm:$0xff] }
 0x5bc   : > { %11993 = vmatmul.mubr.msk.bf16.gmra.mrb[208].mxu1 %vm957_vm2, %v12770_v10 }
 0x5bd   : > { %11996 = vmatprep.mubr.msk.bf16.mxu1 %vm957_vm2, %v12771_v61 }
 0x5bf   : > { %v11886_v55 = vpop.f32.mrb[104].mxu1 }
 0x5c0   : > { %v15760_v45 = vadd.f32 %v11886_v55, %v15572_v7  ;;  %v6953_v8 = vpop.f32.mrb[105].mxu1  ;;  %v12776_v55 = vld [vmem:[#allocation3 + $0x88] sm:$0xff] }
 0x5c1   : > { %v11887_v41 = vpop.f32.mrb[106].mxu1  ;;  %v12777_v8 = vld [vmem:[#allocation3 + $0x90] sm:$0xff] }
 0x5c2   : > { %v6955_v3 = vpop.f32.mrb[107].mxu1 }
 0x5c3   : > { %v15763_v13 = vadd.f32 %v6955_v3, %v15577_v28  ;;  %v12774_v28 = vld [vmem:[#allocation3 + $0x78] sm:$0xff] }
 0x5c4   : > { %11997 = vmatmul.mubr.msk.bf16.gmra.mrb[212].mxu1 %vm957_vm2, %v12772_v16 }
 0x5c5   : > { %12000 = vmatprep.mubr.msk.bf16.mxu1 %vm957_vm2, %v12773_v9 }
 0x5c7   : > { %v11890_v35 = vpop.f32.mrb[108].mxu1 }
 0x5c8   : > { %v6967_v20 = vpop.f32.mrb[109].mxu1  ;;  %v12778_v35 = vld [vmem:[#allocation3 + $0x98] sm:$0xff] }
 0x5c9   : > { %v15768_v27 = vadd.f32 %v6967_v20, %v15592_v53  ;;  %v11891_v22 = vpop.f32.mrb[110].mxu1 }
 0x5ca   : > { %v15771_v7 = vadd.f32 %v11891_v22, %v15595_v59  ;;  %v6970_v15 = vpop.f32.mrb[111].mxu1 }
 0x5cb   : > { %v15774_v46 = vadd.f32 %v6970_v15, %v15598_v50 }
 0x5cc   : > { %12001 = vmatmul.mubr.msk.bf16.gmra.mrb[216].mxu1 %vm957_vm2, %v12774_v28 }
 0x5cd   : > { %12004 = vmatprep.mubr.msk.bf16.mxu1 %vm957_vm2, %v12775_v63 }
 0x5cf   : > { %v11894_v44 = vpop.f32.mrb[112].mxu1 }
 0x5d0   : > { %v15779_v18 = vadd.f32 %v11894_v44, %v15611_v6  ;;  %v6982_v53 = vpop.f32.mrb[113].mxu1 }
 0x5d1   : > { %v15782_v10 = vadd.f32 %v6982_v53, %v15616_v56  ;;  %v11895_v59 = vpop.f32.mrb[114].mxu1  ;;  %v12781_v53 = vld [vmem:[#allocation3 + $0xb0] sm:$0xff] }
 0x5d2   : > { %v15785_v61 = vadd.f32 %v11895_v59, %v15619_v11  ;;  %v6985_v50 = vpop.f32.mrb[115].mxu1  ;;  %v12779_v11 = vld [vmem:[#allocation3 + $0xa0] sm:$0xff] }
 0x5d4   : > { %12005 = vmatmul.mubr.msk.bf16.gmra.mrb[220].mxu1 %vm957_vm2, %v12776_v55 }
 0x5d5   : > { %12008 = vmatprep.mubr.msk.bf16.mxu1 %vm957_vm2, %v12777_v8 }
 0x5d7   : > { %v11898_v41 = vpop.f32.mrb[116].mxu1 }
 0x5d8   : > { %v15790_v3 = vadd.f32 %v11898_v41, %v15632_v12  ;;  %v6997_v6 = vpop.f32.mrb[117].mxu1  ;;  %v12782_v41 = vld [vmem:[#allocation3 + $0xb8] sm:$0xff] }
 0x5d9   : > { %v11899_v16 = vpop.f32.mrb[118].mxu1  ;;  %v12783_v6 = vld [vmem:[#allocation3 + $0xc0] sm:$0xff] }
 0x5da   : > { %v6999_v9 = vpop.f32.mrb[119].mxu1 }
 0x5db   : > { %v15793_v56 = vadd.f32 %v6999_v9, %v15637_v21  ;;  %v12780_v21 = vld [vmem:[#allocation3 + $0xa8] sm:$0xff] }
 0x5dc   : > { %12009 = vmatmul.mubr.msk.bf16.gmra.mrb[224].mxu1 %vm957_vm2, %v12778_v35 }
 0x5dd   : > { %12012 = vmatprep.mubr.msk.bf16.mxu1 %vm957_vm2, %v12779_v11 }
 0x5df   : > { %v11902_v20 = vpop.f32.mrb[120].mxu1 }
 0x5e0   : > { %v7011_v22 = vpop.f32.mrb[121].mxu1  ;;  %v12784_v20 = vld [vmem:[#allocation3 + $0xc8] sm:$0xff] }
 0x5e1   : > { %v15798_v15 = vadd.f32 %v7011_v22, %v15652_v38  ;;  %v11903_v28 = vpop.f32.mrb[122].mxu1 }
 0x5e2   : > { %v15801_v12 = vadd.f32 %v11903_v28, %v15655_v31  ;;  %v7014_v63 = vpop.f32.mrb[123].mxu1 }
 0x5e3   : > { %v15804_v44 = vadd.f32 %v7014_v63, %v15658_v52 }
 0x5e4   : > { %12013 = vmatmul.mubr.msk.bf16.gmra.mrb[228].mxu1 %vm957_vm2, %v12780_v21 }
 0x5e5   : > { %12016 = vmatprep.mubr.msk.bf16.mxu1 %vm957_vm2, %v12781_v53 }
 0x5e7   : > { %v11906_v59 = vpop.f32.mrb[124].mxu1 }
 0x5e8   : > { %v15809_v50 = vadd.f32 %v11906_v59, %v15671_v24  ;;  %v7026_v38 = vpop.f32.mrb[125].mxu1 }
 0x5e9   : > { %v15812_v55 = vadd.f32 %v7026_v38, %v15676_v39  ;;  %v11907_v31 = vpop.f32.mrb[126].mxu1  ;;  %v15842_v38 = vld [vmem:[%s16823_s4 + $0x1c] sm:$0xf] }
 0x5ea   : > { %v15815_v8 = vadd.f32 %v11907_v31, %v15679_v23  ;;  %v7029_v52 = vpop.f32.mrb[127].mxu1  ;;  %v17252_v23 = vld [vmem:[#allocation29_spill] sm:$0xff]  ;;  %v17253_v31 = vld [vmem:[#allocation30_spill] sm:$0xff] }
 0x5ec   : > { %12017 = vmatmul.mubr.msk.bf16.gmra.mrb[232].mxu1 %vm957_vm2, %v12782_v41 }
 0x5ed   : > { %12020 = vmatprep.mubr.msk.bf16.mxu1 %vm957_vm2, %v12783_v6 }
 0x5ef   : > { %v11910_v16 = vpop.f32.mrb[128].mxu1 }
 0x5f0   : > { %v7041_v9 = vpop.f32.mrb[129].mxu1  ;;  %v15820_v24 = vadd.f32 %v11910_v16, %v15690_v32  ;;  %v8827_v32 = vsel %vm1030_vm0, %v15712_v1, 0 }
 0x5f1   : > { %v11911_v35 = vpop.f32.mrb[130].mxu1  ;;  %v17255_v9 = vld [vmem:[#allocation32_spill] sm:$0xff] }
 0x5f2   : > { %v7043_v11 = vpop.f32.mrb[131].mxu1  ;;  %v17256_v35 = vld [vmem:[#allocation33_spill] sm:$0xff] }
 0x5f3   : > { %v15823_v39 = vadd.f32 %v7043_v11, %v15693_v34 }
 0x5f4   : > { %12021 = vmatmul.mubr.msk.bf16.gmra.mrb[236].mxu1 %vm957_vm2, %v12784_v20 }
 0x5f5   : > { %12026 = vmatprep.mubr.msk.bf16.mxu1 %vm957_vm2, %v17252_v23 }
 0x5f7   : > { %v11914_v22 = vpop.f32.mrb[132].mxu1 }
 0x5f8   : > { %v7055_v28 = vpop.f32.mrb[133].mxu1 }
 0x5f9   : > { %v11915_v63 = vpop.f32.mrb[134].mxu1  ;;  %v15829_v21 = vadd.f32 %v7055_v28, %v15699_v30  ;;  %v17254_v30 = vld [vmem:[#allocation31_spill] sm:$0xff]  ;;  %v17257_v28 = vld [vmem:[#allocation34_spill] sm:$0xff] }
 0x5fa   : > { %v7058_v53 = vpop.f32.mrb[135].mxu1  ;;  %v15834_v59 = vadd.f32 %v11915_v63, %v15702_v42 }
 0x5fb   : > { %v15837_v34 = vadd.f32 %v7058_v53, %v15707_v62 }
 0x5fc   : > { %12027 = vmatmul.mubr.msk.bf16.vlgmr.msra.gmra.mrb[240].mxu1 %vm957_vm2, %v17253_v31 }
 0x5fd   : > { %12075 = vmatpush3.bf16.msra.mxu1 %v8827_v32  ;;  %12030 = vmatprep.mubr.msk.bf16.mxu1 %vm957_vm2, %v17254_v30 }
 0x5fe   : > { %12624 = vmatprep.subr.msk.bf16.mxu1 %vm1030_vm0, %v15842_v38 }
 0x5ff   : > { %v11918_v42 = vpop.f32.mrb[136].mxu1 }
 0x600   : > { %v7070_v1 = vpop.f32.mrb[137].mxu1  ;;  %v15851_v62 = vadd.f32 %v11918_v42, %v15719_v4 }
 0x601   : > { %v11919_v52 = vpop.f32.mrb[138].mxu1  ;;  %v15854_v41 = vadd.f32 %v7070_v1, %v15722_v40  ;;  %v17260_v1 = vld [vmem:[#allocation38_spill] sm:$0xff] }
 0x602   : > { %v7073_v6 = vpop.f32.mrb[139].mxu1  ;;  %v15857_v16 = vadd.f32 %v11919_v52, %v15725_v49  ;;  %v17258_v49 = vld [vmem:[#allocation36_spill] sm:$0xff] }
 0x604   : > { %12031 = vmatmul.mubr.msk.bf16.gmra.mrb[244].mxu1 %vm957_vm2, %v17255_v9 }
 0x605   : > { %12034 = vmatprep.mubr.msk.bf16.mxu1 %vm957_vm2, %v17256_v35 }
 0x607   : > { %v11922_v11 = vpop.f32.mrb[140].mxu1 }
 0x608   : > { %v7085_v20 = vpop.f32.mrb[141].mxu1  ;;  %v15864_v23 = vadd.f32 %v11922_v11, %v15730_v36 }
 0x609   : > { %v11923_v4 = vpop.f32.mrb[142].mxu1  ;;  %v17262_v20 = vld [vmem:[#allocation40_spill] sm:$0xff] }
 0x60a   : > { %v7087_v22 = vpop.f32.mrb[143].mxu1 }
 0x60b   : > { %v15867_v40 = vadd.f32 %v7087_v22, %v15733_v37  ;;  %v17259_v37 = vld [vmem:[#allocation37_spill] sm:$0xff] }
 0x60c   : > { %12035 = vmatmul.mubr.msk.bf16.gmra.mrb[248].mxu1 %vm957_vm2, %v17257_v28 }
 0x60d   : > { %12038 = vmatprep.mubr.msk.bf16.mxu1 %vm957_vm2, %v17258_v49 }
 0x60f   : > { %v11928_v63 = vpop.f32.mrb[144].mxu1 }
 0x610   : > { %v7463_v53 = vpop.f32.mrb[145].mxu1  ;;  %v17263_v63 = vld [vmem:[#allocation41_spill] sm:$0xff] }
 0x611   : > { %v11929_v32 = vpop.f32.mrb[146].mxu1  ;;  %v15874_v31 = vadd.f32 %v7463_v53, %v15738_v2 }
 0x612   : > { %v7466_v30 = vpop.f32.mrb[147].mxu1  ;;  %v15877_v36 = vadd.f32 %v11929_v32, %v15741_v54 }
 0x613   : > { %v15880_v42 = vadd.f32 %v7466_v30, %v15744_v19  ;;  %v17261_v19 = vld [vmem:[#allocation39_spill] sm:$0xff] }
 0x614   : > { %12039 = vmatmul.mubr.msk.bf16.gmra.mrb[252].mxu1 %vm957_vm2, %v17259_v37 }
 0x615   : > { %12042 = vmatprep.mubr.msk.bf16.mxu1 %vm957_vm2, %v17260_v1 }
 0x617   : > { %v11932_v52 = vpop.f32.mrb[148].mxu1 }
 0x618   : > { %v7478_v6 = vpop.f32.mrb[149].mxu1  ;;  %v15887_v9 = vadd.f32 %v11932_v52, %v15749_v51 }
 0x619   : > { %v11933_v2 = vpop.f32.mrb[150].mxu1  ;;  %v15890_v35 = vadd.f32 %v7478_v6, %v15752_v57  ;;  %v17266_v6 = vld [vmem:[#allocation44_spill] sm:$0xff] }
 0x61a   : > { %v7481_v54 = vpop.f32.mrb[151].mxu1  ;;  %v15893_v11 = vadd.f32 %v11933_v2, %v15755_v14  ;;  %v17264_v14 = vld [vmem:[#allocation42_spill] sm:$0xff] }
 0x61c   : > { %12043 = vmatmul.mubr.msk.bf16.gmra.mrb[0].mxu1 %vm957_vm2, %v17261_v19 }
 0x61d   : > { %12046 = vmatprep.mubr.msk.bf16.mxu1 %vm957_vm2, %v17262_v20 }
 0x61f   : > { %v11936_v4 = vpop.f32.mrb[152].mxu1 }
 0x620   : > { %v7493_v22 = vpop.f32.mrb[153].mxu1  ;;  %v15900_v28 = vadd.f32 %v11936_v4, %v15760_v45 }
 0x621   : > { %v11937_v51 = vpop.f32.mrb[154].mxu1  ;;  %v17268_v22 = vld [vmem:[#allocation46_spill] sm:$0xff] }
 0x622   : > { %v7495_v49 = vpop.f32.mrb[155].mxu1 }
 0x623   : > { %v15903_v57 = vadd.f32 %v7495_v49, %v15763_v13  ;;  %v17265_v13 = vld [vmem:[#allocation43_spill] sm:$0xff] }
 0x624   : > { %12047 = vmatmul.mubr.msk.bf16.gmra.mrb[4].mxu1 %vm957_vm2, %v17263_v63 }
 0x625   : > { %12050 = vmatprep.mubr.msk.bf16.mxu1 %vm957_vm2, %v17264_v14 }
 0x627   : > { %v11940_v53 = vpop.f32.mrb[156].mxu1 }
 0x628   : > { %v7507_v32 = vpop.f32.mrb[157].mxu1  ;;  %v17269_v53 = vld [vmem:[#allocation47_spill] sm:$0xff] }
 0x629   : > { %v11941_v30 = vpop.f32.mrb[158].mxu1  ;;  %v15910_v37 = vadd.f32 %v7507_v32, %v15768_v27 }
 0x62a   : > { %v7510_v1 = vpop.f32.mrb[159].mxu1  ;;  %v15913_v45 = vadd.f32 %v11941_v30, %v15771_v7 }
 0x62b   : > { %v15916_v52 = vadd.f32 %v7510_v1, %v15774_v46  ;;  %v17267_v46 = vld [vmem:[#allocation45_spill] sm:$0xff] }
 0x62c   : > { %12051 = vmatmul.mubr.msk.bf16.gmra.mrb[8].mxu1 %vm957_vm2, %v17265_v13 }
 0x62d   : > { %12054 = vmatprep.mubr.msk.bf16.mxu1 %vm957_vm2, %v17266_v6 }
 0x62f   : > { %v11944_v2 = vpop.f32.mrb[160].mxu1 }
 0x630   : > { %v7522_v54 = vpop.f32.mrb[161].mxu1  ;;  %v15923_v19 = vadd.f32 %v11944_v2, %v15779_v18 }
 0x631   : > { %v11945_v27 = vpop.f32.mrb[162].mxu1  ;;  %v15926_v20 = vadd.f32 %v7522_v54, %v15782_v10  ;;  %v17272_v54 = vld [vmem:[#allocation50_spill] sm:$0xff] }
 0x632   : > { %v7525_v7 = vpop.f32.mrb[163].mxu1  ;;  %v15929_v4 = vadd.f32 %v11945_v27, %v15785_v61  ;;  %v17270_v61 = vld [vmem:[#allocation48_spill] sm:$0xff] }
 0x633   : > { %v8503_v7 = vld [vmem:[#allocation3 + $0x18] sm:$0xf8] }
 0x634   : > { %12055 = vmatmul.mubr.msk.bf16.gmra.mrb[12].mxu1 %vm957_vm2, %v17267_v46 }
 0x635   : > { %12058 = vmatprep.mubr.msk.bf16.mxu1 %vm957_vm2, %v17268_v22  ;;  %v7988_v22 = vld [vmem:[#allocation3 + $0xd0] sm:$0x1] }
 0x637   : > { %v11948_v51 = vpop.f32.mrb[164].mxu1 }
 0x638   : > { %v7537_v49 = vpop.f32.mrb[165].mxu1  ;;  %v15936_v63 = vadd.f32 %v11948_v51, %v15790_v3 }
 0x639   : > { %v11949_v18 = vpop.f32.mrb[166].mxu1 }
 0x63a   : > { %v7539_v14 = vpop.f32.mrb[167].mxu1  ;;  %v8534_v18 = vshll.u32 %v8503_v7, 16 }
 0x63b   : > { %v15939_v10 = vadd.f32 %v7539_v14, %v15793_v56  ;;  %v17271_v56 = vld [vmem:[#allocation49_spill] sm:$0xff] }
 0x63c   : > { %12059 = vmatmul.mubr.msk.bf16.gmra.mrb[16].mxu1 %vm957_vm2, %v17269_v53  ;;  %v8183_v53 = vshll.u32 %v7988_v22, 16 }
 0x63d   : > { %12062 = vmatprep.mubr.msk.bf16.mxu1 %vm957_vm2, %v17270_v61  ;;  %v17274_v61 = vld [vmem:[#allocation7_spill] sm:$0xff] }
 0x63f   : > { %v11952_v32 = vpop.f32.mrb[168].mxu1 }
 0x640   : > { %v7551_v30 = vpop.f32.mrb[169].mxu1  ;;  %v17275_v32 = vld [vmem:[#allocation4_spill] sm:$0xff] }
 0x641   : > { %v11953_v1 = vpop.f32.mrb[170].mxu1  ;;  %v15946_v13 = vadd.f32 %v7551_v30, %v15798_v15  ;;  %v17276_v30 = vshrl.u32 %v17275_v32, 16 }
 0x642   : > { %v7554_v6 = vpop.f32.mrb[171].mxu1  ;;  %v15949_v3 = vadd.f32 %v11953_v1, %v15801_v12 }
 0x643   : > { %v15952_v2 = vadd.f32 %v7554_v6, %v15804_v44  ;;  %v8531_v44 = vshrl.u32 %v8503_v7, 16  ;;  %v8541_v1 = vrot.slane %v17276_v30, 3 }
 0x644   : > { %12063 = vmatmul.mubr.msk.bf16.gmra.mrb[20].mxu1 %vm957_vm2, %v17271_v56  ;;  %v17278_v56 = vld [vmem:[#allocation52_spill] sm:$0xff] }
 0x645   : > { %12066 = vmatprep.mubr.msk.bf16.mxu1 %vm957_vm2, %v17272_v54  ;;  %v8536_v54 = vrot.slane %v8534_v18, 4 }
 0x647   : > { %v11956_v27 = vpop.f32.mrb[172].mxu1 }
 0x648   : > { %v7566_v46 = vpop.f32.mrb[173].mxu1  ;;  %v15959_v15 = vadd.f32 %v11956_v27, %v15809_v50  ;;  %v17277_v50 = vshll.u32 %v17275_v32, 16  ;;  %v8185_v27 = vrot.slane %v8183_v53, 1  ;;  %v17280_v32 = vld [vmem:[#allocation6_spill] sm:$0xff] }
 0x649   : > { %v11957_v51 = vpop.f32.mrb[174].mxu1  ;;  %v15962_v12 = vadd.f32 %v7566_v46, %v15812_v55  ;;  %v8533_v55 = vrot.slane %v8531_v44, 3  ;;  %v17282_v18 = vshll.u32 %v17280_v32, 16 }
 0x64a   : > { %v7569_v49 = vpop.f32.mrb[175].mxu1  ;;  %v15965_v14 = vadd.f32 %v11957_v51, %v15815_v8  ;;  %v8544_v6 = vrot.slane %v17277_v50, 4 }
 0x64b   : > { %v8553_v53 = vrot.slane %v17282_v18, 4 }
 0x64c   : > { %17273 = vst [vmem:[#allocation8_spill] sm:$0xff] %v15965_v14  ;;  %12067 = vmatmul.mubr.msk.bf16.gmra.mrb[24].mxu1 %vm957_vm2, %v17274_v61  ;;  %v8545_v22 = vor.u32 %v8544_v6, %v8541_v1  ;;  %v8537_v61 = vor.u32 %v8536_v54, %v8533_v55  ;;  %v17279_v14 = vld [vmem:[#allocation51_spill] sm:$0xff]  ;;  %v17283_v1 = vld [vmem:[#allocation5_spill] sm:$0xff] }
 0x64d   : > { %12070 = vmatprep.mubr.msk.bf16.mxu1 %vm957_vm2, %v17278_v56  ;;  %v8186_v30 = vsel %vm760_vm3, %v17279_v14, %v8185_v27  ;;  %v17281_v56 = vshrl.u32 %v17280_v32, 16  ;;  %v17284_v6 = vshrl.u32 %v17283_v1, 16  ;;  %v17285_v55 = vshll.u32 %v17283_v1, 16 }
 0x64f   : > { %v11960_v7 = vpop.f32.mrb[176].mxu1  ;;  %v8550_v44 = vrot.slane %v17281_v56, 3  ;;  %v8562_v54 = vrot.slane %v17285_v55, 4 }
 0x650   : > { %v15976_v8 = vadd.f32 %v11960_v7, %v15820_v24  ;;  %v7581_v46 = vpop.f32.mrb[177].mxu1  ;;  %v8546_v24 = vsel %vm6192_vm8, %v8537_v61, %v8545_v22  ;;  %v8559_v7 = vrot.slane %v17284_v6, 3 }
 0x651   : > { %v11961_v51 = vpop.f32.mrb[178].mxu1 }
 0x652   : > { %v7583_v49 = vpop.f32.mrb[179].mxu1  ;;  %v8563_v46 = vor.u32 %v8562_v54, %v8559_v7 }
 0x653   : > { %v15981_v50 = vadd.f32 %v7583_v49, %v15823_v39  ;;  %v8554_v39 = vor.u32 %v8553_v53, %v8550_v44  ;;  %v17286_v44 = vld [vmem:[#allocation53_spill] sm:$0xff] }
 0x654   : > { %12071 = vmatmul.mubr.msk.bf16.gmra.mrb[28].mxu1 %vm957_vm2, %v8186_v30  ;;  %v9220_v30 = vsel %vm1030_vm0, %v15842_v38, 0  ;;  %v17287_v53 = vshrl.u32 %v17286_v44, 16  ;;  %v17288_v1 = vshll.u32 %v17286_v44, 16  ;;  %v17291_v44 = vshrl.u32 %v15026_v47, 16 }
 0x655   : > { %12076 = vmatprep.mubr.msk.bf16.mxu1 %vm957_vm2, %v8546_v24  ;;  %v8555_v56 = vsel %vm6192_vm8, %v8545_v22, %v8554_v39  ;;  %v8564_v38 = vsel %vm6192_vm8, %v8554_v39, %v8563_v46  ;;  %v17289_v22 = vshrl.u32 %v15024_v29, 16 }
 0x656   : > { %v8568_v24 = vrot.slane %v17287_v53, 3  ;;  %v8586_v53 = vrot.slane %v17291_v44, 3  ;;  %v17297_v44 = vshrl.u32 %v15042_v43, 16 }
 0x657   : > { %v11964_v14 = vpop.f32.mrb[180].mxu1  ;;  %v8577_v6 = vrot.slane %v17289_v22, 3 }
 0x658   : > { %v7595_v27 = vpop.f32.mrb[181].mxu1 }
 0x659   : > { %v15995_v51 = vadd.f32 %v7595_v27, %v15829_v21  ;;  %v11965_v32 = vpop.f32.mrb[182].mxu1  ;;  %v8571_v21 = vrot.slane %v17288_v1, 4 }
 0x65a   : > { %v15998_v49 = vadd.f32 %v11965_v32, %v15834_v59  ;;  %v7598_v61 = vpop.f32.mrb[183].mxu1  ;;  %v16013_v59 = vld [vmem:[%s16823_s4 + $0x20] sm:$0xf] }
 0x65b   : > { %v16004_v18 = vadd.f32 %v7598_v61, %v15837_v34  ;;  %v17290_v34 = vshll.u32 %v15024_v29, 16  ;;  %v8572_v55 = vor.u32 %v8571_v21, %v8568_v24  ;;  %v17292_v24 = vshll.u32 %v15026_v47, 16 }
 0x65c   : > { %12077 = vmatmul.mubr.msk.bf16.vlgmr.msra.gmra.mrb[32].mxu1 %vm957_vm2, %v8555_v56 }
 0x65d   : > { %v8580_v7 = vrot.slane %v17290_v34, 4  ;;  %12125 = vmatpush3.bf16.msra.mxu1 %v9220_v30  ;;  %12080 = vmatprep.mubr.msk.bf16.mxu1 %vm957_vm2, %v8564_v38  ;;  %v8573_v56 = vsel %vm6192_vm8, %v8563_v46, %v8572_v55  ;;  %v8589_v1 = vrot.slane %v17292_v24, 4  ;;  %v17294_v38 = vshll.u32 %v15034_v26, 16 }
 0x65e   : > { %12625 = vmatprep.subr.msk.bf16.mxu1 %vm1030_vm0, %v16013_v59  ;;  %v17298_v24 = vshll.u32 %v15042_v43, 16  ;;  %v17299_v43 = vshrl.u32 %v15044_v25, 16 }
 0x65f   : > { %v11968_v54 = vpop.f32.mrb[184].mxu1  ;;  %v8581_v32 = vor.u32 %v8580_v7, %v8577_v6  ;;  %v8590_v22 = vor.u32 %v8589_v1, %v8586_v53  ;;  %v8613_v53 = vrot.slane %v17297_v44, 3 }
 0x660   : > { %v16025_v14 = vadd.f32 %v11968_v54, %v15851_v62  ;;  %v7610_v27 = vpop.f32.mrb[185].mxu1  ;;  %v8616_v1 = vrot.slane %v17298_v24, 4 }
 0x661   : > { %v16028_v39 = vadd.f32 %v7610_v27, %v15854_v41  ;;  %v11969_v61 = vpop.f32.mrb[186].mxu1  ;;  %v8582_v62 = vsel %vm6192_vm8, %v8572_v55, %v8581_v32  ;;  %v17293_v41 = vshrl.u32 %v15034_v26, 16  ;;  %v8591_v27 = vsel %vm6192_vm8, %v8581_v32, %v8590_v22 }
 0x662   : > { %v16031_v29 = vadd.f32 %v11969_v61, %v15857_v16  ;;  %v7613_v30 = vpop.f32.mrb[187].mxu1  ;;  %v8598_v16 = vrot.slane %v17294_v38, 4  ;;  %v17295_v61 = vshrl.u32 %v15036_v58, 16 }
 0x663   : > { %v8595_v21 = vrot.slane %v17293_v41, 3  ;;  %v17296_v30 = vshll.u32 %v15036_v58, 16  ;;  %v8617_v41 = vor.u32 %v8616_v1, %v8613_v53  ;;  %v17303_v1 = vshrl.u32 %v15052_v0, 16 }
 0x664   : > { %12081 = vmatmul.mubr.msk.bf16.gmra.mrb[36].mxu1 %vm957_vm2, %v8573_v56  ;;  %v8604_v26 = vrot.slane %v17295_v61, 3  ;;  %v17302_v61 = vshll.u32 %v15050_v5, 16 }
 0x665   : > { %12084 = vmatprep.mubr.msk.bf16.mxu1 %vm957_vm2, %v8582_v62  ;;  %v8599_v47 = vor.u32 %v8598_v16, %v8595_v21  ;;  %v8607_v56 = vrot.slane %v17296_v30, 4 }
 0x667   : > { %v11972_v46 = vpop.f32.mrb[188].mxu1 }
 0x668   : > { %v16046_v6 = vadd.f32 %v11972_v46, %v15864_v23  ;;  %v7625_v34 = vpop.f32.mrb[189].mxu1  ;;  %v8600_v23 = vsel %vm6192_vm8, %v8590_v22, %v8599_v47 }
 0x669   : > { %v11973_v7 = vpop.f32.mrb[190].mxu1  ;;  %v8622_v34 = vrot.slane %v17299_v43, 3 }
 0x66a   : > { %v7627_v54 = vpop.f32.mrb[191].mxu1  ;;  %v17300_v7 = vshll.u32 %v15044_v25, 16 }
 0x66b   : > { %v16050_v55 = vadd.f32 %v7627_v54, %v15867_v40  ;;  %v8608_v40 = vor.u32 %v8607_v56, %v8604_v26  ;;  %v8634_v26 = vrot.slane %v17302_v61, 4  ;;  %v17308_v61 = vshll.u32 %v15060_v17, 16 }
 0x66c   : > { %12085 = vmatmul.mubr.msk.bf16.gmra.mrb[40].mxu1 %vm957_vm2, %v8591_v27  ;;  %v8625_v54 = vrot.slane %v17300_v7, 4  ;;  %v17301_v27 = vshrl.u32 %v15050_v5, 16 }
 0x66d   : > { %12088 = vmatprep.mubr.msk.bf16.mxu1 %vm957_vm2, %v8600_v23  ;;  %v8609_v22 = vsel %vm6192_vm8, %v8599_v47, %v8608_v40 }
 0x66f   : > { %v11978_v32 = vpop.f32.mrb[192].mxu1 }
 0x670   : > { %v7757_v62 = vpop.f32.mrb[193].mxu1  ;;  %v17304_v32 = vshll.u32 %v15052_v0, 16 }
 0x671   : > { %v16064_v21 = vadd.f32 %v7757_v62, %v15874_v31  ;;  %v11979_v58 = vpop.f32.mrb[194].mxu1  ;;  %v8618_v31 = vsel %vm6192_vm8, %v8608_v40, %v8617_v41  ;;  %v8640_v40 = vrot.slane %v17303_v1, 3 }
 0x672   : > { %v16067_v38 = vadd.f32 %v11979_v58, %v15877_v36  ;;  %v7760_v16 = vpop.f32.mrb[195].mxu1  ;;  %v8631_v36 = vrot.slane %v17301_v27, 3  ;;  %v8643_v62 = vrot.slane %v17304_v32, 4 }
 0x673   : > { %v16071_v46 = vadd.f32 %v7760_v16, %v15880_v42  ;;  %v8626_v42 = vor.u32 %v8625_v54, %v8622_v34  ;;  %v17306_v16 = vshll.u32 %v15058_v48, 16 }
 0x674   : > { %12089 = vmatmul.mubr.msk.bf16.gmra.mrb[44].mxu1 %vm957_vm2, %v8609_v22  ;;  %v8635_v25 = vor.u32 %v8634_v26, %v8631_v36  ;;  %v8644_v22 = vor.u32 %v8643_v62, %v8640_v40  ;;  %v17307_v36 = vshrl.u32 %v15060_v17, 16  ;;  %v8661_v26 = vrot.slane %v17308_v61, 4 }
 0x675   : > { %12092 = vmatprep.mubr.msk.bf16.mxu1 %vm957_vm2, %v8618_v31  ;;  %v8627_v5 = vsel %vm6192_vm8, %v8617_v41, %v8626_v42 }
 0x676   : > { %v8645_v31 = vsel %vm6192_vm8, %v8635_v25, %v8644_v22 }
 0x677   : > { %v11982_v47 = vpop.f32.mrb[196].mxu1 }
 0x678   : > { %v16085_v30 = vadd.f32 %v11982_v47, %v15887_v9  ;;  %v7772_v56 = vpop.f32.mrb[197].mxu1  ;;  %v8636_v9 = vsel %vm6192_vm8, %v8626_v42, %v8635_v25  ;;  %v17309_v42 = vshrl.u32 %v15066_v33, 16 }
 0x679   : > { %v16088_v23 = vadd.f32 %v7772_v56, %v15890_v35  ;;  %v11983_v44 = vpop.f32.mrb[198].mxu1  ;;  %v17305_v35 = vshrl.u32 %v15058_v48, 16  ;;  %v8658_v48 = vrot.slane %v17307_v36, 3  ;;  %v17310_v56 = vshll.u32 %v15066_v33, 16 }
 0x67a   : > { %v16091_v53 = vadd.f32 %v11983_v44, %v15893_v11  ;;  %v7775_v24 = vpop.f32.mrb[199].mxu1  ;;  %v8652_v11 = vrot.slane %v17306_v16, 4  ;;  %v8667_v47 = vrot.slane %v17309_v42, 3  ;;  %v17311_v33 = vshrl.u32 %v15068_v60, 16 }
 0x67b   : > { %v8649_v58 = vrot.slane %v17305_v35, 3  ;;  %v8670_v44 = vrot.slane %v17310_v56, 4 }
 0x67c   : > { %12093 = vmatmul.mubr.msk.bf16.gmra.mrb[48].mxu1 %vm957_vm2, %v8627_v5  ;;  %v8676_v35 = vrot.slane %v17311_v33, 3 }
 0x67d   : > { %12096 = vmatprep.mubr.msk.bf16.mxu1 %vm957_vm2, %v8636_v9  ;;  %v8653_v0 = vor.u32 %v8652_v11, %v8649_v58  ;;  %v8671_v5 = vor.u32 %v8670_v44, %v8667_v47  ;;  %v17312_v58 = vshll.u32 %v15068_v60, 16  ;;  %v17313_v11 = vld [vmem:[#allocation54_spill] sm:$0xff] }
 0x67f   : > { %v11986_v41 = vpop.f32.mrb[200].mxu1  ;;  %v8679_v16 = vrot.slane %v17312_v58, 4 }
 0x680   : > { %v16106_v43 = vadd.f32 %v11986_v41, %v15900_v28  ;;  %v7787_v34 = vpop.f32.mrb[201].mxu1  ;;  %v8654_v28 = vsel %vm6192_vm8, %v8644_v22, %v8653_v0  ;;  %v17314_v22 = vshrl.u32 %v17313_v11, 16  ;;  %v17315_v41 = vshll.u32 %v17313_v11, 16  ;;  %v17322_v11 = vld [vmem:[#allocation57_spill] sm:$0xff] }
 0x681   : > { %v11987_v7 = vpop.f32.mrb[202].mxu1 }
 0x682   : > { %v7789_v54 = vpop.f32.mrb[203].mxu1  ;;  %v8688_v34 = vrot.slane %v17315_v41, 4  ;;  %v17324_v41 = vshll.u32 %v17322_v11, 16 }
 0x683   : > { %v16110_v27 = vadd.f32 %v7789_v54, %v15903_v57  ;;  %v8662_v57 = vor.u32 %v8661_v26, %v8658_v48 }
 0x684   : > { %12097 = vmatmul.mubr.msk.bf16.gmra.mrb[52].mxu1 %vm957_vm2, %v8645_v31 }
 0x685   : > { %12100 = vmatprep.mubr.msk.bf16.mxu1 %vm957_vm2, %v8654_v28  ;;  %v8663_v62 = vsel %vm6192_vm8, %v8653_v0, %v8662_v57  ;;  %v17316_v28 = vld [vmem:[#allocation55_spill] sm:$0xff] }
 0x686   : > { %v17317_v42 = vshrl.u32 %v17316_v28, 16  ;;  %v17318_v56 = vshll.u32 %v17316_v28, 16 }
 0x687   : > { %v11990_v25 = vpop.f32.mrb[204].mxu1 }
 0x688   : > { %v7801_v24 = vpop.f32.mrb[205].mxu1  ;;  %v8694_v47 = vrot.slane %v17317_v42, 3  ;;  %v8697_v44 = vrot.slane %v17318_v56, 4 }
 0x689   : > { %v16124_v1 = vadd.f32 %v7801_v24, %v15910_v37  ;;  %v11991_v17 = vpop.f32.mrb[206].mxu1  ;;  %v8672_v37 = vsel %vm6192_vm8, %v8662_v57, %v8671_v5  ;;  %v17319_v57 = vld [vmem:[#allocation56_spill] sm:$0xff] }
 0x68a   : > { %v16127_v40 = vadd.f32 %v11991_v17, %v15913_v45  ;;  %v7804_v32 = vpop.f32.mrb[207].mxu1  ;;  %v8685_v45 = vrot.slane %v17314_v22, 3  ;;  %v17321_v24 = vshll.u32 %v17319_v57, 16  ;;  %v8698_v17 = vor.u32 %v8697_v44, %v8694_v47 }
 0x68b   : > { %v16131_v9 = vadd.f32 %v7804_v32, %v15916_v52  ;;  %v8680_v52 = vor.u32 %v8679_v16, %v8676_v35  ;;  %v17323_v22 = vshrl.u32 %v17322_v11, 16 }
 0x68c   : > { %12101 = vmatmul.mubr.msk.bf16.gmra.mrb[56].mxu1 %vm957_vm2, %v8663_v62  ;;  %v8689_v60 = vor.u32 %v8688_v34, %v8685_v45  ;;  %v8715_v34 = vrot.slane %v17324_v41, 4 }
 0x68d   : > { %12104 = vmatprep.mubr.msk.bf16.mxu1 %vm957_vm2, %v8672_v37  ;;  %v8681_v26 = vsel %vm6192_vm8, %v8671_v5, %v8680_v52  ;;  %v8712_v45 = vrot.slane %v17323_v22, 3 }
 0x68e   : > { %v8699_v16 = vsel %vm6192_vm8, %v8689_v60, %v8698_v17 }
 0x68f   : > { %v11994_v0 = vpop.f32.mrb[208].mxu1 }
 0x690   : > { %v16145_v7 = vadd.f32 %v11994_v0, %v15923_v19  ;;  %v7816_v54 = vpop.f32.mrb[209].mxu1  ;;  %v8690_v19 = vsel %vm6192_vm8, %v8680_v52, %v8689_v60  ;;  %v17325_v52 = vld [vmem:[#allocation58_spill] sm:$0xff] }
 0x691   : > { %v16148_v31 = vadd.f32 %v7816_v54, %v15926_v20  ;;  %v11995_v36 = vpop.f32.mrb[210].mxu1  ;;  %v17320_v20 = vshrl.u32 %v17319_v57, 16  ;;  %v17326_v0 = vshrl.u32 %v17325_v52, 16 }
 0x692   : > { %v16151_v48 = vadd.f32 %v11995_v36, %v15929_v4  ;;  %v7819_v61 = vpop.f32.mrb[211].mxu1  ;;  %v8706_v4 = vrot.slane %v17321_v24, 4  ;;  %v17327_v36 = vshll.u32 %v17325_v52, 16 }
 0x693   : > { %v8703_v25 = vrot.slane %v17320_v20, 3  ;;  %v8721_v54 = vrot.slane %v17326_v0, 3 }
 0x694   : > { %12105 = vmatmul.mubr.msk.bf16.gmra.mrb[60].mxu1 %vm957_vm2, %v8681_v26  ;;  %v8724_v61 = vrot.slane %v17327_v36, 4  ;;  %v17334_v36 = vld [vmem:[#allocation8_spill] sm:$0xff] }
 0x695   : > { %12108 = vmatprep.mubr.msk.bf16.mxu1 %vm957_vm2, %v8690_v19  ;;  %v8707_v33 = vor.u32 %v8706_v4, %v8703_v25  ;;  %v16189_v19 = vld [vmem:[#allocation3 + $0xd8] sm:$0xf] }
 0x696   : > { %v8725_v28 = vor.u32 %v8724_v61, %v8721_v54  ;;  %v17328_v25 = vld [vmem:[#allocation59_spill] sm:$0xff] }
 0x697   : > { %v11998_v5 = vpop.f32.mrb[212].mxu1  ;;  %v17329_v24 = vshrl.u32 %v17328_v25, 16 }
 0x698   : > { %v16166_v32 = vadd.f32 %v11998_v5, %v15936_v63  ;;  %v7831_v62 = vpop.f32.mrb[213].mxu1  ;;  %v8708_v63 = vsel %vm6192_vm8, %v8698_v17, %v8707_v33  ;;  %v17330_v17 = vshll.u32 %v17328_v25, 16 }
 0x699   : > { %v11999_v35 = vpop.f32.mrb[214].mxu1  ;;  %v8730_v4 = vrot.slane %v17329_v24, 3 }
 0x69a   : > { %v7833_v58 = vpop.f32.mrb[215].mxu1  ;;  %v8733_v5 = vrot.slane %v17330_v17, 4 }
 0x69b   : > { %v16170_v37 = vadd.f32 %v7833_v58, %v15939_v10  ;;  %v8716_v10 = vor.u32 %v8715_v34, %v8712_v45 }
 0x69c   : > { %12109 = vmatmul.mubr.msk.bf16.gmra.mrb[64].mxu1 %vm957_vm2, %v8699_v16  ;;  %v8734_v11 = vor.u32 %v8733_v5, %v8730_v4  ;;  %v12785_v4 = vld [vmem:[#allocation3 + $0x18] sm:$0xf0]  ;;  %v17335_v5 = vld [vmem:[#allocation4_spill] sm:$0xff] }
 0x69d   : > { %12112 = vmatprep.mubr.msk.bf16.mxu1 %vm957_vm2, %v8708_v63  ;;  %v8717_v57 = vsel %vm6192_vm8, %v8707_v33, %v8716_v10  ;;  %v8749_v33 = vshll.u32 %v16189_v19, 16  ;;  %v9098_v17 = vrot.slane %v12785_v4, 4 }
 0x69f   : > { %v12002_v60 = vpop.f32.mrb[216].mxu1  ;;  %v8751_v54 = vrot.slane %v8749_v33, 4 }
 0x6a0   : > { %v7845_v26 = vpop.f32.mrb[217].mxu1  ;;  %v8735_v60 = vsel %vm6192_vm8, %v8725_v28, %v8734_v11 }
 0x6a1   : > { %v16184_v42 = vadd.f32 %v7845_v26, %v15946_v13  ;;  %v12003_v47 = vpop.f32.mrb[218].mxu1  ;;  %v8726_v13 = vsel %vm6192_vm8, %v8716_v10, %v8725_v28 }
 0x6a2   : > { %v16187_v56 = vadd.f32 %v12003_v47, %v15949_v3  ;;  %v7848_v44 = vpop.f32.mrb[219].mxu1  ;;  %v17331_v3 = vld [vmem:[#allocation60_spill] sm:$0xff] }
 0x6a3   : > { %v16193_v20 = vadd.f32 %v7848_v44, %v15952_v2  ;;  %v17332_v62 = vshrl.u32 %v17331_v3, 16  ;;  %v17333_v58 = vshll.u32 %v17331_v3, 16  ;;  %v8746_v2 = vshrl.u32 %v16189_v19, 16 }
 0x6a4   : > { %12113 = vmatmul.mubr.msk.bf16.gmra.mrb[68].mxu1 %vm957_vm2, %v8717_v57 }
 0x6a5   : > { %v8739_v35 = vrot.slane %v17332_v62, 3  ;;  %v8742_v16 = vrot.slane %v17333_v58, 4  ;;  %12116 = vmatprep.mubr.msk.bf16.mxu1 %vm957_vm2, %v8726_v13  ;;  %v8748_v0 = vrot.slane %v8746_v2, 3  ;;  %v17336_v13 = vrot.slane %v17335_v5, 4  ;;  %v17344_v5 = vld [vmem:[#allocation68_spill] sm:$0xff] }
 0x6a7   : > { %v12006_v22 = vpop.f32.mrb[220].mxu1  ;;  %v8743_v34 = vor.u32 %v8742_v16, %v8739_v35  ;;  %v9100_v62 = vsel %vm1030_vm0, %v9098_v17, %v17336_v13 }
 0x6a8   : > { %v16209_v45 = vadd.f32 %v12006_v22, %v15959_v15  ;;  %v7860_v41 = vpop.f32.mrb[221].mxu1  ;;  %v8752_v15 = vor.u32 %v8751_v54, %v8748_v0  ;;  %v17337_v22 = vld [vmem:[#allocation61_spill] sm:$0xff]  ;;  %v17339_v54 = vld [vmem:[#allocation63_spill] sm:$0xff] }
 0x6a9   : > { %v16212_v63 = vadd.f32 %v7860_v41, %v15962_v12  ;;  %v12007_v52 = vpop.f32.mrb[222].mxu1  ;;  %v8744_v26 = vsel %vm6192_vm8, %v8734_v11, %v8743_v34  ;;  %v17338_v41 = vld [vmem:[#allocation62_spill] sm:$0xff] }
 0x6aa   : > { %v16215_v61 = vadd.f32 %v12007_v52, %v17334_v36  ;;  %v7863_v10 = vpop.f32.mrb[223].mxu1  ;;  %v8753_v57 = vsel %vm6192_vm8, %v8743_v34, %v8752_v15  ;;  %v17340_v36 = vld [vmem:[#allocation64_spill] sm:$0xff] }
 0x6ac   : > { %12117 = vmatmul.mubr.msk.bf16.gmra.mrb[72].mxu1 %vm957_vm2, %v8735_v60 }
 0x6ad   : > { %12120 = vmatprep.mubr.msk.bf16.mxu1 %vm957_vm2, %v8744_v26 }
 0x6af   : > { %v12010_v47 = vpop.f32.mrb[224].mxu1 }
 0x6b0   : > { %v16222_v12 = vadd.f32 %v12010_v47, %v15976_v8  ;;  %v7875_v44 = vpop.f32.mrb[225].mxu1  ;;  %v17341_v47 = vld [vmem:[#allocation65_spill] sm:$0xff] }
 0x6b1   : > { %v12011_v25 = vpop.f32.mrb[226].mxu1 }
 0x6b2   : > { %v7877_v24 = vpop.f32.mrb[227].mxu1 }
 0x6b3   : > { %v16226_v28 = vadd.f32 %v7877_v24, %v15981_v50  ;;  %v9648_v50 = vsel %vm1030_vm0, %v16013_v59, 0 }
 0x6b4   : > { %12121 = vmatmul.mubr.msk.bf16.gmra.mrb[76].mxu1 %vm957_vm2, %v8753_v57 }
 0x6b5   : > { %12126 = vmatprep.mubr.msk.bf16.mxu1 %vm957_vm2, %v9100_v62 }
 0x6b7   : > { %v12014_v8 = vpop.f32.mrb[228].mxu1 }
 0x6b8   : > { %v7889_v35 = vpop.f32.mrb[229].mxu1 }
 0x6b9   : > { %v16234_v58 = vadd.f32 %v7889_v35, %v15995_v51  ;;  %v12015_v16 = vpop.f32.mrb[230].mxu1 }
 0x6ba   : > { %v16237_v2 = vadd.f32 %v12015_v16, %v15998_v49  ;;  %v7892_v33 = vpop.f32.mrb[231].mxu1  ;;  %v17345_v16 = vld [vmem:[#allocation69_spill] sm:$0xff] }
 0x6bb   : > { %v16242_v11 = vadd.f32 %v7892_v33, %v16004_v18  ;;  %v17346_v33 = vld [vmem:[#allocation70_spill] sm:$0xff] }
 0x6bc   : > { %12127 = vmatmul.mubr.msk.bf16.vlgmr.msra.gmra.mrb[80].mxu1 %vm957_vm2, %v17337_v22 }
 0x6bd   : > { %12175 = vmatpush3.bf16.msra.mxu1 %v9648_v50  ;;  %12130 = vmatprep.mubr.msk.bf16.mxu1 %vm957_vm2, %v17338_v41 }
 0x6bf   : > { %v12018_v51 = vpop.f32.mrb[232].mxu1 }
 0x6c0   : > { %v16249_v34 = vadd.f32 %v12018_v51, %v16025_v14  ;;  %v7904_v49 = vpop.f32.mrb[233].mxu1 }
 0x6c1   : > { %v16252_v52 = vadd.f32 %v7904_v49, %v16028_v39  ;;  %v12019_v0 = vpop.f32.mrb[234].mxu1  ;;  %v17347_v49 = vld [vmem:[#allocation71_spill] sm:$0xff] }
 0x6c2   : > { %v16255_v59 = vadd.f32 %v12019_v0, %v16031_v29  ;;  %v7907_v18 = vpop.f32.mrb[235].mxu1  ;;  %v17342_v29 = vld [vmem:[#allocation66_spill] sm:$0xff] }
 0x6c4   : > { %12131 = vmatmul.mubr.msk.bf16.gmra.mrb[84].mxu1 %vm957_vm2, %v17339_v54 }
 0x6c5   : > { %12134 = vmatprep.mubr.msk.bf16.mxu1 %vm957_vm2, %v17340_v36 }
 0x6c7   : > { %v12022_v10 = vpop.f32.mrb[236].mxu1 }
 0x6c8   : > { %v16262_v60 = vadd.f32 %v12022_v10, %v16046_v6  ;;  %v7919_v14 = vpop.f32.mrb[237].mxu1 }
 0x6c9   : > { %v12023_v26 = vpop.f32.mrb[238].mxu1 }
 0x6ca   : > { %v7921_v15 = vpop.f32.mrb[239].mxu1  ;;  %v17350_v26 = vld [vmem:[#allocation74_spill] sm:$0xff] }
 0x6cb   : > { %v16265_v39 = vadd.f32 %v7921_v15, %v16050_v55  ;;  %v17343_v55 = vld [vmem:[#allocation67_spill] sm:$0xff] }
 0x6cc   : > { %12135 = vmatmul.mubr.msk.bf16.gmra.mrb[88].mxu1 %vm957_vm2, %v17341_v47 }
 0x6cd   : > { %12138 = vmatprep.mubr.msk.bf16.mxu1 %vm957_vm2, %v17342_v29 }
 0x6cf   : > { %v12028_v44 = vpop.f32.mrb[240].mxu1 }
 0x6d0   : > { %v8296_v57 = vpop.f32.mrb[241].mxu1 }
 0x6d1   : > { %v16272_v25 = vadd.f32 %v8296_v57, %v16064_v21  ;;  %v12029_v24 = vpop.f32.mrb[242].mxu1  ;;  %v17351_v57 = vld [vmem:[#allocation75_spill] sm:$0xff] }
 0x6d2   : > { %v16275_v6 = vadd.f32 %v12029_v24, %v16067_v38  ;;  %v8299_v4 = vpop.f32.mrb[243].mxu1  ;;  %v17352_v24 = vld [vmem:[#allocation76_spill] sm:$0xff] }
 0x6d3   : > { %v16278_v17 = vadd.f32 %v8299_v4, %v16071_v46 }
 0x6d4   : > { %12139 = vmatmul.mubr.msk.bf16.gmra.mrb[92].mxu1 %vm957_vm2, %v17343_v55 }
 0x6d5   : > { %12142 = vmatprep.mubr.msk.bf16.mxu1 %vm957_vm2, %v17344_v5 }
 0x6d7   : > { %v12032_v13 = vpop.f32.mrb[244].mxu1 }
 0x6d8   : > { %v16285_v62 = vadd.f32 %v12032_v13, %v16085_v30  ;;  %v8311_v21 = vpop.f32.mrb[245].mxu1 }
 0x6d9   : > { %v16288_v8 = vadd.f32 %v8311_v21, %v16088_v23  ;;  %v12033_v38 = vpop.f32.mrb[246].mxu1  ;;  %v17353_v21 = vld [vmem:[#allocation77_spill] sm:$0xff] }
 0x6da   : > { %v16291_v35 = vadd.f32 %v12033_v38, %v16091_v53  ;;  %v8314_v46 = vpop.f32.mrb[247].mxu1  ;;  %v17348_v53 = vld [vmem:[#allocation72_spill] sm:$0xff] }
 0x6dc   : > { %12143 = vmatmul.mubr.msk.bf16.gmra.mrb[96].mxu1 %vm957_vm2, %v17345_v16 }
 0x6dd   : > { %12146 = vmatprep.mubr.msk.bf16.mxu1 %vm957_vm2, %v17346_v33 }
 0x6df   : > { %v12036_v50 = vpop.f32.mrb[248].mxu1 }
 0x6e0   : > { %v16298_v22 = vadd.f32 %v12036_v50, %v16106_v43  ;;  %v8326_v30 = vpop.f32.mrb[249].mxu1 }
 0x6e1   : > { %v12037_v41 = vpop.f32.mrb[250].mxu1 }
 0x6e2   : > { %v8328_v51 = vpop.f32.mrb[251].mxu1  ;;  %v17356_v41 = vld [vmem:[#allocation80_spill] sm:$0xff] }
 0x6e3   : > { %v16301_v23 = vadd.f32 %v8328_v51, %v16110_v27  ;;  %v17349_v27 = vld [vmem:[#allocation73_spill] sm:$0xff] }
 0x6e4   : > { %12147 = vmatmul.mubr.msk.bf16.gmra.mrb[100].mxu1 %vm957_vm2, %v17347_v49 }
 0x6e5   : > { %12150 = vmatprep.mubr.msk.bf16.mxu1 %vm957_vm2, %v17348_v53 }
 0x6e7   : > { %v12040_v0 = vpop.f32.mrb[252].mxu1 }
 0x6e8   : > { %v8340_v18 = vpop.f32.mrb[253].mxu1 }
 0x6e9   : > { %v16308_v54 = vadd.f32 %v8340_v18, %v16124_v1  ;;  %v12041_v36 = vpop.f32.mrb[254].mxu1  ;;  %v17357_v18 = vld [vmem:[#allocation81_spill] sm:$0xff] }
 0x6ea   : > { %v16311_v43 = vadd.f32 %v12041_v36, %v16127_v40  ;;  %v8343_v10 = vpop.f32.mrb[255].mxu1  ;;  %v9145_v36 = vrot.slane %v16189_v19, 4  ;;  %v17360_v19 = vld [vmem:[#allocation84_spill] sm:$0xff] }
 0x6eb   : > { %v16314_v14 = vadd.f32 %v8343_v10, %v16131_v9  ;;  %v17358_v10 = vld [vmem:[#allocation82_spill] sm:$0xff] }
 0x6ec   : > { %12151 = vmatmul.mubr.msk.bf16.gmra.mrb[104].mxu1 %vm957_vm2, %v17349_v27 }
 0x6ed   : > { %12154 = vmatprep.mubr.msk.bf16.mxu1 %vm957_vm2, %v17350_v26 }
 0x6ef   : > { %v12044_v15 = vpop.f32.mrb[0].mxu1 }
 0x6f0   : > { %v16321_v47 = vadd.f32 %v12044_v15, %v16145_v7  ;;  %v8355_v1 = vpop.f32.mrb[1].mxu1 }
 0x6f1   : > { %v16324_v29 = vadd.f32 %v8355_v1, %v16148_v31  ;;  %v12045_v40 = vpop.f32.mrb[2].mxu1 }
 0x6f2   : > { %v16327_v44 = vadd.f32 %v12045_v40, %v16151_v48  ;;  %v8358_v9 = vpop.f32.mrb[3].mxu1  ;;  %v17354_v48 = vld [vmem:[#allocation78_spill] sm:$0xff] }
 0x6f4   : > { %12155 = vmatmul.mubr.msk.bf16.gmra.mrb[108].mxu1 %vm957_vm2, %v17351_v57 }
 0x6f5   : > { %12158 = vmatprep.mubr.msk.bf16.mxu1 %vm957_vm2, %v17352_v24 }
 0x6f7   : > { %v12048_v4 = vpop.f32.mrb[4].mxu1 }
 0x6f8   : > { %v16334_v55 = vadd.f32 %v12048_v4, %v16166_v32  ;;  %v8370_v7 = vpop.f32.mrb[5].mxu1 }
 0x6f9   : > { %v12049_v5 = vpop.f32.mrb[6].mxu1 }
 0x6fa   : > { %v8372_v13 = vpop.f32.mrb[7].mxu1  ;;  %v17362_v5 = vld [vmem:[#allocation86_spill] sm:$0xff] }
 0x6fb   : > { %v16337_v31 = vadd.f32 %v8372_v13, %v16170_v37  ;;  %v17355_v37 = vld [vmem:[#allocation79_spill] sm:$0xff] }
 0x6fc   : > { %12159 = vmatmul.mubr.msk.bf16.gmra.mrb[112].mxu1 %vm957_vm2, %v17353_v21 }
 0x6fd   : > { %12162 = vmatprep.mubr.msk.bf16.mxu1 %vm957_vm2, %v17354_v48 }
 0x6ff   : > { %v12052_v38 = vpop.f32.mrb[8].mxu1 }
 0x700   : > { %v8384_v46 = vpop.f32.mrb[9].mxu1 }
 0x701   : > { %v16344_v16 = vadd.f32 %v8384_v46, %v16184_v42  ;;  %v12053_v33 = vpop.f32.mrb[10].mxu1  ;;  %v17363_v46 = vld [vmem:[#allocation87_spill] sm:$0xff] }
 0x702   : > { %v16347_v32 = vadd.f32 %v12053_v33, %v16187_v56  ;;  %v8387_v50 = vpop.f32.mrb[11].mxu1  ;;  %v17364_v33 = vld [vmem:[#allocation88_spill] sm:$0xff] }
 0x703   : > { %v16350_v30 = vadd.f32 %v8387_v50, %v16193_v20 }
 0x704   : > { %12163 = vmatmul.mubr.msk.bf16.gmra.mrb[116].mxu1 %vm957_vm2, %v17355_v37 }
 0x705   : > { %12166 = vmatprep.mubr.msk.bf16.mxu1 %vm957_vm2, %v17356_v41 }
 0x707   : > { %v12056_v51 = vpop.f32.mrb[12].mxu1 }
 0x708   : > { %v16357_v49 = vadd.f32 %v12056_v51, %v16209_v45  ;;  %v8399_v42 = vpop.f32.mrb[13].mxu1 }
 0x709   : > { %v16360_v53 = vadd.f32 %v8399_v42, %v16212_v63  ;;  %v12057_v56 = vpop.f32.mrb[14].mxu1  ;;  %v17359_v63 = vrot.slane %v17331_v3, 4  ;;  %v17365_v42 = vld [vmem:[#allocation89_spill] sm:$0xff] }
 0x70a   : > { %v16363_v0 = vadd.f32 %v12057_v56, %v16215_v61  ;;  %v8402_v20 = vpop.f32.mrb[15].mxu1 }
 0x70b   : > { %v9146_v15 = vsel %vm1030_vm0, %v17359_v63, %v9145_v36 }
 0x70c   : > { %12167 = vmatmul.mubr.msk.bf16.gmra.mrb[120].mxu1 %vm957_vm2, %v17357_v18 }
 0x70d   : > { %12170 = vmatprep.mubr.msk.bf16.mxu1 %vm957_vm2, %v17358_v10 }
 0x70f   : > { %v12060_v27 = vpop.f32.mrb[16].mxu1 }
 0x710   : > { %v16371_v45 = vadd.f32 %v12060_v27, %v16222_v12  ;;  %v8414_v26 = vpop.f32.mrb[17].mxu1 }
 0x711   : > { %v12061_v61 = vpop.f32.mrb[18].mxu1  ;;  %v17368_v26 = vld [vmem:[#allocation92_spill] sm:$0xff] }
 0x712   : > { %v8416_v1 = vpop.f32.mrb[19].mxu1 }
 0x713   : > { %v16377_v40 = vadd.f32 %v8416_v1, %v16226_v28  ;;  %v17361_v28 = vld [vmem:[#allocation85_spill] sm:$0xff] }
 0x714   : > { %12171 = vmatmul.mubr.msk.bf16.gmra.mrb[124].mxu1 %vm957_vm2, %v9146_v15 }
 0x715   : > { %12176 = vmatprep.mubr.msk.bf16.mxu1 %vm957_vm2, %v17360_v19  ;;  %v17369_v19 = vld [vmem:[#allocation93_spill] sm:$0xff] }
 0x717   : > { %v12064_v9 = vpop.f32.mrb[20].mxu1 }
 0x718   : > { %v8428_v57 = vpop.f32.mrb[21].mxu1  ;;  %v17370_v9 = vld [vmem:[#allocation94_spill] sm:$0xff] }
 0x719   : > { %v16383_v12 = vadd.f32 %v8428_v57, %v16234_v58  ;;  %v12065_v24 = vpop.f32.mrb[22].mxu1 }
 0x71a   : > { %v16386_v3 = vadd.f32 %v12065_v24, %v16237_v2  ;;  %v8431_v4 = vpop.f32.mrb[23].mxu1 }
 0x71b   : > { %v16389_v7 = vadd.f32 %v8431_v4, %v16242_v11 }
 0x71c   : > { %12177 = vmatmul.mubr.msk.bf16.vlgmr.msra.gmra.mrb[128].mxu1 %vm957_vm2, %v17361_v28 }
 0x71d   : > { %12180 = vmatprep.mubr.msk.bf16.mxu1 %vm957_vm2, %v17362_v5  ;;  %v17371_v5 = vld [vmem:[#allocation95_spill] sm:$0xff] }
 0x71f   : > { %v12068_v13 = vpop.f32.mrb[24].mxu1 }
 0x720   : > { %v16396_v21 = vadd.f32 %v12068_v13, %v16249_v34  ;;  %v8443_v58 = vpop.f32.mrb[25].mxu1 }
 0x721   : > { %v16399_v48 = vadd.f32 %v8443_v58, %v16252_v52  ;;  %v12069_v2 = vpop.f32.mrb[26].mxu1 }
 0x722   : > { %v16402_v38 = vadd.f32 %v12069_v2, %v16255_v59  ;;  %v8446_v11 = vpop.f32.mrb[27].mxu1  ;;  %v17366_v59 = vld [vmem:[#allocation90_spill] sm:$0xff] }
 0x724   : > { %12181 = vmatmul.mubr.msk.bf16.gmra.mrb[132].mxu1 %vm957_vm2, %v17363_v46 }
 0x725   : > { %12184 = vmatprep.mubr.msk.bf16.mxu1 %vm957_vm2, %v17364_v33 }
 0x727   : > { %v12072_v50 = vpop.f32.mrb[28].mxu1 }
 0x728   : > { %v16409_v37 = vadd.f32 %v12072_v50, %v16262_v60  ;;  %v8458_v34 = vpop.f32.mrb[29].mxu1  ;;  %v17374_v50 = vld [vmem:[#allocation98_spill] sm:$0xff] }
 0x729   : > { %v12073_v41 = vpop.f32.mrb[30].mxu1 }
 0x72a   : > { %v8460_v51 = vpop.f32.mrb[31].mxu1 }
 0x72b   : > { %v16412_v52 = vadd.f32 %v8460_v51, %v16265_v39  ;;  %v17367_v39 = vld [vmem:[#allocation91_spill] sm:$0xff] }
 0x72c   : > { %12185 = vmatmul.mubr.msk.bf16.gmra.mrb[136].mxu1 %vm957_vm2, %v17365_v42 }
 0x72d   : > { %12188 = vmatprep.mubr.msk.bf16.mxu1 %vm957_vm2, %v17366_v59  ;;  %v17375_v59 = vld [vmem:[#allocation99_spill] sm:$0xff] }
 0x72f   : > { %v12078_v56 = vpop.f32.mrb[32].mxu1 }
 0x730   : > { %v8863_v20 = vpop.f32.mrb[33].mxu1  ;;  %v17376_v56 = vld [vmem:[#allocation100_spill] sm:$0xff] }
 0x731   : > { %v16419_v18 = vadd.f32 %v8863_v20, %v16272_v25  ;;  %v12079_v36 = vpop.f32.mrb[34].mxu1 }
 0x732   : > { %v16422_v60 = vadd.f32 %v12079_v36, %v16275_v6  ;;  %v8866_v10 = vpop.f32.mrb[35].mxu1 }
 0x733   : > { %v16425_v27 = vadd.f32 %v8866_v10, %v16278_v17 }
 0x734   : > { %12189 = vmatmul.mubr.msk.bf16.gmra.mrb[140].mxu1 %vm957_vm2, %v17367_v39 }
 0x735   : > { %12192 = vmatprep.mubr.msk.bf16.mxu1 %vm957_vm2, %v17368_v26  ;;  %v17377_v26 = vld [vmem:[#allocation101_spill] sm:$0xff] }
 0x737   : > { %v12082_v63 = vpop.f32.mrb[36].mxu1 }
 0x738   : > { %v16432_v15 = vadd.f32 %v12082_v63, %v16285_v62  ;;  %v8878_v25 = vpop.f32.mrb[37].mxu1 }
 0x739   : > { %v16435_v61 = vadd.f32 %v8878_v25, %v16288_v8  ;;  %v12083_v6 = vpop.f32.mrb[38].mxu1 }
 0x73a   : > { %v16438_v1 = vadd.f32 %v12083_v6, %v16291_v35  ;;  %v8881_v17 = vpop.f32.mrb[39].mxu1  ;;  %v17372_v35 = vld [vmem:[#allocation96_spill] sm:$0xff] }
 0x73c   : > { %12193 = vmatmul.mubr.msk.bf16.gmra.mrb[144].mxu1 %vm957_vm2, %v17369_v19 }
 0x73d   : > { %12196 = vmatprep.mubr.msk.bf16.mxu1 %vm957_vm2, %v17370_v9  ;;  %v9463_v9 = vld [vmem:[#allocation3 + $0xd8] sm:$0x1f] }
 0x73f   : > { %v12086_v57 = vpop.f32.mrb[40].mxu1 }
 0x740   : > { %v16445_v24 = vadd.f32 %v12086_v57, %v16298_v22  ;;  %v8893_v62 = vpop.f32.mrb[41].mxu1  ;;  %v17379_v57 = vld [vmem:[#allocation103_spill] sm:$0xff] }
 0x741   : > { %v12087_v4 = vpop.f32.mrb[42].mxu1  ;;  %v17380_v62 = vld [vmem:[#allocation105_spill] sm:$0xff] }
 0x742   : > { %v8895_v28 = vpop.f32.mrb[43].mxu1  ;;  %v9567_v4 = vshrl.u32 %v9463_v9, 16 }
 0x743   : > { %v16448_v8 = vadd.f32 %v8895_v28, %v16301_v23  ;;  %v17373_v23 = vld [vmem:[#allocation97_spill] sm:$0xff]  ;;  %v9570_v28 = vshll.u32 %v9463_v9, 16 }
 0x744   : > { %12197 = vmatmul.mubr.msk.bf16.gmra.mrb[148].mxu1 %vm957_vm2, %v17371_v5 }
 0x745   : > { %12200 = vmatprep.mubr.msk.bf16.mxu1 %vm957_vm2, %v17372_v35 }
 0x747   : > { %v12090_v13 = vpop.f32.mrb[44].mxu1 }
 0x748   : > { %v8907_v58 = vpop.f32.mrb[45].mxu1 }
 0x749   : > { %v16455_v2 = vadd.f32 %v8907_v58, %v16308_v54  ;;  %v12091_v11 = vpop.f32.mrb[46].mxu1  ;;  %v9569_v58 = vrot.slane %v9567_v4, 4 }
 0x74a   : > { %v16458_v22 = vadd.f32 %v12091_v11, %v16311_v43  ;;  %v8910_v46 = vpop.f32.mrb[47].mxu1 }
 0x74b   : > { %v16461_v33 = vadd.f32 %v8910_v46, %v16314_v14 }
 0x74c   : > { %12201 = vmatmul.mubr.msk.bf16.gmra.mrb[152].mxu1 %vm957_vm2, %v17373_v23  ;;  %v17381_v23 = vld [vmem:[#allocation106_spill] sm:$0xff] }
 0x74d   : > { %12204 = vmatprep.mubr.msk.bf16.mxu1 %vm957_vm2, %v17374_v50 }
 0x74f   : > { %v12094_v34 = vpop.f32.mrb[48].mxu1 }
 0x750   : > { %v16468_v41 = vadd.f32 %v12094_v34, %v16321_v47  ;;  %v8922_v54 = vpop.f32.mrb[49].mxu1  ;;  %v17382_v34 = vld [vmem:[#allocation107_spill] sm:$0xff] }
 0x751   : > { %v16471_v51 = vadd.f32 %v8922_v54, %v16324_v29  ;;  %v12095_v43 = vpop.f32.mrb[50].mxu1 }
 0x752   : > { %v16474_v42 = vadd.f32 %v12095_v43, %v16327_v44  ;;  %v8925_v14 = vpop.f32.mrb[51].mxu1  ;;  %v17378_v44 = vld [vmem:[#allocation102_spill] sm:$0xff]  ;;  %v17383_v43 = vld [vmem:[#allocation104_spill] sm:$0xff] }
 0x754   : > { %12205 = vmatmul.mubr.msk.bf16.gmra.mrb[156].mxu1 %vm957_vm2, %v17375_v59 }
 0x755   : > { %12208 = vmatprep.mubr.msk.bf16.mxu1 %vm957_vm2, %v17376_v56 }
 0x757   : > { %v12098_v20 = vpop.f32.mrb[52].mxu1 }
 0x758   : > { %v16481_v36 = vadd.f32 %v12098_v20, %v16334_v55  ;;  %v8937_v47 = vpop.f32.mrb[53].mxu1 }
 0x759   : > { %v12099_v10 = vpop.f32.mrb[54].mxu1 }
 0x75a   : > { %v8939_v39 = vpop.f32.mrb[55].mxu1 }
 0x75b   : > { %v16484_v29 = vadd.f32 %v8939_v39, %v16337_v31 }
 0x75c   : > { %12209 = vmatmul.mubr.msk.bf16.gmra.mrb[160].mxu1 %vm957_vm2, %v17377_v26 }
 0x75d   : > { %12212 = vmatprep.mubr.msk.bf16.mxu1 %vm957_vm2, %v17378_v44 }
 0x75f   : > { %v12102_v63 = vpop.f32.mrb[56].mxu1 }
 0x760   : > { %v8951_v25 = vpop.f32.mrb[57].mxu1 }
 0x761   : > { %v16491_v6 = vadd.f32 %v8951_v25, %v16344_v16  ;;  %v12103_v17 = vpop.f32.mrb[58].mxu1 }
 0x762   : > { %v16494_v55 = vadd.f32 %v12103_v17, %v16347_v32  ;;  %v8954_v19 = vpop.f32.mrb[59].mxu1 }
 0x763   : > { %v16497_v31 = vadd.f32 %v8954_v19, %v16350_v30  ;;  %v9572_v30 = vrot.slane %v9570_v28, 5 }
 0x764   : > { %12213 = vmatmul.mubr.msk.bf16.gmra.mrb[164].mxu1 %vm957_vm2, %v17379_v57 }
 0x765   : > { %12216 = vmatprep.mubr.msk.bf16.mxu1 %vm957_vm2, %v17380_v62  ;;  %v9573_v50 = vor.u32 %v9572_v30, %v9569_v58 }
 0x767   : > { %v12106_v5 = vpop.f32.mrb[60].mxu1  ;;  %v9574_v14 = vsel %vm6704_vm4, %v17383_v43, %v9573_v50 }
 0x768   : > { %v16504_v16 = vadd.f32 %v12106_v5, %v16357_v49  ;;  %v8966_v35 = vpop.f32.mrb[61].mxu1 }
 0x769   : > { %v16507_v32 = vadd.f32 %v8966_v35, %v16360_v53  ;;  %v12107_v13 = vpop.f32.mrb[62].mxu1 }
 0x76a   : > { %v16510_v11 = vadd.f32 %v12107_v13, %v16363_v0  ;;  %v8969_v46 = vpop.f32.mrb[63].mxu1 }
 0x76c   : > { %12217 = vmatmul.mubr.msk.bf16.gmra.mrb[168].mxu1 %vm957_vm2, %v17381_v23 }
 0x76d   : > { %12220 = vmatprep.mubr.msk.bf16.mxu1 %vm957_vm2, %v17382_v34 }
 0x76f   : > { %v12110_v49 = vpop.f32.mrb[64].mxu1 }
 0x770   : > { %v16517_v54 = vadd.f32 %v12110_v49, %v16371_v45  ;;  %v8981_v53 = vpop.f32.mrb[65].mxu1 }
 0x771   : > { %v12111_v59 = vpop.f32.mrb[66].mxu1 }
 0x772   : > { %v8983_v56 = vpop.f32.mrb[67].mxu1 }
 0x773   : > { %v16522_v0 = vadd.f32 %v8983_v56, %v16377_v40 }
 0x774   : > { %12221 = vmatmul.mubr.msk.bf16.gmra.mrb[172].mxu1 %vm957_vm2, %v9574_v14 }
 0x777   : > { %v12114_v20 = vpop.f32.mrb[68].mxu1 }
 0x778   : > { %v8995_v47 = vpop.f32.mrb[69].mxu1 }
 0x779   : > { %v16526_v10 = vadd.f32 %v8995_v47, %v16383_v12  ;;  %v12115_v39 = vpop.f32.mrb[70].mxu1 }
 0x77a   : > { %v16529_v45 = vadd.f32 %v12115_v39, %v16386_v3  ;;  %v8998_v26 = vpop.f32.mrb[71].mxu1 }
 0x77b   : > { %v16532_v44 = vadd.f32 %v8998_v26, %v16389_v7 }
 0x77f   : > { %v12118_v63 = vpop.f32.mrb[72].mxu1 }
 0x780   : > { %v16535_v25 = vadd.f32 %v12118_v63, %v16396_v21  ;;  %v9010_v40 = vpop.f32.mrb[73].mxu1 }
 0x781   : > { %v16538_v17 = vadd.f32 %v9010_v40, %v16399_v48  ;;  %v12119_v19 = vpop.f32.mrb[74].mxu1 }
 0x782   : > { %v16541_v12 = vadd.f32 %v12119_v19, %v16402_v38  ;;  %v9013_v9 = vpop.f32.mrb[75].mxu1 }
 0x787   : > { %v12122_v57 = vpop.f32.mrb[76].mxu1 }
 0x788   : > { %v16544_v3 = vadd.f32 %v12122_v57, %v16409_v37  ;;  %v9025_v62 = vpop.f32.mrb[77].mxu1 }
 0x789   : > { %v12123_v7 = vpop.f32.mrb[78].mxu1 }
 0x78a   : > { %v9027_v4 = vpop.f32.mrb[79].mxu1 }
 0x78b   : > { %v16547_v28 = vadd.f32 %v9027_v4, %v16412_v52 }
 0x78f   : > { %v12128_v21 = vpop.f32.mrb[80].mxu1 }
 0x790   : > { %v9256_v5 = vpop.f32.mrb[81].mxu1 }
 0x791   : > { %v16550_v48 = vadd.f32 %v9256_v5, %v16419_v18  ;;  %v12129_v35 = vpop.f32.mrb[82].mxu1 }
 0x792   : > { %v16553_v38 = vadd.f32 %v12129_v35, %v16422_v60  ;;  %v9259_v13 = vpop.f32.mrb[83].mxu1 }
 0x793   : > { %v16556_v58 = vadd.f32 %v9259_v13, %v16425_v27 }
 0x797   : > { %v12132_v37 = vpop.f32.mrb[84].mxu1 }
 0x798   : > { %v16559_v30 = vadd.f32 %v12132_v37, %v16432_v15  ;;  %v9271_v46 = vpop.f32.mrb[85].mxu1 }
 0x799   : > { %v16562_v52 = vadd.f32 %v9271_v46, %v16435_v61  ;;  %v12133_v23 = vpop.f32.mrb[86].mxu1 }
 0x79a   : > { %v16565_v18 = vadd.f32 %v12133_v23, %v16438_v1  ;;  %v9274_v50 = vpop.f32.mrb[87].mxu1 }
 0x79f   : > { %v12136_v34 = vpop.f32.mrb[88].mxu1 }
 0x7a0   : > { %v16568_v60 = vadd.f32 %v12136_v34, %v16445_v24  ;;  %v9286_v49 = vpop.f32.mrb[89].mxu1 }
 0x7a1   : > { %v12137_v27 = vpop.f32.mrb[90].mxu1 }
 0x7a2   : > { %v9288_v53 = vpop.f32.mrb[91].mxu1 }
 0x7a3   : > { %v16571_v43 = vadd.f32 %v9288_v53, %v16448_v8 }
 0x7a7   : > { %v12140_v15 = vpop.f32.mrb[92].mxu1 }
 0x7a8   : > { %v9300_v14 = vpop.f32.mrb[93].mxu1 }
 0x7a9   : > { %v16574_v61 = vadd.f32 %v9300_v14, %v16455_v2  ;;  %v12141_v59 = vpop.f32.mrb[94].mxu1 }
 0x7aa   : > { %v16577_v1 = vadd.f32 %v12141_v59, %v16458_v22  ;;  %v9303_v56 = vpop.f32.mrb[95].mxu1 }
 0x7ab   : > { %v16580_v20 = vadd.f32 %v9303_v56, %v16461_v33 }
 0x7af   : > { %v12144_v24 = vpop.f32.mrb[96].mxu1 }
 0x7b0   : > { %v16583_v47 = vadd.f32 %v12144_v24, %v16468_v41  ;;  %v9315_v39 = vpop.f32.mrb[97].mxu1 }
 0x7b1   : > { %v16586_v8 = vadd.f32 %v9315_v39, %v16471_v51  ;;  %v12145_v26 = vpop.f32.mrb[98].mxu1 }
 0x7b2   : > { %v16589_v2 = vadd.f32 %v12145_v26, %v16474_v42  ;;  %v9318_v63 = vpop.f32.mrb[99].mxu1 }
 0x7b7   : > { %v12148_v40 = vpop.f32.mrb[100].mxu1 }
 0x7b8   : > { %v16592_v22 = vadd.f32 %v12148_v40, %v16481_v36  ;;  %v9330_v19 = vpop.f32.mrb[101].mxu1 }
 0x7b9   : > { %v12149_v33 = vpop.f32.mrb[102].mxu1 }
 0x7ba   : > { %v9332_v9 = vpop.f32.mrb[103].mxu1 }
 0x7bb   : > { %v16595_v57 = vadd.f32 %v9332_v9, %v16484_v29 }
 0x7bf   : > { %v12152_v41 = vpop.f32.mrb[104].mxu1 }
 0x7c0   : > { %v9344_v62 = vpop.f32.mrb[105].mxu1 }
 0x7c1   : > { %v16598_v51 = vadd.f32 %v9344_v62, %v16491_v6  ;;  %v12153_v7 = vpop.f32.mrb[106].mxu1 }
 0x7c2   : > { %v16601_v42 = vadd.f32 %v12153_v7, %v16494_v55  ;;  %v9347_v4 = vpop.f32.mrb[107].mxu1 }
 0x7c3   : > { %v16604_v21 = vadd.f32 %v9347_v4, %v16497_v31  ;;  %v10026_v4 = vld [vmem:[%s12856_s30 + $0x19] sm:$0xff] }
 0x7c7   : > { %v12156_v36 = vpop.f32.mrb[108].mxu1 }
 0x7c8   : > { %v16607_v5 = vadd.f32 %v12156_v36, %v16504_v16  ;;  %v9359_v35 = vpop.f32.mrb[109].mxu1 }
 0x7c9   : > { %v16610_v29 = vadd.f32 %v9359_v35, %v16507_v32  ;;  %v12157_v13 = vpop.f32.mrb[110].mxu1 }
 0x7ca   : > { %v16613_v6 = vadd.f32 %v12157_v13, %v16510_v11  ;;  %v9362_v37 = vpop.f32.mrb[111].mxu1  ;;  %v10027_v13 = vld [vmem:[%s12856_s30 + $0x21] sm:$0xff] }
 0x7cf   : > { %v12160_v46 = vpop.f32.mrb[112].mxu1 }
 0x7d0   : > { %v16616_v55 = vadd.f32 %v12160_v46, %v16517_v54  ;;  %v9374_v23 = vpop.f32.mrb[113].mxu1 }
 0x7d1   : > { %v12161_v31 = vpop.f32.mrb[114].mxu1 }
 0x7d2   : > { %v9376_v50 = vpop.f32.mrb[115].mxu1 }
 0x7d3   : > { %v16619_v34 = vadd.f32 %v9376_v50, %v16522_v0 }
 0x7d7   : > { %v12164_v16 = vpop.f32.mrb[116].mxu1 }
 0x7d8   : > { %v9388_v49 = vpop.f32.mrb[117].mxu1 }
 0x7d9   : > { %v16622_v32 = vadd.f32 %v9388_v49, %v16526_v10  ;;  %v12165_v27 = vpop.f32.mrb[118].mxu1 }
 0x7da   : > { %v16625_v11 = vadd.f32 %v12165_v27, %v16529_v45  ;;  %v9391_v53 = vpop.f32.mrb[119].mxu1 }
 0x7db   : > { %v16628_v15 = vadd.f32 %v9391_v53, %v16532_v44 }
 0x7df   : > { %v12168_v54 = vpop.f32.mrb[120].mxu1 }
 0x7e0   : > { %v16631_v14 = vadd.f32 %v12168_v54, %v16535_v25  ;;  %v9403_v59 = vpop.f32.mrb[121].mxu1 }
 0x7e1   : > { %v16634_v0 = vadd.f32 %v9403_v59, %v16538_v17  ;;  %v12169_v56 = vpop.f32.mrb[122].mxu1 }
 0x7e2   : > { %v16637_v10 = vadd.f32 %v12169_v56, %v16541_v12  ;;  %v9406_v24 = vpop.f32.mrb[123].mxu1  ;;  %v16648_v12 = vld [vmem:[%s16824_s5] ss:$0 sm:$0xff] }
 0x7e7   : > { %v12172_v45 = vpop.f32.mrb[124].mxu1 }
 0x7e8   : > { %v16640_v39 = vadd.f32 %v12172_v45, %v16544_v3  ;;  %v9418_v44 = vpop.f32.mrb[125].mxu1 }
 0x7e9   : > { %v12173_v26 = vpop.f32.mrb[126].mxu1 }
 0x7ea   : > { %v9420_v63 = vpop.f32.mrb[127].mxu1 }
 0x7eb   : > { %v16643_v25 = vadd.f32 %v9420_v63, %v16547_v28  ;;  %v10029_v63 = vld [vmem:[%s12856_s30 + $0x39] sm:$0xff] }
 0x7ef   : > { %v12178_v40 = vpop.f32.mrb[128].mxu1 }
 0x7f0   : > { %v9684_v17 = vpop.f32.mrb[129].mxu1 }
 0x7f1   : > { %v9859_v19 = vadd.f32 %v9684_v17, %v16550_v48  ;;  %v12179_v33 = vpop.f32.mrb[130].mxu1  ;;  %v10028_v48 = vld [vmem:[%s12856_s30 + $0x31] sm:$0xff] }
 0x7f2   : > { %v9861_v3 = vadd.f32 %v12179_v33, %v16553_v38  ;;  %v9687_v9 = vpop.f32.mrb[131].mxu1  ;;  %v10031_v17 = vld [vmem:[%s12856_s30 + $0x51] sm:$0xff] }
 0x7f3   : > { %v9898_v41 = vadd.f32 %v16648_v12, %v9859_v19  ;;  %v9860_v28 = vadd.f32 %v9687_v9, %v16556_v58 }
 0x7f4   : > { %v9900_v62 = vadd.f32 %v16648_v12, %v9861_v3 }
 0x7f5   : > { %vm9930_vm0 = vcmp.ge.f32.partialorder %v9898_v41, 0.0  ;;  %v9962_v7 = vmul.f32 0.2, %v9898_v41  ;;  %v9899_v36 = vadd.f32 %v16648_v12, %v9860_v28 }
 0x7f6   : > { %vm9932_vm3 = vcmp.ge.f32.partialorder %v9900_v62, 0.0  ;;  %v9964_v35 = vmul.f32 0.2, %v9900_v62 }
 0x7f7   : > { %v9994_v38 = vsel %vm9930_vm0, %v9898_v41, %v9962_v7  ;;  %vm9931_vm8 = vcmp.ge.f32.partialorder %v9899_v36, 0.0  ;;  %v9963_v58 = vmul.f32 0.2, %v9899_v36  ;;  %v12182_v37 = vpop.f32.mrb[132].mxu1 }
 0x7f8   : > { %v10058_v46 = vadd.f32 %v10026_v4, %v9994_v38  ;;  %v9996_v23 = vsel %vm9932_vm3, %v9900_v62, %v9964_v35  ;;  %v9863_v31 = vadd.f32 %v12182_v37, %v16559_v30  ;;  %v9699_v50 = vpop.f32.mrb[133].mxu1 }
 0x7f9   : > { %v10060_v16 = vadd.f32 %v10028_v48, %v9996_v23  ;;  %v9995_v49 = vsel %vm9931_vm8, %v9899_v36, %v9963_v58  ;;  %v9862_v27 = vadd.f32 %v9699_v50, %v16562_v52  ;;  %v12183_v53 = vpop.f32.mrb[134].mxu1  ;;  %v10030_v52 = vld [vmem:[%s12856_s30 + $0x49] sm:$0xff]  ;;  %v10032_v23 = vld [vmem:[%s12856_s30 + $0x61] sm:$0xff] }
 0x7fa   : > { %10090 = vst.msk [vmem:[%s16662_s16] sm:$0xff] %vm957_vm2, %v10058_v46  ;;  %v10059_v54 = vadd.f32 %v10027_v13, %v9995_v49  ;;  %v9902_v59 = vadd.f32 %v16648_v12, %v9863_v31  ;;  %v9864_v56 = vadd.f32 %v12183_v53, %v16565_v18  ;;  %v9702_v24 = vpop.f32.mrb[135].mxu1  ;;  %v10033_v58 = vld [vmem:[%s12856_s30 + $0x69] sm:$0xff] }
 0x7fb   : > { %10092 = vst.msk [vmem:[%s16662_s16 + $0x10] sm:$0xff] %vm957_vm2, %v10060_v16  ;;  %v9901_v30 = vadd.f32 %v16648_v12, %v9862_v27 }
 0x7fc   : > { %10091 = vst.msk [vmem:[%s16662_s16 + $0x8] sm:$0xff] %vm957_vm2, %v10059_v54  ;;  %vm9934_vm6 = vcmp.ge.f32.partialorder %v9902_v59, 0.0  ;;  %v9966_v45 = vmul.f32 0.2, %v9902_v59  ;;  %v9903_v44 = vadd.f32 %v16648_v12, %v9864_v56 }
 0x7fd   : > { %vm9933_vm7 = vcmp.ge.f32.partialorder %v9901_v30, 0.0  ;;  %v9965_v26 = vmul.f32 0.2, %v9901_v30 }
 0x7fe   : > { %v9998_v40 = vsel %vm9934_vm6, %v9902_v59, %v9966_v45  ;;  %vm9935_vm9 = vcmp.ge.f32.partialorder %v9903_v44, 0.0  ;;  %v9967_v18 = vmul.f32 0.2, %v9903_v44  ;;  %v10034_v45 = vld [vmem:[%s12856_s30 + $0x79] sm:$0xff] }
 0x7ff   : > { %v10062_v19 = vadd.f32 %v10030_v52, %v9998_v40  ;;  %v9997_v33 = vsel %vm9933_vm7, %v9901_v30, %v9965_v26  ;;  %v12186_v3 = vpop.f32.mrb[136].mxu1 }
 0x800   : > { %v10061_v9 = vadd.f32 %v10029_v63, %v9997_v33  ;;  %v9999_v41 = vsel %vm9935_vm9, %v9903_v44, %v9967_v18  ;;  %v9866_v28 = vadd.f32 %v12186_v3, %v16568_v60  ;;  %v9714_v62 = vpop.f32.mrb[137].mxu1  ;;  %v10036_v44 = vld [vmem:[%s12856_s30 + $0x91] sm:$0xff]  ;;  %v10035_v63 = vld [vmem:[%s12856_s30 + $0x81] sm:$0xff] }
 0x801   : > { %10094 = vst.msk [vmem:[%s16662_s16 + $0x20] sm:$0xff] %vm957_vm2, %v10062_v19  ;;  %v10063_v7 = vadd.f32 %v10031_v17, %v9999_v41  ;;  %v12187_v4 = vpop.f32.mrb[138].mxu1 }
 0x802   : > { %10093 = vst.msk [vmem:[%s16662_s16 + $0x18] sm:$0xff] %vm957_vm2, %v10061_v9  ;;  %v9905_v36 = vadd.f32 %v16648_v12, %v9866_v28  ;;  %v9716_v35 = vpop.f32.mrb[139].mxu1 }
 0x803   : > { %10095 = vst.msk [vmem:[%s16662_s16 + $0x28] sm:$0xff] %vm957_vm2, %v10063_v7  ;;  %v9865_v48 = vadd.f32 %v9716_v35, %v16571_v43 }
 0x804   : > { %vm9937_vm10 = vcmp.ge.f32.partialorder %v9905_v36, 0.0  ;;  %v9969_v38 = vmul.f32 0.2, %v9905_v36 }
 0x805   : > { %v9904_v60 = vadd.f32 %v16648_v12, %v9865_v48 }
 0x806   : > { %v10001_v13 = vsel %vm9937_vm10, %v9905_v36, %v9969_v38  ;;  %v10037_v38 = vld [vmem:[%s12856_s30 + $0x99] sm:$0xff] }
 0x807   : > { %v10065_v37 = vadd.f32 %v10033_v58, %v10001_v13  ;;  %vm9936_vm11 = vcmp.ge.f32.partialorder %v9904_v60, 0.0  ;;  %v9968_v46 = vmul.f32 0.2, %v9904_v60  ;;  %v12190_v31 = vpop.f32.mrb[140].mxu1 }
 0x808   : > { %v9728_v50 = vpop.f32.mrb[141].mxu1 }
 0x809   : > { %10097 = vst.msk [vmem:[%s16662_s16 + $0x38] sm:$0xff] %vm957_vm2, %v10065_v37  ;;  %v10000_v16 = vsel %vm9936_vm11, %v9904_v60, %v9968_v46  ;;  %v9867_v43 = vadd.f32 %v9728_v50, %v16574_v61  ;;  %v12191_v49 = vpop.f32.mrb[142].mxu1  ;;  %v10039_v60 = vld [vmem:[%s12856_s30 + $0xb1] sm:$0xff] }
 0x80a   : > { %v10064_v27 = vadd.f32 %v10032_v23, %v10000_v16  ;;  %v9869_v53 = vadd.f32 %v12191_v49, %v16577_v1  ;;  %v9731_v54 = vpop.f32.mrb[143].mxu1 }
 0x80b   : > { %v9906_v59 = vadd.f32 %v16648_v12, %v9867_v43  ;;  %v9868_v56 = vadd.f32 %v9731_v54, %v16580_v20 }
 0x80c   : > { %10096 = vst.msk [vmem:[%s16662_s16 + $0x30] sm:$0xff] %vm957_vm2, %v10064_v27  ;;  %v9908_v24 = vadd.f32 %v16648_v12, %v9869_v53 }
 0x80d   : > { %vm9938_vm12 = vcmp.ge.f32.partialorder %v9906_v59, 0.0  ;;  %v9970_v30 = vmul.f32 0.2, %v9906_v59  ;;  %v9907_v52 = vadd.f32 %v16648_v12, %v9868_v56  ;;  %v10041_v56 = vld [vmem:[%s12856_s30 + $0xc9] sm:$0xff] }
 0x80e   : > { %vm9940_vm13 = vcmp.ge.f32.partialorder %v9908_v24, 0.0  ;;  %v9972_v61 = vmul.f32 0.2, %v9908_v24 }
 0x80f   : > { %v10002_v1 = vsel %vm9938_vm12, %v9906_v59, %v9970_v30  ;;  %vm9939_vm14 = vcmp.ge.f32.partialorder %v9907_v52, 0.0  ;;  %v9971_v26 = vmul.f32 0.2, %v9907_v52  ;;  %v12194_v40 = vpop.f32.mrb[144].mxu1 }
 0x810   : > { %v10066_v20 = vadd.f32 %v10034_v45, %v10002_v1  ;;  %v10004_v18 = vsel %vm9940_vm13, %v9908_v24, %v9972_v61  ;;  %v9871_v17 = vadd.f32 %v12194_v40, %v16583_v47  ;;  %v9743_v19 = vpop.f32.mrb[145].mxu1 }
 0x811   : > { %v10068_v33 = vadd.f32 %v10036_v44, %v10004_v18  ;;  %v10003_v3 = vsel %vm9939_vm14, %v9907_v52, %v9971_v26  ;;  %v9870_v9 = vadd.f32 %v9743_v19, %v16586_v8  ;;  %v12195_v41 = vpop.f32.mrb[146].mxu1  ;;  %v10038_v8 = vld [vmem:[%s12856_s30 + $0xa9] sm:$0xff]  ;;  %v10040_v52 = vld [vmem:[%s12856_s30 + $0xc1] sm:$0xff] }
 0x812   : > { %10098 = vst.msk [vmem:[%s16662_s16 + $0x40] sm:$0xff] %vm957_vm2, %v10066_v20  ;;  %v10067_v28 = vadd.f32 %v10035_v63, %v10003_v3  ;;  %v9910_v62 = vadd.f32 %v16648_v12, %v9871_v17  ;;  %v9872_v7 = vadd.f32 %v12195_v41, %v16589_v2  ;;  %v9746_v4 = vpop.f32.mrb[147].mxu1  ;;  %v10042_v3 = vld [vmem:[%s12856_s30 + $0xd9] sm:$0xff]  ;;  %v10044_v41 = vld [vmem:[%s12856_s30 + $0xf1] sm:$0xff] }
 0x813   : > { %10100 = vst.msk [vmem:[%s16662_s16 + $0x50] sm:$0xff] %vm957_vm2, %v10068_v33  ;;  %v9909_v47 = vadd.f32 %v16648_v12, %v9870_v9 }
 0x814   : > { %10099 = vst.msk [vmem:[%s16662_s16 + $0x48] sm:$0xff] %vm957_vm2, %v10067_v28  ;;  %vm9942_vm15 = vcmp.ge.f32.partialorder %v9910_v62, 0.0  ;;  %v9974_v36 = vmul.f32 0.2, %v9910_v62  ;;  %v9911_v35 = vadd.f32 %v16648_v12, %v9872_v7 }
 0x815   : > { %vm9941_vm1 = vcmp.ge.f32.partialorder %v9909_v47, 0.0  ;;  %v9973_v48 = vmul.f32 0.2, %v9909_v47 }
 0x816   : > { %v10006_v58 = vsel %vm9942_vm15, %v9910_v62, %v9974_v36  ;;  %vm9943_vm4 = vcmp.ge.f32.partialorder %v9911_v35, 0.0  ;;  %v9975_v2 = vmul.f32 0.2, %v9911_v35  ;;  %v10043_v62 = vld [vmem:[%s12856_s30 + $0xe1] sm:$0xff] }
 0x817   : > { %v10070_v13 = vadd.f32 %v10038_v8, %v10006_v58  ;;  %v10005_v37 = vsel %vm9941_vm1, %v9909_v47, %v9973_v48  ;;  %v12198_v46 = vpop.f32.mrb[148].mxu1 }
 0x818   : > { %v10069_v23 = vadd.f32 %v10037_v38, %v10005_v37  ;;  %v10007_v31 = vsel %vm9943_vm4, %v9911_v35, %v9975_v2  ;;  %v9874_v50 = vadd.f32 %v12198_v46, %v16592_v22  ;;  %v9758_v16 = vpop.f32.mrb[149].mxu1 }
 0x819   : > { %10102 = vst.msk [vmem:[%s16662_s16 + $0x60] sm:$0xff] %vm957_vm2, %v10070_v13  ;;  %v10071_v43 = vadd.f32 %v10039_v60, %v10007_v31  ;;  %v12199_v49 = vpop.f32.mrb[150].mxu1  ;;  %v10045_v31 = vld [vmem:[%s12856_s30 + $0xf9] sm:$0xff]  ;;  %v10047_v16 = vld [vmem:[%s12856_s30 + $0x111] sm:$0xff] }
 0x81a   : > { %10101 = vst.msk [vmem:[%s16662_s16 + $0x58] sm:$0xff] %vm957_vm2, %v10069_v23  ;;  %v9913_v27 = vadd.f32 %v16648_v12, %v9874_v50  ;;  %v9760_v53 = vpop.f32.mrb[151].mxu1 }
 0x81b   : > { %10103 = vst.msk [vmem:[%s16662_s16 + $0x68] sm:$0xff] %vm957_vm2, %v10071_v43  ;;  %v9873_v54 = vadd.f32 %v9760_v53, %v16595_v57 }
 0x81c   : > { %vm9945_vm5 = vcmp.ge.f32.partialorder %v9913_v27, 0.0  ;;  %v9977_v59 = vmul.f32 0.2, %v9913_v27 }
 0x81d   : > { %v9912_v22 = vadd.f32 %v16648_v12, %v9873_v54 }
 0x81e   : > { %v10009_v24 = vsel %vm9945_vm5, %v9913_v27, %v9977_v59 }
 0x81f   : > { %v10073_v30 = vadd.f32 %v10041_v56, %v10009_v24  ;;  %vm9944_vm0 = vcmp.ge.f32.partialorder %v9912_v22, 0.0  ;;  %v9976_v45 = vmul.f32 0.2, %v9912_v22  ;;  %v12202_v61 = vpop.f32.mrb[152].mxu1 }
 0x820   : > { %v9772_v44 = vpop.f32.mrb[153].mxu1 }
 0x821   : > { %10105 = vst.msk [vmem:[%s16662_s16 + $0x78] sm:$0xff] %vm957_vm2, %v10073_v30  ;;  %v10008_v1 = vsel %vm9944_vm0, %v9912_v22, %v9976_v45  ;;  %v9875_v57 = vadd.f32 %v9772_v44, %v16598_v51  ;;  %v12203_v26 = vpop.f32.mrb[154].mxu1  ;;  %v10049_v44 = vld [vmem:[%s12856_s30 + $0x129] sm:$0xff] }
 0x822   : > { %v10072_v63 = vadd.f32 %v10040_v52, %v10008_v1  ;;  %v9877_v40 = vadd.f32 %v12203_v26, %v16601_v42  ;;  %v9775_v20 = vpop.f32.mrb[155].mxu1 }
 0x823   : > { %v9914_v18 = vadd.f32 %v16648_v12, %v9875_v57  ;;  %v9876_v17 = vadd.f32 %v9775_v20, %v16604_v21 }
 0x824   : > { %10104 = vst.msk [vmem:[%s16662_s16 + $0x70] sm:$0xff] %vm957_vm2, %v10072_v63  ;;  %v9916_v19 = vadd.f32 %v16648_v12, %v9877_v40  ;;  %v10048_v63 = vld [vmem:[%s12856_s30 + $0x121] sm:$0xff] }
 0x825   : > { %vm9946_vm3 = vcmp.ge.f32.partialorder %v9914_v18, 0.0  ;;  %v9978_v33 = vmul.f32 0.2, %v9914_v18  ;;  %v9915_v9 = vadd.f32 %v16648_v12, %v9876_v17 }
 0x826   : > { %vm9948_vm8 = vcmp.ge.f32.partialorder %v9916_v19, 0.0  ;;  %v9980_v51 = vmul.f32 0.2, %v9916_v19 }
 0x827   : > { %v10010_v42 = vsel %vm9946_vm3, %v9914_v18, %v9978_v33  ;;  %vm9947_vm6 = vcmp.ge.f32.partialorder %v9915_v9, 0.0  ;;  %v9979_v28 = vmul.f32 0.2, %v9915_v9  ;;  %v12206_v7 = vpop.f32.mrb[156].mxu1 }
 0x828   : > { %v10074_v21 = vadd.f32 %v10042_v3, %v10010_v42  ;;  %v10012_v4 = vsel %vm9948_vm8, %v9916_v19, %v9980_v51  ;;  %v9879_v47 = vadd.f32 %v12206_v7, %v16607_v5  ;;  %v9787_v36 = vpop.f32.mrb[157].mxu1  ;;  %v10052_v7 = vld [vmem:[%s12856_s30 + $0x151] sm:$0xff] }
 0x829   : > { %v10076_v8 = vadd.f32 %v10044_v41, %v10012_v4  ;;  %v10011_v35 = vsel %vm9947_vm6, %v9915_v9, %v9979_v28  ;;  %v9878_v48 = vadd.f32 %v9787_v36, %v16610_v29  ;;  %v12207_v38 = vpop.f32.mrb[158].mxu1  ;;  %v10046_v29 = vld [vmem:[%s12856_s30 + $0x109] sm:$0xff]  ;;  %v10050_v28 = vld [vmem:[%s12856_s30 + $0x139] sm:$0xff]  ;;  %v10051_v4 = vld [vmem:[%s12856_s30 + $0x141] sm:$0xff] }
 0x82a   : > { %10106 = vst.msk [vmem:[%s16662_s16 + $0x80] sm:$0xff] %vm957_vm2, %v10074_v21  ;;  %v10075_v58 = vadd.f32 %v10043_v62, %v10011_v35  ;;  %v9918_v2 = vadd.f32 %v16648_v12, %v9879_v47  ;;  %v9880_v60 = vadd.f32 %v12207_v38, %v16613_v6  ;;  %v9790_v13 = vpop.f32.mrb[159].mxu1 }
 0x82b   : > { %10108 = vst.msk [vmem:[%s16662_s16 + $0x90] sm:$0xff] %vm957_vm2, %v10076_v8  ;;  %v9917_v5 = vadd.f32 %v16648_v12, %v9878_v48 }
 0x82c   : > { %10107 = vst.msk [vmem:[%s16662_s16 + $0x88] sm:$0xff] %vm957_vm2, %v10075_v58  ;;  %vm9950_vm7 = vcmp.ge.f32.partialorder %v9918_v2, 0.0  ;;  %v9982_v37 = vmul.f32 0.2, %v9918_v2  ;;  %v9919_v46 = vadd.f32 %v16648_v12, %v9880_v60 }
 0x82d   : > { %vm9949_vm9 = vcmp.ge.f32.partialorder %v9917_v5, 0.0  ;;  %v9981_v23 = vmul.f32 0.2, %v9917_v5 }
 0x82e   : > { %v10014_v50 = vsel %vm9950_vm7, %v9918_v2, %v9982_v37  ;;  %vm9951_vm10 = vcmp.ge.f32.partialorder %v9919_v46, 0.0  ;;  %v9983_v6 = vmul.f32 0.2, %v9919_v46 }
 0x82f   : > { %v10078_v43 = vadd.f32 %v10046_v29, %v10014_v50  ;;  %v10013_v49 = vsel %vm9949_vm9, %v9917_v5, %v9981_v23  ;;  %v12210_v27 = vpop.f32.mrb[160].mxu1 }
 0x830   : > { %v10077_v53 = vadd.f32 %v10045_v31, %v10013_v49  ;;  %v10015_v54 = vsel %vm9951_vm10, %v9919_v46, %v9983_v6  ;;  %v9882_v59 = vadd.f32 %v12210_v27, %v16616_v55  ;;  %v9802_v56 = vpop.f32.mrb[161].mxu1  ;;  %v10053_v31 = vld [vmem:[%s12856_s30 + $0x159] sm:$0xff]  ;;  %v10055_v6 = vld [vmem:[%s12856_s30 + $0x171] sm:$0xff] }
 0x831   : > { %10110 = vst.msk [vmem:[%s16662_s16 + $0xa0] sm:$0xff] %vm957_vm2, %v10078_v43  ;;  %v10079_v22 = vadd.f32 %v10047_v16, %v10015_v54  ;;  %v12211_v24 = vpop.f32.mrb[162].mxu1 }
 0x832   : > { %10109 = vst.msk [vmem:[%s16662_s16 + $0x98] sm:$0xff] %vm957_vm2, %v10077_v53  ;;  %v9921_v30 = vadd.f32 %v16648_v12, %v9882_v59  ;;  %v9804_v45 = vpop.f32.mrb[163].mxu1 }
 0x833   : > { %10111 = vst.msk [vmem:[%s16662_s16 + $0xa8] sm:$0xff] %vm957_vm2, %v10079_v22  ;;  %v9881_v52 = vadd.f32 %v9804_v45, %v16619_v34 }
 0x834   : > { %vm9953_vm11 = vcmp.ge.f32.partialorder %v9921_v30, 0.0  ;;  %v9985_v61 = vmul.f32 0.2, %v9921_v30 }
 0x835   : > { %v9920_v55 = vadd.f32 %v16648_v12, %v9881_v52 }
 0x836   : > { %v10017_v1 = vsel %vm9953_vm11, %v9921_v30, %v9985_v61 }
 0x837   : > { %v10081_v57 = vadd.f32 %v10049_v44, %v10017_v1  ;;  %vm9952_vm12 = vcmp.ge.f32.partialorder %v9920_v55, 0.0  ;;  %v9984_v26 = vmul.f32 0.2, %v9920_v55  ;;  %v12214_v40 = vpop.f32.mrb[164].mxu1 }
 0x838   : > { %v9816_v20 = vpop.f32.mrb[165].mxu1 }
 0x839   : > { %10113 = vst.msk [vmem:[%s16662_s16 + $0xb8] sm:$0xff] %vm957_vm2, %v10081_v57  ;;  %v10016_v18 = vsel %vm9952_vm12, %v9920_v55, %v9984_v26  ;;  %v9883_v34 = vadd.f32 %v9816_v20, %v16622_v32  ;;  %v12215_v17 = vpop.f32.mrb[166].mxu1  ;;  %v10056_v57 = vld [vmem:[%s12856_s30 + $0x181] sm:$0xff] }
 0x83a   : > { %v10080_v19 = vadd.f32 %v10048_v63, %v10016_v18  ;;  %v9885_v33 = vadd.f32 %v12215_v17, %v16625_v11  ;;  %v9819_v3 = vpop.f32.mrb[167].mxu1 }
 0x83b   : > { %v9922_v9 = vadd.f32 %v16648_v12, %v9883_v34  ;;  %v9884_v51 = vadd.f32 %v9819_v3, %v16628_v15 }
 0x83c   : > { %10112 = vst.msk [vmem:[%s16662_s16 + $0xb0] sm:$0xff] %vm957_vm2, %v10080_v19  ;;  %v9924_v41 = vadd.f32 %v16648_v12, %v9885_v33 }
 0x83d   : > { %vm9954_vm13 = vcmp.ge.f32.partialorder %v9922_v9, 0.0  ;;  %v9986_v42 = vmul.f32 0.2, %v9922_v9  ;;  %v9923_v62 = vadd.f32 %v16648_v12, %v9884_v51 }
 0x83e   : > { %vm9956_vm14 = vcmp.ge.f32.partialorder %v9924_v41, 0.0  ;;  %v9988_v32 = vmul.f32 0.2, %v9924_v41 }
 0x83f   : > { %v10018_v11 = vsel %vm9954_vm13, %v9922_v9, %v9986_v42  ;;  %vm9955_vm15 = vcmp.ge.f32.partialorder %v9923_v62, 0.0  ;;  %v9987_v21 = vmul.f32 0.2, %v9923_v62  ;;  %v12218_v47 = vpop.f32.mrb[168].mxu1 }
 0x840   : > { %v10082_v15 = vadd.f32 %v10050_v28, %v10018_v11  ;;  %v10020_v36 = vsel %vm9956_vm14, %v9924_v41, %v9988_v32  ;;  %v9887_v8 = vadd.f32 %v12218_v47, %v16631_v14  ;;  %v9831_v35 = vpop.f32.mrb[169].mxu1 }
 0x841   : > { %v10084_v48 = vadd.f32 %v10052_v7, %v10020_v36  ;;  %v10019_v38 = vsel %vm9955_vm15, %v9923_v62, %v9987_v21  ;;  %v9886_v58 = vadd.f32 %v9831_v35, %v16634_v0  ;;  %v12219_v2 = vpop.f32.mrb[170].mxu1  ;;  %v10054_v0 = vld [vmem:[%s12856_s30 + $0x169] sm:$0xff] }
 0x842   : > { %10114 = vst.msk [vmem:[%s16662_s16 + $0xc0] sm:$0xff] %vm957_vm2, %v10082_v15  ;;  %v10083_v60 = vadd.f32 %v10051_v4, %v10019_v38  ;;  %v9926_v13 = vadd.f32 %v16648_v12, %v9887_v8  ;;  %v9888_v5 = vadd.f32 %v12219_v2, %v16637_v10  ;;  %v9834_v37 = vpop.f32.mrb[171].mxu1 }
 0x843   : > { %10116 = vst.msk [vmem:[%s16662_s16 + $0xd0] sm:$0xff] %vm957_vm2, %v10084_v48  ;;  %v9925_v14 = vadd.f32 %v16648_v12, %v9886_v58 }
 0x844   : > { %10115 = vst.msk [vmem:[%s16662_s16 + $0xc8] sm:$0xff] %vm957_vm2, %v10083_v60  ;;  %vm9958_vm1 = vcmp.ge.f32.partialorder %v9926_v13, 0.0  ;;  %v9990_v29 = vmul.f32 0.2, %v9926_v13  ;;  %v9927_v46 = vadd.f32 %v16648_v12, %v9888_v5 }
 0x845   : > { %vm9957_vm4 = vcmp.ge.f32.partialorder %v9925_v14, 0.0  ;;  %v9989_v23 = vmul.f32 0.2, %v9925_v14 }
 0x846   : > { %v10022_v50 = vsel %vm9958_vm1, %v9926_v13, %v9990_v29  ;;  %vm9959_vm5 = vcmp.ge.f32.partialorder %v9927_v46, 0.0  ;;  %v9991_v10 = vmul.f32 0.2, %v9927_v46 }
 0x847   : > { %v10086_v16 = vadd.f32 %v10054_v0, %v10022_v50  ;;  %v10021_v43 = vsel %vm9957_vm4, %v9925_v14, %v9989_v23  ;;  %v12222_v49 = vpop.f32.mrb[172].mxu1 }
 0x848   : > { %v10085_v27 = vadd.f32 %v10053_v31, %v10021_v43  ;;  %v10023_v53 = vsel %vm9959_vm5, %v9927_v46, %v9991_v10  ;;  %v9890_v54 = vadd.f32 %v12222_v49, %v16640_v39  ;;  %v9846_v59 = vpop.f32.mrb[173].mxu1  ;;  %v10057_v39 = vld [vmem:[%s12856_s30 + $0x189] sm:$0xff] }
 0x849   : > { %10118 = vst.msk [vmem:[%s16662_s16 + $0xe0] sm:$0xff] %vm957_vm2, %v10086_v16  ;;  %v10087_v56 = vadd.f32 %v10055_v6, %v10023_v53  ;;  %v12223_v22 = vpop.f32.mrb[174].mxu1 }
 0x84a   : > { %10117 = vst.msk [vmem:[%s16662_s16 + $0xd8] sm:$0xff] %vm957_vm2, %v10085_v27  ;;  %v9929_v24 = vadd.f32 %v16648_v12, %v9890_v54  ;;  %v9848_v30 = vpop.f32.mrb[175].mxu1 }
 0x84b   : > { %10119 = vst.msk [vmem:[%s16662_s16 + $0xe8] sm:$0xff] %vm957_vm2, %v10087_v56  ;;  %v9889_v45 = vadd.f32 %v9848_v30, %v16643_v25 }
 0x84c   : > { %vm9961_vm0 = vcmp.ge.f32.partialorder %v9929_v24, 0.0  ;;  %v9993_v52 = vmul.f32 0.2, %v9929_v24 }
 0x84d   : > { %v9928_v61 = vadd.f32 %v16648_v12, %v9889_v45 }
 0x84e   : > { %v10025_v44 = vsel %vm9961_vm0, %v9929_v24, %v9993_v52 }
 0x84f   : > { %v10089_v55 = vadd.f32 %v10057_v39, %v10025_v44  ;;  %vm9960_vm3 = vcmp.ge.f32.partialorder %v9928_v61, 0.0  ;;  %v9992_v1 = vmul.f32 0.2, %v9928_v61 }
 0x851   : > { %10121 = vst.msk [vmem:[%s16662_s16 + $0xf8] sm:$0xff] %vm957_vm2, %v10089_v55  ;;  %v10024_v26 = vsel %vm9960_vm3, %v9928_v61, %v9992_v1 }
 0x852   : > { %v10088_v63 = vadd.f32 %v10056_v57, %v10024_v26 }
 0x854   : > { %10120 = vst.msk [vmem:[%s16662_s16 + $0xf0] sm:$0xff] %vm957_vm2, %v10088_v63 }
 0x855 PF: > { %s16_s21 = sadd.s32 1, %s12792_s21  }
 0x856   : > { %p13_p4 = scmp.ge.s32.totalorder %s16_s21, 4  }
 0x858   :  { %15 = sbr.rel (!%p13_p4) target bundleno = 1 (0x1), region = 90 }

</bundles_post_ra>
